<compile_context>
chip_gen: v6e
topology: v6e:2x2x1
jax: 0.10.0
libtpu: 0.0.40
codegen_flags: <defaults>
</compile_context>

<pallas_src>
import functools

import jax
import jax.numpy as jnp
from jax.experimental import pallas as pl
from jax.experimental.pallas import tpu as pltpu

EPS = 1e-5


def _round_up(x, m):
    return (x + m - 1) // m * m


def _conv3x3(src_ref, w_ref, *, hp, wp, off0):
    """3x3 'SAME' conv over a flat, zero-padded bf16 source ref.

    src_ref: (padt, C) bf16; data rows live at [off0 + wp + 1, ... + hp) in a
    (H, wp)-row-strided layout with the junk columns (>= W) zeroed so they
    double as the left/right halo.  w_ref: (3, 3C, C) bf16 with kw folded
    into the contraction dim.  Each kh band does one (hp, 3C) x (3C, C) MXU
    matmul with f32 accumulation.  Output rows follow the same (H, wp)
    layout; columns >= W of every row are junk (masked downstream).
    """
    acc = None
    for kh in range(3):
        base = off0 + kh * wp
        patch = jnp.concatenate(
            [src_ref[base + kw:base + kw + hp, :] for kw in range(3)],
            axis=-1)                                        # (hp, 3C) bf16
        tap = jnp.dot(patch, w_ref[kh], preferred_element_type=jnp.float32)
        acc = tap if acc is None else acc + tap
    return acc                                              # (hp, C) f32


def _instance_norm(acc, row_mask, inv_n, *, H, wp, C, relu, mask_out):
    """Non-affine InstanceNorm over the valid (col < W) spatial positions.

    Mask-free statistics on the (H, wp, C) view: reduce over H first (cheap
    slab adds), multiply the (wp, C) partials by the column mask, reduce over
    wp.  One-pass f32 sum / sum-of-squares.  Returns (H, wp, C) f32 with the
    junk columns zeroed iff mask_out.
    """
    acc3 = acc.reshape(H, wp, C)
    s1 = jnp.sum(acc3, axis=0)                              # (wp, C)
    s2 = jnp.sum(acc3 * acc3, axis=0)                       # (wp, C)
    s1 = jnp.sum(s1 * row_mask, axis=0, keepdims=True)      # (1, C)
    s2 = jnp.sum(s2 * row_mask, axis=0, keepdims=True)      # (1, C)
    mean = s1 * inv_n
    var = jnp.maximum(s2 * inv_n - mean * mean, 0.0)
    y = (acc3 - mean[None]) * jax.lax.rsqrt(var + EPS)[None]
    if relu:
        y = jnp.maximum(y, 0.0)
    if mask_out:
        y = y * row_mask[None]                              # zero junk cols
    return y


def residual_block_kernel(xp_ref, w1_ref, w2_ref, o_ref, pad_ref,
                          *, H, W, C, wp, data_off):
    hp = H * wp
    padt = pad_ref.shape[0]
    off0 = data_off - wp - 1          # read offset of tap (kh=0, kw=0)
    inv_n = 1.0 / (H * W)

    # (wp, C) column-validity mask — the only mask ever materialized.
    row_mask = (jax.lax.broadcasted_iota(jnp.int32, (wp, C), 0)
                < W).astype(jnp.float32)

    # ---- ConvBlock 1: conv3x3 + InstanceNorm + ReLU (conv bias cancels) ----
    acc1 = _conv3x3(xp_ref, w1_ref, hp=hp, wp=wp, off0=off0)
    y1 = _instance_norm(acc1, row_mask, inv_n, H=H, wp=wp, C=C,
                        relu=True, mask_out=True)

    # Rebuild the flat padded conv-2 source with one contiguous, 16-row
    # aligned bf16 store: the masked (zero) junk columns of y1 land exactly
    # on the halo positions conv2 reads, so only the small leading/trailing
    # pad regions need explicit zero-fill (everything is initialized -> no
    # stale/NaN reads, megacore-safe across grid steps).
    pad_ref[0:data_off, :] = jnp.zeros((data_off, C), jnp.bfloat16)
    pad_ref[data_off + hp:padt, :] = jnp.zeros(
        (padt - data_off - hp, C), jnp.bfloat16)
    pad_ref[data_off:data_off + hp, :] = (
        y1.reshape(hp, C).astype(jnp.bfloat16))

    # ---- ConvBlock 2: conv3x3 + InstanceNorm (no activation) ----
    acc2 = _conv3x3(pad_ref, w2_ref, hp=hp, wp=wp, off0=off0)
    y2 = _instance_norm(acc2, row_mask, inv_n, H=H, wp=wp, C=C,
                        relu=False, mask_out=False)

    # ---- residual add + single contiguous, unmasked output store ----
    # (junk columns carry finite garbage and are cropped by the wrapper)
    res = xp_ref[data_off:data_off + hp, :].astype(jnp.float32) \
        + y2.reshape(hp, C)
    o_ref[...] = res.astype(o_ref.dtype)


def residual_block(x_nhwc, w1, b1, w2, b2):
    """x_nhwc: (N, H, W, C) f32; w*: (3, 3, C, C) HWIO; b*: (C,) (unused —
    a Conv2d bias cancels exactly in the following non-affine InstanceNorm).
    """
    del b1, b2
    N, H, W, C = x_nhwc.shape

    wp = _round_up(W + 2, 8)            # padded row width (8-sublane aligned)
    hp = H * wp                         # rows of the row-strided conv layout
    data_off = _round_up(wp + 1, 16)    # 16-row (bf16) aligned data offset
    padt = _round_up(data_off + hp + wp + 1, 16)   # flat padded source length

    # Flat, zero-padded bf16 conv source built once in the wrapper (cheap
    # fused XLA copy): junk columns >= W of every row are zero (they double
    # as the left/right halo) and the leading/trailing zero rows form the
    # top/bottom halo.
    xb = x_nhwc.astype(jnp.bfloat16)
    xp = jnp.pad(xb, ((0, 0), (0, 0), (0, wp - W), (0, 0)))   # (N, H, wp, C)
    xp = xp.reshape(N, hp, C)
    xp = jnp.pad(xp, ((0, 0), (data_off, padt - data_off - hp), (0, 0)))

    # bf16 weights with kw folded into the contraction dim: (3, 3C, C).
    w1r = w1.astype(jnp.bfloat16).reshape(3, 3 * C, C)
    w2r = w2.astype(jnp.bfloat16).reshape(3, 3 * C, C)

    kernel = functools.partial(residual_block_kernel, H=H, W=W, C=C,
                               wp=wp, data_off=data_off)

    flops = 2 * N * 2 * hp * (3 * C) * C * 3           # 2 convs, 3 kh matmuls
    bytes_accessed = (N * padt * C * 2 + N * hp * C * 4
                      + 2 * 3 * 3 * C * C * 2)
    vmem_bytes = (2 * padt * C * 2          # double-buffered bf16 input block
                  + 2 * hp * C * 4          # double-buffered f32 output block
                  + padt * C * 2            # bf16 y1 staging scratch
                  + 2 * 2 * 3 * 3 * C * C * 2
                  + 8 * hp * C * 4)         # live f32/bf16 intermediates
    vmem_limit = int(min(64 * 1024 * 1024, max(16 * 1024 * 1024, vmem_bytes)))

    out_flat = pl.pallas_call(
        kernel,
        out_shape=jax.ShapeDtypeStruct((N, hp, C), x_nhwc.dtype),
        grid_spec=pltpu.PrefetchScalarGridSpec(
            num_scalar_prefetch=0,
            grid=(N,),
            in_specs=[
                pl.BlockSpec((None, padt, C), lambda n: (n, 0, 0)),
                # constant index_map -> weights stay VMEM-resident over N
                pl.BlockSpec((3, 3 * C, C), lambda n: (0, 0, 0)),
                pl.BlockSpec((3, 3 * C, C), lambda n: (0, 0, 0)),
            ],
            out_specs=pl.BlockSpec((None, hp, C), lambda n: (n, 0, 0)),
            scratch_shapes=[pltpu.VMEM((padt, C), jnp.bfloat16)],
        ),
        compiler_params=pltpu.CompilerParams(
            dimension_semantics=("parallel",),
            vmem_limit_bytes=vmem_limit),
        cost_estimate=pl.CostEstimate(flops=flops,
                                      transcendentals=4 * N * C,
                                      bytes_accessed=bytes_accessed),
    )(xp, w1r, w2r)

    # Padded, contiguous in-kernel store; crop the junk columns with XLA here
    # (cheap fused slice that overlaps the next grid step).
    return out_flat.reshape(N, H, wp, C)[:, :, :W, :]


# ----------------------------- references ----------------------------------

def _reference_f32(x, w1, b1, w2, b2):
    """Module-faithful f32 NHWC reference (conv bias included)."""
    def conv_block(x, w, b, relu):
        y = jax.lax.conv_general_dilated(
            x, w, window_strides=(1, 1), padding="SAME",
            dimension_numbers=("NHWC", "HWIO", "NHWC"))
        y = y + b.reshape(1, 1, 1, -1)
        mean = jnp.mean(y, axis=(1, 2), keepdims=True)
        var = jnp.mean(jnp.square(y - mean), axis=(1, 2), keepdims=True)
        y = (y - mean) / jnp.sqrt(var + EPS)
        return jnp.maximum(y, 0.0) if relu else y

    h = conv_block(x, w1, b1, relu=True)
    h = conv_block(h, w2, b2, relu=False)
    return x + h


def _reference_bf16(x, w1, w2):
    """bf16-consistent reference (same operand precision as the kernel)."""
    def conv(x, w):
        return jax.lax.conv_general_dilated(
            x.astype(jnp.bfloat16), w.astype(jnp.bfloat16),
            window_strides=(1, 1), padding="SAME",
            dimension_numbers=("NHWC", "HWIO", "NHWC"),
            preferred_element_type=jnp.float32)

    def inorm(y, relu):
        mean = jnp.mean(y, axis=(1, 2), keepdims=True)
        var = jnp.mean(jnp.square(y), axis=(1, 2), keepdims=True) - mean * mean
        y = (y - mean) * jax.lax.rsqrt(var + EPS)
        return jnp.maximum(y, 0.0) if relu else y

    h = inorm(conv(x, w1), relu=True)
    h = inorm(conv(h, w2), relu=False)
    return x.astype(jnp.bfloat16).astype(jnp.float32) + h


if __name__ == "__main__":
    key = jax.random.PRNGKey(0)
    N, H, W, C = 2, 16, 16, 8   # ResidualBlock(channels=8), small spatial

    kx, kw1, kb1, kw2, kb2 = jax.random.split(key, 5)
    x = jax.random.normal(kx, (N, H, W, C), dtype=jnp.float32)
    # HWIO conv weights (PyTorch stores OIHW; a real port transposes once).
    w1 = jax.random.normal(kw1, (3, 3, C, C), dtype=jnp.float32) * 0.1
    b1 = jax.random.normal(kb1, (C,), dtype=jnp.float32) * 0.1
    w2 = jax.random.normal(kw2, (3, 3, C, C), dtype=jnp.float32) * 0.1
    b2 = jax.random.normal(kb2, (C,), dtype=jnp.float32) * 0.1

    out = jax.block_until_ready(residual_block(x, w1, b1, w2, b2))
    assert out.shape == (N, H, W, C)

    # Tight check against a reference with the same operand precision (bf16
    # conv inputs/weights, f32 accumulation/stats, bf16 residual source) —
    # catches layout / indexing / statistics bugs.
    ref_bf16 = _reference_bf16(x, w1, w2)
    err_b = float(jnp.max(jnp.abs(out - ref_bf16)))
    assert jnp.allclose(out, ref_bf16, atol=1e-2, rtol=1e-2), err_b

    # Looser sanity check against the exact f32 PyTorch-module semantics
    # (with conv bias) — verifies bias cancellation and module equivalence.
    ref_f32 = _reference_f32(x, w1, b1, w2, b2)
    err_f = float(jnp.max(jnp.abs(out - ref_f32)))
    assert jnp.allclose(out, ref_f32, atol=1e-1, rtol=1e-1), err_f

    print("KERNEL_OK")
</pallas_src>

<mosaic_0001>
module attributes {stable_mosaic.version = 11 : i64} {
  func.func @residual_block_kernel(%arg0: i32, %arg1: memref<1x448x8xbf16, #tpu.memory_space<vmem>>, %arg2: memref<3x24x8xbf16, #tpu.memory_space<vmem>>, %arg3: memref<3x24x8xbf16, #tpu.memory_space<vmem>>, %arg4: memref<1x384x8xf32, #tpu.memory_space<vmem>>, %arg5: memref<448x8xbf16, #tpu.memory_space<vmem>>) attributes {dimension_semantics = [#tpu.dimension_semantics<parallel>], iteration_bounds = array<i64: 2>, scalar_prefetch = 0 : i64, scratch_operands = 1 : i64, tpu.core_type = #tpu.core_type<tc>, window_params = [{transform_indices = @transform_0, window_bounds = array<i64: 1, 448, 8>}, {pipeline_mode = #tpu.pipeline_mode<synchronous>, transform_indices = @transform_1, window_bounds = array<i64: 3, 24, 8>}, {pipeline_mode = #tpu.pipeline_mode<synchronous>, transform_indices = @transform_2, window_bounds = array<i64: 3, 24, 8>}, {transform_indices = @transform_3, window_bounds = array<i64: 1, 384, 8>}]} {
    %0 = tpu.iota {dimensions = array<i32: 0>} : vector<24x8xi32>
    %c16_i32 = arith.constant 16 : i32
    %1 = vector.broadcast %c16_i32 : i32 to vector<24x8xi32>
    %2 = arith.cmpi slt, %0, %1 : vector<24x8xi32>
    %3 = arith.extui %2 : vector<24x8xi1> to vector<24x8xi32>
    %4 = arith.sitofp %3 : vector<24x8xi32> to vector<24x8xf32>
    %c0 = arith.constant 0 : index
    %c7 = arith.constant 7 : index
    %c0_0 = arith.constant 0 : index
    %5 = vector.load %arg1[%c0, %c7, %c0_0] : memref<1x448x8xbf16, #tpu.memory_space<vmem>>, vector<1x384x8xbf16>
    %6 = vector.shape_cast %5 : vector<1x384x8xbf16> to vector<384x8xbf16>
    %c0_1 = arith.constant 0 : index
    %c8 = arith.constant 8 : index
    %c0_2 = arith.constant 0 : index
    %7 = vector.load %arg1[%c0_1, %c8, %c0_2] : memref<1x448x8xbf16, #tpu.memory_space<vmem>>, vector<1x384x8xbf16>
    %8 = vector.shape_cast %7 : vector<1x384x8xbf16> to vector<384x8xbf16>
    %c0_3 = arith.constant 0 : index
    %c9 = arith.constant 9 : index
    %c0_4 = arith.constant 0 : index
    %9 = vector.load %arg1[%c0_3, %c9, %c0_4] : memref<1x448x8xbf16, #tpu.memory_space<vmem>>, vector<1x384x8xbf16>
    %10 = vector.shape_cast %9 : vector<1x384x8xbf16> to vector<384x8xbf16>
    %11 = tpu.concatenate %6, %8, %10 in 1 : vector<384x8xbf16>, vector<384x8xbf16>, vector<384x8xbf16> -> vector<384x24xbf16>
    %c0_5 = arith.constant 0 : index
    %c0_6 = arith.constant 0 : index
    %c0_7 = arith.constant 0 : index
    %12 = vector.load %arg2[%c0_5, %c0_6, %c0_7] : memref<3x24x8xbf16, #tpu.memory_space<vmem>>, vector<1x24x8xbf16>
    %13 = vector.shape_cast %12 : vector<1x24x8xbf16> to vector<24x8xbf16>
    %cst = arith.constant dense<0.000000e+00> : vector<384x8xf32>
    %14 = tpu.matmul %11, %13, %cst {dimension_numbers = #tpu.dot_dimension_numbers<[1], [0], [0], [1], [0, 0, 1, 1], [], []>} : vector<384x24xbf16>, vector<24x8xbf16>, vector<384x8xf32> -> vector<384x8xf32>
    %c0_8 = arith.constant 0 : index
    %c31 = arith.constant 31 : index
    %c0_9 = arith.constant 0 : index
    %15 = vector.load %arg1[%c0_8, %c31, %c0_9] : memref<1x448x8xbf16, #tpu.memory_space<vmem>>, vector<1x384x8xbf16>
    %16 = vector.shape_cast %15 : vector<1x384x8xbf16> to vector<384x8xbf16>
    %c0_10 = arith.constant 0 : index
    %c32 = arith.constant 32 : index
    %c0_11 = arith.constant 0 : index
    %17 = vector.load %arg1[%c0_10, %c32, %c0_11] : memref<1x448x8xbf16, #tpu.memory_space<vmem>>, vector<1x384x8xbf16>
    %18 = vector.shape_cast %17 : vector<1x384x8xbf16> to vector<384x8xbf16>
    %c0_12 = arith.constant 0 : index
    %c33 = arith.constant 33 : index
    %c0_13 = arith.constant 0 : index
    %19 = vector.load %arg1[%c0_12, %c33, %c0_13] : memref<1x448x8xbf16, #tpu.memory_space<vmem>>, vector<1x384x8xbf16>
    %20 = vector.shape_cast %19 : vector<1x384x8xbf16> to vector<384x8xbf16>
    %21 = tpu.concatenate %16, %18, %20 in 1 : vector<384x8xbf16>, vector<384x8xbf16>, vector<384x8xbf16> -> vector<384x24xbf16>
    %c1 = arith.constant 1 : index
    %c0_14 = arith.constant 0 : index
    %c0_15 = arith.constant 0 : index
    %22 = vector.load %arg2[%c1, %c0_14, %c0_15] : memref<3x24x8xbf16, #tpu.memory_space<vmem>>, vector<1x24x8xbf16>
    %23 = vector.shape_cast %22 : vector<1x24x8xbf16> to vector<24x8xbf16>
    %cst_16 = arith.constant dense<0.000000e+00> : vector<384x8xf32>
    %24 = tpu.matmul %21, %23, %cst_16 {dimension_numbers = #tpu.dot_dimension_numbers<[1], [0], [0], [1], [0, 0, 1, 1], [], []>} : vector<384x24xbf16>, vector<24x8xbf16>, vector<384x8xf32> -> vector<384x8xf32>
    %25 = arith.addf %14, %24 : vector<384x8xf32>
    %c0_17 = arith.constant 0 : index
    %c55 = arith.constant 55 : index
    %c0_18 = arith.constant 0 : index
    %26 = vector.load %arg1[%c0_17, %c55, %c0_18] : memref<1x448x8xbf16, #tpu.memory_space<vmem>>, vector<1x384x8xbf16>
    %27 = vector.shape_cast %26 : vector<1x384x8xbf16> to vector<384x8xbf16>
    %c0_19 = arith.constant 0 : index
    %c56 = arith.constant 56 : index
    %c0_20 = arith.constant 0 : index
    %28 = vector.load %arg1[%c0_19, %c56, %c0_20] : memref<1x448x8xbf16, #tpu.memory_space<vmem>>, vector<1x384x8xbf16>
    %29 = vector.shape_cast %28 : vector<1x384x8xbf16> to vector<384x8xbf16>
    %c0_21 = arith.constant 0 : index
    %c57 = arith.constant 57 : index
    %c0_22 = arith.constant 0 : index
    %30 = vector.load %arg1[%c0_21, %c57, %c0_22] : memref<1x448x8xbf16, #tpu.memory_space<vmem>>, vector<1x384x8xbf16>
    %31 = vector.shape_cast %30 : vector<1x384x8xbf16> to vector<384x8xbf16>
    %32 = tpu.concatenate %27, %29, %31 in 1 : vector<384x8xbf16>, vector<384x8xbf16>, vector<384x8xbf16> -> vector<384x24xbf16>
    %c2 = arith.constant 2 : index
    %c0_23 = arith.constant 0 : index
    %c0_24 = arith.constant 0 : index
    %33 = vector.load %arg2[%c2, %c0_23, %c0_24] : memref<3x24x8xbf16, #tpu.memory_space<vmem>>, vector<1x24x8xbf16>
    %34 = vector.shape_cast %33 : vector<1x24x8xbf16> to vector<24x8xbf16>
    %cst_25 = arith.constant dense<0.000000e+00> : vector<384x8xf32>
    %35 = tpu.matmul %32, %34, %cst_25 {dimension_numbers = #tpu.dot_dimension_numbers<[1], [0], [0], [1], [0, 0, 1, 1], [], []>} : vector<384x24xbf16>, vector<24x8xbf16>, vector<384x8xf32> -> vector<384x8xf32>
    %36 = arith.addf %25, %35 : vector<384x8xf32>
    %37 = vector.shape_cast %36 : vector<384x8xf32> to vector<16x24x8xf32>
    %cst_26 = arith.constant dense<0.000000e+00> : vector<24x8xf32>
    %38 = vector.multi_reduction <add>, %37, %cst_26 [0] : vector<16x24x8xf32> to vector<24x8xf32>
    %39 = arith.mulf %37, %37 : vector<16x24x8xf32>
    %cst_27 = arith.constant dense<0.000000e+00> : vector<24x8xf32>
    %40 = vector.multi_reduction <add>, %39, %cst_27 [0] : vector<16x24x8xf32> to vector<24x8xf32>
    %41 = arith.mulf %38, %4 : vector<24x8xf32>
    %cst_28 = arith.constant dense<0.000000e+00> : vector<8xf32>
    %42 = vector.multi_reduction <add>, %41, %cst_28 [0] : vector<24x8xf32> to vector<8xf32>
    %43 = vector.shape_cast %42 : vector<8xf32> to vector<1x8xf32>
    %44 = arith.mulf %40, %4 : vector<24x8xf32>
    %cst_29 = arith.constant dense<0.000000e+00> : vector<8xf32>
    %45 = vector.multi_reduction <add>, %44, %cst_29 [0] : vector<24x8xf32> to vector<8xf32>
    %46 = vector.shape_cast %45 : vector<8xf32> to vector<1x8xf32>
    %cst_30 = arith.constant 3.906250e-03 : f32
    %47 = vector.broadcast %cst_30 : f32 to vector<1x8xf32>
    %48 = arith.mulf %43, %47 : vector<1x8xf32>
    %cst_31 = arith.constant 3.906250e-03 : f32
    %49 = vector.broadcast %cst_31 : f32 to vector<1x8xf32>
    %50 = arith.mulf %46, %49 : vector<1x8xf32>
    %51 = arith.mulf %48, %48 : vector<1x8xf32>
    %52 = arith.subf %50, %51 : vector<1x8xf32>
    %cst_32 = arith.constant 0.000000e+00 : f32
    %53 = vector.broadcast %cst_32 : f32 to vector<1x8xf32>
    %54 = arith.maximumf %52, %53 : vector<1x8xf32>
    %55 = vector.shape_cast %48 : vector<1x8xf32> to vector<1x1x8xf32>
    %56 = vector.broadcast %55 : vector<1x1x8xf32> to vector<16x24x8xf32>
    %57 = arith.subf %37, %56 : vector<16x24x8xf32>
    %cst_33 = arith.constant 9.99999974E-6 : f32
    %58 = vector.broadcast %cst_33 : f32 to vector<1x8xf32>
    %59 = arith.addf %54, %58 : vector<1x8xf32>
    %60 = math.rsqrt %59 : vector<1x8xf32>
    %61 = vector.shape_cast %60 : vector<1x8xf32> to vector<1x1x8xf32>
    %62 = vector.broadcast %61 : vector<1x1x8xf32> to vector<16x24x8xf32>
    %63 = arith.mulf %57, %62 : vector<16x24x8xf32>
    %cst_34 = arith.constant 0.000000e+00 : f32
    %64 = vector.broadcast %cst_34 : f32 to vector<16x24x8xf32>
    %65 = arith.maximumf %63, %64 : vector<16x24x8xf32>
    %66 = vector.shape_cast %4 : vector<24x8xf32> to vector<1x24x8xf32>
    %67 = vector.broadcast %66 : vector<1x24x8xf32> to vector<16x24x8xf32>
    %68 = arith.mulf %65, %67 : vector<16x24x8xf32>
    %cst_35 = arith.constant 0.000000e+00 : bf16
    %69 = vector.broadcast %cst_35 : bf16 to vector<32x8xbf16>
    %c0_36 = arith.constant 0 : index
    %c0_37 = arith.constant 0 : index
    %70 = vector.load %arg5[%c0_36, %c0_37] : memref<448x8xbf16, #tpu.memory_space<vmem>>, vector<32x8xbf16>
    tpu.vector_store %arg5[%c0_36, %c0_37], %69 {strides = array<i32>} : memref<448x8xbf16, #tpu.memory_space<vmem>>, vector<32x8xbf16>,
    %cst_38 = arith.constant 0.000000e+00 : bf16
    %71 = vector.broadcast %cst_38 : bf16 to vector<32x8xbf16>
    %c416 = arith.constant 416 : index
    %c0_39 = arith.constant 0 : index
    %72 = vector.load %arg5[%c416, %c0_39] : memref<448x8xbf16, #tpu.memory_space<vmem>>, vector<32x8xbf16>
    tpu.vector_store %arg5[%c416, %c0_39], %71 {strides = array<i32>} : memref<448x8xbf16, #tpu.memory_space<vmem>>, vector<32x8xbf16>,
    %73 = vector.shape_cast %68 : vector<16x24x8xf32> to vector<384x8xf32>
    %74 = arith.truncf %73 : vector<384x8xf32> to vector<384x8xbf16>
    %c32_40 = arith.constant 32 : index
    %c0_41 = arith.constant 0 : index
    %75 = vector.load %arg5[%c32_40, %c0_41] : memref<448x8xbf16, #tpu.memory_space<vmem>>, vector<384x8xbf16>
    tpu.vector_store %arg5[%c32_40, %c0_41], %74 {strides = array<i32>} : memref<448x8xbf16, #tpu.memory_space<vmem>>, vector<384x8xbf16>,
    %c7_42 = arith.constant 7 : index
    %c0_43 = arith.constant 0 : index
    %76 = vector.load %arg5[%c7_42, %c0_43] : memref<448x8xbf16, #tpu.memory_space<vmem>>, vector<384x8xbf16>
    %c8_44 = arith.constant 8 : index
    %c0_45 = arith.constant 0 : index
    %77 = vector.load %arg5[%c8_44, %c0_45] : memref<448x8xbf16, #tpu.memory_space<vmem>>, vector<384x8xbf16>
    %c9_46 = arith.constant 9 : index
    %c0_47 = arith.constant 0 : index
    %78 = vector.load %arg5[%c9_46, %c0_47] : memref<448x8xbf16, #tpu.memory_space<vmem>>, vector<384x8xbf16>
    %79 = tpu.concatenate %76, %77, %78 in 1 : vector<384x8xbf16>, vector<384x8xbf16>, vector<384x8xbf16> -> vector<384x24xbf16>
    %c0_48 = arith.constant 0 : index
    %c0_49 = arith.constant 0 : index
    %c0_50 = arith.constant 0 : index
    %80 = vector.load %arg3[%c0_48, %c0_49, %c0_50] : memref<3x24x8xbf16, #tpu.memory_space<vmem>>, vector<1x24x8xbf16>
    %81 = vector.shape_cast %80 : vector<1x24x8xbf16> to vector<24x8xbf16>
    %cst_51 = arith.constant dense<0.000000e+00> : vector<384x8xf32>
    %82 = tpu.matmul %79, %81, %cst_51 {dimension_numbers = #tpu.dot_dimension_numbers<[1], [0], [0], [1], [0, 0, 1, 1], [], []>} : vector<384x24xbf16>, vector<24x8xbf16>, vector<384x8xf32> -> vector<384x8xf32>
    %c31_52 = arith.constant 31 : index
    %c0_53 = arith.constant 0 : index
    %83 = vector.load %arg5[%c31_52, %c0_53] : memref<448x8xbf16, #tpu.memory_space<vmem>>, vector<384x8xbf16>
    %c32_54 = arith.constant 32 : index
    %c0_55 = arith.constant 0 : index
    %84 = vector.load %arg5[%c32_54, %c0_55] : memref<448x8xbf16, #tpu.memory_space<vmem>>, vector<384x8xbf16>
    %c33_56 = arith.constant 33 : index
    %c0_57 = arith.constant 0 : index
    %85 = vector.load %arg5[%c33_56, %c0_57] : memref<448x8xbf16, #tpu.memory_space<vmem>>, vector<384x8xbf16>
    %86 = tpu.concatenate %83, %84, %85 in 1 : vector<384x8xbf16>, vector<384x8xbf16>, vector<384x8xbf16> -> vector<384x24xbf16>
    %c1_58 = arith.constant 1 : index
    %c0_59 = arith.constant 0 : index
    %c0_60 = arith.constant 0 : index
    %87 = vector.load %arg3[%c1_58, %c0_59, %c0_60] : memref<3x24x8xbf16, #tpu.memory_space<vmem>>, vector<1x24x8xbf16>
    %88 = vector.shape_cast %87 : vector<1x24x8xbf16> to vector<24x8xbf16>
    %cst_61 = arith.constant dense<0.000000e+00> : vector<384x8xf32>
    %89 = tpu.matmul %86, %88, %cst_61 {dimension_numbers = #tpu.dot_dimension_numbers<[1], [0], [0], [1], [0, 0, 1, 1], [], []>} : vector<384x24xbf16>, vector<24x8xbf16>, vector<384x8xf32> -> vector<384x8xf32>
    %90 = arith.addf %82, %89 : vector<384x8xf32>
    %c55_62 = arith.constant 55 : index
    %c0_63 = arith.constant 0 : index
    %91 = vector.load %arg5[%c55_62, %c0_63] : memref<448x8xbf16, #tpu.memory_space<vmem>>, vector<384x8xbf16>
    %c56_64 = arith.constant 56 : index
    %c0_65 = arith.constant 0 : index
    %92 = vector.load %arg5[%c56_64, %c0_65] : memref<448x8xbf16, #tpu.memory_space<vmem>>, vector<384x8xbf16>
    %c57_66 = arith.constant 57 : index
    %c0_67 = arith.constant 0 : index
    %93 = vector.load %arg5[%c57_66, %c0_67] : memref<448x8xbf16, #tpu.memory_space<vmem>>, vector<384x8xbf16>
    %94 = tpu.concatenate %91, %92, %93 in 1 : vector<384x8xbf16>, vector<384x8xbf16>, vector<384x8xbf16> -> vector<384x24xbf16>
    %c2_68 = arith.constant 2 : index
    %c0_69 = arith.constant 0 : index
    %c0_70 = arith.constant 0 : index
    %95 = vector.load %arg3[%c2_68, %c0_69, %c0_70] : memref<3x24x8xbf16, #tpu.memory_space<vmem>>, vector<1x24x8xbf16>
    %96 = vector.shape_cast %95 : vector<1x24x8xbf16> to vector<24x8xbf16>
    %cst_71 = arith.constant dense<0.000000e+00> : vector<384x8xf32>
    %97 = tpu.matmul %94, %96, %cst_71 {dimension_numbers = #tpu.dot_dimension_numbers<[1], [0], [0], [1], [0, 0, 1, 1], [], []>} : vector<384x24xbf16>, vector<24x8xbf16>, vector<384x8xf32> -> vector<384x8xf32>
    %98 = arith.addf %90, %97 : vector<384x8xf32>
    %99 = vector.shape_cast %98 : vector<384x8xf32> to vector<16x24x8xf32>
    %cst_72 = arith.constant dense<0.000000e+00> : vector<24x8xf32>
    %100 = vector.multi_reduction <add>, %99, %cst_72 [0] : vector<16x24x8xf32> to vector<24x8xf32>
    %101 = arith.mulf %99, %99 : vector<16x24x8xf32>
    %cst_73 = arith.constant dense<0.000000e+00> : vector<24x8xf32>
    %102 = vector.multi_reduction <add>, %101, %cst_73 [0] : vector<16x24x8xf32> to vector<24x8xf32>
    %103 = arith.mulf %100, %4 : vector<24x8xf32>
    %cst_74 = arith.constant dense<0.000000e+00> : vector<8xf32>
    %104 = vector.multi_reduction <add>, %103, %cst_74 [0] : vector<24x8xf32> to vector<8xf32>
    %105 = vector.shape_cast %104 : vector<8xf32> to vector<1x8xf32>
    %106 = arith.mulf %102, %4 : vector<24x8xf32>
    %cst_75 = arith.constant dense<0.000000e+00> : vector<8xf32>
    %107 = vector.multi_reduction <add>, %106, %cst_75 [0] : vector<24x8xf32> to vector<8xf32>
    %108 = vector.shape_cast %107 : vector<8xf32> to vector<1x8xf32>
    %cst_76 = arith.constant 3.906250e-03 : f32
    %109 = vector.broadcast %cst_76 : f32 to vector<1x8xf32>
    %110 = arith.mulf %105, %109 : vector<1x8xf32>
    %cst_77 = arith.constant 3.906250e-03 : f32
    %111 = vector.broadcast %cst_77 : f32 to vector<1x8xf32>
    %112 = arith.mulf %108, %111 : vector<1x8xf32>
    %113 = arith.mulf %110, %110 : vector<1x8xf32>
    %114 = arith.subf %112, %113 : vector<1x8xf32>
    %cst_78 = arith.constant 0.000000e+00 : f32
    %115 = vector.broadcast %cst_78 : f32 to vector<1x8xf32>
    %116 = arith.maximumf %114, %115 : vector<1x8xf32>
    %117 = vector.shape_cast %110 : vector<1x8xf32> to vector<1x1x8xf32>
    %118 = vector.broadcast %117 : vector<1x1x8xf32> to vector<16x24x8xf32>
    %119 = arith.subf %99, %118 : vector<16x24x8xf32>
    %cst_79 = arith.constant 9.99999974E-6 : f32
    %120 = vector.broadcast %cst_79 : f32 to vector<1x8xf32>
    %121 = arith.addf %116, %120 : vector<1x8xf32>
    %122 = math.rsqrt %121 : vector<1x8xf32>
    %123 = vector.shape_cast %122 : vector<1x8xf32> to vector<1x1x8xf32>
    %124 = vector.broadcast %123 : vector<1x1x8xf32> to vector<16x24x8xf32>
    %125 = arith.mulf %119, %124 : vector<16x24x8xf32>
    %c0_80 = arith.constant 0 : index
    %c32_81 = arith.constant 32 : index
    %c0_82 = arith.constant 0 : index
    %126 = vector.load %arg1[%c0_80, %c32_81, %c0_82] : memref<1x448x8xbf16, #tpu.memory_space<vmem>>, vector<1x384x8xbf16>
    %127 = vector.shape_cast %126 : vector<1x384x8xbf16> to vector<384x8xbf16>
    %128 = arith.extf %127 : vector<384x8xbf16> to vector<384x8xf32>
    %129 = vector.shape_cast %125 : vector<16x24x8xf32> to vector<384x8xf32>
    %130 = arith.addf %128, %129 : vector<384x8xf32>
    %c0_83 = arith.constant 0 : index
    %c0_84 = arith.constant 0 : index
    %c0_85 = arith.constant 0 : index
    %131 = vector.load %arg4[%c0_83, %c0_84, %c0_85] : memref<1x384x8xf32, #tpu.memory_space<vmem>>, vector<1x384x8xf32>
    %132 = vector.shape_cast %131 : vector<1x384x8xf32> to vector<384x8xf32>
    %133 = vector.shape_cast %130 : vector<384x8xf32> to vector<1x384x8xf32>
    tpu.vector_store %arg4[%c0_83, %c0_84, %c0_85], %133 {strides = array<i32>} : memref<1x384x8xf32, #tpu.memory_space<vmem>>, vector<1x384x8xf32>,
    return
  }
  func.func @transform_0(%arg0: i32) -> (i32, i32, i32) {
    %c0_i32 = arith.constant 0 : i32
    %c0_i32_0 = arith.constant 0 : i32
    %c0_i32_1 = arith.constant 0 : i32
    return %arg0, %c0_i32, %c0_i32_0 : i32, i32, i32
  }
  func.func @transform_1(%arg0: i32) -> (i32, i32, i32) {
    %c0_i32 = arith.constant 0 : i32
    %c0_i32_0 = arith.constant 0 : i32
    %c0_i32_1 = arith.constant 0 : i32
    %c0_i32_2 = arith.constant 0 : i32
    return %c0_i32, %c0_i32_0, %c0_i32_1 : i32, i32, i32
  }
  func.func @transform_2(%arg0: i32) -> (i32, i32, i32) {
    %c0_i32 = arith.constant 0 : i32
    %c0_i32_0 = arith.constant 0 : i32
    %c0_i32_1 = arith.constant 0 : i32
    %c0_i32_2 = arith.constant 0 : i32
    return %c0_i32, %c0_i32_0, %c0_i32_1 : i32, i32, i32
  }
  func.func @transform_3(%arg0: i32) -> (i32, i32, i32) {
    %c0_i32 = arith.constant 0 : i32
    %c0_i32_0 = arith.constant 0 : i32
    %c0_i32_1 = arith.constant 0 : i32
    return %arg0, %c0_i32, %c0_i32_0 : i32, i32, i32
  }
}

</mosaic_0001>

<bundles_post_ra>
// kernel: tpu_custom_call.1
= control target key start
LH: loop header
LB: loop body
LE: loop exit
PB: predicated region body
PF: predicated region fallthrough
CT: control target
= control target key end

     0   :  { %s9821_s12 = smov 0   ;;  %s15705_s0 = inlined_call_operand.vmem [shape: bf16[2,448,8], index: 0, kind: input, shape index: {}]   ;;  %s15706_s1 = inlined_call_operand.vmem [shape: bf16[3,24,8], index: 1, kind: input, shape index: {}]   ;;  %s15707_s2 = inlined_call_operand.vmem [shape: bf16[3,24,8], index: 2, kind: input, shape index: {}]   ;;  %s15708_s3 = inlined_call_operand.vmem [shape: f32[2,384,8], index: 3, kind: output, shape index: {}]  }
   0x1 LB: > { %s8368_s13 = sadd.s32 4294967295, %s9796_s12   ;;  %p8372_p0 = scmp.ge.s32.totalorder %s9796_s12, 1  ;;  %s9796_s12 = sphi %s9821_s12, %s13_s12  }
   0x2   : > { %p137_p1 = scmp.lt.s32.totalorder %s9796_s12, 3 }
   0x4   : > { %p138_p2 = pnand %p8372_p0, %p137_p1 }
   0x6   : > { %141 = sbr.rel (%p138_p2) target bundleno = 1456 (0x5b0), region = 32 }
   0xb   : > { %p161_p3 = scmp.lt.s32.totalorder %s8368_s13, 1  ;;  %vm651_vm0 = vcmask 1042432   ;;  %s9798_s18 = smov 16   ;;  %vm382_vm1 = vsmask.f32 3328  ;;  %vm1633_vm2 = vcmask 1043456  }
   0xc   : > { %s9799_s19 = smov 8   ;;  %vm751_vm3 = vcmask 64512   ;;  %vm827_vm4 = vcmask 130048   ;;  %vm1351_vm5 = vsmask.f32 4352  ;;  %vm1560_vm6 = vcmask 195584  }
   0xd   : > { %s16574_s13 = smov (!%p161_p3, %s8368_s13), 1  ;;  %vm4080_vm7 = vcmask 60416  }
   0xe   : > { %s9447_s14 = smul.u32 224, %s16574_s13 }
  0x10   : > { %s9835_s17 = scalar_lea.vmem %s15705_s0, %s9447_s14 }
  0x11   : > { %v9838_v0 = vld [vmem:[%s9835_s17 + $0x10] sm:$0xf]  ;;  %v190_v1 = vld [vmem:[%s9835_s17 + $0x14] sm:$0xf]  ;;  %v191_v2 = vld [vmem:[%s9835_s17 + $0x18] sm:$0xf] }
  0x12   : > { %v9843_v3 = vcombine.low %v9838_v0, %v190_v1  ;;  %v9845_v4 = vcombine.low %v190_v1, %v191_v2  ;;  %v192_v5 = vld [vmem:[%s9835_s17 + $0x1c] sm:$0xf]  ;;  %v193_v6 = vld [vmem:[%s9835_s17 + $0x20] sm:$0xf]  ;;  %v194_v7 = vld [vmem:[%s9835_s17 + $0x24] sm:$0xf] }
  0x13   : > { %v9850_v8 = vcombine.low %v191_v2, %v192_v5  ;;  %v9852_v9 = vcombine.low %v192_v5, %v193_v6  ;;  %v9854_v10 = vcombine.low %v193_v6, %v194_v7  ;;  %v195_v11 = vld [vmem:[%s9835_s17 + $0x28] sm:$0xf]  ;;  %v9858_v12 = vld [vmem:[%s9835_s17 + $0x2c] sm:$0xf]  ;;  %v9861_v13 = vld [vmem:[%s9835_s17 + $0x30] sm:$0xf] }
  0x14   : > { %15928 = vst [vmem:[#allocation3_spill] sm:$0xff] %v9843_v3  ;;  %v1145_v14 = vrot.slane %v9843_v3, 5  ;;  %v9865_v15 = vcombine.low %v195_v11, %v9858_v12  ;;  %v9867_v16 = vcombine.low %v194_v7, %v195_v11  ;;  %v9870_v17 = vld [vmem:[%s9835_s17 + $0x34] sm:$0xf]  ;;  %v899_v18 = vshrl.u32 %v9843_v3, 16 }
  0x15   : > { %15929 = vst [vmem:[#allocation4_spill] sm:$0xff] %v9850_v8  ;;  %15930 = vst [vmem:[#allocation5_spill] sm:$0xff] %v9854_v10  ;;  %v1146_v19 = vrot.slane %v9850_v8, 5  ;;  %v1148_v20 = vrot.slane %v9854_v10, 5  ;;  %v9877_v21 = vcombine.low %v9861_v13, %v9870_v17  ;;  %v902_v22 = vshll.u32 %v9843_v3, 16 }
  0x16   : > { %15931 = vst [vmem:[#allocation6_spill] sm:$0xff] %v9865_v15  ;;  %1194 = vrot.lane.b32.xlu1 %v1145_v14, %s9798_s18  ;;  %v1150_v23 = vrot.slane %v9865_v15, 5  ;;  %v906_v24 = vshrl.u32 %v9850_v8, 16  ;;  %v909_v25 = vshll.u32 %v9850_v8, 16  ;;  %v901_v29 = vrot.slane %v899_v18, 4 }
  0x17   : > { %15932 = vst [vmem:[#allocation7_spill] sm:$0xff] %v9877_v21  ;;  %v1147_v26 = vsel %vm651_vm0, %v1145_v14, %v1146_v19  ;;  %v1149_v27 = vsel %vm651_vm0, %v1146_v19, %v1148_v20  ;;  %v1152_v28 = vrot.slane %v9877_v21, 5  ;;  %v9888_v30 = vld [vmem:[%s9835_s17 + $0x38] sm:$0xf]  ;;  %v904_v31 = vrot.slane %v902_v22, 5 }
  0x18   : > { %1196 = vrot.lane.b32.xlu0 %v1147_v26, %s9798_s18  ;;  %v908_v32 = vrot.slane %v906_v24, 4  ;;  %v911_v33 = vrot.slane %v909_v25, 5  ;;  %v914_v34 = vshrl.u32 %v9854_v10, 16  ;;  %v9893_v35 = vld [vmem:[%s9835_s17 + $0x3c] sm:$0xf]  ;;  %v1151_v36 = vsel %vm651_vm0, %v1148_v20, %v1150_v23 }
  0x19   : > { %v1153_v37 = vsel %vm651_vm0, %v1150_v23, %v1152_v28  ;;  %v917_v38 = vshll.u32 %v9854_v10, 16  ;;  %v922_v39 = vshrl.u32 %v9865_v15, 16  ;;  %v9902_v40 = vld [vmem:[%s9835_s17 + $0x40] sm:$0xf]  ;;  %v9905_v41 = vld [vmem:[%s9835_s17 + $0x44] sm:$0xf]  ;;  %v9913_v49 = vcombine.low %v9888_v30, %v9893_v35 }
  0x1a   : > { %1198 = vrot.lane.b32.xlu1 %v1149_v27, %s9798_s18  ;;  %v912_v42 = vor.u32 %v911_v33, %v908_v32  ;;  %v916_v43 = vrot.slane %v914_v34, 4  ;;  %v925_v44 = vshll.u32 %v9865_v15, 16  ;;  %v930_v45 = vshrl.u32 %v9877_v21, 16  ;;  %v9926_v61 = vld [vmem:[%s9835_s17 + $0x48] sm:$0xf] }
  0x1b   : > { %v919_v46 = vrot.slane %v917_v38, 5  ;;  %v924_v47 = vrot.slane %v922_v39, 4  ;;  %v933_v48 = vshll.u32 %v9877_v21, 16  ;;  %15933 = vst [vmem:[#allocation8_spill] sm:$0xff] %v9913_v49  ;;  %v905_v50 = vor.u32 %v904_v31, %v901_v29  ;;  %v9929_v62 = vld [vmem:[%s9835_s17 + $0x4c] sm:$0xf] }
  0x1c   : > { %1200 = vrot.lane.b32.xlu0 %v1151_v36, %s9798_s18  ;;  %v927_v51 = vrot.slane %v925_v44, 5  ;;  %v932_v52 = vrot.slane %v930_v45, 4  ;;  %v9918_v53 = vcombine.low %v9902_v40, %v9905_v41  ;;  %v938_v56 = vshrl.u32 %v9913_v49, 16  ;;  %v9933_v6 = vld [vmem:[%s9835_s17 + $0x50] sm:$0xf] }
  0x1d   : > { %v920_v54 = vor.u32 %v919_v46, %v916_v43  ;;  %v935_v55 = vrot.slane %v933_v48, 5  ;;  %v941_v57 = vshll.u32 %v9913_v49, 16  ;;  %v9936_v7 = vld [vmem:[%s9835_s17 + $0x54] sm:$0xf]  ;;  %v913_v18 = vsel %vm382_vm1, %v905_v50, %v912_v42  ;;  %v9950_v24 = vld [vmem:[%s9835_s17 + $0x58] sm:$0xf] }
  0x1e   : > { %15934 = vst [vmem:[#allocation9_spill] sm:$0xff] %v9918_v53  ;;  %1202 = vrot.lane.b32.xlu1 %v1153_v37, %s9798_s18  ;;  %v928_v58 = vor.u32 %v927_v51, %v924_v47  ;;  %v946_v59 = vshrl.u32 %v9918_v53, 16  ;;  %v949_v60 = vshll.u32 %v9918_v53, 16  ;;  %v940_v2 = vrot.slane %v938_v56, 4  ;;  %v9953_v25 = vld [vmem:[%s9835_s17 + $0x5c] sm:$0xf] }
  0x1f   : > { %v921_v63 = vsel %vm382_vm1, %v912_v42, %v920_v54  ;;  %v936_v1 = vor.u32 %v935_v55, %v932_v52  ;;  %v943_v5 = vrot.slane %v941_v57, 5  ;;  %v9942_v19 = vcombine.low %v9926_v61, %v9929_v62  ;;  %v9959_v31 = vld [vmem:[%s9835_s17 + $0x60] sm:$0xf]  ;;  %v9962_v32 = vld [vmem:[%s9835_s17 + $0x64] sm:$0xf] }
  0x20   : > { %1092 = vrot.lane.b32.xlu0 %v905_v50, %s9799_s19  ;;  %v948_v11 = vrot.slane %v946_v59, 4  ;;  %v951_v14 = vrot.slane %v949_v60, 5  ;;  %v9947_v23 = vcombine.low %v9933_v6, %v9936_v7  ;;  %v929_v36 = vsel %vm382_vm1, %v920_v54, %v928_v58  ;;  %v9993_v59 = vld [vmem:[%s9835_s17 + $0x6c] sm:$0xf]  ;;  %v9996_v60 = vld [vmem:[%s9835_s17 + $0x70] sm:$0xf] }
  0x21   : > { %15935 = vst [vmem:[#allocation10_spill] sm:$0xff] %v9942_v19  ;;  %v944_v20 = vor.u32 %v943_v5, %v940_v2  ;;  %v937_v26 = vsel %vm382_vm1, %v928_v58, %v936_v1  ;;  %v954_v27 = vshrl.u32 %v9942_v19, 16  ;;  %v957_v29 = vshll.u32 %v9942_v19, 16  ;;  %v9989_v58 = vld [vmem:[%s9835_s17 + $0x68] sm:$0xf] }
  0x22   : > { %1096 = vrot.lane.b32.xlu1 %v921_v63, %s9799_s19  ;;  %v952_v22 = vor.u32 %v951_v14, %v948_v11  ;;  %15936 = vst [vmem:[#allocation11_spill] sm:$0xff] %v9947_v23  ;;  %v962_v33 = vshrl.u32 %v9947_v23, 16  ;;  %v965_v34 = vshll.u32 %v9947_v23, 16  ;;  %v1154_v37 = vrot.slane %v9913_v49, 5  ;;  %v9999_v63 = vld [vmem:[%s9835_s17 + $0x74] sm:$0xf] }
  0x23   : > { %v1156_v39 = vrot.slane %v9918_v53, 5  ;;  %v9974_v42 = vcombine.low %v9950_v24, %v9953_v25  ;;  %v9978_v43 = vcombine.low %v9959_v31, %v9962_v32  ;;  %v956_v44 = vrot.slane %v954_v27, 4  ;;  %v188_v8 = vld [vmem:[%s9835_s17 + $0xc] sm:$0xf] }
  0x24   : > { %1094 = vrot.lane.b32.xlu0 %v913_v18, %s9799_s19  ;;  %v953_v38 = vsel %vm382_vm1, %v944_v20, %v952_v22  ;;  %v959_v45 = vrot.slane %v957_v29, 5  ;;  %v964_v46 = vrot.slane %v962_v33, 4  ;;  %v967_v47 = vrot.slane %v965_v34, 5 }
  0x25   : > { %15937 = vst [vmem:[#allocation12_spill] sm:$0xff] %v9974_v42  ;;  %15938 = vst [vmem:[#allocation13_spill] sm:$0xff] %v9978_v43  ;;  %v945_v48 = vsel %vm382_vm1, %v936_v1, %v944_v20  ;;  %v970_v50 = vshrl.u32 %v9974_v42, 16  ;;  %v973_v51 = vshll.u32 %v9974_v42, 16  ;;  %v978_v52 = vshrl.u32 %v9978_v43, 16 }
  0x26   : > { %1100 = vrot.lane.b32.xlu1 %v937_v26, %s9799_s19  ;;  %v981_v54 = vshll.u32 %v9978_v43, 16  ;;  %v1157_v55 = vsel %vm651_vm0, %v1154_v37, %v1156_v39  ;;  %v960_v56 = vor.u32 %v959_v45, %v956_v44  ;;  %v968_v57 = vor.u32 %v967_v47, %v964_v46  ;;  %v10027_v44 = vld [vmem:[%s9835_s17 + $0x80] sm:$0xf] }
  0x27   : > { %v1155_v1 = vsel %vm651_vm0, %v1152_v28, %v1154_v37  ;;  %v1158_v2 = vrot.slane %v9942_v19, 5  ;;  %v1160_v5 = vrot.slane %v9947_v23, 5  ;;  %v972_v11 = vrot.slane %v970_v50, 4  ;;  %v10021_v37 = vld [vmem:[%s9835_s17 + $0x78] sm:$0xf] }
  0x28   : > { %1098 = vrot.lane.b32.xlu0 %v929_v36, %s9799_s19  ;;  %v975_v14 = vrot.slane %v973_v51, 5  ;;  %v980_v18 = vrot.slane %v978_v52, 4  ;;  %v983_v20 = vrot.slane %v981_v54, 5  ;;  %v969_v26 = vsel %vm382_vm1, %v960_v56, %v968_v57  ;;  %v226_v23 = vld [vmem:[%s9835_s17 + $0xa4] sm:$0xf] }
  0x29   : > { %v10010_v27 = vcombine.low %v9989_v58, %v9993_v59  ;;  %v10014_v28 = vcombine.low %v9996_v60, %v9999_v63  ;;  %v961_v29 = vsel %vm382_vm1, %v952_v22, %v960_v56  ;;  %v1161_v33 = vsel %vm651_vm0, %v1158_v2, %v1160_v5 }
  0x2a   : > { %1104 = vrot.lane.b32.xlu1 %v953_v38, %s9799_s19  ;;  %v976_v34 = vor.u32 %v975_v14, %v972_v11  ;;  %v984_v36 = vor.u32 %v983_v20, %v980_v18  ;;  %v10024_v38 = vld [vmem:[%s9835_s17 + $0x7c] sm:$0xf]  ;;  %v1159_v50 = vsel %vm651_vm0, %v1156_v39, %v1158_v2  ;;  %v1162_v51 = vrot.slane %v9974_v42, 5 }
  0x2b   : > { %15939 = vst [vmem:[#allocation14_spill] sm:$0xff] %v10010_v27  ;;  %15940 = vst [vmem:[#allocation15_spill] sm:$0xff] %v10014_v28  ;;  %v986_v45 = vshrl.u32 %v10010_v27, 16  ;;  %v989_v46 = vshll.u32 %v10010_v27, 16  ;;  %v994_v47 = vshrl.u32 %v10014_v28, 16  ;;  %v997_v22 = vshll.u32 %v10014_v28, 16 }
  0x2c   : > { %1102 = vrot.lane.b32.xlu0 %v945_v48, %s9799_s19  ;;  %v10034_v48 = vld [vmem:[%s9835_s17 + $0x84] sm:$0xf]  ;;  %v985_v52 = vsel %vm382_vm1, %v976_v34, %v984_v36  ;;  %v1164_v54 = vrot.slane %v9978_v43, 5  ;;  %v977_v14 = vsel %vm382_vm1, %v968_v57, %v976_v34  ;;  %v10065_v34 = vld [vmem:[%s9835_s17 + $0x90] sm:$0xf] }
  0x2d   : > { %15941 = vst [vmem:[#allocation16_spill] sm:$0xff] %v10034_v48  ;;  %v10048_v56 = vcombine.low %v10027_v44, %v10034_v48  ;;  %v991_v39 = vrot.slane %v989_v46, 5  ;;  %v996_v2 = vrot.slane %v994_v47, 4  ;;  %v999_v11 = vrot.slane %v997_v22, 5  ;;  %v222_v22 = vld [vmem:[%s9835_s17 + $0x94] sm:$0xf] }
  0x2e   : > { %1206 = vrot.lane.b32.xlu1 %v1157_v55, %s9798_s18  ;;  %v10044_v55 = vcombine.low %v10021_v37, %v10024_v38  ;;  %v1165_v18 = vsel %vm651_vm0, %v1162_v51, %v1164_v54 }
  0x2f   : > { %15943 = vst [vmem:[#allocation18_spill] sm:$0xff] %v10048_v56  ;;  %v1000_v46 = vor.u32 %v999_v11, %v996_v2  ;;  %v1010_v47 = vshrl.u32 %v10048_v56, 16  ;;  %v1013_v57 = vshll.u32 %v10048_v56, 16  ;;  %v1168_v2 = vrot.slane %v10014_v28, 5 }
  0x30   : > { %1204 = vrot.lane.b32.xlu0 %v1155_v1, %s9798_s18  ;;  %15942 = vst [vmem:[#allocation17_spill] sm:$0xff] %v10044_v55  ;;  %v988_v1 = vrot.slane %v986_v45, 4  ;;  %v1002_v20 = vshrl.u32 %v10044_v55, 16  ;;  %v15722_v53 = vrot.slane %v10048_v56, 5 }
  0x31   : > { %v1012_v19 = vrot.slane %v1010_v47, 4 }
  0x32   : > { %1108 = vrot.lane.b32.xlu1 %v969_v26, %s9799_s19  ;;  %v1005_v26 = vshll.u32 %v10044_v55, 16  ;;  %v992_v45 = vor.u32 %v991_v39, %v988_v1  ;;  %v223_v1 = vld [vmem:[%s9835_s17 + $0x98] sm:$0xf]  ;;  %v10077_v39 = vld [vmem:[%s9835_s17 + $0x9c] sm:$0xf]  ;;  %v1004_v11 = vrot.slane %v1002_v20, 4 }
  0x33   : > { %15947 = vst [vmem:[#allocation22_spill] sm:$0xff] %v10077_v39  ;;  %v10097_v47 = vcombine.low %v223_v1, %v10077_v39 }
  0x34   : > { %1106 = vrot.lane.b32.xlu0 %v961_v29, %s9799_s19  ;;  %v10057_v29 = vld [vmem:[%s9835_s17 + $0x88] sm:$0xf]  ;;  %v1007_v43 = vrot.slane %v1005_v26, 5  ;;  %v993_v49 = vsel %vm382_vm1, %v984_v36, %v992_v45 }
  0x35   : > { %15944 = vst [vmem:[#allocation19_spill] sm:$0xff] %v10057_v29  ;;  %15950 = vst [vmem:[#allocation25_spill] sm:$0xff] %v10097_v47 }
  0x36   : > { %1210 = vrot.lane.b32.xlu1 %v1161_v33, %s9798_s18  ;;  %v10060_v33 = vld [vmem:[%s9835_s17 + $0x8c] sm:$0xf] }
  0x37   : > { %15945 = vst [vmem:[#allocation20_spill] sm:$0xff] %v10060_v33  ;;  %v10073_v42 = vcombine.low %v10057_v29, %v10060_v33  ;;  %v657_v33 = vrot.slane %v9852_v9, 5 }
  0x38   : > { %1208 = vrot.lane.b32.xlu0 %v1159_v50, %s9798_s18  ;;  %v1166_v50 = vrot.slane %v10010_v27, 5  ;;  %v1001_v27 = vsel %vm382_vm1, %v992_v45, %v1000_v46  ;;  %v1170_v45 = vrot.slane %v10044_v55, 5 }
  0x39   : > { %15946 = vst [vmem:[#allocation21_spill] sm:$0xff] %v10073_v42  ;;  %v1021_v20 = vshll.u32 %v10073_v42, 16 }
  0x3a   : > { %1112 = vrot.lane.b32.xlu1 %v985_v52, %s9799_s19  ;;  %v1163_v52 = vsel %vm651_vm0, %v1160_v5, %v1162_v51  ;;  %v1015_v5 = vrot.slane %v1013_v57, 5  ;;  %v10087_v51 = vld [vmem:[%s9835_s17 + $0xa0] sm:$0xf]  ;;  %v1169_v57 = vsel %vm651_vm0, %v1166_v50, %v1168_v2 }
  0x3b   : > { %15949 = vst [vmem:[#allocation24_spill] sm:$0xff] %v10087_v51  ;;  %v10101_v36 = vcombine.low %v10087_v51, %v226_v23  ;;  %v1023_v21 = vrot.slane %v1021_v20, 5  ;;  %v1034_v23 = vshrl.u32 %v10097_v47, 16  ;;  %v1173_v20 = vsel %vm651_vm0, %v1170_v45, %v15722_v53 }
  0x3c   : > { %1110 = vrot.lane.b32.xlu0 %v977_v14, %s9799_s19  ;;  %v10082_v14 = vcombine.low %v10065_v34, %v222_v22  ;;  %v1016_v28 = vor.u32 %v1015_v5, %v1012_v19  ;;  %v10117_v5 = vcombine.low %v188_v8, %v9838_v0  ;;  %v10134_v8 = vld [vmem:[%s9835_s17 + $0xb0] sm:$0xf]  ;;  %v404_v53 = vshll.u32 %v9845_v4, 16 }
  0x3d   : > { %15951 = vst [vmem:[#allocation26_spill] sm:$0xff] %v10101_v36  ;;  %v1036_v55 = vrot.slane %v1034_v23, 4  ;;  %15954 = vst [vmem:[#allocation29_spill] sm:$0xff] %v10134_v8 }
  0x3e   : > { %1214 = vrot.lane.b32.xlu1 %v1165_v18, %s9798_s18  ;;  %15948 = vst [vmem:[#allocation23_spill] sm:$0xff] %v10082_v14  ;;  %v1018_v18 = vshrl.u32 %v10073_v42, 16  ;;  %v1026_v26 = vshrl.u32 %v10082_v14, 16  ;;  %v1029_v22 = vshll.u32 %v10082_v14, 16 }
  0x40   : > { %1212 = vrot.lane.b32.xlu0 %v1163_v52, %s9798_s18  ;;  %v1008_v52 = vor.u32 %v1007_v43, %v1004_v11  ;;  %v1020_v15 = vrot.slane %v1018_v18, 4  ;;  %v1028_v43 = vrot.slane %v1026_v26, 4  ;;  %v1031_v19 = vrot.slane %v1029_v22, 5 }
  0x41   : > { %v1045_v11 = vshll.u32 %v10101_v36, 16  ;;  %v1174_v22 = vrot.slane %v10073_v42, 5 }
  0x42   : > { %1116 = vrot.lane.b32.xlu1 %v1001_v27, %s9799_s19  ;;  %v1167_v27 = vsel %vm651_vm0, %v1164_v54, %v1166_v50  ;;  %v1017_v1 = vsel %vm382_vm1, %v1008_v52, %v1016_v28  ;;  %v1042_v54 = vshrl.u32 %v10101_v36, 16  ;;  %v1171_v50 = vsel %vm651_vm0, %v1168_v2, %v1170_v45 }
  0x43   : > { %v1009_v18 = vsel %vm382_vm1, %v1000_v46, %v1008_v52  ;;  %v1024_v26 = vor.u32 %v1023_v21, %v1020_v15  ;;  %v10131_v2 = vor.u32 %v1031_v19, %v1028_v43  ;;  %v392_v46 = vshrl.u32 %v10117_v5, 16  ;;  %v230_v15 = vld [vmem:[%s9835_s17 + $0xb4] sm:$0xf] }
  0x44   : > { %1114 = vrot.lane.b32.xlu0 %v993_v49, %s9799_s19  ;;  %v1037_v49 = vshll.u32 %v10097_v47, 16  ;;  %v395_v52 = vshll.u32 %v10117_v5, 16  ;;  %v1044_v45 = vrot.slane %v1042_v54, 4  ;;  %v401_v21 = vshrl.u32 %v9845_v4, 16 }
  0x45   : > { %v1047_v42 = vrot.slane %v1045_v11, 5  ;;  %v15728_v19 = vrot.slane %v10117_v5, 5  ;;  %v655_v54 = vrot.slane %v9845_v4, 5  ;;  %v1025_v11 = vsel %vm382_vm1, %v1016_v28, %v1024_v26 }
  0x46   : > { %1218 = vrot.lane.b32.xlu1 %v1169_v57, %s9798_s18  ;;  %v10125_v57 = vld [vmem:[%s9835_s17 + $0xa8] sm:$0xf]  ;;  %v1039_v10 = vrot.slane %v1037_v49, 5  ;;  %v397_v43 = vrot.slane %v395_v52, 5  ;;  %v403_v3 = vrot.slane %v401_v21, 4  ;;  %v406_v49 = vrot.slane %v404_v53, 5 }
  0x47   : > { %15952 = vst [vmem:[#allocation27_spill] sm:$0xff] %v10125_v57  ;;  %v1033_v52 = vsel %vm382_vm1, %v1024_v26, %v10131_v2  ;;  %v15959_v28 = vrot.slane %v10082_v14, 5  ;;  %v15961_v26 = vrot.slane %v10101_v36, 5 }
  0x48   : > { %1216 = vrot.lane.b32.xlu0 %v1167_v27, %s9798_s18  ;;  %v10128_v27 = vld [vmem:[%s9835_s17 + $0xac] sm:$0xf]  ;;  %v407_v53 = vor.u32 %v406_v49, %v403_v3  ;;  %v1040_v39 = vor.u32 %v1039_v10, %v1036_v55  ;;  %v10175_v3 = vld [vmem:[%s9835_s17 + $0xc0] sm:$0xf]  ;;  %v15960_v55 = vrot.slane %v10048_v56, 5 }
  0x49   : > { %15953 = vst [vmem:[#allocation28_spill] sm:$0xff] %v10128_v27  ;;  %v10145_v23 = vcombine.low %v10125_v57, %v10128_v27  ;;  %v10168_v57 = vld [vmem:[%s9835_s17 + $0xbc] sm:$0xf]  ;;  %15958 = vst [vmem:[#allocation33_spill] sm:$0xff] %v10175_v3 }
  0x4a   : > { %1120 = vrot.lane.b32.xlu1 %v1017_v1, %s9799_s19  ;;  %v394_v1 = vrot.slane %v392_v46, 4  ;;  %v10153_v46 = vcombine.low %v10134_v8, %v230_v15  ;;  %15957 = vst [vmem:[#allocation32_spill] sm:$0xff] %v10168_v57  ;;  %v10170_v15 = vor.u32 %v1047_v42, %v1044_v45  ;;  %v1177_v42 = vsel %vm651_vm0, %v1174_v22, %v15959_v28 }
  0x4b   : > { %15955 = vst [vmem:[#allocation30_spill] sm:$0xff] %v10145_v23  ;;  %v1050_v27 = vshrl.u32 %v10145_v23, 16  ;;  %v15962_v45 = vrot.slane %v10097_v47, 5  ;;  %v410_v28 = vshrl.u32 %v9852_v9, 16 }
  0x4c   : > { %1118 = vrot.lane.b32.xlu0 %v1009_v18, %s9799_s19  ;;  %15956 = vst [vmem:[#allocation31_spill] sm:$0xff] %v10153_v46  ;;  %v10157_v21 = vor.u32 %v397_v43, %v394_v1  ;;  %v231_v18 = vld [vmem:[%s9835_s17 + $0xb8] sm:$0xf]  ;;  %v1053_v1 = vshll.u32 %v10145_v23, 16  ;;  %v882_v43 = vld [vmem:[%s9835_s17 + $0xc4] sm:$0xf] }
  0x4d   : > { %v1058_v10 = vshrl.u32 %v10153_v46, 16  ;;  %v1061_v8 = vshll.u32 %v10153_v46, 16  ;;  %v10201_v51 = vcombine.low %v10175_v3, %v882_v43  ;;  %v1052_v56 = vrot.slane %v1050_v27, 4 }
  0x4e   : > { %1222 = vrot.lane.b32.xlu1 %v1173_v20, %s9798_s18  ;;  %v10162_v20 = vsel %vm651_vm0, %v15728_v19, %v655_v54  ;;  %v10180_v49 = vsel %vm382_vm1, %v10157_v21, %v407_v53  ;;  %v1181_v19 = vsel %vm651_vm0, %v15962_v45, %v15961_v26  ;;  %v1055_v48 = vrot.slane %v1053_v1, 5  ;;  %v9498_v1 = vld [vmem:[%s15706_s1 + $0xc] sm:$0xff]  }
  0x4f   : > { %v419_v26 = vshrl.u32 %v9867_v16, 16  ;;  %v412_v43 = vrot.slane %v410_v28, 4  ;;  %v1063_v3 = vrot.slane %v1061_v8, 5  ;;  %v15737_v27 = vrot.slane %v9867_v16, 5 }
  0x50   : > { %1220 = vrot.lane.b32.xlu0 %v1171_v50, %s9798_s18  ;;  %v1175_v50 = vsel %vm651_vm0, %v15960_v55, %v1174_v22  ;;  %v413_v22 = vshll.u32 %v9852_v9, 16  ;;  %v1049_v55 = vsel %vm382_vm1, %v1040_v39, %v10170_v15 }
  0x51   : > { %v421_v29 = vrot.slane %v419_v26, 4  ;;  %v10225_v8 = vsel %vm651_vm0, %v657_v33, %v15737_v27  ;;  %v10228_v26 = vsel %vm651_vm0, %v655_v54, %v657_v33  ;;  %v1075_v33 = vshrl.u32 %v10201_v51, 16 }
  0x52   : > { %1124 = vrot.lane.b32.xlu1 %v1033_v52, %s9799_s19  ;;  %v10198_v52 = vcombine.low %v231_v18, %v10168_v57  ;;  %v1060_v18 = vrot.slane %v1058_v10, 4  ;;  %v415_v45 = vrot.slane %v413_v22, 5  ;;  %v422_v57 = vshll.u32 %v9867_v16, 16 }
  0x53   : > { %v1078_v54 = vshll.u32 %v10201_v51, 16 }
  0x54   : > { %1122 = vrot.lane.b32.xlu0 %v1025_v11, %s9799_s19  ;;  %15963 = vst [vmem:[#allocation34_spill] sm:$0xff] %v10198_v52  ;;  %v9494_v11 = vld [vmem:[%s15706_s1 + $0x14] ss:$0 sps:$4 sm:$0xff]   ;;  %v416_v10 = vor.u32 %v415_v45, %v412_v43  ;;  %v424_v28 = vrot.slane %v422_v57, 5  ;;  %v1066_v22 = vshrl.u32 %v10198_v52, 16  ;;  %v1069_v57 = vshll.u32 %v10198_v52, 16 }
  0x55   : > { %9441 = vmatprep.subr.msk.bf16.mxu0 %vm1633_vm2, %v9494_v11  ;;  %v1064_v45 = vor.u32 %v1063_v3, %v1060_v18  ;;  %v10256_v3 = vld [vmem:[%s9835_s17 + $0xc8] sm:$0xf]  ;;  %v10262_v18 = vld [vmem:[%s9835_s17 + $0xcc] sm:$0xf] }
  0x56   : > { %1226 = vrot.lane.b32.xlu1 %v1177_v42, %s9798_s18  ;;  %v1041_v42 = vsel %vm382_vm1, %v10131_v2, %v1040_v39  ;;  %v1056_v39 = vor.u32 %v1055_v48, %v1052_v56  ;;  %v10234_v2 = vor.u32 %v424_v28, %v421_v29  ;;  %v10237_v43 = vsel %vm382_vm1, %v407_v53, %v416_v10 }
  0x57   : > { %v15964_v56 = vrot.slane %v10097_v47, 5  ;;  %v15965_v29 = vrot.slane %v10082_v14, 5  ;;  %15966 = vst [vmem:[#allocation35_spill] sm:$0xff] %v10256_v3  ;;  %15967 = vst [vmem:[#allocation36_spill] sm:$0xff] %v10262_v18  ;;  %v1077_v28 = vrot.slane %v1075_v33, 4 }
  0x58   : > { %1224 = vrot.lane.b32.xlu0 %v1175_v50, %s9798_s18  ;;  %v1635_v50 = vsel %vm1633_vm2, %v9494_v11, 0  ;;  %v10243_v11 = vcombine.low %v9893_v35, %v9902_v40  ;;  %v10248_v48 = vsel %vm382_vm1, %v416_v10, %v10234_v2  ;;  %v1182_v35 = vrot.slane %v10145_v23, 5 }
  0x59   : > { %9130 = vmatpush3.bf16.msra.mxu0 %v1635_v50  ;;  %v1179_v53 = vsel %vm651_vm0, %v15965_v29, %v15964_v56  ;;  %v1184_v40 = vrot.slane %v10153_v46, 5  ;;  %v1071_v10 = vrot.slane %v1069_v57, 5  ;;  %v1080_v50 = vrot.slane %v1078_v54, 5  ;;  %v186_v29 = vld [vmem:[%s9835_s17 + $0x4] sm:$0xf] }
  0x5a   : > { %1128 = vrot.lane.b32.xlu1 %v1049_v55, %s9799_s19  ;;  %9131 = vmatprep.subr.bf16.mxu0 %v9498_v1  ;;  %v1068_v55 = vrot.slane %v1066_v22, 4  ;;  %v10268_v56 = vcombine.low %v9870_v17, %v9888_v30  ;;  %v10274_v22 = vcombine.low %v10256_v3, %v10262_v18  ;;  %v10280_v57 = vcombine.low %v9929_v62, %v9933_v6 }
  0x5b   : > { %v1185_v33 = vsel %vm651_vm0, %v1182_v35, %v1184_v40  ;;  %v1081_v17 = vor.u32 %v1080_v50, %v1077_v28  ;;  %v10301_v50 = vcombine.low %v9905_v41, %v9926_v61 }
  0x5c   : > { %1126 = vrot.lane.b32.xlu0 %v1041_v42, %s9799_s19  ;;  %v1065_v42 = vsel %vm382_vm1, %v1056_v39, %v1064_v45  ;;  %v1072_v54 = vor.u32 %v1071_v10, %v1068_v55  ;;  %v1084_v62 = vshrl.u32 %v10274_v22, 16  ;;  %v1087_v6 = vshll.u32 %v10274_v22, 16 }
  0x5d   : > { %9132 = vmatpush3.bf16.msra.mxu0 %v9498_v1  ;;  %v187_v1 = vld [vmem:[%s9835_s17 + $0x8] sm:$0xf]  ;;  %v1186_v55 = vrot.slane %v10198_v52, 5 }
  0x5e   : > { %1230 = vrot.lane.b32.xlu1 %v1181_v19, %s9798_s18  ;;  %v1057_v19 = vsel %vm382_vm1, %v10170_v15, %v1056_v39  ;;  %v10285_v30 = vcombine.low %v186_v29, %v187_v1  ;;  %v437_v15 = vshrl.u32 %v10268_v56, 16  ;;  %v440_v39 = vshll.u32 %v10268_v56, 16 }
  0x5f   : > { %v1082_v10 = vsel %vm382_vm1, %v1072_v54, %v1081_v17  ;;  %v1073_v28 = vsel %vm382_vm1, %v1064_v45, %v1072_v54  ;;  %v455_v45 = vshrl.u32 %v10301_v50, 16  ;;  %v458_v54 = vshll.u32 %v10301_v50, 16 }
  0x60   : > { %1228 = vrot.lane.b32.xlu0 %v1179_v53, %s9798_s18  ;;  %v15968_v53 = vrot.slane %v10101_v36, 5  ;;  %v439_v29 = vrot.slane %v437_v15, 4  ;;  %v442_v1 = vrot.slane %v440_v39, 5  ;;  %v387_v41 = vshll.u32 %v10285_v30, 16 }
  0x61   : > { %v9487_v39 = vld [vmem:[%s9835_s17 + $0xd0] ss:$0 sps:$4 sm:$0x11]   ;;  %v460_v23 = vrot.slane %v458_v54, 5 }
  0x62   : > { %1132 = vrot.lane.b32.xlu1 %v1065_v42, %s9799_s19  ;;  %v1183_v27 = vsel %vm651_vm0, %v15968_v53, %v1182_v35  ;;  %v1188_v42 = vrot.slane %v10201_v51, 5  ;;  %v446_v35 = vshrl.u32 %v10243_v11, 16  ;;  %v1086_v51 = vrot.slane %v1084_v62, 4 }
  0x63   : > { %v1089_v53 = vrot.slane %v1087_v6, 5  ;;  %v15742_v62 = vrot.slane %v10268_v56, 5  ;;  %v457_v6 = vrot.slane %v455_v45, 4 }
  0x64   : > { %1130 = vrot.lane.b32.xlu0 %v1057_v19, %s9799_s19  ;;  %v384_v19 = vshrl.u32 %v10285_v30, 16  ;;  %v448_v52 = vrot.slane %v446_v35, 4  ;;  %v1189_v15 = vsel %vm651_vm0, %v1186_v55, %v1188_v42  ;;  %v665_v35 = vrot.slane %v10243_v11, 5 }
  0x65   : > { %v1090_v46 = vor.u32 %v1089_v53, %v1086_v51  ;;  %v2372_v51 = vld [vmem:[%s9835_s17 + $0x20] sm:$0xf]  ;;  %v2373_v53 = vld [vmem:[%s9835_s17 + $0x24] sm:$0xf] }
  0x66   : > { %1234 = vrot.lane.b32.xlu1 %v1185_v33, %s9798_s18  ;;  %v449_v33 = vshll.u32 %v10243_v11, 16  ;;  %v386_v47 = vrot.slane %v384_v19, 4  ;;  %v10327_v45 = vsel %vm651_vm0, %v15742_v62, %v665_v35  ;;  %v2371_v19 = vld [vmem:[%s9835_s17 + $0x1c] sm:$0xf]  ;;  %v15744_v62 = vrot.slane %v10280_v57, 5 }
  0x67   : > { %15970 = vst [vmem:[#allocation38_spill] sm:$0xff] %v10327_v45  ;;  %v2388_v45 = vld [vmem:[%s9835_s17 + $0x60] sm:$0xf] }
  0x68   : > { %1232 = vrot.lane.b32.xlu0 %v1183_v27, %s9798_s18  ;;  %v451_v61 = vrot.slane %v449_v33, 5  ;;  %v10313_v27 = vcombine.low %v9993_v59, %v9996_v60  ;;  %v667_v59 = vrot.slane %v10301_v50, 5  ;;  %v1187_v60 = vsel %vm651_vm0, %v1184_v40, %v1186_v55 }
  0x69   : > { %v1190_v40 = vrot.slane %v10274_v22, 5  ;;  %v1192_v55 = vrot.slane %v9487_v39, 5  ;;  %v467_v39 = vshll.u32 %v10280_v57, 16 }
  0x6a   : > { %1136 = vrot.lane.b32.xlu1 %v1082_v10, %s9799_s19  ;;  %15969 = vst [vmem:[#allocation37_spill] sm:$0xff] %v10313_v27  ;;  %v10320_v10 = vor.u32 %v442_v1, %v439_v29  ;;  %v452_v33 = vor.u32 %v451_v61, %v448_v52  ;;  %v461_v29 = vor.u32 %v460_v23, %v457_v6  ;;  %v2374_v61 = vld [vmem:[%s9835_s17 + $0x28] sm:$0xf]  ;;  %v464_v23 = vshrl.u32 %v10280_v57, 16 }
  0x6b   : > { %v10335_v1 = vsel %vm651_vm0, %v665_v35, %v667_v59  ;;  %v1193_v6 = vsel %vm651_vm0, %v1190_v40, %v1192_v55  ;;  %v10351_v35 = vcombine.low %v2371_v19, %v2372_v51  ;;  %v1191_v36 = vsel %vm651_vm0, %v1188_v42, %v1190_v40 }
  0x6c   : > { %1134 = vrot.lane.b32.xlu0 %v1073_v28, %s9799_s19  ;;  %v389_v28 = vrot.slane %v387_v41, 5  ;;  %v10332_v52 = vsel %vm382_vm1, %v10320_v10, %v452_v33  ;;  %15972 = vst [vmem:[#allocation40_spill] sm:$0xff] %v10335_v1  ;;  %v10344_v54 = vsel %vm382_vm1, %v452_v33, %v461_v29  ;;  %v1091_v41 = vsel %vm382_vm1, %v1081_v17, %v1090_v46  ;;  %v2376_v17 = vld [vmem:[%s9835_s17 + $0x30] sm:$0xf] }
  0x6d   : > { %15971 = vst [vmem:[#allocation39_spill] sm:$0xff] %v10332_v52  ;;  %v466_v22 = vrot.slane %v464_v23, 4  ;;  %v469_v33 = vrot.slane %v467_v39, 5  ;;  %v10368_v55 = vsel %vm651_vm0, %v667_v59, %v15744_v62  ;;  %v2568_v19 = vshrl.u32 %v10351_v35, 16 }
  0x6e   : > { %1238 = vrot.lane.b32.xlu1 %v1189_v15, %s9798_s18  ;;  %v390_v15 = vor.u32 %v389_v28, %v386_v47  ;;  %15973 = vst [vmem:[#allocation41_spill] sm:$0xff] %v10368_v55  ;;  %v2571_v51 = vshll.u32 %v10351_v35, 16  ;;  %v15976_v27 = vrot.slane %v9867_v16, 5 }
  0x6f   : > { %v10363_v28 = vor.u32 %v469_v33, %v466_v22  ;;  %v2570_v23 = vrot.slane %v2568_v19, 4 }
  0x70   : > { %1236 = vrot.lane.b32.xlu0 %v1187_v60, %s9798_s18  ;;  %v10353_v60 = vcombine.low %v2373_v53, %v2374_v61  ;;  %v399_v47 = vsel %vm382_vm1, %v390_v15, %v10157_v21  ;;  %v10377_v21 = vld [vmem:[%s15706_s1 + $0x8] ss:$0 sps:$4 sm:$0xff]   ;;  %v652_v61 = vrot.slane %v10285_v30, 5 }
  0x71   : > { %v10382_v59 = vsel %vm382_vm1, %v461_v29, %v10363_v28  ;;  %9442 = vmatprep.subr.msk.bf16.mxu1 %vm1633_vm2, %v10377_v21  ;;  %v2143_v52 = vsel %vm1633_vm2, %v10377_v21, 0 }
  0x72   : > { %1140 = vrot.lane.b32.xlu1 %v1090_v46, %s9799_s19  ;;  %v2375_v46 = vld [vmem:[%s9835_s17 + $0x2c] sm:$0xf]  ;;  %v2576_v42 = vshrl.u32 %v10353_v60, 16  ;;  %v2579_v40 = vshll.u32 %v10353_v60, 16  ;;  %15974 = vst [vmem:[#allocation42_spill] sm:$0xff] %v10382_v59  ;;  %9182 = vmatpush3.bf16.msra.mxu1 %v2143_v52 }
  0x73   : > { %v10384_v53 = vcombine.low %v2375_v46, %v2376_v17  ;;  %v2379_v46 = vld [vmem:[%s9835_s17 + $0x3c] sm:$0xf]  ;;  %v2380_v17 = vld [vmem:[%s9835_s17 + $0x40] sm:$0xf] }
  0x74   : > { %1138 = vrot.lane.b32.xlu0 %v1091_v41, %s9799_s19  ;;  %v2573_v41 = vrot.slane %v2571_v51, 5  ;;  %v2578_v22 = vrot.slane %v2576_v42, 4  ;;  %v2581_v39 = vrot.slane %v2579_v40, 5  ;;  %v15975_v51 = vrot.slane %v10117_v5, 5  ;;  %v10417_v5 = vld [vmem:[%s15706_s1 + $0x20] ss:$0 sps:$4 sm:$0xff]  }
  0x75   : > { %v2585_v29 = vshrl.u32 %v10384_v53, 16  ;;  %v2588_v33 = vshll.u32 %v10384_v53, 16  ;;  %9443 = vmatprep.subr.msk.bf16.mxu0 %vm1633_vm2, %v10417_v5 }
  0x76   : > { %1242 = vrot.lane.b32.xlu1 %v1193_v6, %s9798_s18  ;;  %v2378_v6 = vld [vmem:[%s9835_s17 + $0x38] sm:$0xf]  ;;  %v2582_v30 = vor.u32 %v2581_v39, %v2578_v22  ;;  %v654_v42 = vsel %vm651_vm0, %v652_v61, %v15975_v51 }
  0x77   : > { %v2587_v40 = vrot.slane %v2585_v29, 4  ;;  %v2590_v62 = vrot.slane %v2588_v33, 5  ;;  %v2383_v29 = vld [vmem:[%s9835_s17 + $0x4c] sm:$0xf]  ;;  %v2384_v33 = vld [vmem:[%s9835_s17 + $0x50] sm:$0xf] }
  0x78   : > { %1240 = vrot.lane.b32.xlu0 %v1191_v36, %s9798_s18  ;;  %v2377_v36 = vld [vmem:[%s9835_s17 + $0x34] sm:$0xf]  ;;  %v10439_v3 = vcombine.low %v2383_v29, %v2384_v33 }
  0x79   : > { %v10398_v19 = vcombine.low %v2377_v36, %v2378_v6  ;;  %v2591_v6 = vor.u32 %v2590_v62, %v2587_v40 }
  0x7a   : > { %600 = vrot.lane.b32.xlu1 %v399_v47, %s9799_s19  ;;  %v2574_v47 = vor.u32 %v2573_v41, %v2570_v23  ;;  %v2381_v23 = vld [vmem:[%s9835_s17 + $0x44] sm:$0xf]  ;;  %v2382_v41 = vld [vmem:[%s9835_s17 + $0x48] sm:$0xf]  ;;  %v2621_v33 = vshrl.u32 %v10439_v3, 16  ;;  %v2624_v59 = vshll.u32 %v10439_v3, 16 }
  0x7b   : > { %v2594_v39 = vshrl.u32 %v10398_v19, 16  ;;  %v2846_v1 = vrot.slane %v10439_v3, 5 }
  0x7c   : > { %598 = vrot.lane.b32.xlu0 %v390_v15, %s9799_s19  ;;  %v10402_v15 = vcombine.low %v2379_v46, %v2380_v17  ;;  %v2583_v22 = vsel %vm382_vm1, %v2574_v47, %v2582_v30  ;;  %v10428_v46 = vcombine.low %v2381_v23, %v2382_v41  ;;  %v2835_v17 = vrot.slane %v10351_v35, 5 }
  0x7d   : > { %v2596_v62 = vrot.slane %v2594_v39, 4  ;;  %v2592_v35 = vsel %vm382_vm1, %v2582_v30, %v2591_v6 }
  0x7e   : > { %701 = vrot.lane.b32.xlu1 %v652_v61, %s9798_s18  ;;  %v10422_v61 = vcombine.low %v9858_v12, %v9861_v13  ;;  %v2606_v36 = vshll.u32 %v10402_v15, 16  ;;  %v2836_v13 = vrot.slane %v10353_v60, 5  ;;  %v2615_v18 = vshll.u32 %v10428_v46, 16 }
  0x80   : > { %602 = vrot.lane.b32.xlu0 %v10180_v49, %s9799_s19  ;;  %v2597_v49 = vshll.u32 %v10398_v19, 16  ;;  %v428_v51 = vshrl.u32 %v10422_v61, 16  ;;  %v431_v12 = vshll.u32 %v10422_v61, 16  ;;  %v2608_v14 = vrot.slane %v2606_v36, 5  ;;  %v881_v36 = vld [vmem:[%s9835_s17 + $0xc] sm:$0x8] }
  0x82   : > { %705 = vrot.lane.b32.xlu1 %v10162_v20, %s9798_s18  ;;  %v2603_v20 = vshrl.u32 %v10402_v15, 16  ;;  %v2599_v40 = vrot.slane %v2597_v49, 5  ;;  %v430_v60 = vrot.slane %v428_v51, 4  ;;  %v2840_v49 = vrot.slane %v10398_v19, 5 }
  0x83   : > { %v2837_v51 = vsel %vm651_vm0, %v2835_v17, %v2836_v13  ;;  %v2617_v19 = vrot.slane %v2615_v18, 5  ;;  %v2386_v18 = vld [vmem:[%s9835_s17 + $0x58] sm:$0xf] }
  0x84   : > { %703 = vrot.lane.b32.xlu0 %v654_v42, %s9798_s18  ;;  %v2838_v42 = vrot.slane %v10384_v53, 5  ;;  %v2605_v41 = vrot.slane %v2603_v20, 4  ;;  %v433_v53 = vrot.slane %v431_v12, 5  ;;  %v2600_v39 = vor.u32 %v2599_v40, %v2596_v62 }
  0x85   : > { %v2842_v20 = vrot.slane %v10402_v15, 5  ;;  %v661_v12 = vrot.slane %v10422_v61, 5  ;;  %v2385_v15 = vld [vmem:[%s9835_s17 + $0x54] sm:$0xf] }
  0x86   : > { %2784 = vrot.lane.b32.xlu1 %v2583_v22, %s9799_s19  ;;  %v2612_v22 = vshrl.u32 %v10428_v46, 16  ;;  %v2609_v29 = vor.u32 %v2608_v14, %v2605_v41  ;;  %v434_v14 = vor.u32 %v433_v53, %v430_v60  ;;  %v8425_v41 = vcombine.low %v881_v36, %v9838_v0 }
  0x87   : > { %v2623_v53 = vrot.slane %v2621_v33, 4  ;;  %v2844_v36 = vrot.slane %v10428_v46, 5  ;;  %v10495_v46 = vcombine.low %v9953_v25, %v9959_v31  ;;  %v15977_v33 = vrot.slane %v10268_v56, 5 }
  0x88   : > { %2782 = vrot.lane.b32.xlu0 %v2574_v47, %s9799_s19  ;;  %v1195_v23 = vpop.permute.xlu1 %1194  ;;  %v2839_v47 = vsel %vm651_vm0, %v2836_v13, %v2838_v42  ;;  %v2614_v62 = vrot.slane %v2612_v22, 4  ;;  %v10468_v13 = vsel %vm651_vm0, %v2838_v42, %v2840_v49  ;;  %v2387_v22 = vld [vmem:[%s9835_s17 + $0x5c] sm:$0xf]  ;;  %v2610_v0 = vsel %vm382_vm1, %v2600_v39, %v2609_v29 }
  0x89   : > { %v10482_v42 = vsel %vm651_vm0, %v15976_v27, %v661_v12  ;;  %v10497_v27 = vcombine.low %v2385_v15, %v2386_v18  ;;  %v10503_v21 = vsel %vm651_vm0, %v661_v12, %v15977_v33  ;;  %v10516_v52 = vsel %vm382_vm1, %v434_v14, %v10320_v10 }
  0x8a   : > { %v10444_v55 = vpop.permute.xlu0 %1196  ;;  %2884 = vrot.lane.b32.xlu1 %v2835_v17, %s9798_s18  ;;  %v10465_v17 = vsel %vm651_vm0, %v2840_v49, %v2842_v20  ;;  %v2618_v49 = vor.u32 %v2617_v19, %v2614_v62  ;;  %v10521_v12 = vsel %vm651_vm0, %v2842_v20, %v2844_v36 }
  0x8b   : > { %v2630_v20 = vshrl.u32 %v10497_v27, 16  ;;  %v2633_v15 = vshll.u32 %v10497_v27, 16 }
  0x8c   : > { %2786 = vrot.lane.b32.xlu0 %v2592_v35, %s9799_s19  ;;  %v1199_v30 = vpop.permute.xlu1 %1198  ;;  %v10462_v35 = vsel %vm382_vm1, %v2591_v6, %v2600_v39  ;;  %v2626_v6 = vrot.slane %v2624_v59, 5  ;;  %v10491_v59 = vsel %vm382_vm1, %v10234_v2, %v434_v14  ;;  %v10509_v2 = vcombine.low %v2387_v22, %v2388_v45 }
  0x8d   : > { %v10526_v45 = vsel %vm382_vm1, %v2609_v29, %v2618_v49  ;;  %v2632_v33 = vrot.slane %v2630_v20, 4 }
  0x8e   : > { %v10456_v40 = vpop.permute.xlu0 %1200  ;;  %2888 = vrot.lane.b32.xlu1 %v2839_v47, %s9798_s18  ;;  %v9536_v47 = vld [vmem:[%s15706_s1] sm:$0xff]   ;;  %v10518_v62 = vor.u32 %v2626_v6, %v2623_v53 }
  0x8f   : > { %9183 = vmatprep.subr.bf16.mxu1 %v9536_v47 }
  0x90   : > { %2886 = vrot.lane.b32.xlu0 %v2837_v51, %s9798_s18  ;;  %v1203_v60 = vpop.permute.xlu1 %1202  ;;  %9184 = vmatpush3.bf16.msra.mxu1 %v9536_v47 }
  0x92   : > { %v1093_v51 = vpop.permute.xlu0 %1092  ;;  %606 = vrot.lane.b32.xlu1 %v10248_v48, %s9799_s19  ;;  %v10507_v48 = vcombine.low %v9936_v7, %v9950_v24 }
  0x93   : > { %v1246_v39 = vsel %vm751_vm3, %v8425_v41, %v1093_v51  ;;  %v2639_v41 = vshrl.u32 %v10509_v2, 16 }
  0x94   : > { %v1298_v25 = vsel %vm827_vm4, %v1246_v39, %v1195_v23  ;;  %604 = vrot.lane.b32.xlu0 %v10237_v43, %s9799_s19  ;;  %v1097_v31 = vpop.permute.xlu1 %1096  ;;  %v10531_v43 = vsel %vm651_vm0, %v2844_v36, %v2846_v1 }
  0x95   : > { %v1352_v7 = vshrl.u32 %v1298_v25, 16  ;;  %v1250_v24 = vsel %vm751_vm3, %v9852_v9, %v1097_v31  ;;  %v1355_v10 = vshll.u32 %v1298_v25, 16  ;;  %v10538_v9 = vcombine.low %v9962_v32, %v9989_v58 }
  0x96   : > { %v1302_v23 = vsel %vm827_vm4, %v1250_v24, %v1199_v30  ;;  %v1095_v19 = vpop.permute.xlu0 %1094  ;;  %709 = vrot.lane.b32.xlu1 %v10225_v8, %s9798_s18  ;;  %v10549_v32 = vsel %vm382_vm1, %v2618_v49, %v10518_v62  ;;  %v2642_v58 = vshll.u32 %v10509_v2, 16  ;;  %v2635_v25 = vrot.slane %v2633_v15, 5 }
  0x97   : > { %v1367_v29 = vshrl.u32 %v1302_v23, 16  ;;  %v1370_v14 = vshll.u32 %v1302_v23, 16  ;;  %v1354_v18 = vrot.slane %v1352_v7, 3  ;;  %v1248_v30 = vsel %vm751_vm3, %v9845_v4, %v1095_v19 }
  0x98   : > { %707 = vrot.lane.b32.xlu0 %v10228_v26, %s9798_s18  ;;  %v1101_v8 = vpop.permute.xlu1 %1100  ;;  %v1300_v53 = vsel %vm827_vm4, %v1248_v30, %v10444_v55  ;;  %v1357_v36 = vrot.slane %v1355_v10, 4  ;;  %v2641_v31 = vrot.slane %v2639_v41, 4  ;;  %v2644_v15 = vrot.slane %v2642_v58, 5 }
  0x99   : > { %v1369_v22 = vrot.slane %v1367_v29, 3  ;;  %v1372_v47 = vrot.slane %v1370_v14, 4  ;;  %v1254_v6 = vsel %vm751_vm3, %v10422_v61, %v1101_v8  ;;  %v1359_v4 = vshrl.u32 %v1300_v53, 16 }
  0x9a   : > { %v1362_v51 = vshll.u32 %v1300_v53, 16  ;;  %v1306_v26 = vsel %vm827_vm4, %v1254_v6, %v1203_v60  ;;  %v1099_v39 = vpop.permute.xlu0 %1098  ;;  %2790 = vrot.lane.b32.xlu1 %v2610_v0, %s9799_s19  ;;  %v1358_v29 = vor.u32 %v1357_v36, %v1354_v18  ;;  %v2848_v30 = vrot.slane %v10497_v27, 5 }
  0x9b   : > { %v1252_v49 = vsel %vm751_vm3, %v9867_v16, %v1099_v39  ;;  %v1373_v7 = vor.u32 %v1372_v47, %v1369_v22  ;;  %v1361_v24 = vrot.slane %v1359_v4, 3  ;;  %v1383_v60 = vshrl.u32 %v1306_v26, 16 }
  0x9c   : > { %v1364_v55 = vrot.slane %v1362_v51, 4  ;;  %v1304_v61 = vsel %vm827_vm4, %v1252_v49, %v10456_v40  ;;  %2788 = vrot.lane.b32.xlu0 %v10462_v35, %s9799_s19  ;;  %v1105_v10 = vpop.permute.xlu1 %1104  ;;  %v1386_v23 = vshll.u32 %v1306_v26, 16  ;;  %v10570_v35 = vcombine.low %v10024_v38, %v10027_v44 }
  0x9d   : > { %v1375_v19 = vshrl.u32 %v1304_v61, 16  ;;  %v1378_v0 = vshll.u32 %v1304_v61, 16  ;;  %v1258_v16 = vsel %vm751_vm3, %v10243_v11, %v1105_v10  ;;  %v2850_v18 = vrot.slane %v10509_v2, 5 }
  0x9e   : > { %v1103_v20 = vpop.permute.xlu0 %1102  ;;  %2892 = vrot.lane.b32.xlu1 %v10465_v17, %s9798_s18  ;;  %v1365_v14 = vor.u32 %v1364_v55, %v1361_v24  ;;  %v10577_v17 = vor.u32 %v2635_v25, %v2632_v33  ;;  %v1385_v58 = vrot.slane %v1383_v60, 3  ;;  %v1388_v47 = vrot.slane %v1386_v23, 4 }
  0x9f   : > { %v1377_v41 = vrot.slane %v1375_v19, 3  ;;  %v1380_v40 = vrot.slane %v1378_v0, 4  ;;  %v1256_v44 = vsel %vm751_vm3, %v10268_v56, %v1103_v20  ;;  %v10587_v36 = vor.u32 %v2644_v15, %v2641_v31  ;;  %v2389_v56 = vld [vmem:[%s9835_s17 + $0x64] sm:$0xf]  ;;  %v2390_v31 = vld [vmem:[%s9835_s17 + $0x68] sm:$0xf] }
  0xa0   : > { %v1366_v8 = vsel %vm1351_vm5, %v1358_v29, %v1365_v14  ;;  %2890 = vrot.lane.b32.xlu0 %v10468_v13, %s9798_s18  ;;  %v1207_v11 = vpop.permute.xlu1 %1206  ;;  %v1374_v22 = vsel %vm1351_vm5, %v1365_v14, %v1373_v7  ;;  %v473_v26 = vshrl.u32 %v10507_v48, 16  ;;  %v476_v39 = vshll.u32 %v10507_v48, 16  ;;  %v15979_v20 = vld [vmem:[#allocation19_spill] sm:$0xff]  ;;  %v15980_v29 = vld [vmem:[#allocation16_spill] sm:$0xff] }
  0xa1   : > { %v1381_v53 = vor.u32 %v1380_v40, %v1377_v41  ;;  %9133 = vmatprep.mubr.msk.bf16.mxu0 %vm1560_vm6, %v1366_v8  ;;  %v1310_v38 = vsel %vm827_vm4, %v1258_v16, %v1207_v11  ;;  %v1389_v55 = vor.u32 %v1388_v47, %v1385_v58  ;;  %v10605_v61 = vsel %vm651_vm0, %v2848_v30, %v2850_v18 }
  0xa2   : > { %v1399_v27 = vshrl.u32 %v1310_v38, 16  ;;  %v1402_v13 = vshll.u32 %v1310_v38, 16  ;;  %9134 = vmatmul.mubr.msk.bf16.vlgmr.msra.gmra.mxu0 %vm1560_vm6, %v1374_v22  ;;  %v1205_v6 = vpop.permute.xlu0 %1204  ;;  %610 = vrot.lane.b32.xlu1 %v10516_v52, %s9799_s19  ;;  %v10610_v10 = vsel %vm651_vm0, %v2846_v1, %v2848_v30  ;;  %v10623_v3 = vsel %vm382_vm1, %v10577_v17, %v10587_v36  ;;  %v15978_v1 = vld [vmem:[#allocation20_spill] sm:$0xff] }
  0xa3   : > { %v1308_v4 = vsel %vm827_vm4, %v1256_v44, %v1205_v6  ;;  %v1382_v51 = vsel %vm1351_vm5, %v1373_v7, %v1381_v53  ;;  %v10600_v7 = vcombine.low %v9999_v63, %v10021_v37  ;;  %v2391_v63 = vld [vmem:[%s9835_s17 + $0x6c] sm:$0xf]  ;;  %v2392_v37 = vld [vmem:[%s9835_s17 + $0x70] sm:$0xf]  ;;  %v10627_v16 = vcombine.low %v15978_v1, %v10065_v34  ;;  %v9539_v34 = vld [vmem:[%s15706_s1 + $0x18] sm:$0xff]  }
  0xa4   : > { %v1401_v49 = vrot.slane %v1399_v27, 3  ;;  %v1404_v33 = vrot.slane %v1402_v13, 4  ;;  %v1391_v25 = vshrl.u32 %v1308_v4, 16  ;;  %v1394_v24 = vshll.u32 %v1308_v4, 16  ;;  %9137 = vmatprep.mubr.msk.bf16.mxu0 %vm1560_vm6, %v1382_v51  ;;  %608 = vrot.lane.b32.xlu0 %v10491_v59, %s9799_s19  ;;  %v1109_v52 = vpop.permute.xlu1 %1108 }
  0xa5   : > { %v1262_v19 = vsel %vm751_vm3, %v10280_v57, %v1109_v52  ;;  %v10631_v14 = vcombine.low %v15980_v29, %v15979_v20  ;;  %v10633_v15 = vcombine.low %v2389_v56, %v2390_v31  ;;  %v475_v40 = vrot.slane %v473_v26, 4  ;;  %v9682_v20 = vld [vmem:[%s9835_s17 + $0x94] sm:$0xf]  ;;  %v9683_v29 = vld [vmem:[%s9835_s17 + $0x98] sm:$0xf] }
  0xa6   : > { %v10612_v60 = vor.u32 %v1404_v33, %v1401_v49  ;;  %v1393_v59 = vrot.slane %v1391_v25, 3  ;;  %v1396_v23 = vrot.slane %v1394_v24, 4  ;;  %v1107_v0 = vpop.permute.xlu0 %1106  ;;  %713 = vrot.lane.b32.xlu1 %v10503_v21, %s9798_s18  ;;  %v478_v30 = vrot.slane %v476_v39, 5  ;;  %v15981_v25 = vld [vmem:[#allocation24_spill] sm:$0xff]  ;;  %v15982_v24 = vld [vmem:[#allocation22_spill] sm:$0xff] }
  0xa7   : > { %v3344_v8 = vsel %vm1633_vm2, %v10417_v5, 0  ;;  %v1260_v11 = vsel %vm751_vm3, %v10301_v50, %v1107_v0  ;;  %v1390_v58 = vsel %vm1351_vm5, %v1381_v53, %v1389_v55  ;;  %v10646_v47 = vcombine.low %v2391_v63, %v2392_v37 }
  0xa8   : > { %v1397_v41 = vor.u32 %v1396_v23, %v1393_v59  ;;  %711 = vrot.lane.b32.xlu0 %v10482_v42, %s9798_s18  ;;  %v1211_v21 = vpop.permute.xlu1 %1210  ;;  %9234 = vmatpush3.bf16.msra.mxu0 %v3344_v8  ;;  %v671_v53 = vrot.slane %v10507_v48, 5  ;;  %v2648_v13 = vshrl.u32 %v10633_v15, 16  ;;  %v2651_v6 = vshll.u32 %v10633_v15, 16 }
  0xa9   : > { %v1314_v22 = vsel %vm827_vm4, %v1262_v19, %v1211_v21  ;;  %9235 = vmatprep.subr.bf16.mxu0 %v9539_v34  ;;  %v10664_v56 = vsel %vm382_vm1, %v10518_v62, %v10577_v17  ;;  %v10666_v49 = vor.u32 %v478_v30, %v475_v40  ;;  %v2657_v33 = vshrl.u32 %v10646_v47, 16 }
  0xaa   : > { %v1415_v42 = vshrl.u32 %v1314_v22, 16  ;;  %v1418_v38 = vshll.u32 %v1314_v22, 16  ;;  %9138 = vmatmul.mubr.msk.bf16.gmra.mxu0 %vm1560_vm6, %v1390_v58  ;;  %v1209_v44 = vpop.permute.xlu0 %1208  ;;  %v1398_v5 = vsel %vm1351_vm5, %v1389_v55, %v1397_v41  ;;  %2794 = vrot.lane.b32.xlu1 %v10549_v32, %s9799_s19  ;;  %v1406_v50 = vsel %vm1351_vm5, %v1397_v41, %v10612_v60 }
  0xab   : > { %v1312_v27 = vsel %vm827_vm4, %v1260_v11, %v1209_v44  ;;  %9141 = vmatprep.mubr.msk.bf16.mxu0 %vm1560_vm6, %v1398_v5  ;;  %v10671_v52 = vcombine.low %v15982_v24, %v15981_v25  ;;  %v2660_v62 = vshll.u32 %v10646_v47, 16  ;;  %v2650_v23 = vrot.slane %v2648_v13, 4  ;;  %v15984_v5 = vld [vmem:[#allocation39_spill] sm:$0xff]  ;;  %v2393_v25 = vld [vmem:[%s9835_s17 + $0x74] sm:$0xf] }
  0xac   : > { %v1417_v4 = vrot.slane %v1415_v42, 3  ;;  %v1420_v51 = vrot.slane %v1418_v38, 4  ;;  %v1407_v26 = vshrl.u32 %v1312_v27, 16  ;;  %v1410_v39 = vshll.u32 %v1312_v27, 16  ;;  %2792 = vrot.lane.b32.xlu0 %v10526_v45, %s9799_s19  ;;  %v1113_v32 = vpop.permute.xlu1 %1112  ;;  %9236 = vmatpush3.bf16.msra.mxu0 %v9539_v34  ;;  %v2394_v24 = vld [vmem:[%s9835_s17 + $0x78] sm:$0xf] }
  0xad   : > { %v1266_v17 = vsel %vm751_vm3, %v10495_v46, %v1113_v32  ;;  %v2653_v19 = vrot.slane %v2651_v6, 5  ;;  %v2852_v0 = vrot.slane %v10633_v15, 5  ;;  %v15983_v1 = vrot.slane %v10280_v57, 5 }
  0xae   : > { %v10673_v31 = vor.u32 %v1420_v51, %v1417_v4  ;;  %v1409_v45 = vrot.slane %v1407_v26, 3  ;;  %v1412_v55 = vrot.slane %v1410_v39, 4  ;;  %v1111_v59 = vpop.permute.xlu0 %1110  ;;  %2896 = vrot.lane.b32.xlu1 %v10531_v43, %s9798_s18  ;;  %v10692_v41 = vcombine.low %v9682_v20, %v9683_v29  ;;  %v15985_v39 = vld [vmem:[#allocation40_spill] sm:$0xff]  ;;  %v9684_v29 = vld [vmem:[%s9835_s17 + $0xa4] sm:$0xf] }
  0xaf   : > { %v10688_v43 = vsel %vm651_vm0, %v15983_v1, %v671_v53  ;;  %v2854_v21 = vrot.slane %v10646_v47, 5  ;;  %v1264_v15 = vsel %vm751_vm3, %v10507_v48, %v1111_v59  ;;  %v2659_v40 = vrot.slane %v2657_v33, 4 }
  0xb0   : > { %v1413_v63 = vor.u32 %v1412_v55, %v1409_v45  ;;  %2894 = vrot.lane.b32.xlu0 %v10521_v12, %s9798_s18  ;;  %v1215_v37 = vpop.permute.xlu1 %1214  ;;  %v482_v12 = vshrl.u32 %v10495_v46, 16  ;;  %v485_v30 = vshll.u32 %v10495_v46, 16  ;;  %v2662_v22 = vrot.slane %v2660_v62, 5  ;;  %v15986_v45 = vld [vmem:[#allocation37_spill] sm:$0xff] }
  0xb1   : > { %v1318_v8 = vsel %vm827_vm4, %v1266_v17, %v1215_v37  ;;  %v10712_v42 = vsel %vm382_vm1, %v10363_v28, %v10666_v49  ;;  %v2654_v38 = vor.u32 %v2653_v19, %v2650_v23  ;;  %v491_v27 = vshrl.u32 %v10538_v9, 16  ;;  %v15987_v62 = vld [vmem:[#allocation29_spill] sm:$0xff]  ;;  %v15988_v17 = vld [vmem:[#allocation28_spill] sm:$0xff]  ;;  %v15989_v37 = vld [vmem:[#allocation38_spill] sm:$0xff] }
  0xb2   : > { %9142 = vmatmul.mubr.msk.bf16.gmra.mxu0 %vm1560_vm6, %v1406_v50  ;;  %v1213_v57 = vpop.permute.xlu0 %1212  ;;  %v1414_v34 = vsel %vm1351_vm5, %v10612_v60, %v1413_v63  ;;  %614 = vrot.lane.b32.xlu1 %v10344_v54, %s9799_s19  ;;  %v1422_v11 = vsel %vm1351_vm5, %v1413_v63, %v10673_v31  ;;  %v10717_v60 = vsel %vm651_vm0, %v2850_v18, %v2852_v0  ;;  %v494_v13 = vshll.u32 %v10538_v9, 16 }
  0xb3   : > { %v1316_v58 = vsel %vm827_vm4, %v1264_v15, %v1213_v57  ;;  %9145 = vmatprep.mubr.msk.bf16.mxu0 %vm1560_vm6, %v1414_v34  ;;  %v1431_v28 = vshrl.u32 %v1318_v8, 16  ;;  %v1434_v6 = vshll.u32 %v1318_v8, 16  ;;  %v484_v4 = vrot.slane %v482_v12, 4  ;;  %v15990_v15 = vld [vmem:[#allocation27_spill] sm:$0xff]  ;;  %v2395_v12 = vld [vmem:[%s9835_s17 + $0x7c] sm:$0xf] }
  0xb4   : > { %v1423_v54 = vshrl.u32 %v1316_v58, 16  ;;  %v1426_v44 = vshll.u32 %v1316_v58, 16  ;;  %612 = vrot.lane.b32.xlu0 %v15984_v5, %s9799_s19  ;;  %v1117_v50 = vpop.permute.xlu1 %1116  ;;  %v487_v51 = vrot.slane %v485_v30, 5  ;;  %v10725_v32 = vor.u32 %v2662_v22, %v2659_v40 }
  0xb5   : > { %v10730_v33 = vsel %vm651_vm0, %v2852_v0, %v2854_v21  ;;  %v1270_v55 = vsel %vm751_vm3, %v15986_v45, %v1117_v50  ;;  %v10738_v59 = vsel %vm382_vm1, %v10587_v36, %v2654_v38  ;;  %v10742_v23 = vcombine.low %v15988_v17, %v15987_v62  ;;  %v2396_v36 = vld [vmem:[%s9835_s17 + $0x80] sm:$0xf] }
  0xb6   : > { %v1425_v2 = vrot.slane %v1423_v54, 3  ;;  %v1428_v26 = vrot.slane %v1426_v44, 4  ;;  %v1115_v18 = vpop.permute.xlu0 %1114  ;;  %717 = vrot.lane.b32.xlu1 %v15985_v39, %s9798_s18  ;;  %v673_v19 = vrot.slane %v10495_v46, 5  ;;  %v493_v1 = vrot.slane %v491_v27, 4 }
  0xb7   : > { %v496_v20 = vrot.slane %v494_v13, 5  ;;  %v10749_v40 = vcombine.low %v9684_v29, %v15990_v15  ;;  %v1433_v30 = vrot.slane %v1431_v28, 3  ;;  %v1436_v8 = vrot.slane %v1434_v6, 4  ;;  %v15991_v6 = vld [vmem:[#allocation33_spill] sm:$0xff] }
  0xb8   : > { %v1429_v63 = vor.u32 %v1428_v26, %v1425_v2  ;;  %715 = vrot.lane.b32.xlu0 %v15989_v37, %s9798_s18  ;;  %v1219_v0 = vpop.permute.xlu1 %1218  ;;  %v10753_v57 = vor.u32 %v487_v51, %v484_v4  ;;  %v10755_v34 = vcombine.low %v2393_v25, %v2394_v24  ;;  %v1268_v46 = vsel %vm751_vm3, %v10538_v9, %v1115_v18  ;;  %v15992_v4 = vld [vmem:[#allocation32_spill] sm:$0xff]  ;;  %v9685_v37 = vld [vmem:[%s9835_s17 + $0xb4] sm:$0xf] }
  0xb9   : > { %v1322_v22 = vsel %vm827_vm4, %v1270_v55, %v1219_v0  ;;  %v675_v44 = vrot.slane %v10538_v9, 5  ;;  %v10770_v50 = vsel %vm382_vm1, %v2654_v38, %v10725_v32  ;;  %v10777_v27 = vcombine.low %v2395_v12, %v2396_v36  ;;  %v9686_v0 = vld [vmem:[%s9835_s17 + $0xb8] sm:$0xf] }
  0xba   : > { %9146 = vmatmul.mubr.msk.bf16.gmra.mxu0 %vm1560_vm6, %v1422_v11  ;;  %v1217_v58 = vpop.permute.xlu0 %1216  ;;  %v1430_v54 = vsel %vm1351_vm5, %v10673_v31, %v1429_v63  ;;  %2798 = vrot.lane.b32.xlu1 %v10623_v3, %s9799_s19  ;;  %v10775_v11 = vsel %vm651_vm0, %v671_v53, %v673_v19  ;;  %v10781_v28 = vor.u32 %v496_v20, %v493_v1  ;;  %v1447_v2 = vshrl.u32 %v1322_v22, 16 }
  0xbb   : > { %v1320_v5 = vsel %vm827_vm4, %v1268_v46, %v1217_v58  ;;  %9149 = vmatprep.mubr.msk.bf16.mxu0 %vm1560_vm6, %v1430_v54  ;;  %v10785_v51 = vcombine.low %v15992_v4, %v15991_v6  ;;  %v1437_v38 = vor.u32 %v1436_v8, %v1433_v30  ;;  %v1450_v48 = vshll.u32 %v1322_v22, 16 }
  0xbc   : > { %v1439_v31 = vshrl.u32 %v1320_v5, 16  ;;  %v1442_v13 = vshll.u32 %v1320_v5, 16  ;;  %2796 = vrot.lane.b32.xlu0 %v10664_v56, %s9799_s19  ;;  %v1121_v3 = vpop.permute.xlu1 %1120  ;;  %v10790_v53 = vsel %vm382_vm1, %v10666_v49, %v10753_v57  ;;  %v10797_v39 = vsel %vm651_vm0, %v673_v19, %v675_v44 }
  0xbd   : > { %v2666_v25 = vshrl.u32 %v10755_v34, 16  ;;  %v1274_v24 = vsel %vm751_vm3, %v10570_v35, %v1121_v3  ;;  %v2669_v55 = vshll.u32 %v10755_v34, 16  ;;  %v2675_v49 = vshrl.u32 %v10777_v27, 16 }
  0xbe   : > { %v1441_v26 = vrot.slane %v1439_v31, 3  ;;  %v1444_v18 = vrot.slane %v1442_v13, 4  ;;  %v1119_v56 = vpop.permute.xlu0 %1118  ;;  %2900 = vrot.lane.b32.xlu1 %v10605_v61, %s9798_s18  ;;  %v2678_v62 = vshll.u32 %v10777_v27, 16  ;;  %v10809_v19 = vcombine.low %v9685_v37, %v9686_v0  ;;  %v15993_v13 = vld [vmem:[#allocation42_spill] sm:$0xff]  ;;  %v15994_v37 = vld [vmem:[#allocation41_spill] sm:$0xff] }
  0xbf   : > { %v2856_v1 = vrot.slane %v10755_v34, 5  ;;  %v2858_v20 = vrot.slane %v10777_v27, 5  ;;  %v1449_v29 = vrot.slane %v1447_v2, 3  ;;  %v1452_v15 = vrot.slane %v1450_v48, 4 }
  0xc0   : > { %v1445_v17 = vor.u32 %v1444_v18, %v1441_v26  ;;  %2898 = vrot.lane.b32.xlu0 %v10610_v10, %s9798_s18  ;;  %v1223_v61 = vpop.permute.xlu1 %1222  ;;  %v1438_v12 = vsel %vm1351_vm5, %v1429_v63, %v1437_v38  ;;  %v500_v36 = vshrl.u32 %v15986_v45, 16  ;;  %v1272_v30 = vsel %vm751_vm3, %v10600_v7, %v1119_v56 }
  0xc1   : > { %v1326_v10 = vsel %vm827_vm4, %v1274_v24, %v1223_v61  ;;  %v2668_v34 = vrot.slane %v2666_v25, 4  ;;  %v2671_v63 = vrot.slane %v2669_v55, 5  ;;  %v2677_v58 = vrot.slane %v2675_v49, 4 }
  0xc2   : > { %9150 = vmatmul.mubr.msk.bf16.gmra.mxu0 %vm1560_vm6, %v1438_v12  ;;  %v1221_v8 = vpop.permute.xlu0 %1220  ;;  %v1446_v46 = vsel %vm1351_vm5, %v1437_v38, %v1445_v17  ;;  %618 = vrot.lane.b32.xlu1 %v10712_v42, %s9799_s19  ;;  %v2680_v54 = vrot.slane %v2678_v62, 5  ;;  %v10829_v6 = vsel %vm382_vm1, %v10753_v57, %v10781_v28  ;;  %v503_v42 = vshll.u32 %v15986_v45, 16 }
  0xc3   : > { %v1324_v22 = vsel %vm827_vm4, %v1272_v30, %v1221_v8  ;;  %9153 = vmatprep.mubr.msk.bf16.mxu0 %vm1560_vm6, %v1446_v46  ;;  %v1453_v4 = vor.u32 %v1452_v15, %v1449_v29  ;;  %v1463_v38 = vshrl.u32 %v1326_v10, 16  ;;  %v1466_v2 = vshll.u32 %v1326_v10, 16  ;;  %v15995_v29 = vld [vmem:[#allocation36_spill] sm:$0xff]  ;;  %v15996_v30 = vld [vmem:[#allocation35_spill] sm:$0xff] }
  0xc4   : > { %v1455_v5 = vshrl.u32 %v1324_v22, 16  ;;  %v1458_v31 = vshll.u32 %v1324_v22, 16  ;;  %616 = vrot.lane.b32.xlu0 %v15993_v13, %s9799_s19  ;;  %v1125_v3 = vpop.permute.xlu1 %1124  ;;  %v10835_v48 = vsel %vm651_vm0, %v2856_v1, %v2858_v20  ;;  %v10842_v57 = vsel %vm651_vm0, %v2854_v21, %v2856_v1 }
  0xc5   : > { %v502_v25 = vrot.slane %v500_v36, 4  ;;  %v1278_v24 = vsel %vm751_vm3, %v10627_v16, %v1125_v3  ;;  %v2672_v55 = vor.u32 %v2671_v63, %v2668_v34  ;;  %v10846_v49 = vor.u32 %v2680_v54, %v2677_v58  ;;  %v10856_v36 = vld [vmem:[%s9835_s17 + $0xc4] sm:$0xf] }
  0xc6   : > { %v1457_v26 = vrot.slane %v1455_v5, 3  ;;  %v1460_v18 = vrot.slane %v1458_v31, 4  ;;  %v1123_v56 = vpop.permute.xlu0 %1122  ;;  %721 = vrot.lane.b32.xlu1 %v10688_v43, %s9798_s18  ;;  %v509_v62 = vshrl.u32 %v10600_v7, 16  ;;  %v505_v0 = vrot.slane %v503_v42, 5  ;;  %v2397_v5 = vld [vmem:[%s9835_s17 + $0x84] sm:$0xf] }
  0xc7   : > { %v512_v47 = vshll.u32 %v10600_v7, 16  ;;  %v8427_v21 = vcombine.low %v15995_v29, %v15995_v29  ;;  %v1465_v1 = vrot.slane %v1463_v38, 3  ;;  %v1468_v15 = vrot.slane %v1466_v2, 4  ;;  %v2398_v31 = vld [vmem:[%s9835_s17 + $0x88] sm:$0xf] }
  0xc8   : > { %v1461_v61 = vor.u32 %v1460_v18, %v1457_v26  ;;  %719 = vrot.lane.b32.xlu0 %v15994_v37, %s9798_s18  ;;  %v1227_v43 = vpop.permute.xlu1 %1226  ;;  %v1454_v12 = vsel %vm1351_vm5, %v1445_v17, %v1453_v4  ;;  %v8426_v10 = vcombine.low %v10856_v36, %v15996_v30  ;;  %v1276_v8 = vsel %vm751_vm3, %v10631_v14, %v1123_v56  ;;  %v2399_v56 = vld [vmem:[%s9835_s17 + $0x8c] sm:$0xf] }
  0xc9   : > { %v1330_v46 = vsel %vm827_vm4, %v1278_v24, %v1227_v43  ;;  %v10871_v63 = vsel %vm382_vm1, %v2672_v55, %v10846_v49  ;;  %v10875_v58 = vsel %vm382_vm1, %v10725_v32, %v2672_v55  ;;  %v677_v54 = vrot.slane %v15986_v45, 5  ;;  %v2400_v32 = vld [vmem:[%s9835_s17 + $0x90] sm:$0xf] }
  0xca   : > { %9154 = vmatmul.mubr.msk.bf16.gmra.mxu0 %vm1560_vm6, %v1454_v12  ;;  %v1225_v34 = vpop.permute.xlu0 %1224  ;;  %v1462_v22 = vsel %vm1351_vm5, %v1453_v4, %v1461_v61  ;;  %2802 = vrot.lane.b32.xlu1 %v10770_v50, %s9799_s19  ;;  %v511_v42 = vrot.slane %v509_v62, 4  ;;  %v514_v4 = vrot.slane %v512_v47, 5  ;;  %v1469_v38 = vor.u32 %v1468_v15, %v1465_v1 }
  0xcb   : > { %v1328_v17 = vsel %vm827_vm4, %v1276_v8, %v1225_v34  ;;  %9157 = vmatprep.mubr.msk.bf16.mxu0 %vm1560_vm6, %v1462_v22  ;;  %v1479_v2 = vshrl.u32 %v1330_v46, 16  ;;  %v1482_v26 = vshll.u32 %v1330_v46, 16  ;;  %v10882_v18 = vor.u32 %v505_v0, %v502_v25  ;;  %v10909_v8 = vld [vmem:[%s9835_s17 + $0xc] sm:$0xf]  ;;  %v10912_v46 = vld [vmem:[%s9835_s17 + $0x8] sm:$0xf] }
  0xcc   : > { %v1471_v13 = vshrl.u32 %v1328_v17, 16  ;;  %v1474_v50 = vshll.u32 %v1328_v17, 16  ;;  %2800 = vrot.lane.b32.xlu0 %v10738_v59, %s9799_s19  ;;  %v1129_v3 = vpop.permute.xlu1 %1128  ;;  %v679_v59 = vrot.slane %v10600_v7, 5  ;;  %v10889_v62 = vcombine.low %v2397_v5, %v2398_v31 }
  0xcd   : > { %v1282_v43 = vsel %vm751_vm3, %v10671_v52, %v1129_v3  ;;  %v10898_v25 = vsel %vm651_vm0, %v675_v44, %v677_v54  ;;  %v15752_v0 = vrot.slane %v10742_v23, 5  ;;  %v695_v47 = vrot.slane %v10809_v19, 5  ;;  %v10917_v44 = vld [vmem:[%s9835_s17] sm:$0x8] }
  0xce   : > { %v1473_v24 = vrot.slane %v1471_v13, 3  ;;  %v1476_v55 = vrot.slane %v1474_v50, 4  ;;  %v1127_v37 = vpop.permute.xlu0 %1126  ;;  %2904 = vrot.lane.b32.xlu1 %v10730_v33, %s9798_s18  ;;  %v10904_v15 = vor.u32 %v514_v4, %v511_v42  ;;  %v10906_v12 = vcombine.low %v2399_v56, %v2400_v32 }
  0xcf   : > { %v8376_v9 = vcombine.low %v10912_v46, %v10909_v8  ;;  %v1481_v34 = vrot.slane %v1479_v2, 3  ;;  %v1484_v22 = vrot.slane %v1482_v26, 4  ;;  %v1470_v17 = vsel %vm1351_vm5, %v1461_v61, %v1469_v38  ;;  %v10944_v2 = vld [vmem:[%s9835_s17 + $0x4] sm:$0xf] }
  0xd0   : > { %v1477_v1 = vor.u32 %v1476_v55, %v1473_v24  ;;  %2902 = vrot.lane.b32.xlu0 %v10717_v60, %s9798_s18  ;;  %v1231_v33 = vpop.permute.xlu1 %1230  ;;  %v10925_v60 = vsel %vm651_vm0, %v15752_v0, %v695_v47  ;;  %v1280_v5 = vsel %vm751_vm3, %v10692_v41, %v1127_v37  ;;  %v2684_v61 = vshrl.u32 %v10889_v62, 16 }
  0xd1   : > { %v1334_v31 = vsel %vm827_vm4, %v1282_v43, %v1231_v33  ;;  %v10940_v42 = vsel %vm382_vm1, %v10781_v28, %v10882_v18  ;;  %v2687_v4 = vshll.u32 %v10889_v62, 16  ;;  %v2693_v32 = vshrl.u32 %v10906_v12, 16 }
  0xd2   : > { %9158 = vmatmul.mubr.msk.bf16.gmra.mxu0 %vm1560_vm6, %v1470_v17  ;;  %v1229_v13 = vpop.permute.xlu0 %1228  ;;  %v1478_v50 = vsel %vm1351_vm5, %v1469_v38, %v1477_v1  ;;  %622 = vrot.lane.b32.xlu1 %v10829_v6, %s9799_s19  ;;  %v8375_v38 = vcombine.low %v10917_v44, %v10944_v2  ;;  %v2696_v24 = vshll.u32 %v10906_v12, 16  ;;  %v1485_v55 = vor.u32 %v1484_v22, %v1481_v34 }
  0xd3   : > { %v1332_v3 = vsel %vm827_vm4, %v1280_v5, %v1229_v13  ;;  %9161 = vmatprep.mubr.msk.bf16.mxu0 %vm1560_vm6, %v1478_v50  ;;  %v1495_v28 = vshrl.u32 %v1334_v31, 16  ;;  %v1498_v37 = vshll.u32 %v1334_v31, 16  ;;  %v2860_v43 = vrot.slane %v10889_v62, 5 }
  0xd4   : > { %v1487_v26 = vshrl.u32 %v1332_v3, 16  ;;  %v1490_v6 = vshll.u32 %v1332_v3, 16  ;;  %620 = vrot.lane.b32.xlu0 %v10790_v53, %s9799_s19  ;;  %v1133_v56 = vpop.permute.xlu1 %1132  ;;  %v10960_v53 = vsel %vm651_vm0, %v677_v54, %v679_v59  ;;  %v2686_v13 = vrot.slane %v2684_v61, 4 }
  0xd5   : > { %v1286_v34 = vsel %vm751_vm3, %v10742_v23, %v1133_v56  ;;  %v2689_v62 = vrot.slane %v2687_v4, 5  ;;  %v2862_v22 = vrot.slane %v10906_v12, 5  ;;  %v518_v31 = vshrl.u32 %v10570_v35, 16  ;;  %v2401_v56 = vld [vmem:[%s9835_s17 + $0x94] sm:$0xf] }
  0xd6   : > { %v1489_v33 = vrot.slane %v1487_v26, 3  ;;  %v1492_v17 = vrot.slane %v1490_v6, 4  ;;  %v1131_v5 = vpop.permute.xlu0 %1130  ;;  %725 = vrot.lane.b32.xlu1 %v10797_v39, %s9798_s18  ;;  %v516_v45 = vsel %vm382_vm1, %v10882_v18, %v10904_v15  ;;  %v2695_v54 = vrot.slane %v2693_v32, 4 }
  0xd7   : > { %v2698_v61 = vrot.slane %v2696_v24, 5  ;;  %v1497_v3 = vrot.slane %v1495_v28, 3  ;;  %v1500_v26 = vrot.slane %v1498_v37, 4  ;;  %v1486_v6 = vsel %vm1351_vm5, %v1477_v1, %v1485_v55 }
  0xd8   : > { %v1493_v50 = vor.u32 %v1492_v17, %v1489_v33  ;;  %723 = vrot.lane.b32.xlu0 %v10775_v11, %s9798_s18  ;;  %v1235_v39 = vpop.permute.xlu1 %1234  ;;  %v10975_v4 = vsel %vm651_vm0, %v2858_v20, %v2860_v43  ;;  %v2402_v33 = vld [vmem:[%s9835_s17 + $0x98] sm:$0xf]  ;;  %v1284_v11 = vsel %vm751_vm3, %v10749_v40, %v1131_v5  ;;  %v521_v27 = vshll.u32 %v10570_v35, 16 }
  0xd9   : > { %v1338_v17 = vsel %vm827_vm4, %v1286_v34, %v1235_v39  ;;  %v2690_v1 = vor.u32 %v2689_v62, %v2686_v13  ;;  %v10992_v24 = vsel %vm651_vm0, %v2860_v43, %v2862_v22  ;;  %v520_v28 = vrot.slane %v518_v31, 4 }
  0xda   : > { %9162 = vmatmul.mubr.msk.bf16.gmra.mxu0 %vm1560_vm6, %v1486_v6  ;;  %v1233_v18 = vpop.permute.xlu0 %1232  ;;  %v1494_v32 = vsel %vm1351_vm5, %v1485_v55, %v1493_v50  ;;  %2806 = vrot.lane.b32.xlu1 %v10871_v63, %s9799_s19  ;;  %v527_v5 = vshrl.u32 %v10631_v14, 16  ;;  %v10997_v34 = vcombine.low %v2401_v56, %v2402_v33  ;;  %v1501_v39 = vor.u32 %v1500_v26, %v1497_v3 }
  0xdb   : > { %v1336_v20 = vsel %vm827_vm4, %v1284_v11, %v1233_v18  ;;  %9165 = vmatprep.mubr.msk.bf16.mxu0 %vm1560_vm6, %v1494_v32  ;;  %v1511_v6 = vshrl.u32 %v1338_v17, 16  ;;  %v1514_v13 = vshll.u32 %v1338_v17, 16  ;;  %v10999_v62 = vor.u32 %v2698_v61, %v2695_v54  ;;  %v2403_v11 = vld [vmem:[%s9835_s17 + $0x9c] sm:$0xf] }
  0xdc   : > { %v1503_v37 = vshrl.u32 %v1336_v20, 16  ;;  %v1506_v55 = vshll.u32 %v1336_v20, 16  ;;  %2804 = vrot.lane.b32.xlu0 %v10875_v58, %s9799_s19  ;;  %v1137_v63 = vpop.permute.xlu1 %1136  ;;  %v523_v32 = vrot.slane %v521_v27, 5  ;;  %v2404_v20 = vld [vmem:[%s9835_s17 + $0xa0] sm:$0xf]  ;;  %v15751_v58 = vrot.slane %v10785_v51, 5 }
  0xdd   : > { %v1290_v56 = vsel %vm751_vm3, %v10785_v51, %v1137_v63  ;;  %v11010_v3 = vsel %vm382_vm1, %v10846_v49, %v2690_v1  ;;  %v530_v54 = vshll.u32 %v10631_v14, 16  ;;  %v681_v61 = vrot.slane %v10570_v35, 5 }
  0xde   : > { %v1505_v43 = vrot.slane %v1503_v37, 3  ;;  %v1508_v18 = vrot.slane %v1506_v55, 4  ;;  %v1135_v31 = vpop.permute.xlu0 %1134  ;;  %2908 = vrot.lane.b32.xlu1 %v10835_v48, %s9798_s18  ;;  %v2702_v33 = vshrl.u32 %v10997_v34, 16  ;;  %v2705_v17 = vshll.u32 %v10997_v34, 16 }
  0xdf   : > { %v11023_v49 = vsel %vm651_vm0, %v695_v47, %v15751_v58  ;;  %v1513_v27 = vrot.slane %v1511_v6, 3  ;;  %v1516_v37 = vrot.slane %v1514_v13, 4  ;;  %v1502_v35 = vsel %vm1351_vm5, %v1493_v50, %v1501_v39 }
  0xe0   : > { %v1509_v26 = vor.u32 %v1508_v18, %v1505_v43  ;;  %2906 = vrot.lane.b32.xlu0 %v10842_v57, %s9798_s18  ;;  %v1239_v48 = vpop.permute.xlu1 %1238  ;;  %v11026_v55 = vcombine.low %v2403_v11, %v2404_v20  ;;  %v1288_v57 = vsel %vm751_vm3, %v10809_v19, %v1135_v31  ;;  %v529_v47 = vrot.slane %v527_v5, 4 }
  0xe1   : > { %v1342_v63 = vsel %vm827_vm4, %v1290_v56, %v1239_v48  ;;  %v2700_v50 = vsel %vm382_vm1, %v2690_v1, %v10999_v62  ;;  %v532_v13 = vrot.slane %v530_v54, 5  ;;  %v683_v11 = vrot.slane %v10631_v14, 5 }
  0xe2   : > { %9166 = vmatmul.mubr.msk.bf16.gmra.mxu0 %vm1560_vm6, %v1502_v35  ;;  %v1237_v43 = vpop.permute.xlu0 %1236  ;;  %v1510_v18 = vsel %vm1351_vm5, %v1501_v39, %v1509_v26  ;;  %626 = vrot.lane.b32.xlu1 %v516_v45, %s9799_s19  ;;  %v2704_v56 = vrot.slane %v2702_v33, 4  ;;  %v2707_v45 = vrot.slane %v2705_v17, 5  ;;  %v1517_v5 = vor.u32 %v1516_v37, %v1513_v27 }
  0xe3   : > { %v1340_v6 = vsel %vm827_vm4, %v1288_v57, %v1237_v43  ;;  %9169 = vmatprep.mubr.msk.bf16.mxu0 %vm1560_vm6, %v1510_v18  ;;  %v1527_v48 = vshrl.u32 %v1342_v63, 16  ;;  %v1530_v35 = vshll.u32 %v1342_v63, 16  ;;  %v11042_v57 = vld [vmem:[%s9835_s17 + $0x18] sm:$0x8]  ;;  %v2711_v1 = vshrl.u32 %v11026_v55, 16 }
  0xe4   : > { %v1519_v31 = vshrl.u32 %v1340_v6, 16  ;;  %v1522_v20 = vshll.u32 %v1340_v6, 16  ;;  %624 = vrot.lane.b32.xlu0 %v10940_v42, %s9799_s19  ;;  %v1141_v39 = vpop.permute.xlu1 %1140  ;;  %v524_v42 = vor.u32 %v523_v32, %v520_v28  ;;  %v2714_v33 = vshll.u32 %v11026_v55, 16  ;;  %v11063_v63 = vld [vmem:[%s9835_s17 + $0x20] sm:$0xf] }
  0xe5   : > { %v1296_v17 = vsel %vm751_vm3, %v8427_v21, %v1141_v39  ;;  %v11055_v27 = vsel %vm651_vm0, %v681_v61, %v683_v11  ;;  %v11060_v37 = vsel %vm651_vm0, %v679_v59, %v681_v61  ;;  %v11072_v32 = vor.u32 %v532_v13, %v529_v47  ;;  %v11075_v6 = vld [vmem:[%s9835_s17 + $0x1c] sm:$0xf] }
  0xe6   : > { %v1521_v54 = vrot.slane %v1519_v31, 3  ;;  %v1524_v43 = vrot.slane %v1522_v20, 4  ;;  %v1139_v18 = vpop.permute.xlu0 %1138  ;;  %729 = vrot.lane.b32.xlu1 %v10960_v53, %s9798_s18  ;;  %v11066_v53 = vld [vmem:[%s9835_s17 + $0x24] sm:$0xf]  ;;  %v8486_v7 = vcombine.low %v11042_v57, %v11075_v6  ;;  %v11079_v59 = vor.u32 %v2707_v45, %v2704_v56 }
  0xe7   : > { %v1529_v61 = vrot.slane %v1527_v48, 3  ;;  %v1532_v31 = vrot.slane %v1530_v35, 4  ;;  %v1518_v20 = vsel %vm1351_vm5, %v1509_v26, %v1517_v5  ;;  %v2713_v39 = vrot.slane %v2711_v1, 4 }
  0xe8   : > { %v1525_v29 = vor.u32 %v1524_v43, %v1521_v54  ;;  %727 = vrot.lane.b32.xlu0 %v10898_v25, %s9798_s18  ;;  %v1243_v21 = vpop.permute.xlu1 %1242  ;;  %v1293_v25 = vsel %vm751_vm3, %v8426_v10, %v1139_v18  ;;  %v2716_v56 = vrot.slane %v2714_v33, 5  ;;  %v536_v36 = vshrl.u32 %v10627_v16, 16 }
  0xe9   : > { %v1346_v47 = vsel %vm827_vm4, %v1296_v17, %v1243_v21  ;;  %v539_v30 = vshll.u32 %v10627_v16, 16  ;;  %v545_v10 = vshrl.u32 %v10692_v41, 16  ;;  %v548_v35 = vshll.u32 %v10692_v41, 16  ;;  %v2405_v17 = vld [vmem:[%s9835_s17 + $0xa4] sm:$0xf] }
  0xea   : > { %9170 = vmatmul.mubr.msk.bf16.gmra.mxu0 %vm1560_vm6, %v1518_v20  ;;  %v1241_v13 = vpop.permute.xlu0 %1240  ;;  %v1526_v54 = vsel %vm1351_vm5, %v1517_v5, %v1525_v29  ;;  %2810 = vrot.lane.b32.xlu1 %v2700_v50, %s9799_s19  ;;  %v525_v5 = vsel %vm382_vm1, %v10904_v15, %v524_v42  ;;  %v1533_v1 = vor.u32 %v1532_v31, %v1529_v61  ;;  %v1543_v43 = vshrl.u32 %v1346_v47, 16  ;;  %v2406_v21 = vld [vmem:[%s9835_s17 + $0xa8] sm:$0xf]  ;;  %v11115_v31 = vld [vmem:[%s9835_s17 + $0x2c] sm:$0xf] }
  0xeb   : > { %v1344_v45 = vsel %vm827_vm4, %v1293_v25, %v1241_v13  ;;  %9173 = vmatprep.mubr.msk.bf16.mxu0 %vm1560_vm6, %v1526_v54  ;;  %v1546_v18 = vshll.u32 %v1346_v47, 16  ;;  %v534_v33 = vsel %vm382_vm1, %v524_v42, %v11072_v32  ;;  %v11109_v15 = vsel %vm382_vm1, %v10999_v62, %v11079_v59  ;;  %v11112_v61 = vld [vmem:[%s9835_s17 + $0x28] sm:$0xf]  ;;  %v2407_v47 = vld [vmem:[%s9835_s17 + $0xac] sm:$0xf] }
  0xec   : > { %v1535_v26 = vshrl.u32 %v1344_v45, 16  ;;  %v1538_v48 = vshll.u32 %v1344_v45, 16  ;;  %2808 = vrot.lane.b32.xlu0 %v11010_v3, %s9799_s19  ;;  %v601_v50 = vpop.permute.xlu1 %600  ;;  %v11120_v13 = vor.u32 %v2716_v56, %v2713_v39  ;;  %v538_v54 = vrot.slane %v536_v36, 4 }
  0xed   : > { %v541_v45 = vrot.slane %v539_v30, 5  ;;  %v550_v0 = vrot.slane %v548_v35, 5  ;;  %v11129_v28 = vcombine.low %v2405_v17, %v2406_v21  ;;  %v1545_v42 = vrot.slane %v1543_v43, 3  ;;  %v15997_v43 = vld [vmem:[#allocation3_spill] sm:$0xff] }
  0xee   : > { %v1537_v20 = vrot.slane %v1535_v26, 3  ;;  %v1540_v25 = vrot.slane %v1538_v48, 4  ;;  %v599_v3 = vpop.permute.xlu0 %598  ;;  %2912 = vrot.lane.b32.xlu1 %v10992_v24, %s9798_s18  ;;  %v547_v26 = vrot.slane %v545_v10, 4  ;;  %v2408_v48 = vld [vmem:[%s9835_s17 + $0xb0] sm:$0xf]  ;;  %v1548_v39 = vrot.slane %v1546_v18, 4 }
  0xef   : > { %v754_v62 = vsel %vm751_vm3, %v8375_v38, %v599_v3  ;;  %v1534_v56 = vsel %vm1351_vm5, %v1525_v29, %v1533_v1  ;;  %v2864_v2 = vrot.slane %v10997_v34, 5  ;;  %v2866_v38 = vrot.slane %v11026_v55, 5 }
  0xf0   : > { %v1541_v24 = vor.u32 %v1540_v25, %v1537_v20  ;;  %2910 = vrot.lane.b32.xlu0 %v10975_v4, %s9798_s18  ;;  %v702_v58 = vpop.permute.xlu1 %701  ;;  %v11138_v4 = vcombine.low %v2407_v47, %v2408_v48  ;;  %v685_v29 = vrot.slane %v10627_v16, 5  ;;  %v542_v18 = vor.u32 %v541_v45, %v538_v54 }
  0xf1   : > { %v829_v36 = vsel %vm827_vm4, %v754_v62, %v702_v58  ;;  %v2718_v58 = vsel %vm382_vm1, %v11079_v59, %v11120_v13  ;;  %v687_v17 = vrot.slane %v10692_v41, 5  ;;  %v1549_v21 = vor.u32 %v1548_v39, %v1545_v42 }
  0xf2   : > { %9174 = vmatmul.mubr.msk.bf16.gmra.mxu0 %vm1560_vm6, %v1534_v56  ;;  %v603_v30 = vpop.permute.xlu0 %602  ;;  %v1542_v44 = vsel %vm1351_vm5, %v1533_v1, %v1541_v24  ;;  %630 = vrot.lane.b32.xlu1 %v534_v33, %s9799_s19  ;;  %v1862_v10 = vshrl.u32 %v829_v36, 16  ;;  %v1865_v35 = vshll.u32 %v829_v36, 16  ;;  %v11148_v33 = vor.u32 %v550_v0, %v547_v26 }
  0xf3   : > { %9177 = vmatprep.mubr.msk.bf16.mxu0 %vm1560_vm6, %v1542_v44  ;;  %v760_v1 = vsel %vm751_vm3, %v15997_v43, %v603_v30  ;;  %v2720_v25 = vshrl.u32 %v11129_v28, 16  ;;  %v2723_v59 = vshll.u32 %v11129_v28, 16  ;;  %v757_v16 = vsel %vm751_vm3, %v8376_v9, %v601_v50 }
  0xf4   : > { %628 = vrot.lane.b32.xlu0 %v525_v5, %s9799_s19  ;;  %v706_v34 = vpop.permute.xlu1 %705  ;;  %v2729_v0 = vshrl.u32 %v11138_v4, 16  ;;  %v1864_v42 = vrot.slane %v1862_v10, 3  ;;  %v1867_v54 = vrot.slane %v1865_v35, 4  ;;  %v2732_v26 = vshll.u32 %v11138_v4, 16 }
  0xf5   : > { %v833_v20 = vsel %vm827_vm4, %v760_v1, %v706_v34  ;;  %v1550_v9 = vsel %vm1351_vm5, %v1541_v24, %v1549_v21  ;;  %v2865_v50 = vsel %vm651_vm0, %v2862_v22, %v2864_v2  ;;  %v11175_v56 = vsel %vm651_vm0, %v685_v29, %v687_v17 }
  0xf6   : > { %v1877_v3 = vshrl.u32 %v833_v20, 16  ;;  %v1880_v5 = vshll.u32 %v833_v20, 16  ;;  %v704_v47 = vpop.permute.xlu0 %703  ;;  %733 = vrot.lane.b32.xlu1 %v11055_v27, %s9798_s18  ;;  %v2867_v27 = vsel %vm651_vm0, %v2864_v2, %v2866_v38  ;;  %v552_v44 = vsel %vm382_vm1, %v542_v18, %v11148_v33 }
  0xf7   : > { %v831_v45 = vsel %vm827_vm4, %v757_v16, %v704_v47  ;;  %v543_v12 = vsel %vm382_vm1, %v11072_v32, %v542_v18  ;;  %v2722_v22 = vrot.slane %v2720_v25, 4  ;;  %v2725_v2 = vrot.slane %v2723_v59, 5 }
  0xf8   : > { %v1879_v48 = vrot.slane %v1877_v3, 3  ;;  %v1882_v62 = vrot.slane %v1880_v5, 4  ;;  %v1869_v39 = vshrl.u32 %v831_v45, 16  ;;  %v1872_v8 = vshll.u32 %v831_v45, 16  ;;  %731 = vrot.lane.b32.xlu0 %v11060_v37, %s9798_s18  ;;  %v2785_v46 = vpop.permute.xlu1 %2784  ;;  %v11205_v3 = vld [vmem:[%s9835_s17 + $0x38] sm:$0xf] }
  0xf9   : > { %v2731_v10 = vrot.slane %v2729_v0, 4  ;;  %v1868_v1 = vor.u32 %v1867_v54, %v1864_v42  ;;  %v2734_v34 = vrot.slane %v2732_v26, 5  ;;  %v554_v32 = vshrl.u32 %v10671_v52, 16  ;;  %v11208_v5 = vld [vmem:[%s9835_s17 + $0x3c] sm:$0xf] }
  0xfa   : > { %v11177_v36 = vor.u32 %v1882_v62, %v1879_v48  ;;  %v1871_v30 = vrot.slane %v1869_v39, 3  ;;  %v1874_v37 = vrot.slane %v1872_v8, 4  ;;  %9178 = vmatmul.mubr.msk.bf16.gmra.mxu0 %vm1560_vm6, %v1550_v9  ;;  %v2783_v24 = vpop.permute.xlu0 %2782  ;;  %2814 = vrot.lane.b32.xlu1 %v2718_v58, %s9799_s19  ;;  %v557_v18 = vshll.u32 %v10671_v52, 16  ;;  %v2409_v26 = vld [vmem:[%s9835_s17 + $0xb4] sm:$0xf] }
  0xfb   : > { %v2936_v35 = vsel %vm751_vm3, %v8486_v7, %v2783_v24  ;;  %v563_v20 = vshrl.u32 %v10749_v40, 16  ;;  %v566_v25 = vshll.u32 %v10749_v40, 16  ;;  %v8490_v47 = vcombine.low %v11205_v3, %v11208_v5  ;;  %v2410_v48 = vld [vmem:[%s9835_s17 + $0xb8] sm:$0xf] }
  0xfc   : > { %2812 = vrot.lane.b32.xlu0 %v11109_v15, %s9799_s19  ;;  %v2885_v43 = vpop.permute.xlu1 %2884  ;;  %v1875_v58 = vor.u32 %v1874_v37, %v1871_v30  ;;  %v686_v15 = vsel %vm651_vm0, %v683_v11, %v685_v29  ;;  %v2868_v14 = vrot.slane %v11129_v28, 5  ;;  %v15998_v11 = vcombine.low %v11112_v61, %v11115_v31  ;;  %v2411_v31 = vld [vmem:[%s9835_s17 + $0xbc] sm:$0xf] }
  0xfd   : > { %v3010_v21 = vsel %vm827_vm4, %v2936_v35, %v2885_v43  ;;  %v2726_v42 = vor.u32 %v2725_v2, %v2722_v22  ;;  %v11219_v54 = vor.u32 %v2734_v34, %v2731_v10  ;;  %v2870_v45 = vrot.slane %v11138_v4, 5  ;;  %v2412_v22 = vld [vmem:[%s9835_s17 + $0xc0] sm:$0xf] }
  0xfe   : > { %v2787_v57 = vpop.permute.xlu0 %2786  ;;  %2916 = vrot.lane.b32.xlu1 %v2867_v27, %s9798_s18  ;;  %v1876_v6 = vsel %vm1351_vm5, %v1868_v1, %v1875_v58  ;;  %v1884_v7 = vsel %vm1351_vm5, %v1875_v58, %v11177_v36  ;;  %v3063_v59 = vshrl.u32 %v3010_v21, 16  ;;  %v3066_v16 = vshll.u32 %v3010_v21, 16  ;;  %v11239_v21 = vld [vmem:[%s9835_s17 + $0x30] sm:$0xf] }
  0xff   : > { %9185 = vmatprep.mubr.msk.bf16.mxu1 %vm1560_vm6, %v1876_v6  ;;  %v2942_v29 = vsel %vm751_vm3, %v15998_v11, %v2787_v57  ;;  %v556_v39 = vrot.slane %v554_v32, 4  ;;  %v559_v8 = vrot.slane %v557_v18, 5  ;;  %v565_v61 = vrot.slane %v563_v20, 4 }
 0x100   : > { %2914 = vrot.lane.b32.xlu0 %v2865_v50, %s9798_s18  ;;  %9186 = vmatmul.mubr.msk.bf16.vlgmr.msra.gmra.mxu1 %vm1560_vm6, %v1884_v7  ;;  %v2889_v0 = vpop.permute.xlu1 %2888  ;;  %v15999_v9 = vcombine.low %v11063_v63, %v11066_v53  ;;  %v568_v24 = vrot.slane %v566_v25, 5  ;;  %v3065_v2 = vrot.slane %v3063_v59, 3  ;;  %v3068_v10 = vrot.slane %v3066_v16, 4 }
 0x101   : > { %v3014_v62 = vsel %vm827_vm4, %v2942_v29, %v2889_v0  ;;  %v11233_v43 = vcombine.low %v2409_v26, %v2410_v48  ;;  %v2727_v34 = vsel %vm382_vm1, %v11120_v13, %v2726_v42  ;;  %v2871_v18 = vsel %vm651_vm0, %v2868_v14, %v2870_v45  ;;  %v16000_v13 = vld [vmem:[#allocation5_spill] sm:$0xff] }
 0x102   : > { %v2939_v27 = vsel %vm751_vm3, %v15999_v9, %v2785_v46  ;;  %v3078_v50 = vshrl.u32 %v3014_v62, 16  ;;  %v3081_v30 = vshll.u32 %v3014_v62, 16  ;;  %v2887_v37 = vpop.permute.xlu0 %2886  ;;  %634 = vrot.lane.b32.xlu1 %v552_v44, %s9799_s19  ;;  %v11242_v44 = vld [vmem:[%s9835_s17 + $0x34] sm:$0xf]  ;;  %v11251_v20 = vcombine.low %v2411_v31, %v2412_v22  ;;  %v16001_v9 = vld [vmem:[#allocation4_spill] sm:$0xff] }
 0x103   : > { %v3012_v35 = vsel %vm827_vm4, %v2939_v27, %v2887_v37  ;;  %v8489_v32 = vcombine.low %v11239_v21, %v11242_v44  ;;  %v2736_v59 = vsel %vm382_vm1, %v2726_v42, %v11219_v54  ;;  %v689_v16 = vrot.slane %v10671_v52, 5 }
 0x104   : > { %v3080_v1 = vrot.slane %v3078_v50, 3  ;;  %v3083_v58 = vrot.slane %v3081_v30, 4  ;;  %v3070_v63 = vshrl.u32 %v3012_v35, 16  ;;  %v3073_v53 = vshll.u32 %v3012_v35, 16  ;;  %632 = vrot.lane.b32.xlu0 %v543_v12, %s9799_s19  ;;  %v607_v46 = vpop.permute.xlu1 %606 }
 0x105   : > { %v766_v7 = vsel %vm751_vm3, %v16000_v13, %v607_v46  ;;  %v2738_v11 = vshrl.u32 %v11233_v43, 16  ;;  %v2741_v29 = vshll.u32 %v11233_v43, 16  ;;  %v3069_v0 = vor.u32 %v3068_v10, %v3065_v2 }
 0x106   : > { %v11253_v12 = vor.u32 %v3083_v58, %v3080_v1  ;;  %v3072_v57 = vrot.slane %v3070_v63, 3  ;;  %v3075_v6 = vrot.slane %v3073_v53, 4  ;;  %v605_v25 = vpop.permute.xlu0 %604  ;;  %737 = vrot.lane.b32.xlu1 %v11175_v56, %s9798_s18  ;;  %v560_v62 = vor.u32 %v559_v8, %v556_v39 }
 0x107   : > { %v11265_v31 = vor.u32 %v568_v24, %v565_v61  ;;  %v763_v56 = vsel %vm751_vm3, %v16001_v9, %v605_v25  ;;  %v691_v42 = vrot.slane %v10749_v40, 5  ;;  %v2747_v50 = vshrl.u32 %v11251_v20, 16  ;;  %v11423_v40 = vld [vmem:[%s9835_s17 + $0xd8] sm:$0xf] }
 0x108   : > { %v3076_v26 = vor.u32 %v3075_v6, %v3072_v57  ;;  %735 = vrot.lane.b32.xlu0 %v686_v15, %s9798_s18  ;;  %v710_v48 = vpop.permute.xlu1 %709  ;;  %v2740_v61 = vrot.slane %v2738_v11, 4  ;;  %v2743_v24 = vrot.slane %v2741_v29, 5  ;;  %v2750_v2 = vshll.u32 %v11251_v20, 16 }
 0x109   : > { %v837_v27 = vsel %vm827_vm4, %v766_v7, %v710_v48  ;;  %v2869_v53 = vsel %vm651_vm0, %v2866_v38, %v2868_v14  ;;  %v570_v46 = vsel %vm382_vm1, %v560_v62, %v11265_v31  ;;  %v572_v21 = vshrl.u32 %v10742_v23, 16 }
 0x10a   : > { %v1893_v30 = vshrl.u32 %v837_v27, 16  ;;  %v1896_v37 = vshll.u32 %v837_v27, 16  ;;  %v708_v22 = vpop.permute.xlu0 %707  ;;  %2818 = vrot.lane.b32.xlu1 %v2736_v59, %s9799_s19  ;;  %v3077_v15 = vsel %vm1351_vm5, %v3069_v0, %v3076_v26  ;;  %v3085_v39 = vsel %vm1351_vm5, %v3076_v26, %v11253_v12  ;;  %v11316_v27 = vld [vmem:[%s9835_s17 + $0xc8] sm:$0xf] }
 0x10b   : > { %v835_v8 = vsel %vm827_vm4, %v763_v56, %v708_v22  ;;  %9237 = vmatprep.mubr.msk.bf16.mxu0 %vm1560_vm6, %v3077_v15  ;;  %v575_v44 = vshll.u32 %v10742_v23, 16  ;;  %v561_v55 = vsel %vm382_vm1, %v11148_v33, %v560_v62  ;;  %v692_v38 = vsel %vm651_vm0, %v689_v16, %v691_v42  ;;  %v2413_v56 = vld [vmem:[%s9835_s17 + $0xc4] sm:$0xf] }
 0x10c   : > { %v1895_v10 = vrot.slane %v1893_v30, 3  ;;  %v1898_v35 = vrot.slane %v1896_v37, 4  ;;  %v1885_v1 = vshrl.u32 %v835_v8, 16  ;;  %v1888_v58 = vshll.u32 %v835_v8, 16  ;;  %2816 = vrot.lane.b32.xlu0 %v2727_v34, %s9799_s19  ;;  %9238 = vmatmul.mubr.msk.bf16.vlgmr.msra.gmra.mxu0 %vm1560_vm6, %v3085_v39  ;;  %v2791_v63 = vpop.permute.xlu1 %2790 }
 0x10d   : > { %v2948_v28 = vsel %vm751_vm3, %v8490_v47, %v2791_v63  ;;  %v2749_v14 = vrot.slane %v2747_v50, 4  ;;  %v2752_v7 = vrot.slane %v2750_v2, 5  ;;  %v2744_v5 = vor.u32 %v2743_v24, %v2740_v61  ;;  %v2416_v24 = vld [vmem:[%s9835_s17 + $0xd0] sm:$0xf] }
 0x10e   : > { %v11290_v57 = vor.u32 %v1898_v35, %v1895_v10  ;;  %v1887_v6 = vrot.slane %v1885_v1, 3  ;;  %v1890_v34 = vrot.slane %v1888_v58, 4  ;;  %v2789_v13 = vpop.permute.xlu0 %2788  ;;  %2920 = vrot.lane.b32.xlu1 %v2871_v18, %s9798_s18  ;;  %v2872_v47 = vrot.slane %v11233_v43, 5  ;;  %v9700_v10 = vld [vmem:[%s9835_s17 + $0x48] sm:$0xf] }
 0x10f   : > { %v2874_v18 = vrot.slane %v11251_v20, 5  ;;  %v2945_v33 = vsel %vm751_vm3, %v8489_v32, %v2789_v13  ;;  %v574_v11 = vrot.slane %v572_v21, 4  ;;  %v577_v29 = vrot.slane %v575_v44, 5 }
 0x110   : > { %v1891_v25 = vor.u32 %v1890_v34, %v1887_v6  ;;  %2918 = vrot.lane.b32.xlu0 %v2869_v53, %s9798_s18  ;;  %v2893_v3 = vpop.permute.xlu1 %2892  ;;  %v11320_v50 = vor.u32 %v2752_v7, %v2749_v14  ;;  %v581_v30 = vshrl.u32 %v10809_v19, 16  ;;  %v584_v37 = vshll.u32 %v10809_v19, 16  ;;  %v9701_v19 = vld [vmem:[%s9835_s17 + $0x4c] sm:$0xf] }
 0x111   : > { %v3018_v59 = vsel %vm827_vm4, %v2948_v28, %v2893_v3  ;;  %v690_v2 = vsel %vm651_vm0, %v687_v17, %v689_v16  ;;  %v8492_v35 = vcombine.low %v9700_v10, %v9701_v19  ;;  %v11338_v1 = vcombine.low %v2413_v56, %v11316_v27 }
 0x112   : > { %v3094_v0 = vshrl.u32 %v3018_v59, 16  ;;  %v3097_v26 = vshll.u32 %v3018_v59, 16  ;;  %v2891_v48 = vpop.permute.xlu0 %2890  ;;  %638 = vrot.lane.b32.xlu1 %v570_v46, %s9799_s19  ;;  %v1892_v62 = vsel %vm1351_vm5, %v11177_v36, %v1891_v25  ;;  %v1900_v9 = vsel %vm1351_vm5, %v1891_v25, %v11290_v57  ;;  %v11325_v36 = vld [vmem:[%s9835_s17 + $0xcc] sm:$0xf]  ;;  %v16002_v46 = vld [vmem:[#allocation7_spill] sm:$0xff] }
 0x113   : > { %v3016_v32 = vsel %vm827_vm4, %v2945_v33, %v2891_v48  ;;  %9189 = vmatprep.mubr.msk.bf16.mxu1 %vm1560_vm6, %v1892_v62  ;;  %v2754_v52 = vsel %vm382_vm1, %v2744_v5, %v11320_v50  ;;  %v583_v41 = vrot.slane %v581_v30, 4  ;;  %v586_v17 = vrot.slane %v584_v37, 5  ;;  %v9702_v30 = vld [vmem:[%s9835_s17 + $0x40] sm:$0xf]  ;;  %v9703_v37 = vld [vmem:[%s9835_s17 + $0x44] sm:$0xf] }
 0x114   : > { %v3096_v22 = vrot.slane %v3094_v0, 3  ;;  %v3099_v15 = vrot.slane %v3097_v26, 4  ;;  %v3086_v39 = vshrl.u32 %v3016_v32, 16  ;;  %v3089_v8 = vshll.u32 %v3016_v32, 16  ;;  %636 = vrot.lane.b32.xlu0 %v561_v55, %s9799_s19  ;;  %9190 = vmatmul.mubr.msk.bf16.gmra.mxu1 %vm1560_vm6, %v1900_v9  ;;  %v611_v61 = vpop.permute.xlu1 %610 }
 0x115   : > { %v772_v21 = vsel %vm751_vm3, %v16002_v46, %v611_v61  ;;  %v11348_v16 = vcombine.low %v11325_v36, %v2416_v24  ;;  %v2745_v28 = vsel %vm382_vm1, %v11219_v54, %v2744_v5  ;;  %v2875_v13 = vsel %vm651_vm0, %v2872_v47, %v2874_v18 }
 0x116   : > { %v11340_v58 = vor.u32 %v3099_v15, %v3096_v22  ;;  %v3088_v63 = vrot.slane %v3086_v39, 3  ;;  %v3091_v53 = vrot.slane %v3089_v8, 4  ;;  %v609_v44 = vpop.permute.xlu0 %608  ;;  %741 = vrot.lane.b32.xlu1 %v692_v38, %s9798_s18  ;;  %v578_v55 = vor.u32 %v577_v29, %v574_v11  ;;  %v16003_v38 = vld [vmem:[#allocation6_spill] sm:$0xff] }
 0x117   : > { %v769_v14 = vsel %vm751_vm3, %v16003_v38, %v609_v44  ;;  %v2756_v25 = vshrl.u32 %v11338_v1, 16  ;;  %v2759_v3 = vshll.u32 %v11338_v1, 16  ;;  %v11370_v29 = vor.u32 %v586_v17, %v583_v41 }
 0x118   : > { %v3092_v6 = vor.u32 %v3091_v53, %v3088_v63  ;;  %739 = vrot.lane.b32.xlu0 %v690_v2, %s9798_s18  ;;  %v714_v34 = vpop.permute.xlu1 %713  ;;  %v2765_v26 = vshrl.u32 %v11348_v16, 16  ;;  %v2768_v48 = vshll.u32 %v11348_v16, 16  ;;  %v8491_v22 = vcombine.low %v9702_v30, %v9703_v37 }
 0x119   : > { %v841_v7 = vsel %vm827_vm4, %v772_v21, %v714_v34  ;;  %v2873_v15 = vsel %vm651_vm0, %v2870_v45, %v2872_v47  ;;  %v2758_v39 = vrot.slane %v2756_v25, 4  ;;  %v2761_v8 = vrot.slane %v2759_v3, 5 }
 0x11a   : > { %v1909_v33 = vshrl.u32 %v841_v7, 16  ;;  %v1912_v59 = vshll.u32 %v841_v7, 16  ;;  %v712_v0 = vpop.permute.xlu0 %711  ;;  %2822 = vrot.lane.b32.xlu1 %v2754_v52, %s9799_s19  ;;  %v3093_v54 = vsel %vm1351_vm5, %v11253_v12, %v3092_v6  ;;  %v3101_v5 = vsel %vm1351_vm5, %v3092_v6, %v11340_v58 }
 0x11b   : > { %v839_v11 = vsel %vm827_vm4, %v769_v14, %v712_v0  ;;  %9241 = vmatprep.mubr.msk.bf16.mxu0 %vm1560_vm6, %v3093_v54  ;;  %v588_v63 = vsel %vm382_vm1, %v578_v55, %v11370_v29  ;;  %v2767_v53 = vrot.slane %v2765_v26, 4  ;;  %v2770_v43 = vrot.slane %v2768_v48, 5 }
 0x11c   : > { %v1911_v62 = vrot.slane %v1909_v33, 3  ;;  %v1914_v9 = vrot.slane %v1912_v59, 4  ;;  %v1901_v56 = vshrl.u32 %v839_v11, 16  ;;  %v1904_v32 = vshll.u32 %v839_v11, 16  ;;  %2820 = vrot.lane.b32.xlu0 %v2745_v28, %s9799_s19  ;;  %9242 = vmatmul.mubr.msk.bf16.gmra.mxu0 %vm1560_vm6, %v3101_v5  ;;  %v2795_v12 = vpop.permute.xlu1 %2794  ;;  %v16005_v5 = vld [vmem:[#allocation9_spill] sm:$0xff] }
 0x11d   : > { %v2954_v10 = vsel %vm751_vm3, %v8492_v35, %v2795_v12  ;;  %v579_v21 = vsel %vm382_vm1, %v11265_v31, %v578_v55  ;;  %v2762_v35 = vor.u32 %v2761_v8, %v2758_v39  ;;  %v11401_v28 = vor.u32 %v2770_v43, %v2767_v53  ;;  %v9705_v12 = vld [vmem:[%s9835_s17 + $0x5c] sm:$0xf]  ;;  %v9552_v43 = vld [vmem:[%s9835_s17 + $0xc4] ss:$0 sps:$4 sm:$0x11]  }
 0x11e   : > { %v11383_v61 = vor.u32 %v1914_v9, %v1911_v62  ;;  %v1903_v24 = vrot.slane %v1901_v56, 3  ;;  %v1906_v2 = vrot.slane %v1904_v32, 4  ;;  %v2793_v19 = vpop.permute.xlu0 %2792  ;;  %2924 = vrot.lane.b32.xlu1 %v2875_v13, %s9798_s18  ;;  %v590_v31 = vshrl.u32 %v10785_v51, 16  ;;  %v9704_v32 = vld [vmem:[%s9835_s17 + $0x58] sm:$0xf] }
 0x11f   : > { %v2951_v45 = vsel %vm751_vm3, %v8491_v22, %v2793_v19  ;;  %v593_v13 = vshll.u32 %v10785_v51, 16  ;;  %v16004_v25 = vrot.slane %v10742_v23, 5  ;;  %v2876_v33 = vrot.slane %v11338_v1, 5  ;;  %v11420_v23 = vld [vmem:[%s9835_s17 + $0xd4] sm:$0xf] }
 0x120   : > { %v1907_v46 = vor.u32 %v1906_v2, %v1903_v24  ;;  %2922 = vrot.lane.b32.xlu0 %v2873_v15, %s9798_s18  ;;  %v2897_v4 = vpop.permute.xlu1 %2896  ;;  %v2878_v1 = vrot.slane %v11348_v16, 5  ;;  %v592_v48 = vrot.slane %v590_v31, 4  ;;  %v8494_v30 = vcombine.low %v9704_v32, %v9705_v12 }
 0x121   : > { %v3022_v47 = vsel %vm827_vm4, %v2954_v10, %v2897_v4  ;;  %v694_v3 = vsel %vm651_vm0, %v691_v42, %v16004_v25  ;;  %v2772_v42 = vsel %vm382_vm1, %v2762_v35, %v11401_v28  ;;  %v595_v62 = vrot.slane %v593_v13, 5 }
 0x122   : > { %v3110_v44 = vshrl.u32 %v3022_v47, 16  ;;  %v3113_v52 = vshll.u32 %v3022_v47, 16  ;;  %v2895_v41 = vpop.permute.xlu0 %2894  ;;  %642 = vrot.lane.b32.xlu1 %v588_v63, %s9799_s19  ;;  %v1908_v17 = vsel %vm1351_vm5, %v11290_v57, %v1907_v46  ;;  %v1916_v6 = vsel %vm1351_vm5, %v1907_v46, %v11383_v61 }
 0x123   : > { %v3020_v34 = vsel %vm827_vm4, %v2951_v45, %v2895_v41  ;;  %9193 = vmatprep.mubr.msk.bf16.mxu1 %vm1560_vm6, %v1908_v17  ;;  %v2763_v15 = vsel %vm382_vm1, %v11320_v50, %v2762_v35  ;;  %v11438_v39 = vcombine.low %v11420_v23, %v11423_v40  ;;  %v2879_v50 = vsel %vm651_vm0, %v2876_v33, %v2878_v1  ;;  %v9707_v35 = vld [vmem:[%s9835_s17 + $0x54] sm:$0xf] }
 0x124   : > { %v3112_v55 = vrot.slane %v3110_v44, 3  ;;  %v3115_v38 = vrot.slane %v3113_v52, 4  ;;  %v3102_v14 = vshrl.u32 %v3020_v34, 16  ;;  %v3105_v7 = vshll.u32 %v3020_v34, 16  ;;  %640 = vrot.lane.b32.xlu0 %v579_v21, %s9799_s19  ;;  %9194 = vmatmul.mubr.msk.bf16.gmra.mxu1 %vm1560_vm6, %v1916_v6  ;;  %v615_v57 = vpop.permute.xlu1 %614  ;;  %v9706_v21 = vld [vmem:[%s9835_s17 + $0x50] sm:$0xf] }
 0x125   : > { %v778_v11 = vsel %vm751_vm3, %v16005_v5, %v615_v57  ;;  %v596_v53 = vor.u32 %v595_v62, %v592_v48  ;;  %v8493_v44 = vcombine.low %v9706_v21, %v9707_v35  ;;  %v2877_v52 = vsel %vm651_vm0, %v2874_v18, %v2876_v33  ;;  %v9556_v48 = vld [vmem:[%s9835_s17 + $0xdc] ss:$0 sps:$4 sm:$0x11]  }
 0x126   : > { %v11413_v59 = vor.u32 %v3115_v38, %v3112_v55  ;;  %v3104_v0 = vrot.slane %v3102_v14, 3  ;;  %v3107_v54 = vrot.slane %v3105_v7, 4  ;;  %v613_v26 = vpop.permute.xlu0 %612  ;;  %745 = vrot.lane.b32.xlu1 %v10925_v60, %s9798_s18  ;;  %v16006_v60 = vld [vmem:[#allocation8_spill] sm:$0xff]  ;;  %v2774_v41 = vshrl.u32 %v11438_v39, 16 }
 0x127   : > { %v775_v37 = vsel %vm751_vm3, %v16006_v60, %v613_v26  ;;  %v2777_v17 = vshll.u32 %v11438_v39, 16  ;;  %v699_v38 = vrot.slane %v9552_v43, 5  ;;  %v597_v18 = vsel %vm382_vm1, %v11370_v29, %v596_v53  ;;  %v9708_v43 = vld [vmem:[%s9835_s17 + $0x68] sm:$0xf] }
 0x128   : > { %v3108_v9 = vor.u32 %v3107_v54, %v3104_v0  ;;  %743 = vrot.lane.b32.xlu0 %v694_v3, %s9798_s18  ;;  %v718_v56 = vpop.permute.xlu1 %717  ;;  %v2776_v25 = vrot.slane %v2774_v41, 4  ;;  %v16007_v29 = vrot.slane %v10785_v51, 5  ;;  %v16008_v51 = vld [vmem:[#allocation11_spill] sm:$0xff] }
 0x129   : > { %v845_v22 = vsel %vm827_vm4, %v778_v11, %v718_v56  ;;  %v2779_v3 = vrot.slane %v2777_v17, 5 }
 0x12a   : > { %v1925_v8 = vshrl.u32 %v845_v22, 16  ;;  %v1928_v24 = vshll.u32 %v845_v22, 16  ;;  %v716_v2 = vpop.permute.xlu0 %715  ;;  %2826 = vrot.lane.b32.xlu1 %v2772_v42, %s9799_s19  ;;  %v3109_v10 = vsel %vm1351_vm5, %v11340_v58, %v3108_v9  ;;  %v3117_v19 = vsel %vm1351_vm5, %v3108_v9, %v11413_v59 }
 0x12b   : > { %v843_v63 = vsel %vm827_vm4, %v775_v37, %v716_v2  ;;  %9245 = vmatprep.mubr.msk.bf16.mxu0 %vm1560_vm6, %v3109_v10  ;;  %v700_v42 = vsel %vm651_vm0, %v16007_v29, %v699_v38  ;;  %v2780_v12 = vor.u32 %v2779_v3, %v2776_v25 }
 0x12c   : > { %v1927_v46 = vrot.slane %v1925_v8, 3  ;;  %v1930_v4 = vrot.slane %v1928_v24, 4  ;;  %v1917_v45 = vshrl.u32 %v843_v63, 16  ;;  %v1920_v47 = vshll.u32 %v843_v63, 16  ;;  %2824 = vrot.lane.b32.xlu0 %v2763_v15, %s9799_s19  ;;  %9246 = vmatmul.mubr.msk.bf16.gmra.mxu0 %vm1560_vm6, %v3117_v19  ;;  %v2799_v58 = vpop.permute.xlu1 %2798  ;;  %v16009_v19 = vld [vmem:[#allocation10_spill] sm:$0xff] }
 0x12d   : > { %v2960_v13 = vsel %vm751_vm3, %v8494_v30, %v2799_v58  ;;  %v2880_v8 = vrot.slane %v11438_v39, 5  ;;  %v2882_v24 = vrot.slane %v9556_v48, 5 }
 0x12e   : > { %v11460_v6 = vor.u32 %v1930_v4, %v1927_v46  ;;  %v1919_v34 = vrot.slane %v1917_v45, 3  ;;  %v1922_v31 = vrot.slane %v1920_v47, 4  ;;  %v2797_v55 = vpop.permute.xlu0 %2796  ;;  %2928 = vrot.lane.b32.xlu1 %v2879_v50, %s9798_s18  ;;  %v9709_v46 = vld [vmem:[%s9835_s17 + $0x6c] sm:$0xf] }
 0x12f   : > { %v2957_v7 = vsel %vm751_vm3, %v8493_v44, %v2797_v55  ;;  %v8496_v4 = vcombine.low %v9708_v43, %v9709_v46 }
 0x130   : > { %v1923_v14 = vor.u32 %v1922_v31, %v1919_v34  ;;  %2926 = vrot.lane.b32.xlu0 %v2877_v52, %s9798_s18  ;;  %v2901_v20 = vpop.permute.xlu1 %2900  ;;  %v9710_v34 = vld [vmem:[%s9835_s17 + $0x60] sm:$0xf] }
 0x131   : > { %v3026_v57 = vsel %vm827_vm4, %v2960_v13, %v2901_v20  ;;  %v2881_v13 = vsel %vm651_vm0, %v2878_v1, %v2880_v8 }
 0x132   : > { %v3126_v33 = vshrl.u32 %v3026_v57, 16  ;;  %v3129_v0 = vshll.u32 %v3026_v57, 16  ;;  %v2899_v54 = vpop.permute.xlu0 %2898  ;;  %646 = vrot.lane.b32.xlu1 %v596_v53, %s9799_s19  ;;  %v1924_v5 = vsel %vm1351_vm5, %v11383_v61, %v1923_v14  ;;  %v1932_v11 = vsel %vm1351_vm5, %v1923_v14, %v11460_v6 }
 0x133   : > { %v3024_v26 = vsel %vm827_vm4, %v2957_v7, %v2899_v54  ;;  %9197 = vmatprep.mubr.msk.bf16.mxu1 %vm1560_vm6, %v1924_v5  ;;  %v2781_v53 = vsel %vm382_vm1, %v11401_v28, %v2780_v12  ;;  %v2883_v28 = vsel %vm651_vm0, %v2880_v8, %v2882_v24  ;;  %v9713_v8 = vld [vmem:[%s9835_s17 + $0x7c] sm:$0xf] }
 0x134   : > { %v3128_v62 = vrot.slane %v3126_v33, 3  ;;  %v3131_v9 = vrot.slane %v3129_v0, 4  ;;  %v3118_v56 = vshrl.u32 %v3024_v26, 16  ;;  %v3121_v32 = vshll.u32 %v3024_v26, 16  ;;  %644 = vrot.lane.b32.xlu0 %v597_v18, %s9799_s19  ;;  %9198 = vmatmul.mubr.msk.bf16.gmra.mxu1 %vm1560_vm6, %v1932_v11  ;;  %v619_v61 = vpop.permute.xlu1 %618 }
 0x135   : > { %v784_v22 = vsel %vm751_vm3, %v16008_v51, %v619_v61 }
 0x136   : > { %v11482_v30 = vor.u32 %v3131_v9, %v3128_v62  ;;  %v3120_v60 = vrot.slane %v3118_v56, 3  ;;  %v3123_v37 = vrot.slane %v3121_v32, 4  ;;  %v617_v15 = vpop.permute.xlu0 %616  ;;  %749 = vrot.lane.b32.xlu1 %v700_v42, %s9798_s18  ;;  %v16010_v56 = vld [vmem:[#allocation13_spill] sm:$0xff] }
 0x137   : > { %v781_v63 = vsel %vm751_vm3, %v16009_v19, %v617_v15  ;;  %v9712_v15 = vld [vmem:[%s9835_s17 + $0x78] sm:$0xf] }
 0x138   : > { %v3124_v2 = vor.u32 %v3123_v37, %v3120_v60  ;;  %747 = vrot.lane.b32.xlu0 %v11023_v49, %s9798_s18  ;;  %v722_v10 = vpop.permute.xlu1 %721  ;;  %v16011_v37 = vld [vmem:[#allocation12_spill] sm:$0xff]  ;;  %v8498_v24 = vcombine.low %v9712_v15, %v9713_v8 }
 0x139   : > { %v849_v50 = vsel %vm827_vm4, %v784_v22, %v722_v10 }
 0x13a   : > { %v1941_v45 = vshrl.u32 %v849_v50, 16  ;;  %v1944_v39 = vshll.u32 %v849_v50, 16  ;;  %v720_v47 = vpop.permute.xlu0 %719  ;;  %2830 = vrot.lane.b32.xlu1 %v2780_v12, %s9799_s19  ;;  %v3125_v49 = vsel %vm1351_vm5, %v11413_v59, %v3124_v2  ;;  %v3133_v58 = vsel %vm1351_vm5, %v3124_v2, %v11482_v30  ;;  %v9711_v59 = vld [vmem:[%s9835_s17 + $0x64] sm:$0xf] }
 0x13b   : > { %v847_v21 = vsel %vm827_vm4, %v781_v63, %v720_v47  ;;  %9249 = vmatprep.mubr.msk.bf16.mxu0 %vm1560_vm6, %v3125_v49  ;;  %v8495_v31 = vcombine.low %v9710_v34, %v9711_v59  ;;  %v9714_v47 = vld [vmem:[%s9835_s17 + $0x70] sm:$0xf]  ;;  %v9715_v49 = vld [vmem:[%s9835_s17 + $0x74] sm:$0xf] }
 0x13c   : > { %v1943_v35 = vrot.slane %v1941_v45, 3  ;;  %v1946_v44 = vrot.slane %v1944_v39, 4  ;;  %v1933_v52 = vshrl.u32 %v847_v21, 16  ;;  %v1936_v41 = vshll.u32 %v847_v21, 16  ;;  %2828 = vrot.lane.b32.xlu0 %v2781_v53, %s9799_s19  ;;  %9250 = vmatmul.mubr.msk.bf16.gmra.mxu0 %vm1560_vm6, %v3133_v58  ;;  %v2803_v17 = vpop.permute.xlu1 %2802 }
 0x13d   : > { %v2966_v20 = vsel %vm751_vm3, %v8496_v4, %v2803_v17  ;;  %v8497_v58 = vcombine.low %v9714_v47, %v9715_v49 }
 0x13e   : > { %v11512_v55 = vor.u32 %v1946_v44, %v1943_v35  ;;  %v1935_v38 = vrot.slane %v1933_v52, 3  ;;  %v1938_v14 = vrot.slane %v1936_v41, 4  ;;  %v2801_v18 = vpop.permute.xlu0 %2800  ;;  %2932 = vrot.lane.b32.xlu1 %v2883_v28, %s9798_s18 }
 0x13f   : > { %v2963_v25 = vsel %vm751_vm3, %v8495_v31, %v2801_v18 }
 0x140   : > { %v1939_v7 = vor.u32 %v1938_v14, %v1935_v38  ;;  %2930 = vrot.lane.b32.xlu0 %v2881_v13, %s9798_s18  ;;  %v2905_v57 = vpop.permute.xlu1 %2904 }
 0x141   : > { %v3030_v3 = vsel %vm827_vm4, %v2966_v20, %v2905_v57 }
 0x142   : > { %v3142_v16 = vshrl.u32 %v3030_v3, 16  ;;  %v3145_v33 = vshll.u32 %v3030_v3, 16  ;;  %v2903_v1 = vpop.permute.xlu0 %2902  ;;  %v1940_v0 = vsel %vm1351_vm5, %v11460_v6, %v1939_v7  ;;  %v1948_v54 = vsel %vm1351_vm5, %v1939_v7, %v11512_v55 }
 0x143   : > { %v3028_v5 = vsel %vm827_vm4, %v2963_v25, %v2903_v1  ;;  %9201 = vmatprep.mubr.msk.bf16.mxu1 %vm1560_vm6, %v1940_v0  ;;  %v16012_v1 = vld [vmem:[#allocation15_spill] sm:$0xff] }
 0x144   : > { %v3144_v11 = vrot.slane %v3142_v16, 3  ;;  %v3147_v26 = vrot.slane %v3145_v33, 4  ;;  %v3134_v29 = vshrl.u32 %v3028_v5, 16  ;;  %v3137_v42 = vshll.u32 %v3028_v5, 16  ;;  %9202 = vmatmul.mubr.msk.bf16.gmra.mxu1 %vm1560_vm6, %v1948_v54  ;;  %v623_v48 = vpop.permute.xlu1 %622 }
 0x145   : > { %v790_v32 = vsel %vm751_vm3, %v16010_v56, %v623_v48  ;;  %v9716_v48 = vld [vmem:[%s9835_s17 + $0x88] sm:$0xf] }
 0x146   : > { %v11526_v62 = vor.u32 %v3147_v26, %v3144_v11  ;;  %v3136_v9 = vrot.slane %v3134_v29, 3  ;;  %v3139_v6 = vrot.slane %v3137_v42, 4  ;;  %v621_v61 = vpop.permute.xlu0 %620  ;;  %v16013_v26 = vld [vmem:[#allocation14_spill] sm:$0xff] }
 0x147   : > { %v787_v51 = vsel %vm751_vm3, %v16011_v37, %v621_v61 }
 0x148   : > { %v3140_v12 = vor.u32 %v3139_v6, %v3136_v9  ;;  %v726_v60 = vpop.permute.xlu1 %725  ;;  %v9717_v9 = vld [vmem:[%s9835_s17 + $0x8c] sm:$0xf] }
 0x149   : > { %v853_v22 = vsel %vm827_vm4, %v790_v32, %v726_v60  ;;  %v8500_v6 = vcombine.low %v9716_v48, %v9717_v9 }
 0x14a   : > { %v1957_v2 = vshrl.u32 %v853_v22, 16  ;;  %v1960_v10 = vshll.u32 %v853_v22, 16  ;;  %v724_v19 = vpop.permute.xlu0 %723  ;;  %v3141_v63 = vsel %vm1351_vm5, %v11482_v30, %v3140_v12  ;;  %v3149_v50 = vsel %vm1351_vm5, %v3140_v12, %v11526_v62 }
 0x14b   : > { %v851_v53 = vsel %vm827_vm4, %v787_v51, %v724_v19  ;;  %9253 = vmatprep.mubr.msk.bf16.mxu0 %vm1560_vm6, %v3141_v63 }
 0x14c   : > { %v1959_v43 = vrot.slane %v1957_v2, 3  ;;  %v1962_v46 = vrot.slane %v1960_v10, 4  ;;  %v1949_v4 = vshrl.u32 %v851_v53, 16  ;;  %v1952_v45 = vshll.u32 %v851_v53, 16  ;;  %9254 = vmatmul.mubr.msk.bf16.gmra.mxu0 %vm1560_vm6, %v3149_v50  ;;  %v2807_v39 = vpop.permute.xlu1 %2806  ;;  %v9718_v2 = vld [vmem:[%s9835_s17 + $0x80] sm:$0xf] }
 0x14d   : > { %v2972_v35 = vsel %vm751_vm3, %v8498_v24, %v2807_v39  ;;  %v9719_v10 = vld [vmem:[%s9835_s17 + $0x84] sm:$0xf] }
 0x14e   : > { %v11544_v21 = vor.u32 %v1962_v46, %v1959_v43  ;;  %v1951_v30 = vrot.slane %v1949_v4, 3  ;;  %v1954_v28 = vrot.slane %v1952_v45, 4  ;;  %v2805_v44 = vpop.permute.xlu0 %2804  ;;  %v8499_v19 = vcombine.low %v9718_v2, %v9719_v10 }
 0x14f   : > { %v2969_v17 = vsel %vm751_vm3, %v8497_v58, %v2805_v44 }
 0x150   : > { %v1955_v52 = vor.u32 %v1954_v28, %v1951_v30  ;;  %v2909_v41 = vpop.permute.xlu1 %2908 }
 0x151   : > { %v3034_v34 = vsel %vm827_vm4, %v2972_v35, %v2909_v41 }
 0x152   : > { %v3158_v59 = vshrl.u32 %v3034_v34, 16  ;;  %v3161_v31 = vshll.u32 %v3034_v34, 16  ;;  %v2907_v13 = vpop.permute.xlu0 %2906  ;;  %v1956_v38 = vsel %vm1351_vm5, %v11512_v55, %v1955_v52  ;;  %v1964_v14 = vsel %vm1351_vm5, %v1955_v52, %v11544_v21 }
 0x153   : > { %v3032_v20 = vsel %vm827_vm4, %v2969_v17, %v2907_v13  ;;  %9205 = vmatprep.mubr.msk.bf16.mxu1 %vm1560_vm6, %v1956_v38 }
 0x154   : > { %v3160_v18 = vrot.slane %v3158_v59, 3  ;;  %v3163_v7 = vrot.slane %v3161_v31, 4  ;;  %v3150_v57 = vshrl.u32 %v3032_v20, 16  ;;  %v3153_v25 = vshll.u32 %v3032_v20, 16  ;;  %9206 = vmatmul.mubr.msk.bf16.gmra.mxu1 %vm1560_vm6, %v1964_v14  ;;  %v627_v3 = vpop.permute.xlu1 %626  ;;  %v16014_v20 = vld [vmem:[#allocation18_spill] sm:$0xff] }
 0x155   : > { %v796_v0 = vsel %vm751_vm3, %v16012_v1, %v627_v3 }
 0x156   : > { %v11556_v16 = vor.u32 %v3163_v7, %v3160_v18  ;;  %v3152_v33 = vrot.slane %v3150_v57, 3  ;;  %v3155_v55 = vrot.slane %v3153_v25, 4  ;;  %v625_v54 = vpop.permute.xlu0 %624 }
 0x157   : > { %v793_v29 = vsel %vm751_vm3, %v16013_v26, %v625_v54  ;;  %v9721_v54 = vld [vmem:[%s9835_s17 + $0x9c] sm:$0xf] }
 0x158   : > { %v3156_v5 = vor.u32 %v3155_v55, %v3152_v33  ;;  %v730_v11 = vpop.permute.xlu1 %729  ;;  %v16015_v33 = vld [vmem:[#allocation17_spill] sm:$0xff] }
 0x159   : > { %v857_v42 = vsel %vm827_vm4, %v796_v0, %v730_v11  ;;  %v9720_v0 = vld [vmem:[%s9835_s17 + $0x98] sm:$0xf] }
 0x15a   : > { %v1973_v56 = vshrl.u32 %v857_v42, 16  ;;  %v1976_v32 = vshll.u32 %v857_v42, 16  ;;  %v728_v61 = vpop.permute.xlu0 %727  ;;  %v3157_v12 = vsel %vm1351_vm5, %v11526_v62, %v3156_v5  ;;  %v3165_v60 = vsel %vm1351_vm5, %v3156_v5, %v11556_v16 }
 0x15b   : > { %v855_v37 = vsel %vm827_vm4, %v793_v29, %v728_v61  ;;  %9257 = vmatprep.mubr.msk.bf16.mxu0 %vm1560_vm6, %v3157_v12  ;;  %v8502_v5 = vcombine.low %v9720_v0, %v9721_v54  ;;  %v9724_v54 = vld [vmem:[%s9835_s17 + $0xa8] sm:$0xf] }
 0x15c   : > { %v1975_v51 = vrot.slane %v1973_v56, 3  ;;  %v1978_v22 = vrot.slane %v1976_v32, 4  ;;  %v1965_v15 = vshrl.u32 %v855_v37, 16  ;;  %v1968_v8 = vshll.u32 %v855_v37, 16  ;;  %9258 = vmatmul.mubr.msk.bf16.gmra.mxu0 %vm1560_vm6, %v3165_v60  ;;  %v2811_v24 = vpop.permute.xlu1 %2810 }
 0x15d   : > { %v2978_v53 = vsel %vm751_vm3, %v8500_v6, %v2811_v24 }
 0x15e   : > { %v11574_v63 = vor.u32 %v1978_v22, %v1975_v51  ;;  %v1967_v62 = vrot.slane %v1965_v15, 3  ;;  %v1970_v50 = vrot.slane %v1968_v8, 4  ;;  %v2809_v43 = vpop.permute.xlu0 %2808  ;;  %v9722_v51 = vld [vmem:[%s9835_s17 + $0x90] sm:$0xf]  ;;  %v9723_v22 = vld [vmem:[%s9835_s17 + $0x94] sm:$0xf] }
 0x15f   : > { %v2975_v45 = vsel %vm751_vm3, %v8499_v19, %v2809_v43  ;;  %v8501_v15 = vcombine.low %v9722_v51, %v9723_v22 }
 0x160   : > { %v1971_v46 = vor.u32 %v1970_v50, %v1967_v62  ;;  %v2913_v4 = vpop.permute.xlu1 %2912 }
 0x161   : > { %v3038_v39 = vsel %vm827_vm4, %v2978_v53, %v2913_v4 }
 0x162   : > { %v11579_v47 = vpop.f32.mrf.mxu0  ;;  %v3174_v49 = vshrl.u32 %v3038_v39, 16  ;;  %v3177_v58 = vshll.u32 %v3038_v39, 16  ;;  %v2911_v30 = vpop.permute.xlu0 %2910  ;;  %v1972_v28 = vsel %vm1351_vm5, %v11544_v21, %v1971_v46  ;;  %v1980_v35 = vsel %vm1351_vm5, %v1971_v46, %v11574_v63 }
 0x163   : > { %v3036_v44 = vsel %vm827_vm4, %v2975_v45, %v2911_v30  ;;  %9209 = vmatprep.mubr.msk.bf16.mxu1 %vm1560_vm6, %v1972_v28 }
 0x164   : > { %v3176_v52 = vrot.slane %v3174_v49, 3  ;;  %v3179_v41 = vrot.slane %v3177_v58, 4  ;;  %v3166_v17 = vshrl.u32 %v3036_v44, 16  ;;  %v3169_v34 = vshll.u32 %v3036_v44, 16  ;;  %v11587_v59 = vpop.f32.mrf.mxu0  ;;  %9210 = vmatmul.mubr.msk.bf16.gmra.mxu1 %vm1560_vm6, %v1980_v35  ;;  %v631_v31 = vpop.permute.xlu1 %630 }
 0x165   : > { %v802_v18 = vsel %vm751_vm3, %v16014_v20, %v631_v31  ;;  %v16016_v20 = vld [vmem:[#allocation23_spill] sm:$0xff] }
 0x166   : > { %v11590_v13 = vor.u32 %v3179_v41, %v3176_v52  ;;  %v3168_v21 = vrot.slane %v3166_v17, 3  ;;  %v3171_v38 = vrot.slane %v3169_v34, 4  ;;  %v11592_v14 = vpop.f32.mrf.mxu0  ;;  %v629_v7 = vpop.permute.xlu0 %628 }
 0x167   : > { %v799_v55 = vsel %vm751_vm3, %v16015_v33, %v629_v7 }
 0x168   : > { %v3172_v57 = vor.u32 %v3171_v38, %v3168_v21  ;;  %v11596_v25 = vpop.f32.mrf.mxu0  ;;  %v734_v3 = vpop.permute.xlu1 %733 }
 0x169   : > { %v861_v1 = vsel %vm827_vm4, %v802_v18, %v734_v3 }
 0x16a   : > { %v11603_v11 = vpop.f32.mrf.mxu0  ;;  %v1989_v26 = vshrl.u32 %v861_v1, 16  ;;  %v1992_v29 = vshll.u32 %v861_v1, 16  ;;  %v732_v42 = vpop.permute.xlu0 %731  ;;  %v3173_v48 = vsel %vm1351_vm5, %v11556_v16, %v3172_v57  ;;  %v3181_v9 = vsel %vm1351_vm5, %v3172_v57, %v11590_v13 }
 0x16b   : > { %v859_v6 = vsel %vm827_vm4, %v799_v55, %v732_v42  ;;  %9261 = vmatprep.mubr.msk.bf16.mxu0 %vm1560_vm6, %v3173_v48  ;;  %v16017_v55 = vld [vmem:[#allocation21_spill] sm:$0xff] }
 0x16c   : > { %v1991_v56 = vrot.slane %v1989_v26, 3  ;;  %v1994_v32 = vrot.slane %v1992_v29, 4  ;;  %v1981_v61 = vshrl.u32 %v859_v6, 16  ;;  %v1984_v12 = vshll.u32 %v859_v6, 16  ;;  %v11611_v60 = vpop.f32.mrf.mxu0  ;;  %9262 = vmatmul.mubr.msk.bf16.gmra.mxu0 %vm1560_vm6, %v3181_v9  ;;  %v2815_v37 = vpop.permute.xlu1 %2814 }
 0x16d   : > { %v2984_v10 = vsel %vm751_vm3, %v8502_v5, %v2815_v37  ;;  %v9725_v5 = vld [vmem:[%s9835_s17 + $0xac] sm:$0xf] }
 0x16e   : > { %v11616_v16 = vor.u32 %v1994_v32, %v1991_v56  ;;  %v1983_v8 = vrot.slane %v1981_v61, 3  ;;  %v1986_v24 = vrot.slane %v1984_v12, 4  ;;  %v11618_v2 = vpop.f32.mrf.mxu0  ;;  %v2813_v19 = vpop.permute.xlu0 %2812  ;;  %v8504_v26 = vcombine.low %v9724_v54, %v9725_v5  ;;  %v16018_v54 = vld [vmem:[#allocation26_spill] sm:$0xff] }
 0x16f   : > { %v2981_v43 = vsel %vm751_vm3, %v8501_v15, %v2813_v19 }
 0x170   : > { %v1987_v62 = vor.u32 %v1986_v24, %v1983_v8  ;;  %v11621_v50 = vpop.f32.mrf.mxu0  ;;  %v2917_v53 = vpop.permute.xlu1 %2916  ;;  %v9726_v8 = vld [vmem:[%s9835_s17 + $0xa0] sm:$0xf]  ;;  %v9727_v24 = vld [vmem:[%s9835_s17 + $0xa4] sm:$0xf] }
 0x171   : > { %v3042_v46 = vsel %vm827_vm4, %v2984_v10, %v2917_v53  ;;  %v8503_v10 = vcombine.low %v9726_v8, %v9727_v24 }
 0x172   : > { %v11625_v4 = vpop.f32.mrf.mxu0  ;;  %v3190_v45 = vshrl.u32 %v3042_v46, 16  ;;  %v3193_v39 = vshll.u32 %v3042_v46, 16  ;;  %v2915_v49 = vpop.permute.xlu0 %2914  ;;  %v1988_v58 = vsel %vm1351_vm5, %v11574_v63, %v1987_v62  ;;  %v1996_v30 = vsel %vm1351_vm5, %v1987_v62, %v11616_v16 }
 0x173   : > { %v3040_v28 = vsel %vm827_vm4, %v2981_v43, %v2915_v49  ;;  %9213 = vmatprep.mubr.msk.bf16.mxu1 %vm1560_vm6, %v1988_v58 }
 0x174   : > { %v3192_v35 = vrot.slane %v3190_v45, 3  ;;  %v3195_v44 = vrot.slane %v3193_v39, 4  ;;  %v3182_v52 = vshrl.u32 %v3040_v28, 16  ;;  %v3185_v41 = vshll.u32 %v3040_v28, 16  ;;  %v11633_v17 = vpop.f32.mrf.mxu0  ;;  %9214 = vmatmul.mubr.msk.bf16.gmra.mxu1 %vm1560_vm6, %v1996_v30  ;;  %v635_v34 = vpop.permute.xlu1 %634 }
 0x175   : > { %v808_v18 = vsel %vm751_vm3, %v16016_v20, %v635_v34 }
 0x176   : > { %v11636_v31 = vor.u32 %v3195_v44, %v3192_v35  ;;  %v3184_v63 = vrot.slane %v3182_v52, 3  ;;  %v3187_v21 = vrot.slane %v3185_v41, 4  ;;  %v11638_v38 = vpop.f32.mrf.mxu0  ;;  %v633_v7 = vpop.permute.xlu0 %632 }
 0x177   : > { %v805_v1 = vsel %vm751_vm3, %v16017_v55, %v633_v7 }
 0x178   : > { %v3188_v57 = vor.u32 %v3187_v21, %v3184_v63  ;;  %v11642_v3 = vpop.f32.mrf.mxu0  ;;  %v738_v33 = vpop.permute.xlu1 %737 }
 0x179   : > { %v865_v0 = vsel %vm827_vm4, %v808_v18, %v738_v33 }
 0x17a   : > { %v11649_v29 = vpop.f32.mrf.mxu0  ;;  %v2005_v42 = vshrl.u32 %v865_v0, 16  ;;  %v2008_v48 = vshll.u32 %v865_v0, 16  ;;  %v736_v9 = vpop.permute.xlu0 %735  ;;  %v3189_v6 = vsel %vm1351_vm5, %v11590_v13, %v3188_v57  ;;  %v3197_v56 = vsel %vm1351_vm5, %v3188_v57, %v11636_v31 }
 0x17b   : > { %v863_v32 = vsel %vm827_vm4, %v805_v1, %v736_v9  ;;  %9265 = vmatprep.mubr.msk.bf16.mxu0 %vm1560_vm6, %v3189_v6  ;;  %v16019_v6 = vld [vmem:[#allocation25_spill] sm:$0xff] }
 0x17c   : > { %v2007_v61 = vrot.slane %v2005_v42, 3  ;;  %v2010_v12 = vrot.slane %v2008_v48, 4  ;;  %v1997_v37 = vshrl.u32 %v863_v32, 16  ;;  %v2000_v51 = vshll.u32 %v863_v32, 16  ;;  %v11657_v22 = vpop.f32.mrf.mxu0  ;;  %9266 = vmatmul.mubr.msk.bf16.gmra.mxu0 %vm1560_vm6, %v3197_v56  ;;  %v2819_v15 = vpop.permute.xlu1 %2818 }
 0x17d   : > { %v2990_v43 = vsel %vm751_vm3, %v8504_v26, %v2819_v15 }
 0x17e   : > { %v11662_v13 = vor.u32 %v2010_v12, %v2007_v61  ;;  %v1999_v19 = vrot.slane %v1997_v37, 3  ;;  %v2002_v62 = vrot.slane %v2000_v51, 4  ;;  %v11664_v53 = vpop.f32.mrf.mxu0  ;;  %v2817_v46 = vpop.permute.xlu0 %2816  ;;  %v9728_v61 = vld [vmem:[%s9835_s17 + $0xb8] sm:$0xf]  ;;  %v9729_v12 = vld [vmem:[%s9835_s17 + $0xbc] sm:$0xf] }
 0x17f   : > { %v2987_v58 = vsel %vm751_vm3, %v8503_v10, %v2817_v46  ;;  %v8506_v37 = vcombine.low %v9728_v61, %v9729_v12 }
 0x180   : > { %v2003_v45 = vor.u32 %v2002_v62, %v1999_v19  ;;  %v11667_v39 = vpop.f32.mrf.mxu0  ;;  %v2921_v49 = vpop.permute.xlu1 %2920 }
 0x181   : > { %v3046_v30 = vsel %vm827_vm4, %v2990_v43, %v2921_v49 }
 0x182   : > { %v11671_v28 = vpop.f32.mrf.mxu0  ;;  %v3206_v35 = vshrl.u32 %v3046_v30, 16  ;;  %v3209_v44 = vshll.u32 %v3046_v30, 16  ;;  %v2919_v52 = vpop.permute.xlu0 %2918  ;;  %v2004_v41 = vsel %vm1351_vm5, %v11616_v16, %v2003_v45  ;;  %v2012_v34 = vsel %vm1351_vm5, %v2003_v45, %v11662_v13 }
 0x183   : > { %v3044_v63 = vsel %vm827_vm4, %v2987_v58, %v2919_v52  ;;  %9217 = vmatprep.mubr.msk.bf16.mxu1 %vm1560_vm6, %v2004_v41 }
 0x184   : > { %v3208_v21 = vrot.slane %v3206_v35, 3  ;;  %v3211_v20 = vrot.slane %v3209_v44, 4  ;;  %v3198_v18 = vshrl.u32 %v3044_v63, 16  ;;  %v3201_v7 = vshll.u32 %v3044_v63, 16  ;;  %v11679_v57 = vpop.f32.mrf.mxu0  ;;  %9218 = vmatmul.mubr.msk.bf16.gmra.mxu1 %vm1560_vm6, %v2012_v34  ;;  %v639_v33 = vpop.permute.xlu1 %638  ;;  %v9730_v35 = vld [vmem:[%s9835_s17 + $0xb0] sm:$0xf] }
 0x185   : > { %v814_v5 = vsel %vm751_vm3, %v16018_v54, %v639_v33  ;;  %v9731_v44 = vld [vmem:[%s9835_s17 + $0xb4] sm:$0xf] }
 0x186   : > { %v11682_v55 = vor.u32 %v3211_v20, %v3208_v21  ;;  %v3200_v16 = vrot.slane %v3198_v18, 3  ;;  %v3203_v1 = vrot.slane %v3201_v7, 4  ;;  %v11684_v0 = vpop.f32.mrf.mxu0  ;;  %v637_v26 = vpop.permute.xlu0 %636  ;;  %v8505_v52 = vcombine.low %v9730_v35, %v9731_v44  ;;  %v16029_v35 = vld [vmem:[#allocation30_spill] sm:$0xff] }
 0x187   : > { %v811_v56 = vsel %vm751_vm3, %v16019_v6, %v637_v26 }
 0x188   : > { %v3204_v42 = vor.u32 %v3203_v1, %v3200_v16  ;;  %v11688_v48 = vpop.f32.mrf.mxu0  ;;  %v742_v9 = vpop.permute.xlu1 %741 }
 0x189   : > { %v869_v32 = vsel %vm827_vm4, %v814_v5, %v742_v9 }
 0x18a   : > { %v11695_v51 = vpop.f32.mrf.mxu0  ;;  %v2021_v15 = vshrl.u32 %v869_v32, 16  ;;  %v2024_v8 = vshll.u32 %v869_v32, 16  ;;  %v740_v24 = vpop.permute.xlu0 %739  ;;  %v3205_v10 = vsel %vm1351_vm5, %v11636_v31, %v3204_v42  ;;  %v3213_v19 = vsel %vm1351_vm5, %v3204_v42, %v11682_v55 }
 0x18b   : > { %16020 = vst [vmem:[#allocation20_spill] sm:$0xff] %v11695_v51  ;;  %v867_v62 = vsel %vm827_vm4, %v811_v56, %v740_v24  ;;  %9269 = vmatprep.mubr.msk.bf16.mxu0 %vm1560_vm6, %v3205_v10 }
 0x18c   : > { %v2023_v43 = vrot.slane %v2021_v15, 3  ;;  %v2026_v46 = vrot.slane %v2024_v8, 4  ;;  %v2013_v45 = vshrl.u32 %v867_v62, 16  ;;  %v2016_v49 = vshll.u32 %v867_v62, 16  ;;  %v11703_v58 = vpop.f32.mrf.mxu0  ;;  %9270 = vmatmul.mubr.msk.bf16.gmra.mxu0 %vm1560_vm6, %v3213_v19  ;;  %v2823_v30 = vpop.permute.xlu1 %2822  ;;  %v16027_v62 = vld [vmem:[#allocation31_spill] sm:$0xff] }
 0x18d   : > { %16021 = vst [vmem:[#allocation19_spill] sm:$0xff] %v11703_v58  ;;  %v2996_v21 = vsel %vm751_vm3, %v8506_v37, %v2823_v30 }
 0x18e   : > { %v11708_v31 = vor.u32 %v2026_v46, %v2023_v43  ;;  %v2015_v41 = vrot.slane %v2013_v45, 3  ;;  %v2018_v34 = vrot.slane %v2016_v49, 4  ;;  %v11710_v63 = vpop.f32.mrf.mxu0  ;;  %v2821_v20 = vpop.permute.xlu0 %2820 }
 0x18f   : > { %16022 = vst [vmem:[#allocation16_spill] sm:$0xff] %v11710_v63  ;;  %v2993_v16 = vsel %vm751_vm3, %v8505_v52, %v2821_v20 }
 0x190   : > { %v2019_v18 = vor.u32 %v2018_v34, %v2015_v41  ;;  %v11713_v7 = vpop.f32.mrf.mxu0  ;;  %v2925_v33 = vpop.permute.xlu1 %2924  ;;  %v8508_v41 = vcombine.low %v11316_v27, %v11325_v36 }
 0x191   : > { %16023 = vst [vmem:[#allocation24_spill] sm:$0xff] %v11713_v7  ;;  %v3050_v1 = vsel %vm827_vm4, %v2996_v21, %v2925_v33 }
 0x192   : > { %v11717_v54 = vpop.f32.mrf.mxu0  ;;  %v3222_v5 = vshrl.u32 %v3050_v1, 16  ;;  %v3225_v26 = vshll.u32 %v3050_v1, 16  ;;  %v2923_v42 = vpop.permute.xlu0 %2922  ;;  %v2020_v9 = vsel %vm1351_vm5, %v11662_v13, %v2019_v18  ;;  %v2028_v6 = vsel %vm1351_vm5, %v2019_v18, %v11708_v31 }
 0x193   : > { %16024 = vst [vmem:[#allocation22_spill] sm:$0xff] %v11717_v54  ;;  %v3048_v56 = vsel %vm827_vm4, %v2993_v16, %v2923_v42  ;;  %9221 = vmatprep.mubr.msk.bf16.mxu1 %vm1560_vm6, %v2020_v9 }
 0x194   : > { %v3224_v32 = vrot.slane %v3222_v5, 3  ;;  %v3227_v61 = vrot.slane %v3225_v26, 4  ;;  %v3214_v12 = vshrl.u32 %v3048_v56, 16  ;;  %v3217_v37 = vshll.u32 %v3048_v56, 16  ;;  %v11725_v15 = vpop.f32.mrf.mxu0  ;;  %9222 = vmatmul.mubr.msk.bf16.gmra.mxu1 %vm1560_vm6, %v2028_v6  ;;  %v643_v8 = vpop.permute.xlu1 %642  ;;  %v9732_v6 = vld [vmem:[%s9835_s17 + $0xc0] sm:$0xf] }
 0x195   : > { %16025 = vst [vmem:[#allocation39_spill] sm:$0xff] %v11725_v15  ;;  %v820_v43 = vsel %vm751_vm3, %v16027_v62, %v643_v8  ;;  %v9733_v56 = vld [vmem:[%s9835_s17 + $0xc4] sm:$0xf] }
 0x196   : > { %v11728_v24 = vor.u32 %v3227_v61, %v3224_v32  ;;  %v3216_v10 = vrot.slane %v3214_v12, 3  ;;  %v3219_v13 = vrot.slane %v3217_v37, 4  ;;  %v11730_v19 = vpop.f32.mrf.mxu0  ;;  %v641_v46 = vpop.permute.xlu0 %640 }
 0x197   : > { %16026 = vst [vmem:[#allocation40_spill] sm:$0xff] %v11730_v19  ;;  %v817_v44 = vsel %vm751_vm3, %v16029_v35, %v641_v46 }
 0x198   : > { %v3220_v45 = vor.u32 %v3219_v13, %v3216_v10  ;;  %v11734_v49 = vpop.f32.mrf.mxu0  ;;  %v746_v30 = vpop.permute.xlu1 %745 }
 0x199   : > { %16028 = vst [vmem:[#allocation37_spill] sm:$0xff] %v11734_v49  ;;  %v873_v52 = vsel %vm827_vm4, %v820_v43, %v746_v30  ;;  %v9734_v30 = vld [vmem:[%s9835_s17 + $0xc0] sm:$0xf] }
 0x19a   : > { %v11741_v34 = vpop.f32.mrf.mxu0  ;;  %v2037_v21 = vshrl.u32 %v873_v52, 16  ;;  %v2040_v20 = vshll.u32 %v873_v52, 16  ;;  %v744_v18 = vpop.permute.xlu0 %743  ;;  %v3221_v33 = vsel %vm1351_vm5, %v11682_v55, %v3220_v45  ;;  %v3229_v16 = vsel %vm1351_vm5, %v3220_v45, %v11728_v24 }
 0x19b   : > { %16030 = vst [vmem:[#allocation29_spill] sm:$0xff] %v11741_v34  ;;  %v871_v1 = vsel %vm827_vm4, %v817_v44, %v744_v18  ;;  %9273 = vmatprep.mubr.msk.bf16.mxu0 %vm1560_vm6, %v3221_v33  ;;  %v8507_v55 = vcombine.low %v9732_v6, %v9733_v56  ;;  %v8399_v35 = vcombine.low %v9734_v30, %v9734_v30 }
 0x19c   : > { %v2039_v5 = vrot.slane %v2037_v21, 3  ;;  %v2042_v26 = vrot.slane %v2040_v20, 4  ;;  %v2029_v27 = vshrl.u32 %v871_v1, 16  ;;  %v2032_v36 = vshll.u32 %v871_v1, 16  ;;  %v11749_v42 = vpop.f32.mrf.mxu0  ;;  %9274 = vmatmul.mubr.msk.bf16.gmra.mxu0 %vm1560_vm6, %v3229_v16  ;;  %v2827_v9 = vpop.permute.xlu1 %2826 }
 0x19d   : > { %16031 = vst [vmem:[#allocation28_spill] sm:$0xff] %v11749_v42  ;;  %v3002_v8 = vsel %vm751_vm3, %v8508_v41, %v2827_v9 }
 0x19e   : > { %v11754_v32 = vor.u32 %v2042_v26, %v2039_v5  ;;  %v2031_v61 = vrot.slane %v2029_v27, 3  ;;  %v2034_v12 = vrot.slane %v2032_v36, 4  ;;  %v11756_v37 = vpop.f32.mrf.mxu0  ;;  %v2825_v10 = vpop.permute.xlu0 %2824 }
 0x19f   : > { %16032 = vst [vmem:[#allocation38_spill] sm:$0xff] %v11756_v37  ;;  %v2999_v46 = vsel %vm751_vm3, %v8507_v55, %v2825_v10 }
 0x1a0   : > { %v2035_v13 = vor.u32 %v2034_v12, %v2031_v61  ;;  %v11759_v62 = vpop.f32.mrf.mxu0  ;;  %v2929_v43 = vpop.permute.xlu1 %2928 }
 0x1a1   : > { %16033 = vst [vmem:[#allocation27_spill] sm:$0xff] %v11759_v62  ;;  %v3054_v45 = vsel %vm827_vm4, %v3002_v8, %v2929_v43 }
 0x1a2   : > { %v11764_v44 = vpop.f32.mrf.mxu0  ;;  %v3238_v52 = vshrl.u32 %v3054_v45, 16  ;;  %v3241_v21 = vshll.u32 %v3054_v45, 16  ;;  %v2927_v20 = vpop.permute.xlu0 %2926  ;;  %v2036_v18 = vsel %vm1351_vm5, %v11708_v31, %v2035_v13  ;;  %v2044_v41 = vsel %vm1351_vm5, %v2035_v13, %v11754_v32  ;;  %v16038_v13 = vld [vmem:[#allocation34_spill] sm:$0xff] }
 0x1a3   : > { %16034 = vst [vmem:[#allocation33_spill] sm:$0xff] %v11764_v44  ;;  %v3052_v33 = vsel %vm827_vm4, %v2999_v46, %v2927_v20  ;;  %9225 = vmatprep.mubr.msk.bf16.mxu1 %vm1560_vm6, %v2036_v18  ;;  %v8510_v45 = vcombine.low %v11423_v40, %v11423_v40 }
 0x1a4   : > { %v3240_v16 = vrot.slane %v3238_v52, 3  ;;  %v3243_v1 = vrot.slane %v3241_v21, 4  ;;  %v3230_v5 = vshrl.u32 %v3052_v33, 16  ;;  %v3233_v26 = vshll.u32 %v3052_v33, 16  ;;  %v11772_v27 = vpop.f32.mrf.mxu0  ;;  %9226 = vmatmul.mubr.msk.bf16.gmra.mxu1 %vm1560_vm6, %v2044_v41  ;;  %v647_v36 = vpop.permute.xlu1 %646 }
 0x1a5   : > { %16035 = vst [vmem:[#allocation32_spill] sm:$0xff] %v11772_v27  ;;  %v826_v55 = vsel %vm751_vm3, %v8399_v35, %v647_v36  ;;  %v9735_v36 = vld [vmem:[%s9835_s17 + $0xd0] sm:$0xf] }
 0x1a6   : > { %v3244_v9 = vor.u32 %v3243_v1, %v3240_v16  ;;  %v3232_v6 = vrot.slane %v3230_v5, 3  ;;  %v3235_v56 = vrot.slane %v3233_v26, 4  ;;  %v11775_v31 = vpop.f32.mrf.mxu0  ;;  %v645_v61 = vpop.permute.xlu0 %644 }
 0x1a7   : > { %16036 = vst [vmem:[#allocation42_spill] sm:$0xff] %v11775_v31  ;;  %v823_v43 = vsel %vm751_vm3, %v16038_v13, %v645_v61 }
 0x1a8   : > { %v3236_v12 = vor.u32 %v3235_v56, %v3232_v6  ;;  %v11778_v8 = vpop.f32.mrf.mxu0  ;;  %v750_v10 = vpop.permute.xlu1 %749  ;;  %v8509_v6 = vcombine.low %v9735_v36, %v11420_v23 }
 0x1a9   : > { %16037 = vst [vmem:[#allocation41_spill] sm:$0xff] %v11778_v8  ;;  %v877_v46 = vsel %vm827_vm4, %v826_v55, %v750_v10 }
 0x1aa   : > { %v11785_v30 = vpop.f32.mrf.mxu0  ;;  %v2053_v52 = vshrl.u32 %v877_v46, 16  ;;  %v2056_v21 = vshll.u32 %v877_v46, 16  ;;  %v748_v20 = vpop.permute.xlu0 %747  ;;  %v3237_v35 = vsel %vm1351_vm5, %v11728_v24, %v3236_v12  ;;  %v3245_v18 = vsel %vm1351_vm5, %v3236_v12, %v3244_v9 }
 0x1ab   : > { %16039 = vst [vmem:[#allocation36_spill] sm:$0xff] %v11785_v30  ;;  %v875_v41 = vsel %vm827_vm4, %v823_v43, %v748_v20  ;;  %9277 = vmatprep.mubr.msk.bf16.mxu0 %vm1560_vm6, %v3237_v35 }
 0x1ac   : > { %v2055_v33 = vrot.slane %v2053_v52, 3  ;;  %v2058_v16 = vrot.slane %v2056_v21, 4  ;;  %v2045_v1 = vshrl.u32 %v875_v41, 16  ;;  %v2048_v5 = vshll.u32 %v875_v41, 16  ;;  %v11792_v40 = vpop.f32.mrf.mxu0  ;;  %9278 = vmatmul.mubr.msk.bf16.gmra.mxu0 %vm1560_vm6, %v3245_v18  ;;  %v2831_v26 = vpop.permute.xlu1 %2830 }
 0x1ad   : > { %16040 = vst [vmem:[#allocation35_spill] sm:$0xff] %v11792_v40  ;;  %v3008_v12 = vsel %vm751_vm3, %v8510_v45, %v2831_v26 }
 0x1ae   : > { %v2059_v56 = vor.u32 %v2058_v16, %v2055_v33  ;;  %v2047_v24 = vrot.slane %v2045_v1, 3  ;;  %v2050_v55 = vrot.slane %v2048_v5, 4  ;;  %v11797_v61 = vpop.f32.mrf.mxu0  ;;  %v2829_v10 = vpop.permute.xlu0 %2828 }
 0x1af   : > { %16041 = vst [vmem:[#allocation3_spill] sm:$0xff] %v11797_v61  ;;  %v3005_v52 = vsel %vm751_vm3, %v8509_v6, %v2829_v10 }
 0x1b0   : > { %v2051_v13 = vor.u32 %v2050_v55, %v2047_v24  ;;  %v11800_v43 = vpop.f32.mrf.mxu0  ;;  %v2933_v46 = vpop.permute.xlu1 %2932 }
 0x1b1   : > { %16042 = vst [vmem:[#allocation5_spill] sm:$0xff] %v11800_v43  ;;  %v3058_v21 = vsel %vm827_vm4, %v3008_v12, %v2933_v46 }
 0x1b2   : > { %v11804_v20 = vpop.f32.mrf.mxu0  ;;  %v3254_v35 = vshrl.u32 %v3058_v21, 16  ;;  %v3257_v23 = vshll.u32 %v3058_v21, 16  ;;  %v2931_v18 = vpop.permute.xlu0 %2930  ;;  %v2052_v41 = vsel %vm1351_vm5, %v11754_v32, %v2051_v13  ;;  %v2060_v33 = vsel %vm1351_vm5, %v2051_v13, %v2059_v56 }
 0x1b3   : > { %16043 = vst [vmem:[#allocation4_spill] sm:$0xff] %v11804_v20  ;;  %v3056_v45 = vsel %vm827_vm4, %v3005_v52, %v2931_v18  ;;  %9229 = vmatprep.mubr.msk.bf16.mxu1 %vm1560_vm6, %v2052_v41 }
 0x1b4   : > { %v3256_v16 = vrot.slane %v3254_v35, 3  ;;  %v3259_v1 = vrot.slane %v3257_v23, 4  ;;  %v3246_v5 = vshrl.u32 %v3056_v45, 16  ;;  %v3249_v26 = vshll.u32 %v3056_v45, 16  ;;  %v11811_v36 = vpop.f32.mrf.mxu0  ;;  %9230 = vmatmul.mubr.msk.bf16.gmra.mxu1 %vm1560_vm6, %v2060_v33 }
 0x1b5   : > { %16044 = vst [vmem:[#allocation7_spill] sm:$0xff] %v11811_v36 }
 0x1b6   : > { %v3260_v6 = vor.u32 %v3259_v1, %v3256_v16  ;;  %v3248_v24 = vrot.slane %v3246_v5, 3  ;;  %v3251_v55 = vrot.slane %v3249_v26, 4  ;;  %v11814_v12 = vpop.f32.mrf.mxu0 }
 0x1b7   : > { %16045 = vst [vmem:[#allocation6_spill] sm:$0xff] %v11814_v12 }
 0x1b8   : > { %v3252_v32 = vor.u32 %v3251_v55, %v3248_v24  ;;  %v11816_v10 = vpop.f32.mrf.mxu0 }
 0x1b9   : > { %16046 = vst [vmem:[#allocation9_spill] sm:$0xff] %v11816_v10 }
 0x1ba   : > { %v3253_v56 = vsel %vm1351_vm5, %v3244_v9, %v3252_v32  ;;  %v3261_v13 = vsel %vm1351_vm5, %v3252_v32, %v3260_v6  ;;  %v11822_v46 = vpop.f32.mrf.mxu0 }
 0x1bb   : > { %9281 = vmatprep.mubr.msk.bf16.mxu0 %vm1560_vm6, %v3253_v56  ;;  %16047 = vst [vmem:[#allocation8_spill] sm:$0xff] %v11822_v46 }
 0x1bc   : > { %9282 = vmatmul.mubr.msk.bf16.gmra.mxu0 %vm1560_vm6, %v3261_v13  ;;  %v11824_v52 = vpop.f32.mrf.mxu0 }
 0x1bd   : > { %16048 = vst [vmem:[#allocation11_spill] sm:$0xff] %v11824_v52 }
 0x1be   : > { %v11826_v21 = vpop.f32.mrf.mxu0 }
 0x1bf   : > { %16049 = vst [vmem:[#allocation10_spill] sm:$0xff] %v11826_v21 }
 0x1c0   : > { %v9187_v35 = vpop.f32.mrf.mxu1  ;;  %v11828_v23 = vpop.f32.mrf.mxu0 }
 0x1c1   : > { %16050 = vst [vmem:[#allocation13_spill] sm:$0xff] %v11828_v23  ;;  %v2188_v41 = vadd.f32 %v9187_v35, %v11579_v47 }
 0x1c2   : > { %v2179_v18 = vpop.f32.mrf.mxu1 }
 0x1c3   : > { %v2180_v9 = vadd.f32 %v2179_v18, %v11587_v59 }
 0x1c4   : > { %v9188_v5 = vpop.f32.mrf.mxu1 }
 0x1c5   : > { %v2191_v51 = vadd.f32 %v9188_v5, %v11592_v14 }
 0x1c6   : > { %v2182_v26 = vpop.f32.mrf.mxu1 }
 0x1cc   : > { %v9239_v33 = vpop.f32.mrf.mxu0 }
 0x1cd   : > { %v11832_v45 = vadd.f32 %v9239_v33, %v2188_v41 }
 0x1ce   : > { %v3380_v16 = vpop.f32.mrf.mxu0 }
 0x1cf   : > { %v11834_v1 = vadd.f32 %v3380_v16, %v2180_v9 }
 0x1d0   : > { %v9240_v6 = vpop.f32.mrf.mxu0 }
 0x1d1   : > { %16051 = vst [vmem:[#allocation12_spill] sm:$0xff] %v11834_v1 }
 0x1d2   : > { %v3383_v55 = vpop.f32.mrf.mxu0 }
 0x1d4   : > { %v9191_v24 = vpop.f32.mrf.mxu1 }
 0x1d6   : > { %v2195_v32 = vpop.f32.mrf.mxu1 }
 0x1d7   : > { %v2196_v58 = vadd.f32 %v2195_v32, %v11611_v60 }
 0x1d8   : > { %v9192_v13 = vpop.f32.mrf.mxu1 }
 0x1da   : > { %v2198_v21 = vpop.f32.mrf.mxu1 }
 0x1dc   : > { %v9243_v56 = vpop.f32.mrf.mxu0 }
 0x1de   : > { %v3396_v23 = vpop.f32.mrf.mxu0 }
 0x1e0   : > { %v9244_v52 = vpop.f32.mrf.mxu0 }
 0x1e2   : > { %v3399_v35 = vpop.f32.mrf.mxu0 }
 0x1e4   : > { %v11836_v47 = vpop.f32.mrf.mxu1 }
 0x1e6   : > { %v11838_v59 = vpop.f32.mrf.mxu1 }
 0x1e8   : > { %v11842_v41 = vpop.f32.mrf.mxu1 }
 0x1ea   : > { %v11846_v9 = vpop.f32.mrf.mxu1 }
 0x1ec   : > { %v11840_v18 = vpop.f32.mrf.mxu0 }
 0x1ee   : > { %v11844_v33 = vpop.f32.mrf.mxu0 }
 0x1f0   : > { %v11848_v16 = vpop.f32.mrf.mxu0 }
 0x1f2   : > { %v11852_v12 = vpop.f32.mrf.mxu0 }
 0x1f4   : > { %v11850_v46 = vpop.f32.mrf.mxu1 }
 0x1f6   : > { %v11854_v10 = vpop.f32.mrf.mxu1 }
 0x1f8   : > { %v11858_v36 = vpop.f32.mrf.mxu1 }
 0x1fa   : > { %v11862_v61 = vpop.f32.mrf.mxu1 }
 0x1fc   : > { %v11856_v20 = vpop.f32.mrf.mxu0 }
 0x1fe   : > { %v11860_v43 = vpop.f32.mrf.mxu0 }
 0x200   : > { %v11864_v30 = vpop.f32.mrf.mxu0 }
 0x202   : > { %v11868_v31 = vpop.f32.mrf.mxu0 }
 0x204   : > { %v11866_v40 = vpop.f32.mrf.mxu1 }
 0x206   : > { %v11870_v8 = vpop.f32.mrf.mxu1 }
 0x208   : > { %v11874_v44 = vpop.f32.mrf.mxu1 }
 0x20a   : > { %v11878_v37 = vpop.f32.mrf.mxu1 }
 0x20b   : > { %16052 = vst [vmem:[#allocation15_spill] sm:$0xff] %v11878_v37 }
 0x20c   : > { %v11872_v27 = vpop.f32.mrf.mxu0 }
 0x20e   : > { %v11876_v62 = vpop.f32.mrf.mxu0 }
 0x210   : > { %v11880_v34 = vpop.f32.mrf.mxu0 }
 0x211   : > { %16053 = vst [vmem:[#allocation14_spill] sm:$0xff] %v11880_v34 }
 0x212   : > { %v11884_v54 = vpop.f32.mrf.mxu0 }
 0x213   : > { %16055 = vst [vmem:[#allocation17_spill] sm:$0xff] %v11884_v54  ;;  %v11905_v54 = vadd.f32 %v3396_v23, %v2196_v58 }
 0x214   : > { %v11882_v42 = vpop.f32.mrf.mxu1 }
 0x215   : > { %16054 = vst [vmem:[#allocation18_spill] sm:$0xff] %v11882_v42  ;;  %v11902_v42 = vadd.f32 %v9240_v6, %v2191_v51  ;;  %16063 = vst [vmem:[#allocation43_spill] sm:$0xff] %v11905_v54  ;;  %v3651_v6 = vsel %vm751_vm3, %v11905_v54, 0.0 }
 0x216   : > { %v11886_v49 = vpop.f32.mrf.mxu1 }
 0x217   : > { %16056 = vst [vmem:[#allocation23_spill] sm:$0xff] %v11886_v49  ;;  %16062 = vst [vmem:[#allocation34_spill] sm:$0xff] %v11902_v42  ;;  %v2183_v49 = vadd.f32 %v2182_v26, %v11596_v25  ;;  %v3715_v60 = vmul.f32 %v11902_v42, %v11902_v42  ;;  %v3716_v25 = vmul.f32 %v11905_v54, %v11905_v54 }
 0x218   : > { %v11890_v15 = vpop.f32.mrf.mxu1 }
 0x219   : > { %16058 = vst [vmem:[#allocation26_spill] sm:$0xff] %v11890_v15  ;;  %v11908_v15 = vadd.f32 %v3383_v55, %v2183_v49 }
 0x21a   : > { %v11894_v63 = vpop.f32.mrf.mxu1 }
 0x21b   : > { %16060 = vst [vmem:[#allocation31_spill] sm:$0xff] %v11894_v63  ;;  %v2207_v63 = vadd.f32 %v9192_v13, %v11618_v2  ;;  %v3620_v2 = vsel %vm751_vm3, %v11902_v42, 0.0  ;;  %v3713_v49 = vmul.f32 %v11908_v15, %v11908_v15  ;;  %v2220_v42 = vadd.f32 %v11836_v47, %v11625_v4 }
 0x21c   : > { %v11888_v19 = vpop.f32.mrf.mxu0 }
 0x21d   : > { %16057 = vst [vmem:[#allocation21_spill] sm:$0xff] %v11888_v19  ;;  %v2204_v19 = vadd.f32 %v9191_v24, %v11603_v11  ;;  %v11921_v51 = vadd.f32 %v9244_v52, %v2207_v63  ;;  %v3712_v11 = vmul.f32 %v11834_v1, %v11834_v1  ;;  %v3619_v63 = vsel %vm751_vm3, %v11834_v1, 0.0 }
 0x21e   : > { %v11892_v7 = vpop.f32.mrf.mxu0  ;;  %v3761_v52 = vsel %vm751_vm3, %v3715_v60, 0.0  ;;  %v3792_v24 = vsel %vm751_vm3, %v3716_v25, 0.0  ;;  %v3650_v60 = vsel %vm751_vm3, %v11908_v15, 0.0 }
 0x21f   : > { %16059 = vst [vmem:[#allocation25_spill] sm:$0xff] %v11892_v7  ;;  %v11917_v5 = vadd.f32 %v9243_v56, %v2204_v19  ;;  %v2199_v19 = vadd.f32 %v2198_v21, %v11621_v50  ;;  %v3719_v55 = vmul.f32 %v11921_v51, %v11921_v51  ;;  %v9800_v21 = vmov 0  }
 0x220   : > { %v11898_v37 = vpop.f32.mrf.mxu0  ;;  %4082 = vst.msk [vmem:[#allocation2 + $0x4] sm:$0xf] %vm4080_vm7, %v9800_v21  ;;  %4083 = vst.msk [vmem:[#allocation2 + $0x8] sm:$0xf] %vm4080_vm7, %v9800_v21  ;;  %v3714_v56 = vmul.f32 %v11832_v45, %v11832_v45  ;;  %v3760_v13 = vsel %vm751_vm3, %v3712_v11, 0.0  ;;  %v2212_v11 = vadd.f32 %v11838_v59, %v11633_v17  ;;  %v3681_v17 = vsel %vm751_vm3, %v11832_v45, 0.0 }
 0x221   : > { %v3718_v26 = vmul.f32 %v11917_v5, %v11917_v5  ;;  %v11944_v32 = vadd.f32 %v3399_v35, %v2199_v19  ;;  %4081 = vst.msk [vmem:[#allocation2] sm:$0xf] %vm4080_vm7, %v9800_v21  ;;  %4084 = vst.msk [vmem:[#allocation2 + $0xc] sm:$0xf] %vm4080_vm7, %v9800_v21  ;;  %v3621_v35 = vadd.f32 %v3620_v2, %v3619_v63  ;;  %v3791_v19 = vsel %vm751_vm3, %v3713_v49, 0.0 }
 0x222   : > { %v11911_v7 = vpop.f32.mrf.mxu0  ;;  %4085 = vst.msk [vmem:[#allocation2 + $0xd0] sm:$0xf] %vm4080_vm7, %v9800_v21  ;;  %4086 = vst.msk [vmem:[#allocation2 + $0xd4] sm:$0xf] %vm4080_vm7, %v9800_v21  ;;  %v3762_v25 = vadd.f32 %v3761_v52, %v3760_v13  ;;  %v3622_v54 = vsel %vm751_vm3, %v11917_v5, 0.0  ;;  %v3653_v2 = vsel %vm751_vm3, %v11921_v51, 0.0  ;;  %v11977_v52 = vadd.f32 %v11840_v18, %v2220_v42 }
 0x223   : > { %4087 = vst.msk [vmem:[#allocation2 + $0xd8] sm:$0xf] %vm4080_vm7, %v9800_v21  ;;  %4088 = vst.msk [vmem:[#allocation2 + $0xdc] sm:$0xf] %vm4080_vm7, %v9800_v21  ;;  %v3763_v21 = vsel %vm751_vm3, %v3718_v26, 0.0  ;;  %v3794_v49 = vsel %vm751_vm3, %v3719_v55, 0.0  ;;  %v3717_v63 = vmul.f32 %v11944_v32, %v11944_v32  ;;  %v11984_v26 = vadd.f32 %v11844_v33, %v2212_v11 }
 0x224   : > { %v11900_v34 = vpop.f32.mrf.mxu1  ;;  %v3822_v59 = vsel %vm751_vm3, %v3714_v56, 0.0  ;;  %v3682_v42 = vsel %vm751_vm3, %v11944_v32, 0.0  ;;  %v2215_v18 = vadd.f32 %v11846_v9, %v11642_v3  ;;  %v2223_v11 = vadd.f32 %v11842_v41, %v11638_v38 }
 0x225   : > { %16061 = vst [vmem:[#allocation30_spill] sm:$0xff] %v11900_v34  ;;  %v3793_v34 = vadd.f32 %v3792_v24, %v3791_v19  ;;  %v11989_v24 = vadd.f32 %v3763_v21, %v3762_v25  ;;  %v3823_v33 = vsel %vm751_vm3, %v3717_v63, 0.0  ;;  %v3720_v3 = vmul.f32 %v11984_v26, %v11984_v26 }
 0x226   : > { %v11913_v14 = vpop.f32.mrf.mxu1  ;;  %v12011_v9 = vadd.f32 %v11852_v12, %v2215_v18  ;;  %v2228_v38 = vadd.f32 %v11854_v10, %v11657_v22  ;;  %v3683_v41 = vadd.f32 %v3682_v42, %v3681_v17  ;;  %v12016_v25 = vadd.f32 %v11848_v16, %v2223_v11 }
 0x227   : > { %v3795_v13 = vadd.f32 %v3794_v49, %v3793_v34  ;;  %v4331_v19 = vld [vmem:[#allocation2 + $0x8] sm:$0xf]  ;;  %v3824_v63 = vadd.f32 %v3823_v33, %v3822_v59  ;;  %v2236_v12 = vadd.f32 %v11850_v46, %v11649_v29  ;;  %v3825_v42 = vsel %vm751_vm3, %v3720_v3, 0.0 }
 0x228   : > { %v11932_v23 = vpop.f32.mrf.mxu1  ;;  %v12027_v18 = vadd.f32 %v11860_v43, %v2228_v38  ;;  %v3721_v29 = vmul.f32 %v12011_v9, %v12011_v9  ;;  %v2239_v43 = vadd.f32 %v11858_v36, %v11664_v53  ;;  %v3723_v33 = vmul.f32 %v12016_v25, %v12016_v25 }
 0x229   : > { %v12042_v46 = vadd.f32 %v11856_v20, %v2236_v12  ;;  %v2231_v11 = vadd.f32 %v11862_v61, %v11667_v39  ;;  %v3624_v36 = vsel %vm751_vm3, %v12011_v9, 0.0  ;;  %v2244_v39 = vadd.f32 %v11870_v8, %v11679_v57 }
 0x22a   : > { %v11966_v1 = vpop.f32.mrf.mxu1  ;;  %v3724_v53 = vmul.f32 %v12027_v18, %v12027_v18  ;;  %v12055_v20 = vadd.f32 %v11864_v30, %v2239_v43  ;;  %v3827_v12 = vsel %vm751_vm3, %v3723_v33, 0.0 }
 0x22b   : > { %v3726_v30 = vmul.f32 %v12042_v46, %v12042_v46  ;;  %v12077_v57 = vadd.f32 %v11876_v62, %v2244_v39  ;;  %v3688_v62 = vsel %vm751_vm3, %v12042_v46, 0.0 }
 0x22c   : > { %v11923_v58 = vpop.f32.mrf.mxu0  ;;  %16066 = vst [vmem:[#allocation46_spill] sm:$0xff] %v12055_v20 }
 0x22d   : > { %16064 = vst [vmem:[#allocation44_spill] sm:$0xff] %v11923_v58  ;;  %v3652_v58 = vadd.f32 %v3651_v6, %v3650_v60  ;;  %v3623_v6 = vadd.f32 %v3622_v54, %v3621_v35  ;;  %v4330_v60 = vld [vmem:[#allocation2 + $0x4] sm:$0xf]  ;;  %v3722_v54 = vmul.f32 %v11977_v52, %v11977_v52  ;;  %v3684_v35 = vsel %vm751_vm3, %v11984_v26, 0.0  ;;  %16068 = vst [vmem:[#allocation48_spill] sm:$0xff] %v12077_v57 }
 0x22e   : > { %v11946_v50 = vpop.f32.mrf.mxu0  ;;  %v12004_v34 = vcombine.low %v4330_v60, %v4331_v19  ;;  %v3655_v60 = vsel %vm751_vm3, %v11977_v52, 0.0  ;;  %v3685_v10 = vadd.f32 %v3684_v35, %v3683_v41  ;;  %v3686_v19 = vsel %vm751_vm3, %v12016_v25, 0.0 }
 0x22f   : > { %v3654_v55 = vadd.f32 %v3653_v2, %v3652_v58  ;;  %v3796_v22 = vsel %vm751_vm3, %v3722_v54, 0.0  ;;  %v12060_v41 = vadd.f32 %v11868_v31, %v2231_v11  ;;  %v3626_v31 = vsel %vm751_vm3, %v12027_v18, 0.0  ;;  %v16070_v11 = vld [vmem:[#allocation14_spill] sm:$0xff] }
 0x230   : > { %v11979_v4 = vpop.f32.mrf.mxu0  ;;  %16065 = vst [vmem:[#allocation45_spill] sm:$0xff] %v12004_v34  ;;  %v15756_v2 = vrot.slane %v12004_v34, 5  ;;  %v4527_v49 = vshrl.u32 %v12004_v34, 16  ;;  %v4530_v59 = vshll.u32 %v12004_v34, 16  ;;  %v3797_v38 = vadd.f32 %v3796_v22, %v3795_v13 }
 0x231   : > { %v3656_v3 = vadd.f32 %v3655_v60, %v3654_v55  ;;  %v3826_v55 = vadd.f32 %v3825_v42, %v3824_v63  ;;  %v3687_v13 = vadd.f32 %v3686_v19, %v3685_v10  ;;  %v3765_v60 = vsel %vm751_vm3, %v3721_v29, 0.0  ;;  %v16069_v19 = vld [vmem:[#allocation15_spill] sm:$0xff] }
 0x232   : > { %v12000_v56 = vpop.f32.mrf.mxu0  ;;  %4843 = vrot.lane.b32.xlu1 %v15756_v2, %s9798_s18  ;;  %v4529_v17 = vrot.slane %v4527_v49, 4  ;;  %v4532_v35 = vrot.slane %v4530_v59, 5  ;;  %v2252_v22 = vadd.f32 %v11866_v40, %v11671_v28  ;;  %v3625_v10 = vadd.f32 %v3624_v36, %v3623_v6 }
 0x233   : > { %v3727_v59 = vmul.f32 %v12055_v20, %v12055_v20  ;;  %v2255_v42 = vadd.f32 %v11874_v44, %v11684_v0  ;;  %v3766_v28 = vadd.f32 %v3765_v60, %v11989_v24  ;;  %v3725_v40 = vmul.f32 %v12060_v41, %v12060_v41 }
 0x234   : > { %v11981_v47 = vpop.f32.mrf.mxu1  ;;  %v12066_v49 = vor.u32 %v4532_v35, %v4529_v17  ;;  %v3767_v17 = vsel %vm751_vm3, %v3724_v53, 0.0  ;;  %v12096_v29 = vadd.f32 %v11872_v27, %v2252_v22  ;;  %v3829_v6 = vsel %vm751_vm3, %v3726_v30, 0.0  ;;  %v16071_v30 = vld [vmem:[#allocation17_spill] sm:$0xff] }
 0x235   : > { %v3627_v43 = vadd.f32 %v3626_v31, %v3625_v10  ;;  %v2247_v33 = vadd.f32 %v16069_v19, %v11688_v48  ;;  %v12102_v35 = vadd.f32 %v16070_v11, %v2255_v42  ;;  %v3828_v0 = vadd.f32 %v3827_v12, %v3826_v55  ;;  %v16072_v10 = vld [vmem:[#allocation19_spill] sm:$0xff]  ;;  %v16074_v19 = vld [vmem:[#allocation20_spill] sm:$0xff] }
 0x236   : > { %v12002_v58 = vpop.f32.mrf.mxu1  ;;  %16067 = vst [vmem:[#allocation47_spill] sm:$0xff] %v12066_v49  ;;  %4741 = vrot.lane.b32.xlu0 %v12066_v49, %s9799_s19  ;;  %v3768_v44 = vadd.f32 %v3767_v17, %v3766_v28  ;;  %v3628_v24 = vsel %vm751_vm3, %v12055_v20, 0.0  ;;  %v3728_v53 = vmul.f32 %v12077_v57, %v12077_v57  ;;  %v3689_v39 = vadd.f32 %v3688_v62, %v3687_v13  ;;  %v16073_v17 = vld [vmem:[#allocation23_spill] sm:$0xff]  ;;  %v16079_v49 = vld [vmem:[#allocation26_spill] sm:$0xff] }
 0x237   : > { %v3769_v60 = vsel %vm751_vm3, %v3727_v59, 0.0  ;;  %v3657_v48 = vsel %vm751_vm3, %v12060_v41, 0.0  ;;  %v12116_v31 = vadd.f32 %v16071_v30, %v2247_v33  ;;  %v3830_v55 = vadd.f32 %v3829_v6, %v3828_v0  ;;  %v16075_v33 = vld [vmem:[#allocation18_spill] sm:$0xff]  ;;  %v16076_v30 = vld [vmem:[#allocation25_spill] sm:$0xff] }
 0x238   : > { %v12030_v16 = vpop.f32.mrf.mxu1  ;;  %v3798_v12 = vsel %vm751_vm3, %v3725_v40, 0.0  ;;  %v3730_v22 = vmul.f32 %v12096_v29, %v12096_v29  ;;  %v2260_v42 = vadd.f32 %v16073_v17, %v16072_v10  ;;  %v3629_v13 = vadd.f32 %v3628_v24, %v3627_v43  ;;  %v16078_v24 = vld [vmem:[#allocation16_spill] sm:$0xff] }
 0x239   : > { %v3659_v59 = vsel %vm751_vm3, %v12077_v57, 0.0  ;;  %v3731_v62 = vmul.f32 %v12102_v35, %v12102_v35  ;;  %v2268_v6 = vadd.f32 %v16075_v33, %v16074_v19  ;;  %v3770_v11 = vadd.f32 %v3769_v60, %v3768_v44  ;;  %v16080_v57 = vld [vmem:[#allocation21_spill] sm:$0xff]  ;;  %v16082_v60 = vld [vmem:[#allocation24_spill] sm:$0xff] }
 0x23a   : > { %v12064_v61 = vpop.f32.mrf.mxu1  ;;  %v3658_v40 = vadd.f32 %v3657_v48, %v3656_v3  ;;  %v3800_v0 = vsel %vm751_vm3, %v3728_v53, 0.0  ;;  %v12133_v2 = vadd.f32 %v16076_v30, %v2260_v42  ;;  %v3799_v17 = vadd.f32 %v3798_v12, %v3797_v38  ;;  %v16083_v48 = vld [vmem:[#allocation31_spill] sm:$0xff] }
 0x23b   : > { %v3729_v43 = vmul.f32 %v12116_v31, %v12116_v31  ;;  %v2271_v34 = vadd.f32 %v16079_v49, %v16078_v24  ;;  %v12142_v20 = vadd.f32 %v16080_v57, %v2268_v6  ;;  %v3630_v3 = vsel %vm751_vm3, %v12096_v29, 0.0  ;;  %v16084_v6 = vld [vmem:[#allocation39_spill] sm:$0xff] }
 0x23c   : > { %v12018_v21 = vpop.f32.mrf.mxu0  ;;  %16077 = vst [vmem:[#allocation15_spill] sm:$0xff] %v12133_v2  ;;  %v3771_v44 = vsel %vm751_vm3, %v3730_v22, 0.0  ;;  %v3660_v53 = vadd.f32 %v3659_v59, %v3658_v40  ;;  %v2263_v42 = vadd.f32 %v16083_v48, %v16082_v60  ;;  %v3801_v38 = vadd.f32 %v3800_v0, %v3799_v17 }
 0x23d   : > { %16081 = vst [vmem:[#allocation14_spill] sm:$0xff] %v12142_v20  ;;  %v3661_v12 = vsel %vm751_vm3, %v12102_v35, 0.0  ;;  %v3802_v49 = vsel %vm751_vm3, %v3731_v62, 0.0  ;;  %v12155_v57 = vadd.f32 %v11898_v37, %v2271_v34  ;;  %v3690_v33 = vsel %vm751_vm3, %v12116_v31, 0.0 }
 0x23e   : > { %v12050_v54 = vpop.f32.mrf.mxu0  ;;  %v3732_v22 = vmul.f32 %v12133_v2, %v12133_v2  ;;  %v12162_v59 = vadd.f32 %v11911_v7, %v2263_v42  ;;  %v2276_v40 = vadd.f32 %v11913_v14, %v16084_v6  ;;  %v3631_v30 = vadd.f32 %v3630_v3, %v3629_v13  ;;  %v16085_v3 = vld [vmem:[#allocation40_spill] sm:$0xff] }
 0x23f   : > { %v3772_v17 = vadd.f32 %v3771_v44, %v3770_v11  ;;  %v3831_v62 = vsel %vm751_vm3, %v3729_v43, 0.0  ;;  %v3734_v37 = vmul.f32 %v12142_v20, %v12142_v20  ;;  %v3662_v34 = vadd.f32 %v3661_v12, %v3660_v53 }
 0x240   : > { %v12079_v8 = vpop.f32.mrf.mxu0  ;;  %v3663_v24 = vsel %vm751_vm3, %v12142_v20, 0.0  ;;  %v3692_v7 = vsel %vm751_vm3, %v12133_v2, 0.0  ;;  %v12176_v60 = vadd.f32 %v11946_v50, %v2276_v40  ;;  %v3803_v13 = vadd.f32 %v3802_v49, %v3801_v38  ;;  %v16086_v50 = vld [vmem:[#allocation37_spill] sm:$0xff]  ;;  %v16088_v49 = vld [vmem:[#allocation22_spill] sm:$0xff] }
 0x241   : > { %v3691_v11 = vadd.f32 %v3690_v33, %v3689_v39  ;;  %v3735_v43 = vmul.f32 %v12155_v57, %v12155_v57  ;;  %v2287_v44 = vadd.f32 %v11932_v23, %v16085_v3  ;;  %v3832_v53 = vadd.f32 %v3831_v62, %v3830_v55  ;;  %v16089_v33 = vld [vmem:[#allocation30_spill] sm:$0xff]  ;;  %v16091_v3 = vld [vmem:[#allocation44_spill] sm:$0xff] }
 0x242   : > { %v12108_v36 = vpop.f32.mrf.mxu0  ;;  %v3833_v42 = vsel %vm751_vm3, %v3732_v22, 0.0  ;;  %v3733_v12 = vmul.f32 %v12162_v59, %v12162_v59  ;;  %v2279_v6 = vadd.f32 %v11966_v1, %v16086_v50  ;;  %v3664_v40 = vadd.f32 %v3663_v24, %v3662_v34  ;;  %v16090_v22 = vld [vmem:[#allocation28_spill] sm:$0xff] }
 0x243   : > { %v3804_v20 = vsel %vm751_vm3, %v3734_v37, 0.0  ;;  %v3693_v38 = vadd.f32 %v3692_v7, %v3691_v11  ;;  %v12193_v39 = vadd.f32 %v11979_v4, %v2287_v44  ;;  %v2284_v2 = vadd.f32 %v16089_v33, %v16088_v49  ;;  %v16093_v44 = vld [vmem:[#allocation29_spill] sm:$0xff]  ;;  %v16095_v49 = vld [vmem:[#allocation38_spill] sm:$0xff] }
 0x244   : > { %v12081_v63 = vpop.f32.mrf.mxu1  ;;  %v3736_v23 = vmul.f32 %v12176_v60, %v12176_v60  ;;  %v12200_v55 = vadd.f32 %v12000_v56, %v2279_v6  ;;  %v2292_v62 = vadd.f32 %v12002_v58, %v16090_v22  ;;  %v3834_v37 = vadd.f32 %v3833_v42, %v3832_v53 }
 0x245   : > { %16087 = vst [vmem:[#allocation17_spill] sm:$0xff] %v12193_v39  ;;  %v3694_v4 = vsel %vm751_vm3, %v12155_v57, 0.0  ;;  %v3835_v24 = vsel %vm751_vm3, %v3735_v43, 0.0  ;;  %v3632_v7 = vsel %vm751_vm3, %v12162_v59, 0.0  ;;  %v3773_v11 = vsel %vm751_vm3, %v3733_v12, 0.0 }
 0x246   : > { %v12110_v27 = vpop.f32.mrf.mxu1  ;;  %v12213_v56 = vadd.f32 %v16091_v3, %v2284_v2  ;;  %v2300_v58 = vadd.f32 %v11981_v47, %v16093_v44  ;;  %v12218_v50 = vadd.f32 %v12050_v54, %v2292_v62  ;;  %v3805_v42 = vadd.f32 %v3804_v20, %v3803_v13 }
 0x247   : > { %v3634_v43 = vsel %vm751_vm3, %v12176_v60, 0.0  ;;  %v3739_v6 = vmul.f32 %v12193_v39, %v12193_v39  ;;  %v2303_v12 = vadd.f32 %v12030_v16, %v16095_v49  ;;  %v3633_v2 = vadd.f32 %v3632_v7, %v3631_v30 }
 0x248   : > { %v12135_v10 = vpop.f32.mrf.mxu1  ;;  %16092 = vst [vmem:[#allocation19_spill] sm:$0xff] %v12213_v56  ;;  %16094 = vst [vmem:[#allocation23_spill] sm:$0xff] %v12218_v50  ;;  %v3775_v33 = vsel %vm751_vm3, %v3736_v23, 0.0  ;;  %v3737_v47 = vmul.f32 %v12200_v55, %v12200_v55  ;;  %v12232_v54 = vadd.f32 %v12018_v21, %v2300_v58  ;;  %v3695_v20 = vadd.f32 %v3694_v4, %v3693_v38  ;;  %v16097_v38 = vld [vmem:[#allocation27_spill] sm:$0xff] }
 0x249   : > { %v3836_v13 = vadd.f32 %v3835_v24, %v3834_v37  ;;  %v3774_v62 = vadd.f32 %v3773_v11, %v3772_v17  ;;  %v12237_v3 = vadd.f32 %v12079_v8, %v2303_v12  ;;  %v3738_v16 = vmul.f32 %v12213_v56, %v12213_v56  ;;  %v16098_v24 = vld [vmem:[#allocation33_spill] sm:$0xff] }
 0x24a   : > { %v12166_v0 = vpop.f32.mrf.mxu1  ;;  %v3635_v30 = vadd.f32 %v3634_v43, %v3633_v2  ;;  %v3636_v23 = vsel %vm751_vm3, %v12193_v39, 0.0  ;;  %v3740_v7 = vmul.f32 %v12218_v50, %v12218_v50  ;;  %v3777_v58 = vsel %vm751_vm3, %v3739_v6, 0.0  ;;  %v16099_v43 = vld [vmem:[#allocation32_spill] sm:$0xff] }
 0x24b   : > { %16096 = vst [vmem:[#allocation20_spill] sm:$0xff] %v12237_v3  ;;  %v3776_v44 = vadd.f32 %v3775_v33, %v3774_v62  ;;  %v3665_v17 = vsel %vm751_vm3, %v12200_v55, 0.0  ;;  %v2295_v8 = vadd.f32 %v12064_v61, %v16097_v38  ;;  %v3806_v37 = vsel %vm751_vm3, %v3737_v47, 0.0 }
 0x24c   : > { %v12123_v28 = vpop.f32.mrf.mxu0  ;;  %v3742_v4 = vmul.f32 %v12232_v54, %v12232_v54  ;;  %v2316_v11 = vadd.f32 %v12081_v63, %v16098_v24  ;;  %v2308_v49 = vadd.f32 %v12110_v27, %v16099_v43  ;;  %v3696_v6 = vsel %vm751_vm3, %v12213_v56, 0.0 }
 0x24d   : > { %v3667_v2 = vsel %vm751_vm3, %v12218_v50, 0.0  ;;  %v3743_v61 = vmul.f32 %v12237_v3, %v12237_v3  ;;  %v12264_v33 = vadd.f32 %v12108_v36, %v2295_v8  ;;  %v3666_v47 = vadd.f32 %v3665_v17, %v3664_v40 }
 0x24e   : > { %v12149_v19 = vpop.f32.mrf.mxu0  ;;  %v3808_v62 = vsel %vm751_vm3, %v3740_v7, 0.0  ;;  %v12268_v63 = vadd.f32 %v12123_v28, %v2316_v11  ;;  %v3837_v43 = vsel %vm751_vm3, %v3738_v16, 0.0  ;;  %v3637_v50 = vadd.f32 %v3636_v23, %v3635_v30  ;;  %v16100_v11 = vld [vmem:[#allocation41_spill] sm:$0xff]  ;;  %v16101_v30 = vld [vmem:[#allocation42_spill] sm:$0xff] }
 0x24f   : > { %v12271_v27 = vadd.f32 %v12149_v19, %v2308_v49  ;;  %v3778_v39 = vadd.f32 %v3777_v58, %v3776_v44  ;;  %v3807_v56 = vadd.f32 %v3806_v37, %v3805_v42  ;;  %v3638_v36 = vsel %vm751_vm3, %v12232_v54, 0.0  ;;  %v16102_v58 = vld [vmem:[#allocation35_spill] sm:$0xff] }
 0x250   : > { %v12178_v14 = vpop.f32.mrf.mxu0  ;;  %v3779_v40 = vsel %vm751_vm3, %v3742_v4, 0.0  ;;  %v3668_v7 = vadd.f32 %v3667_v2, %v3666_v47  ;;  %v3669_v28 = vsel %vm751_vm3, %v12237_v3, 0.0  ;;  %v3810_v19 = vsel %vm751_vm3, %v3743_v61, 0.0 }
 0x251   : > { %v3809_v17 = vadd.f32 %v3808_v62, %v3807_v56  ;;  %v3741_v8 = vmul.f32 %v12264_v33, %v12264_v33  ;;  %v2311_v16 = vadd.f32 %v12166_v0, %v16100_v11  ;;  %v2319_v42 = vadd.f32 %v12135_v10, %v16101_v30 }
 0x252   : > { %v12204_v1 = vpop.f32.mrf.mxu0  ;;  %v3746_v23 = vmul.f32 %v12268_v63, %v12268_v63  ;;  %v3744_v44 = vmul.f32 %v12271_v27, %v12271_v27  ;;  %v3697_v49 = vadd.f32 %v3696_v6, %v3695_v20  ;;  %v3838_v2 = vadd.f32 %v3837_v43, %v3836_v13  ;;  %v16104_v20 = vld [vmem:[#allocation36_spill] sm:$0xff] }
 0x253   : > { %v3639_v61 = vadd.f32 %v3638_v36, %v3637_v50  ;;  %v12294_v47 = vadd.f32 %v12204_v1, %v2311_v16  ;;  %v3780_v0 = vadd.f32 %v3779_v40, %v3778_v39  ;;  %v3670_v62 = vadd.f32 %v3669_v28, %v3668_v7  ;;  %v16105_v36 = vld [vmem:[#allocation3_spill] sm:$0xff]  ;;  %v16106_v7 = vld [vmem:[#allocation5_spill] sm:$0xff] }
 0x254   : > { %v12180_v48 = vpop.f32.mrf.mxu1  ;;  %v12297_v10 = vadd.f32 %v12178_v14, %v2319_v42  ;;  %v3811_v3 = vadd.f32 %v3810_v19, %v3809_v17  ;;  %v3671_v1 = vsel %vm751_vm3, %v12268_v63, 0.0  ;;  %v3812_v39 = vsel %vm751_vm3, %v3746_v23, 0.0 }
 0x255   : > { %v2332_v50 = vadd.f32 %v12180_v48, %v16104_v20  ;;  %v3700_v14 = vsel %vm751_vm3, %v12271_v27, 0.0  ;;  %v3841_v13 = vsel %vm751_vm3, %v3744_v44, 0.0  ;;  %v3745_v43 = vmul.f32 %v12294_v47, %v12294_v47 }
 0x256   : > { %v2323_v34 = vpop.f32.mrf.mxu1  ;;  %v3672_v23 = vadd.f32 %v3671_v1, %v3670_v62  ;;  %v3640_v44 = vsel %vm751_vm3, %v12294_v47, 0.0 }
 0x257   : > { %v2324_v37 = vadd.f32 %v2323_v34, %v16102_v58  ;;  %v3698_v34 = vsel %vm751_vm3, %v12264_v33, 0.0  ;;  %v3839_v58 = vsel %vm751_vm3, %v3741_v8, 0.0  ;;  %v3747_v8 = vmul.f32 %v12297_v10, %v12297_v10 }
 0x258   : > { %v12234_v22 = vpop.f32.mrf.mxu1  ;;  %v3699_v17 = vadd.f32 %v3698_v34, %v3697_v49  ;;  %v3840_v19 = vadd.f32 %v3839_v58, %v3838_v2  ;;  %v3702_v49 = vsel %vm751_vm3, %v12297_v10, 0.0  ;;  %v3781_v34 = vsel %vm751_vm3, %v3745_v43, 0.0 }
 0x259   : > { %v2335_v40 = vadd.f32 %v12234_v22, %v16105_v36  ;;  %v3641_v1 = vadd.f32 %v3640_v44, %v3639_v61  ;;  %v16110_v61 = vld [vmem:[#allocation6_spill] sm:$0xff] }
 0x25a   : > { %v2326_v12 = vpop.f32.mrf.mxu1  ;;  %v3842_v20 = vadd.f32 %v3841_v13, %v3840_v19 }
 0x25b   : > { %v2327_v48 = vadd.f32 %v2326_v12, %v16106_v7  ;;  %v3813_v12 = vadd.f32 %v3812_v39, %v3811_v3  ;;  %v16108_v39 = vld [vmem:[#allocation4_spill] sm:$0xff]  ;;  %v16109_v7 = vld [vmem:[#allocation9_spill] sm:$0xff] }
 0x25c   : > { %v12220_v53 = vpop.f32.mrf.mxu0 }
 0x25d   : > { %v12318_v28 = vadd.f32 %v12220_v53, %v2332_v50  ;;  %v3701_v53 = vadd.f32 %v3700_v14, %v3699_v17  ;;  %v16107_v50 = vld [vmem:[#allocation7_spill] sm:$0xff] }
 0x25e   : > { %v3524_v21 = vpop.f32.mrf.mxu0 }
 0x25f   : > { %v12299_v11 = vadd.f32 %v3524_v21, %v2324_v37  ;;  %v3750_v58 = vmul.f32 %v12318_v28, %v12318_v28 }
 0x260   : > { %v9276_v38 = vpop.f32.mrf.mxu0 }
 0x261   : > { %16103 = vst [vmem:[#allocation18_spill] sm:$0xff] %v12299_v11  ;;  %v3748_v16 = vmul.f32 %v12299_v11, %v12299_v11  ;;  %v12326_v37 = vadd.f32 %v9276_v38, %v2335_v40  ;;  %v3642_v62 = vsel %vm751_vm3, %v12299_v11, 0.0 }
 0x262   : > { %v3527_v56 = vpop.f32.mrf.mxu0  ;;  %v3643_v19 = vadd.f32 %v3642_v62, %v3641_v1 }
 0x263   : > { %v12328_v22 = vadd.f32 %v3527_v56, %v2327_v48  ;;  %v3843_v56 = vsel %vm751_vm3, %v3747_v8, 0.0  ;;  %v3783_v3 = vsel %vm751_vm3, %v3748_v16, 0.0  ;;  %v3751_v43 = vmul.f32 %v12326_v37, %v12326_v37 }
 0x264   : > { %v12273_v24 = vpop.f32.mrf.mxu1 }
 0x265   : > { %v2348_v14 = vadd.f32 %v12273_v24, %v16108_v39  ;;  %v3749_v40 = vmul.f32 %v12328_v22, %v12328_v22  ;;  %v3704_v24 = vsel %vm751_vm3, %v12318_v28, 0.0  ;;  %v3644_v39 = vsel %vm751_vm3, %v12326_v37, 0.0 }
 0x266   : > { %v2339_v4 = vpop.f32.mrf.mxu1 }
 0x267   : > { %v2340_v38 = vadd.f32 %v2339_v4, %v16107_v50  ;;  %v3782_v4 = vadd.f32 %v3781_v34, %v3780_v0  ;;  %v3845_v50 = vsel %vm751_vm3, %v3750_v58, 0.0  ;;  %v3814_v34 = vsel %vm751_vm3, %v3749_v40, 0.0 }
 0x268   : > { %v9228_v21 = vpop.f32.mrf.mxu1 }
 0x269   : > { %v2351_v8 = vadd.f32 %v9228_v21, %v16110_v61  ;;  %v3785_v21 = vsel %vm751_vm3, %v3751_v43, 0.0 }
 0x26a   : > { %v2342_v2 = vpop.f32.mrf.mxu1 }
 0x26b   : > { %v2343_v48 = vadd.f32 %v2342_v2, %v16109_v7  ;;  %v3703_v2 = vadd.f32 %v3702_v49, %v3701_v53  ;;  %v3815_v7 = vadd.f32 %v3814_v34, %v3813_v12 }
 0x26c   : > { %v9279_v30 = vpop.f32.mrf.mxu0 }
 0x26d   : > { %v12350_v16 = vadd.f32 %v9279_v30, %v2348_v14  ;;  %v3673_v30 = vsel %vm751_vm3, %v12328_v22, 0.0  ;;  %v3705_v1 = vadd.f32 %v3704_v24, %v3703_v2 }
 0x26e   : > { %v3540_v6 = vpop.f32.mrf.mxu0  ;;  %v3674_v40 = vadd.f32 %v3673_v30, %v3672_v23 }
 0x26f   : > { %v12347_v17 = vadd.f32 %v3540_v6, %v2340_v38  ;;  %v3844_v6 = vadd.f32 %v3843_v56, %v3842_v20  ;;  %v3784_v38 = vadd.f32 %v3783_v3, %v3782_v4  ;;  %v3754_v53 = vmul.f32 %v12350_v16, %v12350_v16  ;;  %v16111_v56 = vld [vmem:[#allocation8_spill] sm:$0xff] }
 0x270   : > { %v9280_v42 = vpop.f32.mrf.mxu0 }
 0x271   : > { %v12359_v0 = vadd.f32 %v9280_v42, %v2351_v8  ;;  %v3752_v58 = vmul.f32 %v12347_v17, %v12347_v17  ;;  %v3846_v14 = vadd.f32 %v3845_v50, %v3844_v6  ;;  %v3646_v42 = vsel %vm751_vm3, %v12350_v16, 0.0  ;;  %v16112_v8 = vld [vmem:[#allocation11_spill] sm:$0xff] }
 0x272   : > { %v3543_v13 = vpop.f32.mrf.mxu0  ;;  %v3675_v20 = vsel %vm751_vm3, %v12347_v17, 0.0  ;;  %v3786_v43 = vadd.f32 %v3785_v21, %v3784_v38  ;;  %v16113_v21 = vld [vmem:[#allocation10_spill] sm:$0xff] }
 0x273   : > { %v12357_v11 = vadd.f32 %v3543_v13, %v2343_v48  ;;  %v3645_v13 = vadd.f32 %v3644_v39, %v3643_v19  ;;  %v3755_v48 = vmul.f32 %v12359_v0, %v12359_v0  ;;  %v3816_v19 = vsel %vm751_vm3, %v3752_v58, 0.0 }
 0x274   : > { %v9231_v36 = vpop.f32.mrf.mxu1  ;;  %v3676_v6 = vadd.f32 %v3675_v20, %v3674_v40  ;;  %v3677_v23 = vsel %vm751_vm3, %v12359_v0, 0.0 }
 0x275   : > { %v3753_v49 = vmul.f32 %v12357_v11, %v12357_v11  ;;  %v2364_v3 = vadd.f32 %v9231_v36, %v16111_v56  ;;  %v3706_v61 = vsel %vm751_vm3, %v12357_v11, 0.0  ;;  %v3647_v2 = vadd.f32 %v3646_v42, %v3645_v13  ;;  %v16114_v42 = vld [vmem:[#allocation13_spill] sm:$0xff] }
 0x276   : > { %v2355_v44 = vpop.f32.mrf.mxu1  ;;  %v3787_v36 = vsel %vm751_vm3, %v3754_v53, 0.0  ;;  %v3818_v56 = vsel %vm751_vm3, %v3755_v48, 0.0  ;;  %v3707_v13 = vadd.f32 %v3706_v61, %v3705_v1 }
 0x277   : > { %v2356_v24 = vadd.f32 %v2355_v44, %v16112_v8  ;;  %v3847_v38 = vsel %vm751_vm3, %v3753_v49, 0.0  ;;  %v3817_v44 = vadd.f32 %v3816_v19, %v3815_v7 }
 0x278   : > { %v9232_v62 = vpop.f32.mrf.mxu1  ;;  %v3848_v8 = vadd.f32 %v3847_v38, %v3846_v14 }
 0x279   : > { %v2367_v30 = vadd.f32 %v9232_v62, %v16113_v21 }
 0x27a   : > { %v2358_v50 = vpop.f32.mrf.mxu1 }
 0x27b   : > { %v2359_v53 = vadd.f32 %v2358_v50, %v16114_v42 }
 0x27c   : > { %v9283_v4 = vpop.f32.mrf.mxu0 }
 0x27d   : > { %v12382_v39 = vadd.f32 %v9283_v4, %v2364_v3  ;;  %v3678_v4 = vadd.f32 %v3677_v23, %v3676_v6  ;;  %v3788_v6 = vadd.f32 %v3787_v36, %v3786_v43 }
 0x27e   : > { %v3556_v12 = vpop.f32.mrf.mxu0 }
 0x27f   : > { %v3758_v34 = vmul.f32 %v12382_v39, %v12382_v39  ;;  %v12391_v58 = vadd.f32 %v3556_v12, %v2356_v24  ;;  %v3679_v3 = vsel %vm751_vm3, %v12382_v39, 0.0  ;;  %v3819_v12 = vadd.f32 %v3818_v56, %v3817_v44 }
 0x280   : > { %v9284_v20 = vpop.f32.mrf.mxu0  ;;  %v3680_v21 = vadd.f32 %v3679_v3, %v3678_v4 }
 0x281   : > { %v3708_v49 = vsel %vm751_vm3, %v12391_v58, 0.0  ;;  %v3756_v62 = vmul.f32 %v12391_v58, %v12391_v58  ;;  %v12401_v40 = vadd.f32 %v9284_v20, %v2367_v30  ;;  %v3820_v7 = vsel %vm751_vm3, %v3758_v34, 0.0 }
 0x282   : > { %v3709_v48 = vadd.f32 %v3708_v49, %v3707_v13  ;;  %v3559_v1 = vpop.f32.mrf.mxu0  ;;  %v3821_v34 = vadd.f32 %v3820_v7, %v3819_v12  ;;  %v3857_v44 = vsel %vm751_vm3, %v3680_v21, 0.0 }
 0x283   : > { %v3849_v19 = vsel %vm751_vm3, %v3756_v62, 0.0  ;;  %v3710_v61 = vsel %vm751_vm3, %v12401_v40, 0.0  ;;  %v3759_v24 = vmul.f32 %v12401_v40, %v12401_v40  ;;  %v12409_v50 = vadd.f32 %v3559_v1, %v2359_v53 }
 0x284   : > { %v3850_v30 = vadd.f32 %v3849_v19, %v3848_v8  ;;  %v3711_v42 = vadd.f32 %v3710_v61, %v3709_v48  ;;  %v3871_v62 = vsel %vm751_vm3, %v3821_v34, 0.0 }
 0x285   : > { %v3851_v14 = vsel %vm751_vm3, %v3759_v24, 0.0  ;;  %v3648_v23 = vsel %vm751_vm3, %v12409_v50, 0.0  ;;  %v3757_v38 = vmul.f32 %v12409_v50, %v12409_v50 }
 0x286   : > { %v3852_v13 = vadd.f32 %v3851_v14, %v3850_v30  ;;  %v3855_v20 = vmul.f32 0.0, %v3711_v42  ;;  %v3649_v49 = vadd.f32 %v3648_v23, %v3647_v2 }
 0x287   : > { %v3789_v53 = vsel %vm751_vm3, %v3757_v38, 0.0 }
 0x288   : > { %v3869_v56 = vmul.f32 0.0, %v3852_v13  ;;  %v3790_v3 = vadd.f32 %v3789_v53, %v3788_v6  ;;  %v3856_v43 = vsel %vm751_vm3, %v3649_v49, 0.0  ;;  %v3859_v4 = vsel %vm751_vm3, %v3855_v20, 0.0 }
 0x289   : > { %v3858_v36 = vadd.f32 %v3857_v44, %v3856_v43  ;;  %v16115_v43 = vld [vmem:[#allocation12_spill] sm:$0xff] }
 0x28a   : > { %v3870_v8 = vsel %vm751_vm3, %v3790_v3, 0.0  ;;  %v3873_v1 = vsel %vm751_vm3, %v3869_v56, 0.0 }
 0x28b   : > { %v3860_v48 = vadd.f32 %v3859_v4, %v3858_v36  ;;  %v3872_v7 = vadd.f32 %v3871_v62, %v3870_v8  ;;  %v16116_v8 = vld [vmem:[#allocation34_spill] sm:$0xff] }
 0x28d   : > { %v3861_v2 = vrot.slane %v3860_v48, 4  ;;  %v3874_v19 = vadd.f32 %v3873_v1, %v3872_v7  ;;  %v16117_v7 = vld [vmem:[#allocation43_spill] sm:$0xff] }
 0x28f   : > { %v3862_v61 = vadd.f32 %v3861_v2, %v3860_v48  ;;  %v3875_v24 = vrot.slane %v3874_v19, 4 }
 0x291   : > { %v3863_v12 = vrot.slane %v3862_v61, 2  ;;  %v3876_v21 = vadd.f32 %v3875_v24, %v3874_v19 }
 0x293   : > { %v3864_v30 = vadd.f32 %v3863_v12, %v3862_v61  ;;  %v3877_v42 = vrot.slane %v3876_v21, 2 }
 0x295   : > { %v3865_v6 = vrot.slane %v3864_v30, 1  ;;  %v3878_v14 = vadd.f32 %v3877_v42, %v3876_v21  ;;  %v16121_v42 = vld [vmem:[#allocation14_spill] sm:$0xff] }
 0x297   : > { %v3866_v23 = vadd.f32 %v3865_v6, %v3864_v30  ;;  %v3879_v38 = vrot.slane %v3878_v14, 1 }
 0x299   : > { %v3880_v34 = vadd.f32 %v3879_v38, %v3878_v14  ;;  %v12423_v13 = vmul.f32 0.00390625, %v3866_v23  ;;  %v16123_v38 = vld [vmem:[#allocation17_spill] sm:$0xff] }
 0x29b   : > { %v3882_v20 = vmul.f32 0.00390625, %v3880_v34  ;;  %v3883_v49 = vmul.f32 %v12423_v13, %v12423_v13  ;;  %v3931_v3 = vsub.f32 %v12409_v50, %v12423_v13  ;;  %v3886_v36 = vsub.f32 %v16115_v43, %v12423_v13 }
 0x29c   : > { %v3887_v62 = vsub.f32 %v11908_v15, %v12423_v13  ;;  %v3888_v4 = vsub.f32 %v11832_v45, %v12423_v13  ;;  %v3889_v48 = vsub.f32 %v16116_v8, %v12423_v13  ;;  %v3890_v1 = vsub.f32 %v16117_v7, %v12423_v13 }
 0x29d   : > { %v3884_v53 = vsub.f32 %v3882_v20, %v3883_v49  ;;  %v3891_v2 = vsub.f32 %v11944_v32, %v12423_v13  ;;  %v3892_v50 = vsub.f32 %v11917_v5, %v12423_v13  ;;  %v3893_v19 = vsub.f32 %v11921_v51, %v12423_v13 }
 0x29e   : > { %v3894_v15 = vsub.f32 %v11984_v26, %v12423_v13  ;;  %v3895_v45 = vsub.f32 %v12011_v9, %v12423_v13  ;;  %v3896_v61 = vsub.f32 %v11977_v52, %v12423_v13  ;;  %v3897_v24 = vsub.f32 %v12016_v25, %v12423_v13  ;;  %v16118_v26 = vld [vmem:[#allocation46_spill] sm:$0xff]  ;;  %v16119_v9 = vld [vmem:[#allocation48_spill] sm:$0xff] }
 0x29f   : > { %v3885_v44 = vmax.f32 %v3884_v53, 0.0  ;;  %v3898_v32 = vsub.f32 %v12027_v18, %v12423_v13  ;;  %v3899_v5 = vsub.f32 %v12060_v41, %v12423_v13  ;;  %v3900_v51 = vsub.f32 %v12042_v46, %v12423_v13  ;;  %v16120_v41 = vld [vmem:[#allocation15_spill] sm:$0xff] }
 0x2a0   : > { %v3901_v12 = vsub.f32 %v16118_v26, %v12423_v13  ;;  %v3902_v21 = vsub.f32 %v16119_v9, %v12423_v13  ;;  %v3903_v52 = vsub.f32 %v12116_v31, %v12423_v13  ;;  %v3904_v25 = vsub.f32 %v12096_v29, %v12423_v13 }
 0x2a1   : > { %v3934_v56 = vadd.f32 1e-05, %v3885_v44  ;;  %v3905_v18 = vsub.f32 %v12102_v35, %v12423_v13  ;;  %v3906_v30 = vsub.f32 %v16120_v41, %v12423_v13  ;;  %v3907_v46 = vsub.f32 %v12162_v59, %v12423_v13  ;;  %v16122_v35 = vld [vmem:[#allocation19_spill] sm:$0xff] }
 0x2a2   : > { %v3908_v6 = vsub.f32 %v16121_v42, %v12423_v13  ;;  %v3909_v14 = vsub.f32 %v12155_v57, %v12423_v13  ;;  %v3910_v31 = vsub.f32 %v12176_v60, %v12423_v13  ;;  %v3911_v29 = vsub.f32 %v12200_v55, %v12423_v13  ;;  %v16124_v59 = vld [vmem:[#allocation23_spill] sm:$0xff]  ;;  %v16125_v60 = vld [vmem:[#allocation20_spill] sm:$0xff] }
 0x2a3   : > { %9678 = vrsqrt.f32 %v3934_v56  ;;  %v3912_v23 = vsub.f32 %v16122_v35, %v12423_v13  ;;  %v3913_v34 = vsub.f32 %v16123_v38, %v12423_v13  ;;  %v3914_v20 = vsub.f32 %v16124_v59, %v12423_v13 }
 0x2a4   : > { %v3915_v49 = vsub.f32 %v12264_v33, %v12423_v13  ;;  %v3916_v57 = vsub.f32 %v12232_v54, %v12423_v13  ;;  %v3917_v53 = vsub.f32 %v16125_v60, %v12423_v13  ;;  %v3918_v55 = vsub.f32 %v12271_v27, %v12423_v13  ;;  %v16126_v33 = vld [vmem:[#allocation18_spill] sm:$0xff] }
 0x2a5   : > { %v3919_v44 = vsub.f32 %v12294_v47, %v12423_v13  ;;  %v3920_v56 = vsub.f32 %v12268_v63, %v12423_v13  ;;  %v3921_v43 = vsub.f32 %v12297_v10, %v12423_v13  ;;  %v3922_v8 = vsub.f32 %v16126_v33, %v12423_v13 }
 0x2a6   : > { %v3923_v54 = vsub.f32 %v12328_v22, %v12423_v13  ;;  %v3924_v7 = vsub.f32 %v12318_v28, %v12423_v13  ;;  %v3925_v27 = vsub.f32 %v12326_v37, %v12423_v13  ;;  %v3926_v47 = vsub.f32 %v12347_v17, %v12423_v13 }
 0x2a7   : > { %v3927_v63 = vsub.f32 %v12357_v11, %v12423_v13  ;;  %v3928_v10 = vsub.f32 %v12350_v16, %v12423_v13  ;;  %v3929_v9 = vsub.f32 %v12359_v0, %v12423_v13  ;;  %v3930_v22 = vsub.f32 %v12391_v58, %v12423_v13 }
 0x2a8   : > { %v3932_v28 = vsub.f32 %v12382_v39, %v12423_v13  ;;  %v3933_v37 = vsub.f32 %v12401_v40, %v12423_v13 }
 0x2b0   : > { %v9679_v26 = vpop.eup %9678 }
 0x2b1   : > { %v3981_v17 = vmul.f32 %v9679_v26, %v3931_v3  ;;  %v12523_v41 = vmul.f32 %v9679_v26, %v3886_v36  ;;  %v12525_v11 = vmul.f32 %v9679_v26, %v3887_v62  ;;  %v12527_v42 = vmul.f32 %v9679_v26, %v3888_v4 }
 0x2b2   : > { %v12529_v16 = vmul.f32 %v9679_v26, %v3889_v48  ;;  %v12531_v35 = vmul.f32 %v9679_v26, %v3890_v1  ;;  %v12533_v0 = vmul.f32 %v9679_v26, %v3891_v2  ;;  %v12535_v58 = vmul.f32 %v9679_v26, %v3892_v50 }
 0x2b3   : > { %v4029_v38 = vmax.f32 %v3981_v17, 0.0  ;;  %v12537_v39 = vmul.f32 %v9679_v26, %v3893_v19  ;;  %v12539_v59 = vmul.f32 %v9679_v26, %v3894_v15  ;;  %v12541_v40 = vmul.f32 %v9679_v26, %v3895_v45 }
 0x2b4   : > { %v12543_v13 = vmul.f32 %v9679_v26, %v3896_v61  ;;  %v12545_v3 = vmul.f32 %v9679_v26, %v3897_v24  ;;  %v12547_v36 = vmul.f32 %v9679_v26, %v3898_v32  ;;  %v12549_v62 = vmul.f32 %v9679_v26, %v3899_v5 }
 0x2b5   : > { %v8850_v4 = vpack.c.bf16 %v4029_v38, %v4029_v38  ;;  %v12551_v48 = vmul.f32 %v9679_v26, %v3900_v51  ;;  %v12553_v1 = vmul.f32 %v9679_v26, %v3901_v12  ;;  %v12555_v2 = vmul.f32 %v9679_v26, %v3902_v21 }
 0x2b6   : > { %v12557_v50 = vmul.f32 %v9679_v26, %v3903_v52  ;;  %v12559_v19 = vmul.f32 %v9679_v26, %v3904_v25  ;;  %v12561_v15 = vmul.f32 %v9679_v26, %v3905_v18  ;;  %v12563_v45 = vmul.f32 %v9679_v26, %v3906_v30 }
 0x2b7   : > { %4326 = vst.msk [vmem:[#allocation2 + $0xc4] sm:$0xf] %vm4080_vm7, %v8850_v4  ;;  %v12566_v61 = vmul.f32 %v9679_v26, %v3907_v46  ;;  %v12568_v24 = vmul.f32 %v9679_v26, %v3908_v6  ;;  %v12570_v32 = vmul.f32 %v9679_v26, %v3909_v14  ;;  %v12572_v5 = vmul.f32 %v9679_v26, %v3910_v31 }
 0x2b8   : > { %v12574_v51 = vmul.f32 %v9679_v26, %v3911_v29  ;;  %v12576_v12 = vmul.f32 %v9679_v26, %v3912_v23  ;;  %v12578_v21 = vmul.f32 %v9679_v26, %v3913_v34  ;;  %v12580_v52 = vmul.f32 %v9679_v26, %v3914_v20 }
 0x2b9   : > { %v12582_v25 = vmul.f32 %v9679_v26, %v3915_v49  ;;  %v12584_v18 = vmul.f32 %v9679_v26, %v3916_v57  ;;  %v12586_v30 = vmul.f32 %v9679_v26, %v3917_v53  ;;  %v12588_v46 = vmul.f32 %v9679_v26, %v3918_v55 }
 0x2ba   : > { %v12590_v6 = vmul.f32 %v9679_v26, %v3919_v44  ;;  %v12592_v14 = vmul.f32 %v9679_v26, %v3920_v56  ;;  %v12594_v31 = vmul.f32 %v9679_v26, %v3921_v43  ;;  %v12596_v29 = vmul.f32 %v9679_v26, %v3922_v8 }
 0x2bb   : > { %v12598_v23 = vmul.f32 %v9679_v26, %v3923_v54  ;;  %v12600_v34 = vmul.f32 %v9679_v26, %v3924_v7  ;;  %v12602_v20 = vmul.f32 %v9679_v26, %v3925_v27  ;;  %v12604_v49 = vmul.f32 %v9679_v26, %v3926_v47 }
 0x2bc   : > { %v12606_v57 = vmul.f32 %v9679_v26, %v3927_v63  ;;  %v12608_v60 = vmul.f32 %v9679_v26, %v3928_v10  ;;  %v12610_v53 = vmul.f32 %v9679_v26, %v3929_v9  ;;  %v12612_v55 = vmul.f32 %v9679_v26, %v3930_v22 }
 0x2bd   : > { %v12614_v44 = vmul.f32 %v9679_v26, %v3932_v28  ;;  %v12616_v56 = vmul.f32 %v9679_v26, %v3933_v37  ;;  %v3984_v43 = vmax.f32 %v12523_v41, 0.0  ;;  %v3985_v33 = vmax.f32 %v12525_v11, 0.0 }
 0x2be   : > { %v3986_v8 = vmax.f32 %v12527_v42, 0.0  ;;  %v3987_v54 = vmax.f32 %v12529_v16, 0.0  ;;  %v3988_v7 = vmax.f32 %v12531_v35, 0.0  ;;  %v3989_v27 = vmax.f32 %v12533_v0, 0.0 }
 0x2bf   : > { %v3990_v47 = vmax.f32 %v12535_v58, 0.0  ;;  %v3991_v63 = vmax.f32 %v12537_v39, 0.0  ;;  %v3992_v10 = vmax.f32 %v12539_v59, 0.0  ;;  %v3993_v26 = vmax.f32 %v12541_v40, 0.0 }
 0x2c0   : > { %v3994_v9 = vmax.f32 %v12543_v13, 0.0  ;;  %v3995_v22 = vmax.f32 %v12545_v3, 0.0  ;;  %v3996_v28 = vmax.f32 %v12547_v36, 0.0  ;;  %v3997_v37 = vmax.f32 %v12549_v62, 0.0 }
 0x2c1   : > { %v3998_v17 = vmax.f32 %v12551_v48, 0.0  ;;  %v3999_v41 = vmax.f32 %v12553_v1, 0.0  ;;  %v4000_v11 = vmax.f32 %v12555_v2, 0.0  ;;  %v4001_v42 = vmax.f32 %v12557_v50, 0.0 }
 0x2c2   : > { %v4002_v0 = vmax.f32 %v12559_v19, 0.0  ;;  %v4003_v38 = vmax.f32 %v12561_v15, 0.0  ;;  %v4004_v59 = vmax.f32 %v12563_v45, 0.0  ;;  %v4005_v40 = vmax.f32 %v12566_v61, 0.0 }
 0x2c3   : > { %v4006_v13 = vmax.f32 %v12568_v24, 0.0  ;;  %v4007_v3 = vmax.f32 %v12570_v32, 0.0  ;;  %v4008_v36 = vmax.f32 %v12572_v5, 0.0  ;;  %v4009_v62 = vmax.f32 %v12574_v51, 0.0 }
 0x2c4   : > { %v4010_v4 = vmax.f32 %v12576_v12, 0.0  ;;  %v4011_v48 = vmax.f32 %v12578_v21, 0.0  ;;  %v4013_v2 = vmax.f32 %v12582_v25, 0.0  ;;  %v4016_v15 = vmax.f32 %v12588_v46, 0.0 }
 0x2c5   : > { %v4019_v32 = vmax.f32 %v12594_v31, 0.0  ;;  %v4022_v12 = vmax.f32 %v12600_v34, 0.0  ;;  %v4025_v19 = vmax.f32 %v12606_v57, 0.0  ;;  %v4026_v46 = vmax.f32 %v12608_v60, 0.0 }
 0x2c6   : > { %v4027_v45 = vmax.f32 %v12610_v53, 0.0  ;;  %v4028_v61 = vmax.f32 %v12612_v55, 0.0  ;;  %v4031_v5 = vmax.f32 %v12616_v56, 0.0  ;;  %v8805_v50 = vpack.c.bf16 %v3984_v43, %v3984_v43 }
 0x2c7   : > { %v8806_v51 = vpack.c.bf16 %v3985_v33, %v3985_v33  ;;  %v12665_v1 = vmul.f32 0.0, %v3986_v8  ;;  %v12667_v34 = vmul.f32 0.0, %v3989_v27  ;;  %v12669_v21 = vmul.f32 0.0, %v3992_v10 }
 0x2c8   : > { %v12671_v25 = vmul.f32 0.0, %v3995_v22  ;;  %v12673_v57 = vmul.f32 0.0, %v3998_v17  ;;  %4281 = vst.msk [vmem:[#allocation2 + $0x10] sm:$0xf] %vm4080_vm7, %v8805_v50  ;;  %v12677_v55 = vmul.f32 0.0, %v4001_v42  ;;  %v12679_v31 = vmul.f32 0.0, %v4004_v59 }
 0x2c9   : > { %4282 = vst.msk [vmem:[#allocation2 + $0x14] sm:$0xf] %vm4080_vm7, %v8806_v51  ;;  %v12681_v56 = vmul.f32 0.0, %v4007_v3  ;;  %v12683_v43 = vmul.f32 0.0, %v4010_v4  ;;  %v12685_v33 = vmul.f32 0.0, %v4013_v2  ;;  %v12687_v8 = vmul.f32 0.0, %v4016_v15 }
 0x2ca   : > { %v12689_v27 = vmul.f32 0.0, %v4019_v32  ;;  %v12691_v10 = vmul.f32 0.0, %v4022_v12  ;;  %v12693_v22 = vmul.f32 0.0, %v4025_v19  ;;  %v12695_v17 = vmul.f32 0.0, %v4028_v61 }
 0x2cb   : > { %v12697_v42 = vmul.f32 0.0, %v4031_v5  ;;  %v8808_v59 = vpack.c.bf16 %v3987_v54, %v3987_v54  ;;  %v8809_v3 = vpack.c.bf16 %v3988_v7, %v3988_v7  ;;  %v8811_v4 = vpack.c.bf16 %v3990_v47, %v3990_v47 }
 0x2cc   : > { %v8812_v2 = vpack.c.bf16 %v3991_v63, %v3991_v63  ;;  %v8814_v50 = vpack.c.bf16 %v3993_v26, %v3993_v26  ;;  %v8815_v19 = vpack.c.bf16 %v3994_v9, %v3994_v9  ;;  %v8817_v15 = vpack.c.bf16 %v3996_v28, %v3996_v28 }
 0x2cd   : > { %v8818_v61 = vpack.c.bf16 %v3997_v37, %v3997_v37  ;;  %v8820_v32 = vpack.c.bf16 %v3999_v41, %v3999_v41  ;;  %4284 = vst.msk [vmem:[#allocation2 + $0x1c] sm:$0xf] %vm4080_vm7, %v8808_v59  ;;  %v8821_v16 = vpack.c.bf16 %v4000_v11, %v4000_v11  ;;  %v8823_v54 = vpack.c.bf16 %v4002_v0, %v4002_v0 }
 0x2ce   : > { %v8824_v35 = vpack.c.bf16 %v4003_v38, %v4003_v38  ;;  %v8826_v5 = vpack.c.bf16 %v4005_v40, %v4005_v40  ;;  %4285 = vst.msk [vmem:[#allocation2 + $0x20] sm:$0xf] %vm4080_vm7, %v8809_v3  ;;  %4287 = vst.msk [vmem:[#allocation2 + $0x28] sm:$0xf] %vm4080_vm7, %v8811_v4  ;;  %v8827_v58 = vpack.c.bf16 %v4006_v13, %v4006_v13  ;;  %v16127_v9 = vmax.f32 %v12580_v52, 0.0 }
 0x2cf   : > { %4288 = vst.msk [vmem:[#allocation2 + $0x2c] sm:$0xf] %vm4080_vm7, %v8812_v2  ;;  %4290 = vst.msk [vmem:[#allocation2 + $0x34] sm:$0xf] %vm4080_vm7, %v8814_v50  ;;  %v8829_v39 = vpack.c.bf16 %v4008_v36, %v4008_v36  ;;  %v8830_v7 = vpack.c.bf16 %v4009_v62, %v4009_v62  ;;  %v8832_v47 = vpack.c.bf16 %v4011_v48, %v4011_v48  ;;  %v4333_v63 = vld [vmem:[#allocation2 + $0x10] sm:$0xf] }
 0x2d0   : > { %4291 = vst.msk [vmem:[#allocation2 + $0x38] sm:$0xf] %vm4080_vm7, %v8815_v19  ;;  %4293 = vst.msk [vmem:[#allocation2 + $0x40] sm:$0xf] %vm4080_vm7, %v8817_v15  ;;  %v12723_v26 = vld [vmem:[#allocation2 + $0x14] sm:$0xf]  ;;  %v8833_v24 = vpack.c.bf16 %v16127_v9, %v16127_v9  ;;  %v8848_v12 = vpack.c.bf16 %v4027_v45, %v4027_v45  ;;  %v8807_v53 = vpack.c.bf16 %v12665_v1, %v12665_v1 }
 0x2d1   : > { %4294 = vst.msk [vmem:[#allocation2 + $0x44] sm:$0xf] %vm4080_vm7, %v8818_v61  ;;  %4296 = vst.msk [vmem:[#allocation2 + $0x4c] sm:$0xf] %vm4080_vm7, %v8820_v32  ;;  %v16128_v28 = vmax.f32 %v12584_v18, 0.0  ;;  %v16129_v41 = vmax.f32 %v12586_v30, 0.0  ;;  %v12742_v52 = vcombine.low %v4333_v63, %v12723_v26  ;;  %v8810_v45 = vpack.c.bf16 %v12667_v34, %v12667_v34 }
 0x2d2   : > { %v16130_v0 = vmax.f32 %v12590_v6, 0.0  ;;  %v4332_v40 = vld [vmem:[#allocation2 + $0xc] sm:$0xf]  ;;  %4297 = vst.msk [vmem:[#allocation2 + $0x50] sm:$0xf] %vm4080_vm7, %v8821_v16  ;;  %v16132_v18 = vmax.f32 %v12592_v14, 0.0  ;;  %v8819_v3 = vpack.c.bf16 %v12673_v57, %v12673_v57  ;;  %v8828_v34 = vpack.c.bf16 %v12681_v56, %v12681_v56 }
 0x2d3   : > { %v8835_v37 = vpack.c.bf16 %v16128_v28, %v16128_v28  ;;  %v8836_v11 = vpack.c.bf16 %v16129_v41, %v16129_v41  ;;  %4299 = vst.msk [vmem:[#allocation2 + $0x58] sm:$0xf] %vm4080_vm7, %v8823_v54  ;;  %4300 = vst.msk [vmem:[#allocation2 + $0x5c] sm:$0xf] %vm4080_vm7, %v8824_v35  ;;  %v16133_v6 = vmax.f32 %v12596_v29, 0.0  ;;  %v16134_v36 = vmax.f32 %v12598_v23, 0.0 }
 0x2d4   : > { %v8838_v38 = vpack.c.bf16 %v16130_v0, %v16130_v0  ;;  %4302 = vst.msk [vmem:[#allocation2 + $0x64] sm:$0xf] %vm4080_vm7, %v8826_v5  ;;  %16131 = vst [vmem:[#allocation25_spill] sm:$0xff] %v12742_v52  ;;  %v8839_v30 = vpack.c.bf16 %v16132_v18, %v16132_v18  ;;  %v16135_v14 = vmax.f32 %v12602_v20, 0.0  ;;  %v16136_v29 = vmax.f32 %v12604_v49, 0.0  ;;  %v16138_v56 = vld [vmem:[#allocation45_spill] sm:$0xff] }
 0x2d5   : > { %v8841_v13 = vpack.c.bf16 %v16133_v6, %v16133_v6  ;;  %v8842_v62 = vpack.c.bf16 %v16134_v36, %v16134_v36  ;;  %4303 = vst.msk [vmem:[#allocation2 + $0x68] sm:$0xf] %vm4080_vm7, %v8827_v58  ;;  %4305 = vst.msk [vmem:[#allocation2 + $0x70] sm:$0xf] %vm4080_vm7, %v8829_v39  ;;  %v8847_v23 = vpack.c.bf16 %v4026_v46, %v4026_v46  ;;  %v5285_v20 = vrot.slane %v12742_v52, 5 }
 0x2d6   : > { %4306 = vst.msk [vmem:[#allocation2 + $0x74] sm:$0xf] %vm4080_vm7, %v8830_v7  ;;  %4308 = vst.msk [vmem:[#allocation2 + $0x7c] sm:$0xf] %vm4080_vm7, %v8832_v47  ;;  %v8844_v48 = vpack.c.bf16 %v16135_v14, %v16135_v14  ;;  %v8845_v51 = vpack.c.bf16 %v16136_v29, %v16136_v29  ;;  %v16137_v49 = vmax.f32 %v12614_v44, 0.0  ;;  %v12777_v59 = vcombine.low %v4332_v40, %v4333_v63 }
 0x2d7   : > { %4309 = vst.msk [vmem:[#allocation2 + $0x80] sm:$0xf] %vm4080_vm7, %v8833_v24  ;;  %4311 = vst.msk [vmem:[#allocation2 + $0x88] sm:$0xf] %vm4080_vm7, %v8835_v37  ;;  %v8813_v46 = vpack.c.bf16 %v12669_v21, %v12669_v21  ;;  %v8816_v44 = vpack.c.bf16 %v12671_v25, %v12671_v25  ;;  %5334 = vrot.lane.b32.xlu1 %v5285_v20, %s9798_s18  ;;  %v8822_v21 = vpack.c.bf16 %v12677_v55, %v12677_v55  ;;  %v6508_v57 = vld [vmem:[#allocation2 + $0x1c] sm:$0xf] }
 0x2d8   : > { %4312 = vst.msk [vmem:[#allocation2 + $0x8c] sm:$0xf] %vm4080_vm7, %v8836_v11  ;;  %4314 = vst.msk [vmem:[#allocation2 + $0x94] sm:$0xf] %vm4080_vm7, %v8838_v38  ;;  %v8851_v60 = vpack.c.bf16 %v16137_v49, %v16137_v49  ;;  %v15768_v1 = vrot.slane %v12777_v59, 5  ;;  %v8825_v25 = vpack.c.bf16 %v12679_v31, %v12679_v31  ;;  %v8831_v2 = vpack.c.bf16 %v12683_v43, %v12683_v43 }
 0x2d9   : > { %4315 = vst.msk [vmem:[#allocation2 + $0x98] sm:$0xf] %vm4080_vm7, %v8839_v30  ;;  %4317 = vst.msk [vmem:[#allocation2 + $0xa0] sm:$0xf] %vm4080_vm7, %v8841_v13  ;;  %v6509_v4 = vld [vmem:[#allocation2 + $0x20] sm:$0xf]  ;;  %v8834_v50 = vpack.c.bf16 %v12685_v33, %v12685_v33  ;;  %v8837_v55 = vpack.c.bf16 %v12687_v8, %v12687_v8  ;;  %v8840_v31 = vpack.c.bf16 %v12689_v27, %v12689_v27 }
 0x2da   : > { %4318 = vst.msk [vmem:[#allocation2 + $0xa4] sm:$0xf] %vm4080_vm7, %v8842_v62  ;;  %4320 = vst.msk [vmem:[#allocation2 + $0xac] sm:$0xf] %vm4080_vm7, %v8844_v48  ;;  %v16139_v43 = vrot.slane %v16138_v56, 5  ;;  %v8843_v8 = vpack.c.bf16 %v12691_v10, %v12691_v10  ;;  %v8846_v27 = vpack.c.bf16 %v12693_v22, %v12693_v22  ;;  %v8849_v19 = vpack.c.bf16 %v12695_v17, %v12695_v17 }
 0x2db   : > { %4321 = vst.msk [vmem:[#allocation2 + $0xb0] sm:$0xf] %vm4080_vm7, %v8845_v51  ;;  %4323 = vst.msk [vmem:[#allocation2 + $0xb8] sm:$0xf] %vm4080_vm7, %v8847_v23  ;;  %v8852_v15 = vpack.c.bf16 %v12697_v42, %v12697_v42  ;;  %v12837_v61 = vcombine.low %v6508_v57, %v6509_v4  ;;  %v4354_v10 = vld [vmem:[#allocation2 + $0x64] sm:$0xf] }
 0x2dc   : > { %4324 = vst.msk [vmem:[#allocation2 + $0xbc] sm:$0xf] %vm4080_vm7, %v8848_v12  ;;  %4327 = vst.msk [vmem:[#allocation2 + $0xc8] sm:$0xf] %vm4080_vm7, %v8851_v60  ;;  %v4796_v33 = vsel %vm651_vm0, %v16139_v43, %v15768_v1  ;;  %v4355_v22 = vld [vmem:[#allocation2 + $0x68] sm:$0xf] }
 0x2dd   : > { %4283 = vst.msk [vmem:[#allocation2 + $0x18] sm:$0xf] %vm4080_vm7, %v8807_v53  ;;  %4286 = vst.msk [vmem:[#allocation2 + $0x24] sm:$0xf] %vm4080_vm7, %v8810_v45  ;;  %4845 = vrot.lane.b32.xlu0 %v4796_v33, %s9798_s18  ;;  %v15769_v17 = vrot.slane %v12837_v61, 5  ;;  %v12856_v35 = vcombine.low %v4354_v10, %v4355_v22 }
 0x2de   : > { %4289 = vst.msk [vmem:[#allocation2 + $0x30] sm:$0xf] %vm4080_vm7, %v8813_v46  ;;  %4292 = vst.msk [vmem:[#allocation2 + $0x3c] sm:$0xf] %vm4080_vm7, %v8816_v44  ;;  %v12848_v42 = vld [vmem:[#allocation2 + $0x1c] sm:$0xf] }
 0x2df   : > { %4295 = vst.msk [vmem:[#allocation2 + $0x48] sm:$0xf] %vm4080_vm7, %v8819_v3  ;;  %4298 = vst.msk [vmem:[#allocation2 + $0x54] sm:$0xf] %vm4080_vm7, %v8822_v21  ;;  %v12850_v32 = vld [vmem:[#allocation2 + $0x20] sm:$0xf]  ;;  %7021 = vrot.lane.b32.xlu1 %v15769_v17, %s9798_s18 }
 0x2e0   : > { %4301 = vst.msk [vmem:[#allocation2 + $0x60] sm:$0xf] %vm4080_vm7, %v8825_v25  ;;  %4304 = vst.msk [vmem:[#allocation2 + $0x6c] sm:$0xf] %vm4080_vm7, %v8828_v34  ;;  %v12852_v16 = vld [vmem:[#allocation2 + $0x7c] sm:$0xf] }
 0x2e1   : > { %4307 = vst.msk [vmem:[#allocation2 + $0x78] sm:$0xf] %vm4080_vm7, %v8831_v2  ;;  %4310 = vst.msk [vmem:[#allocation2 + $0x84] sm:$0xf] %vm4080_vm7, %v8834_v50  ;;  %v12854_v54 = vld [vmem:[#allocation2 + $0x80] sm:$0xf] }
 0x2e2   : > { %4313 = vst.msk [vmem:[#allocation2 + $0x90] sm:$0xf] %vm4080_vm7, %v8837_v55  ;;  %4316 = vst.msk [vmem:[#allocation2 + $0x9c] sm:$0xf] %vm4080_vm7, %v8840_v31  ;;  %v12863_v58 = vld [vmem:[#allocation2 + $0x28] sm:$0xf]  ;;  %v12879_v24 = vcombine.low %v12852_v16, %v12854_v54 }
 0x2e3   : > { %4319 = vst.msk [vmem:[#allocation2 + $0xa8] sm:$0xf] %vm4080_vm7, %v8843_v8  ;;  %4322 = vst.msk [vmem:[#allocation2 + $0xb4] sm:$0xf] %vm4080_vm7, %v8846_v27  ;;  %v12865_v39 = vld [vmem:[#allocation2 + $0x2c] sm:$0xf] }
 0x2e4   : > { %4325 = vst.msk [vmem:[#allocation2 + $0xc0] sm:$0xf] %vm4080_vm7, %v8849_v19  ;;  %4328 = vst.msk [vmem:[#allocation2 + $0xcc] sm:$0xf] %vm4080_vm7, %v8852_v15  ;;  %v12861_v5 = vld [vmem:[#allocation2 + $0x18] sm:$0xf]  ;;  %v12894_v0 = vcombine.low %v12863_v58, %v12865_v39 }
 0x2e5   : > { %v12869_v7 = vcombine.low %v12861_v5, %v12848_v42  ;;  %v12871_v47 = vld [vmem:[#allocation2 + $0x24] sm:$0xf]  ;;  %v12873_v63 = vld [vmem:[#allocation2 + $0x30] sm:$0xf]  ;;  %v12875_v9 = vld [vmem:[#allocation2 + $0x34] sm:$0xf] }
 0x2e6   : > { %16141 = vst [vmem:[#allocation26_spill] sm:$0xff] %v12879_v24  ;;  %v12883_v28 = vcombine.low %v12850_v32, %v12871_v47  ;;  %v12887_v37 = vcombine.low %v12873_v63, %v12875_v9  ;;  %v12889_v41 = vld [vmem:[#allocation2 + $0x3c] sm:$0xf]  ;;  %16144 = vst [vmem:[#allocation31_spill] sm:$0xff] %v12894_v0  ;;  %v12897_v40 = vld [vmem:[#allocation2 + $0x38] sm:$0xf] }
 0x2e7   : > { %16140 = vst [vmem:[#allocation16_spill] sm:$0xff] %v12869_v7  ;;  %v5286_v11 = vrot.slane %v12869_v7, 5  ;;  %v12904_v30 = vcombine.low %v12897_v40, %v12889_v41  ;;  %v12906_v6 = vld [vmem:[#allocation2 + $0x40] sm:$0xf]  ;;  %v12908_v13 = vld [vmem:[#allocation2 + $0x44] sm:$0xf] }
 0x2e8   : > { %16142 = vst [vmem:[#allocation21_spill] sm:$0xff] %v12883_v28  ;;  %16143 = vst [vmem:[#allocation24_spill] sm:$0xff] %v12887_v37  ;;  %v5288_v38 = vrot.slane %v12883_v28, 5  ;;  %v5292_v62 = vrot.slane %v12887_v37, 5  ;;  %v12913_v14 = vld [vmem:[#allocation2 + $0x48] sm:$0xf]  ;;  %v12919_v51 = vcombine.low %v12906_v6, %v12908_v13 }
 0x2e9   : > { %v5287_v18 = vsel %vm651_vm0, %v5285_v20, %v5286_v11  ;;  %16145 = vst [vmem:[#allocation39_spill] sm:$0xff] %v12904_v30  ;;  %v5290_v48 = vrot.slane %v12894_v0, 5  ;;  %v4350_v29 = vld [vmem:[#allocation2 + $0x54] sm:$0xf]  ;;  %v12921_v23 = vld [vmem:[#allocation2 + $0x4c] sm:$0xf] }
 0x2ea   : > { %5336 = vrot.lane.b32.xlu0 %v5287_v18, %s9798_s18  ;;  %v5289_v36 = vsel %vm651_vm0, %v5286_v11, %v5288_v38  ;;  %16146 = vst [vmem:[#allocation40_spill] sm:$0xff] %v12919_v51  ;;  %v5294_v20 = vrot.slane %v12904_v30, 5  ;;  %v12927_v49 = vcombine.low %v12913_v14, %v12921_v23  ;;  %v12929_v60 = vld [vmem:[#allocation2 + $0x50] sm:$0xf]  ;;  %v4353_v46 = vld [vmem:[#allocation2 + $0x60] sm:$0xf] }
 0x2eb   : > { %5338 = vrot.lane.b32.xlu1 %v5289_v36, %s9798_s18  ;;  %v5291_v12 = vsel %vm651_vm0, %v5288_v38, %v5290_v48  ;;  %v5293_v53 = vsel %vm651_vm0, %v5290_v48, %v5292_v62  ;;  %v12934_v45 = vcombine.low %v12929_v60, %v4350_v29  ;;  %v5296_v44 = vrot.slane %v12919_v51, 5  ;;  %v4351_v3 = vld [vmem:[#allocation2 + $0x58] sm:$0xf]  ;;  %v4352_v21 = vld [vmem:[#allocation2 + $0x5c] sm:$0xf] }
 0x2ec   : > { %16147 = vst [vmem:[#allocation37_spill] sm:$0xff] %v12927_v49  ;;  %v5295_v25 = vsel %vm651_vm0, %v5292_v62, %v5294_v20  ;;  %v5298_v34 = vrot.slane %v12927_v49, 5  ;;  %v12943_v2 = vcombine.low %v4353_v46, %v4354_v10  ;;  %v12945_v50 = vld [vmem:[#allocation2 + $0x6c] sm:$0xf]  ;;  %v12948_v55 = vcombine.low %v4351_v3, %v4352_v21  ;;  %v12954_v43 = vld [vmem:[#allocation2 + $0x70] sm:$0xf] }
 0x2ed   : > { %16148 = vst [vmem:[#allocation22_spill] sm:$0xff] %v12934_v45  ;;  %v5297_v57 = vsel %vm651_vm0, %v5294_v20, %v5296_v44  ;;  %v5300_v4 = vrot.slane %v12934_v45, 5  ;;  %v12952_v56 = vcombine.low %v4355_v22, %v12945_v50  ;;  %v12956_v33 = vld [vmem:[#allocation2 + $0x74] sm:$0xf]  ;;  %v12961_v19 = vld [vmem:[#allocation2 + $0x78] sm:$0xf] }
 0x2ee   : > { %5340 = vrot.lane.b32.xlu0 %v5291_v12, %s9798_s18  ;;  %16149 = vst [vmem:[#allocation30_spill] sm:$0xff] %v12943_v2  ;;  %16150 = vst [vmem:[#allocation28_spill] sm:$0xff] %v12948_v55  ;;  %v5299_v31 = vsel %vm651_vm0, %v5296_v44, %v5298_v34  ;;  %v5304_v27 = vrot.slane %v12943_v2, 5  ;;  %v5302_v15 = vrot.slane %v12948_v55, 5  ;;  %v12965_v10 = vld [vmem:[#allocation2 + $0x84] sm:$0xf]  ;;  %v12969_v22 = vcombine.low %v12954_v43, %v12956_v33 }
 0x2ef   : > { %5342 = vrot.lane.b32.xlu1 %v5293_v53, %s9798_s18  ;;  %16151 = vst [vmem:[#allocation44_spill] sm:$0xff] %v12952_v56  ;;  %v5301_v8 = vsel %vm651_vm0, %v5298_v34, %v5300_v4  ;;  %v5306_v38 = vrot.slane %v12952_v56, 5  ;;  %v12975_v18 = vcombine.low %v12961_v19, %v12852_v16  ;;  %v12981_v62 = vcombine.low %v12854_v54, %v12965_v10  ;;  %v12984_v48 = vld [vmem:[#allocation2 + $0x90] sm:$0xf]  ;;  %v12987_v20 = vld [vmem:[#allocation2 + $0x88] sm:$0xf] }
 0x2f0   : > { %16152 = vst [vmem:[#allocation29_spill] sm:$0xff] %v12969_v22  ;;  %v5303_v11 = vsel %vm651_vm0, %v5300_v4, %v5302_v15  ;;  %v5305_v36 = vsel %vm651_vm0, %v5302_v15, %v5304_v27  ;;  %v5308_v12 = vrot.slane %v12969_v22, 5  ;;  %v12989_v53 = vld [vmem:[#allocation2 + $0x8c] sm:$0xf]  ;;  %v13002_v4 = vld [vmem:[#allocation2 + $0x9c] sm:$0xf]  ;;  %v13016_v15 = vcombine.low %v4352_v21, %v4353_v46 }
 0x2f1   : > { %16153 = vst [vmem:[#allocation38_spill] sm:$0xff] %v12975_v18  ;;  %16154 = vst [vmem:[#allocation27_spill] sm:$0xff] %v12981_v62  ;;  %v5307_v16 = vsel %vm651_vm0, %v5304_v27, %v5306_v38  ;;  %v5310_v44 = vrot.slane %v12975_v18, 5  ;;  %v5312_v34 = vrot.slane %v12981_v62, 5  ;;  %v13014_v27 = vcombine.low %v4350_v29, %v4351_v3  ;;  %v13034_v3 = vld [vmem:[#allocation2 + $0xa8] sm:$0xf] }
 0x2f2   : > { %5344 = vrot.lane.b32.xlu0 %v5295_v25, %s9798_s18  ;;  %v12993_v25 = vld [vmem:[#allocation2 + $0x94] sm:$0xf]  ;;  %v5309_v54 = vsel %vm651_vm0, %v5306_v38, %v5308_v12  ;;  %16159 = vst [vmem:[#allocation35_spill] sm:$0xff] %v13034_v3  ;;  %v13044_v17 = vld [vmem:[#allocation2 + $0xac] sm:$0xf] }
 0x2f3   : > { %5346 = vrot.lane.b32.xlu1 %v5297_v57, %s9798_s18  ;;  %v13000_v57 = vcombine.low %v12984_v48, %v12993_v25  ;;  %v5311_v38 = vsel %vm651_vm0, %v5308_v12, %v5310_v44  ;;  %v5313_v29 = vsel %vm651_vm0, %v5310_v44, %v5312_v34  ;;  %v13038_v12 = vld [vmem:[#allocation2 + $0xb4] sm:$0xf]  ;;  %16162 = vst [vmem:[#allocation5_spill] sm:$0xff] %v13044_v17  ;;  %v13052_v62 = vld [vmem:[#allocation2 + $0xb0] sm:$0xf] }
 0x2f4   : > { %16160 = vst [vmem:[#allocation36_spill] sm:$0xff] %v13038_v12  ;;  %16164 = vst [vmem:[#allocation4_spill] sm:$0xff] %v13052_v62  ;;  %v5022_v18 = vld [vmem:[#allocation2 + $0xc4] sm:$0xf] }
 0x2f5   : > { %16155 = vst [vmem:[#allocation33_spill] sm:$0xff] %v13000_v57  ;;  %v5316_v46 = vrot.slane %v13000_v57, 5  ;;  %v13050_v57 = vcombine.low %v13034_v3, %v13044_v17  ;;  %v13066_v17 = vld [vmem:[#allocation2 + $0xbc] sm:$0xf] }
 0x2f6   : > { %5348 = vrot.lane.b32.xlu0 %v5299_v31, %s9798_s18  ;;  %v13007_v31 = vld [vmem:[%s15707_s2 + $0x14] ss:$0 sps:$4 sm:$0xff]   ;;  %16168 = vst [vmem:[#allocation11_spill] sm:$0xff] %v13066_v17 }
 0x2f7   : > { %5350 = vrot.lane.b32.xlu1 %v5301_v8, %s9798_s18  ;;  %v13012_v8 = vcombine.low %v12987_v20, %v12989_v53  ;;  %9444 = vmatprep.subr.msk.bf16.mxu1 %vm1633_vm2, %v13007_v31  ;;  %16163 = vst [vmem:[#allocation7_spill] sm:$0xff] %v13050_v57 }
 0x2f9   : > { %16156 = vst [vmem:[#allocation32_spill] sm:$0xff] %v13012_v8  ;;  %v5314_v21 = vrot.slane %v13012_v8, 5  ;;  %v13061_v8 = vld [vmem:[#allocation2 + $0xc0] sm:$0xf] }
 0x2fa   : > { %5352 = vrot.lane.b32.xlu0 %v5303_v11, %s9798_s18  ;;  %v13018_v11 = vld [vmem:[#allocation2 + $0x98] sm:$0xf]  ;;  %16166 = vst [vmem:[#allocation6_spill] sm:$0xff] %v13061_v8 }
 0x2fb   : > { %5354 = vrot.lane.b32.xlu1 %v5305_v36, %s9798_s18  ;;  %v13025_v36 = vcombine.low %v13018_v11, %v13002_v4 }
 0x2fd   : > { %16157 = vst [vmem:[#allocation41_spill] sm:$0xff] %v13025_v36  ;;  %v5318_v44 = vrot.slane %v13025_v36, 5  ;;  %v13064_v36 = vld [vmem:[#allocation2 + $0xb8] sm:$0xf] }
 0x2fe   : > { %5356 = vrot.lane.b32.xlu0 %v5307_v16, %s9798_s18  ;;  %v13027_v16 = vld [vmem:[#allocation2 + $0xa0] sm:$0xf]  ;;  %16167 = vst [vmem:[#allocation8_spill] sm:$0xff] %v13064_v36 }
 0x2ff   : > { %5358 = vrot.lane.b32.xlu1 %v5309_v54, %s9798_s18  ;;  %v13029_v54 = vld [vmem:[#allocation2 + $0xa4] sm:$0xf]  ;;  %v5319_v3 = vsel %vm651_vm0, %v5316_v46, %v5318_v44 }
 0x300   : > { %16158 = vst [vmem:[#allocation42_spill] sm:$0xff] %v13029_v54  ;;  %v13042_v1 = vcombine.low %v13027_v16, %v13029_v54  ;;  %v13058_v54 = vcombine.low %v13052_v62, %v13038_v12  ;;  %v5024_v62 = vld [vmem:[#allocation2 + $0xcc] sm:$0xf] }
 0x302   : > { %5360 = vrot.lane.b32.xlu0 %v5311_v38, %s9798_s18  ;;  %16161 = vst [vmem:[#allocation3_spill] sm:$0xff] %v13042_v1  ;;  %v5315_v38 = vsel %vm651_vm0, %v5312_v34, %v5314_v21  ;;  %16165 = vst [vmem:[#allocation9_spill] sm:$0xff] %v13058_v54  ;;  %v5320_v34 = vrot.slane %v13042_v1, 5  ;;  %v5324_v12 = vrot.slane %v13058_v54, 5  ;;  %v13079_v1 = vcombine.low %v13064_v36, %v13066_v17  ;;  %v6511_v17 = vld [vmem:[#allocation2 + $0x28] sm:$0xf] }
 0x303   : > { %5362 = vrot.lane.b32.xlu1 %v5313_v29, %s9798_s18  ;;  %v5317_v29 = vsel %vm651_vm0, %v5314_v21, %v5316_v46  ;;  %v5023_v46 = vld [vmem:[#allocation2 + $0xc8] sm:$0xf]  ;;  %v13091_v36 = vcombine.low %v12945_v50, %v12954_v43  ;;  %v6513_v50 = vld [vmem:[#allocation2 + $0x30] sm:$0xf]  ;;  %v13106_v43 = vcombine.low %v12956_v33, %v12961_v19  ;;  %v6514_v33 = vld [vmem:[#allocation2 + $0x34] sm:$0xf] }
 0x304   : > { %v5321_v21 = vsel %vm651_vm0, %v5318_v44, %v5320_v34  ;;  %16169 = vst [vmem:[#allocation10_spill] sm:$0xff] %v13079_v1  ;;  %v13082_v22 = vcombine.low %v5023_v46, %v5024_v62  ;;  %v6515_v19 = vld [vmem:[#allocation2 + $0x38] sm:$0xf] }
 0x306   : > { %5364 = vrot.lane.b32.xlu0 %v5315_v38, %s9798_s18  ;;  %v5322_v38 = vrot.slane %v13050_v57, 5 }
 0x307   : > { %5366 = vrot.lane.b32.xlu1 %v5317_v29, %s9798_s18  ;;  %v13074_v29 = vcombine.low %v13061_v8, %v5022_v18  ;;  %v9599_v18 = vld [vmem:[#allocation2 + $0xd0] ss:$0 sps:$4 sm:$0x11]   ;;  %v6510_v8 = vld [vmem:[#allocation2 + $0x24] sm:$0xf] }
 0x308   : > { %v5323_v57 = vsel %vm651_vm0, %v5320_v34, %v5322_v38  ;;  %v5330_v34 = vrot.slane %v13082_v22, 5  ;;  %v5332_v46 = vrot.slane %v9599_v18, 5 }
 0x309   : > { %v5328_v44 = vrot.slane %v13074_v29, 5 }
 0x30a   : > { %5368 = vrot.lane.b32.xlu0 %v5319_v3, %s9798_s18  ;;  %v5325_v3 = vsel %vm651_vm0, %v5322_v38, %v5324_v12  ;;  %v5333_v18 = vsel %vm651_vm0, %v5330_v34, %v5332_v46 }
 0x30b   : > { %5370 = vrot.lane.b32.xlu1 %v5321_v21, %s9798_s18  ;;  %v5326_v21 = vrot.slane %v13079_v1, 5 }
 0x30d   : > { %v5327_v62 = vsel %vm651_vm0, %v5324_v12, %v5326_v21  ;;  %v5329_v38 = vsel %vm651_vm0, %v5326_v21, %v5328_v44  ;;  %v5331_v12 = vsel %vm651_vm0, %v5328_v44, %v5330_v34  ;;  %v16171_v44 = vrot.slane %v12837_v61, 5 }
 0x30e   : > { %5372 = vrot.lane.b32.xlu0 %v5323_v57, %s9798_s18  ;;  %v13095_v57 = vcombine.low %v6510_v8, %v6511_v17  ;;  %v6512_v8 = vld [vmem:[#allocation2 + $0x2c] sm:$0xf]  ;;  %v16172_v34 = vrot.slane %v12777_v59, 5 }
 0x30f   : > { %5374 = vrot.lane.b32.xlu1 %v5325_v3, %s9798_s18  ;;  %v13101_v3 = vcombine.low %v12723_v26, %v12861_v5  ;;  %v13113_v26 = vcombine.low %v6512_v8, %v6513_v50  ;;  %v13118_v5 = vcombine.low %v12848_v42, %v12850_v32  ;;  %v13130_v50 = vcombine.low %v12871_v47, %v12863_v58  ;;  %v9640_v8 = vld [vmem:[%s15707_s2 + $0xc] sm:$0xff]  }
 0x310   : > { %v6973_v17 = vrot.slane %v13095_v57, 5  ;;  %v13134_v32 = vcombine.low %v6514_v33, %v6515_v19  ;;  %v5772_v58 = vsel %vm1633_vm2, %v13007_v31, 0  ;;  %v13148_v47 = vcombine.low %v12965_v10, %v12987_v20 }
 0x311   : > { %16170 = vst [vmem:[#allocation13_spill] sm:$0xff] %v13101_v3  ;;  %v4797_v21 = vrot.slane %v13101_v3, 5  ;;  %v6975_v46 = vrot.slane %v13113_v26, 5  ;;  %v4799_v42 = vrot.slane %v13118_v5, 5  ;;  %v4801_v19 = vrot.slane %v13130_v50, 5  ;;  %9286 = vmatpush3.bf16.msra.mxu1 %v5772_v58 }
 0x312   : > { %5376 = vrot.lane.b32.xlu0 %v5327_v62, %s9798_s18  ;;  %v6974_v62 = vsel %vm651_vm0, %v16171_v44, %v6973_v17  ;;  %v13142_v44 = vcombine.low %v12865_v39, %v12873_v63  ;;  %16173 = vst [vmem:[#allocation12_spill] sm:$0xff] %v13148_v47  ;;  %v6977_v39 = vrot.slane %v13134_v32, 5  ;;  %9287 = vmatprep.subr.bf16.mxu1 %v9640_v8  ;;  %v6518_v63 = vld [vmem:[#allocation2 + $0x44] sm:$0xf]  ;;  %v6520_v58 = vld [vmem:[#allocation2 + $0x4c] sm:$0xf] }
 0x313   : > { %5378 = vrot.lane.b32.xlu1 %v5329_v38, %s9798_s18  ;;  %v4798_v38 = vsel %vm651_vm0, %v16172_v34, %v4797_v21  ;;  %v6976_v33 = vsel %vm651_vm0, %v6973_v17, %v6975_v46  ;;  %v4802_v17 = vsel %vm651_vm0, %v4799_v42, %v4801_v19 }
 0x314   : > { %v6978_v31 = vsel %vm651_vm0, %v6975_v46, %v6977_v39  ;;  %v4803_v10 = vrot.slane %v13142_v44, 5  ;;  %v13171_v46 = vcombine.low %v12875_v9, %v12897_v40 }
 0x315   : > { %9288 = vmatpush3.bf16.msra.mxu1 %v9640_v8  ;;  %v13183_v8 = vcombine.low %v12993_v25, %v13018_v11  ;;  %v13197_v25 = vcombine.low %v12908_v13, %v12913_v14  ;;  %v6525_v11 = vld [vmem:[#allocation2 + $0x60] sm:$0xf] }
 0x316   : > { %5380 = vrot.lane.b32.xlu0 %v5331_v12, %s9798_s18  ;;  %v6516_v12 = vld [vmem:[#allocation2 + $0x3c] sm:$0xf]  ;;  %v4805_v9 = vrot.slane %v13171_v46, 5 }
 0x317   : > { %5382 = vrot.lane.b32.xlu1 %v5333_v18, %s9798_s18  ;;  %v4800_v18 = vsel %vm651_vm0, %v4797_v21, %v4799_v42  ;;  %v6519_v21 = vld [vmem:[#allocation2 + $0x48] sm:$0xf]  ;;  %v13177_v42 = vcombine.low %v12889_v41, %v12906_v6  ;;  %16176 = vst [vmem:[#allocation46_spill] sm:$0xff] %v13183_v8  ;;  %16177 = vst [vmem:[#allocation48_spill] sm:$0xff] %v13197_v25  ;;  %v4809_v13 = vrot.slane %v13197_v25, 5 }
 0x318   : > { %v13159_v20 = vcombine.low %v6518_v63, %v6519_v21  ;;  %v13202_v63 = vcombine.low %v13002_v4, %v13027_v16  ;;  %v13215_v4 = vcombine.low %v12921_v23, %v12929_v60  ;;  %v6526_v16 = vld [vmem:[#allocation2 + $0x64] sm:$0xf] }
 0x319   : > { %16175 = vst [vmem:[#allocation43_spill] sm:$0xff] %v13177_v42  ;;  %v4807_v6 = vrot.slane %v13177_v42, 5 }
 0x31a   : > { %7023 = vrot.lane.b32.xlu0 %v6974_v62, %s9798_s18  ;;  %v6517_v62 = vld [vmem:[#allocation2 + $0x40] sm:$0xf]  ;;  %16178 = vst [vmem:[#allocation15_spill] sm:$0xff] %v13202_v63  ;;  %v4811_v23 = vrot.slane %v13215_v4, 5 }
 0x31b   : > { %4847 = vrot.lane.b32.xlu1 %v4798_v38, %s9798_s18  ;;  %v13153_v34 = vcombine.low %v6516_v12, %v6517_v62  ;;  %v13166_v12 = vcombine.low %v12989_v53, %v12984_v48  ;;  %v6981_v62 = vrot.slane %v13159_v20, 5  ;;  %v6522_v53 = vld [vmem:[#allocation2 + $0x54] sm:$0xf] }
 0x31d   : > { %v6979_v38 = vrot.slane %v13153_v34, 5  ;;  %16174 = vst [vmem:[#allocation34_spill] sm:$0xff] %v13166_v12 }
 0x31e   : > { %4849 = vrot.lane.b32.xlu0 %v4800_v18, %s9798_s18  ;;  %v4804_v18 = vsel %vm651_vm0, %v4801_v19, %v4803_v10  ;;  %v6523_v19 = vld [vmem:[#allocation2 + $0x58] sm:$0xf] }
 0x31f   : > { %7025 = vrot.lane.b32.xlu1 %v6976_v33, %s9798_s18  ;;  %v6521_v33 = vld [vmem:[#allocation2 + $0x50] sm:$0xf]  ;;  %v6980_v48 = vsel %vm651_vm0, %v6977_v39, %v6979_v38  ;;  %v6982_v41 = vsel %vm651_vm0, %v6979_v38, %v6981_v62  ;;  %v13191_v21 = vcombine.low %v6522_v53, %v6523_v19  ;;  %v4806_v39 = vsel %vm651_vm0, %v4803_v10, %v4805_v9  ;;  %v6528_v19 = vld [vmem:[#allocation2 + $0x6c] sm:$0xf] }
 0x320   : > { %v13187_v40 = vcombine.low %v6520_v58, %v6521_v33  ;;  %v6527_v58 = vld [vmem:[#allocation2 + $0x68] sm:$0xf]  ;;  %v5224_v33 = vshrl.u32 %v13082_v22, 16 }
 0x321   : > { %v6985_v38 = vrot.slane %v13191_v21, 5  ;;  %v13225_v60 = vcombine.low %v6526_v16, %v6527_v58  ;;  %v4535_v16 = vshrl.u32 %v12777_v59, 16  ;;  %v4538_v58 = vshll.u32 %v12777_v59, 16 }
 0x322   : > { %7027 = vrot.lane.b32.xlu0 %v6978_v31, %s9798_s18  ;;  %v6983_v31 = vrot.slane %v13187_v40, 5 }
 0x323   : > { %4851 = vrot.lane.b32.xlu1 %v4802_v17, %s9798_s18  ;;  %v4808_v17 = vsel %vm651_vm0, %v4805_v9, %v4807_v6  ;;  %16179 = vst [vmem:[#allocation14_spill] sm:$0xff] %v13225_v60 }
 0x324   : > { %v6984_v10 = vsel %vm651_vm0, %v6981_v62, %v6983_v31  ;;  %v6986_v53 = vsel %vm651_vm0, %v6983_v31, %v6985_v38  ;;  %v4810_v62 = vsel %vm651_vm0, %v4807_v6, %v4809_v13  ;;  %v5215_v31 = vshrl.u32 %v13074_v29, 16 }
 0x325   : > { %v5218_v6 = vshll.u32 %v13074_v29, 16  ;;  %v5042_v29 = vshll.u32 %v12742_v52, 16 }
 0x326   : > { %4853 = vrot.lane.b32.xlu0 %v4804_v18, %s9798_s18  ;;  %v6524_v18 = vld [vmem:[#allocation2 + $0x5c] sm:$0xf] }
 0x327   : > { %7029 = vrot.lane.b32.xlu1 %v6980_v48, %s9798_s18  ;;  %v13210_v14 = vcombine.low %v6524_v18, %v6525_v11  ;;  %v5227_v48 = vshll.u32 %v13082_v22, 16  ;;  %v4812_v22 = vsel %vm651_vm0, %v4809_v13, %v4811_v23  ;;  %v6989_v13 = vrot.slane %v13225_v60, 5 }
 0x328   : > { %v4540_v60 = vrot.slane %v4538_v58, 5 }
 0x329   : > { %v6987_v9 = vrot.slane %v13210_v14, 5  ;;  %v5229_v11 = vrot.slane %v5227_v48, 5  ;;  %v5217_v48 = vrot.slane %v5215_v31, 4 }
 0x32a   : > { %7031 = vrot.lane.b32.xlu0 %v6982_v41, %s9798_s18  ;;  %v6529_v41 = vld [vmem:[#allocation2 + $0x70] sm:$0xf] }
 0x32b   : > { %4855 = vrot.lane.b32.xlu1 %v4806_v39, %s9798_s18  ;;  %v5226_v39 = vrot.slane %v5224_v33, 4  ;;  %v6988_v18 = vsel %vm651_vm0, %v6985_v38, %v6987_v9  ;;  %v5039_v33 = vshrl.u32 %v12742_v52, 16  ;;  %v15797_v38 = vrot.slane %v13016_v15, 5 }
 0x32d   : > { %v5041_v31 = vrot.slane %v5039_v33, 4  ;;  %v6531_v33 = vld [vmem:[#allocation2 + $0x78] sm:$0xf] }
 0x32e   : > { %4857 = vrot.lane.b32.xlu0 %v4808_v17, %s9798_s18  ;;  %v13228_v17 = vcombine.low %v6528_v19, %v6529_v41  ;;  %v6990_v19 = vsel %vm651_vm0, %v6987_v9, %v6989_v13  ;;  %v6708_v9 = vshll.u32 %v12837_v61, 16 }
 0x32f   : > { %7033 = vrot.lane.b32.xlu1 %v6984_v10, %s9798_s18  ;;  %v4813_v10 = vrot.slane %v13014_v27, 5 }
 0x331   : > { %v4814_v59 = vsel %vm651_vm0, %v4811_v23, %v4813_v10  ;;  %v4816_v23 = vsel %vm651_vm0, %v4813_v10, %v15797_v38  ;;  %v5054_v10 = vshrl.u32 %v12883_v28, 16 }
 0x332   : > { %7035 = vrot.lane.b32.xlu0 %v6986_v53, %s9798_s18  ;;  %v5220_v53 = vrot.slane %v5218_v6, 5  ;;  %v5044_v6 = vrot.slane %v5042_v29, 5 }
 0x333   : > { %4859 = vrot.lane.b32.xlu1 %v4810_v62, %s9798_s18  ;;  %v5230_v62 = vor.u32 %v5229_v11, %v5226_v39  ;;  %v6705_v39 = vshrl.u32 %v12837_v61, 16 }
 0x334   : > { %v13243_v41 = vor.u32 %v5220_v53, %v5217_v48  ;;  %v5046_v48 = vshrl.u32 %v12869_v7, 16  ;;  %v5049_v53 = vshll.u32 %v12869_v7, 16  ;;  %v5045_v61 = vor.u32 %v5044_v6, %v5041_v31 }
 0x335   : > { %v6707_v29 = vrot.slane %v6705_v39, 4  ;;  %v5056_v39 = vrot.slane %v5054_v10, 4  ;;  %v4819_v7 = vrot.slane %v13091_v36, 5 }
 0x336   : > { %4861 = vrot.lane.b32.xlu0 %v4812_v22, %s9798_s18  ;;  %v6991_v22 = vrot.slane %v13228_v17, 5  ;;  %v13253_v11 = vsel %vm382_vm1, %v13243_v41, %v5230_v62  ;;  %v5051_v38 = vrot.slane %v5049_v53, 5  ;;  %v5065_v53 = vshll.u32 %v12894_v0, 16 }
 0x337   : > { %7037 = vrot.lane.b32.xlu1 %v6988_v18, %s9798_s18  ;;  %v4537_v18 = vrot.slane %v4535_v16, 4 }
 0x338   : > { %v6992_v16 = vsel %vm651_vm0, %v6989_v13, %v6991_v22 }
 0x339   : > { %v13260_v58 = vor.u32 %v4540_v60, %v4537_v18  ;;  %v16180_v60 = vld [vmem:[#allocation47_spill] sm:$0xff]  ;;  %v5048_v18 = vrot.slane %v5046_v48, 4  ;;  %v5062_v48 = vshrl.u32 %v12894_v0, 16  ;;  %v9646_v0 = vld [vmem:[%s15707_s2 + $0x8] ss:$0 sps:$4 sm:$0xff]  }
 0x33a   : > { %7039 = vrot.lane.b32.xlu0 %v6990_v19, %s9798_s18  ;;  %v6710_v19 = vrot.slane %v6708_v9, 5  ;;  %9445 = vmatprep.subr.msk.bf16.mxu0 %vm1633_vm2, %v9646_v0 }
 0x33b   : > { %4863 = vrot.lane.b32.xlu1 %v4814_v59, %s9798_s18  ;;  %v6530_v59 = vld [vmem:[#allocation2 + $0x74] sm:$0xf]  ;;  %v4542_v13 = vsel %vm382_vm1, %v16180_v60, %v13260_v58 }
 0x33c   : > { %v13265_v52 = vcombine.low %v6530_v59, %v6531_v33  ;;  %v13274_v31 = vor.u32 %v6710_v19, %v6707_v29  ;;  %v5070_v33 = vshrl.u32 %v12887_v37, 16  ;;  %v5073_v59 = vshll.u32 %v12887_v37, 16 }
 0x33d   : > { %v5086_v37 = vshrl.u32 %v12919_v51, 16 }
 0x33e   : > { %4865 = vrot.lane.b32.xlu0 %v4816_v23, %s9798_s18  ;;  %v5057_v23 = vshll.u32 %v12883_v28, 16  ;;  %v6993_v6 = vrot.slane %v13265_v52, 5  ;;  %v5075_v60 = vrot.slane %v5073_v59, 5  ;;  %v16181_v59 = vrot.slane %v13016_v15, 5 }
 0x33f   : > { %7041 = vrot.lane.b32.xlu1 %v6992_v16, %s9798_s18  ;;  %v5052_v16 = vor.u32 %v5051_v38, %v5048_v18  ;;  %v5064_v38 = vrot.slane %v5062_v48, 4  ;;  %v13288_v18 = vpop.permute.xlu1 %4843 }
 0x340   : > { %v5059_v9 = vrot.slane %v5057_v23, 5  ;;  %v6994_v29 = vsel %vm651_vm0, %v6991_v22, %v6993_v6  ;;  %v5072_v23 = vrot.slane %v5070_v33, 4  ;;  %v5081_v33 = vshll.u32 %v12904_v30, 16 }
 0x341   : > { %v5053_v10 = vsel %vm382_vm1, %v5045_v61, %v5052_v16 }
 0x342   : > { %5232 = vrot.lane.b32.xlu0 %v5045_v61, %s9799_s19  ;;  %v5060_v19 = vor.u32 %v5059_v9, %v5056_v39  ;;  %v6532_v39 = vld [vmem:[#allocation2 + $0x7c] sm:$0xf]  ;;  %v6533_v9 = vld [vmem:[#allocation2 + $0x80] sm:$0xf]  ;;  %v5078_v61 = vshrl.u32 %v12904_v30, 16  ;;  %v5089_v30 = vshll.u32 %v12919_v51, 16 }
 0x343   : > { %4743 = vrot.lane.b32.xlu1 %v4542_v13, %s9799_s19  ;;  %v5067_v13 = vrot.slane %v5065_v53, 5  ;;  %v5076_v53 = vor.u32 %v5075_v60, %v5072_v23  ;;  %v5083_v60 = vrot.slane %v5081_v33, 5 }
 0x344   : > { %v5061_v22 = vsel %vm382_vm1, %v5052_v16, %v5060_v19  ;;  %v13305_v16 = vcombine.low %v6532_v39, %v6533_v9  ;;  %v5080_v23 = vrot.slane %v5078_v61, 4  ;;  %v13319_v39 = vld [vmem:[%s15707_s2 + $0x20] ss:$0 sps:$4 sm:$0xff]   ;;  %v5088_v9 = vrot.slane %v5086_v37, 4 }
 0x345   : > { %9446 = vmatprep.subr.msk.bf16.mxu1 %vm1633_vm2, %v13319_v39  ;;  %v5102_v37 = vshrl.u32 %v12934_v45, 16 }
 0x346   : > { %6919 = vrot.lane.b32.xlu0 %v13274_v31, %s9799_s19  ;;  %v5084_v33 = vor.u32 %v5083_v60, %v5080_v23 }
 0x347   : > { %5280 = vrot.lane.b32.xlu1 %v5230_v62, %s9799_s19  ;;  %v4817_v62 = vrot.slane %v12856_v35, 5 }
 0x349   : > { %v4818_v48 = vsel %vm651_vm0, %v16181_v59, %v4817_v62  ;;  %v13311_v28 = vpop.permute.xlu1 %5334  ;;  %v6534_v59 = vld [vmem:[#allocation2 + $0x84] sm:$0xf]  ;;  %v4820_v61 = vsel %vm651_vm0, %v4817_v62, %v4819_v7  ;;  %v6280_v62 = vsel %vm1633_vm2, %v9646_v0, 0 }
 0x34a   : > { %7043 = vrot.lane.b32.xlu0 %v6994_v29, %s9798_s18  ;;  %v5068_v29 = vor.u32 %v5067_v13, %v5064_v38  ;;  %16182 = vst [vmem:[#allocation19_spill] sm:$0xff] %v13311_v28  ;;  %v6535_v13 = vld [vmem:[#allocation2 + $0x88] sm:$0xf]  ;;  %9338 = vmatpush3.bf16.msra.mxu0 %v6280_v62 }
 0x34b   : > { %5234 = vrot.lane.b32.xlu1 %v5053_v10, %s9799_s19  ;;  %v13303_v10 = vpop.permute.xlu0 %4741  ;;  %v13322_v51 = vcombine.low %v6534_v59, %v6535_v13  ;;  %v5085_v13 = vsel %vm382_vm1, %v5076_v53, %v5084_v33 }
 0x34c   : > { %v5077_v38 = vsel %vm382_vm1, %v5068_v29, %v5076_v53 }
 0x34d   : > { %v6997_v59 = vrot.slane %v13322_v51, 5 }
 0x34e   : > { %5236 = vrot.lane.b32.xlu0 %v5061_v22, %s9799_s19  ;;  %v5069_v22 = vsel %vm382_vm1, %v5060_v19, %v5068_v29  ;;  %v6995_v19 = vrot.slane %v13305_v16, 5  ;;  %v5097_v29 = vshll.u32 %v12927_v49, 16 }
 0x34f   : > { %4867 = vrot.lane.b32.xlu1 %v4818_v48, %s9798_s18  ;;  %v5091_v48 = vrot.slane %v5089_v30, 5  ;;  %v5105_v30 = vshll.u32 %v12934_v45, 16 }
 0x350   : > { %v6996_v28 = vsel %vm651_vm0, %v6993_v6, %v6995_v19  ;;  %v5099_v6 = vrot.slane %v5097_v29, 5 }
 0x351   : > { %v13337_v23 = vpop.permute.xlu1 %7021  ;;  %v5092_v60 = vor.u32 %v5091_v48, %v5088_v9  ;;  %v5107_v0 = vrot.slane %v5105_v30, 5  ;;  %v6998_v9 = vsel %vm651_vm0, %v6995_v19, %v6997_v59  ;;  %v5113_v19 = vshll.u32 %v12948_v55, 16 }
 0x352   : > { %5238 = vrot.lane.b32.xlu0 %v5069_v22, %s9799_s19  ;;  %v5094_v22 = vshrl.u32 %v12927_v49, 16  ;;  %16184 = vst [vmem:[#allocation23_spill] sm:$0xff] %v13337_v23 }
 0x353   : > { %5240 = vrot.lane.b32.xlu1 %v5077_v38, %s9799_s19  ;;  %v13330_v38 = vpop.permute.xlu0 %4845  ;;  %v5093_v45 = vsel %vm382_vm1, %v5084_v33, %v5092_v60  ;;  %v5118_v33 = vshrl.u32 %v12943_v2, 16 }
 0x354   : > { %16183 = vst [vmem:[#allocation17_spill] sm:$0xff] %v13330_v38  ;;  %v5096_v49 = vrot.slane %v5094_v22, 4  ;;  %v5104_v38 = vrot.slane %v5102_v37, 4  ;;  %v6536_v22 = vld [vmem:[#allocation2 + $0x8c] sm:$0xf]  ;;  %v5110_v37 = vshrl.u32 %v12948_v55, 16 }
 0x356   : > { %4869 = vrot.lane.b32.xlu0 %v4820_v61, %s9798_s18  ;;  %v4821_v61 = vrot.slane %v13106_v43, 5  ;;  %v5100_v62 = vor.u32 %v5099_v6, %v5096_v49  ;;  %v5108_v29 = vor.u32 %v5107_v0, %v5104_v38  ;;  %v5120_v0 = vrot.slane %v5118_v33, 4 }
 0x357   : > { %7045 = vrot.lane.b32.xlu1 %v6996_v28, %s9798_s18  ;;  %v6537_v28 = vld [vmem:[#allocation2 + $0x90] sm:$0xf] }
 0x358   : > { %v4822_v53 = vsel %vm651_vm0, %v4819_v7, %v4821_v61  ;;  %v5101_v7 = vsel %vm382_vm1, %v5092_v60, %v5100_v62  ;;  %v5109_v38 = vsel %vm382_vm1, %v5100_v62, %v5108_v29  ;;  %v6539_v60 = vld [vmem:[#allocation2 + $0x98] sm:$0xf]  ;;  %v5126_v62 = vshrl.u32 %v12952_v56, 16 }
 0x35a   : > { %5242 = vrot.lane.b32.xlu0 %v5085_v13, %s9799_s19  ;;  %v13352_v13 = vcombine.low %v6536_v22, %v6537_v28  ;;  %v5115_v22 = vrot.slane %v5113_v19, 5 }
 0x35b   : > { %5244 = vrot.lane.b32.xlu1 %v5093_v45, %s9799_s19  ;;  %v5121_v45 = vshll.u32 %v12943_v2, 16  ;;  %v6538_v2 = vld [vmem:[#allocation2 + $0x94] sm:$0xf] }
 0x35c   : > { %v13345_v23 = vpop.permute.xlu0 %5336  ;;  %v6999_v6 = vrot.slane %v13352_v13, 5  ;;  %v13379_v19 = vcombine.low %v6538_v2, %v6539_v60 }
 0x35d   : > { %16185 = vst [vmem:[#allocation20_spill] sm:$0xff] %v13345_v23  ;;  %v13348_v48 = vpop.permute.xlu1 %5338  ;;  %v5123_v28 = vrot.slane %v5121_v45, 5 }
 0x35e   : > { %16186 = vst [vmem:[#allocation18_spill] sm:$0xff] %v13348_v48  ;;  %7047 = vrot.lane.b32.xlu0 %v6998_v9, %s9798_s18  ;;  %v4823_v9 = vrot.slane %v12879_v24, 5  ;;  %v7000_v33 = vsel %vm651_vm0, %v6997_v59, %v6999_v6  ;;  %16191 = vst [vmem:[#allocation51_spill] sm:$0xff] %v13379_v19  ;;  %v7001_v2 = vrot.slane %v13379_v19, 5  ;;  %v6552_v19 = vld [vmem:[#allocation2 + $0xcc] sm:$0xf] }
 0x35f   : > { %4871 = vrot.lane.b32.xlu1 %v4822_v53, %s9798_s18  ;;  %v5112_v53 = vrot.slane %v5110_v37, 4  ;;  %v5124_v45 = vor.u32 %v5123_v28, %v5120_v0  ;;  %v4825_v0 = vrot.slane %v13148_v47, 5  ;;  %v6540_v28 = vld [vmem:[#allocation2 + $0x9c] sm:$0xf] }
 0x360   : > { %v13359_v30 = vpop.permute.xlu0 %5340 }
 0x361   : > { %16187 = vst [vmem:[#allocation45_spill] sm:$0xff] %v13359_v30  ;;  %v13362_v49 = vpop.permute.xlu1 %5342  ;;  %v5116_v37 = vor.u32 %v5115_v22, %v5112_v53 }
 0x362   : > { %16188 = vst [vmem:[#allocation47_spill] sm:$0xff] %v13362_v49  ;;  %5246 = vrot.lane.b32.xlu0 %v5101_v7, %s9799_s19  ;;  %v4824_v49 = vsel %vm651_vm0, %v4821_v61, %v4823_v9  ;;  %v5129_v7 = vshll.u32 %v12952_v56, 16  ;;  %v5128_v56 = vrot.slane %v5126_v62, 4 }
 0x363   : > { %5248 = vrot.lane.b32.xlu1 %v5109_v38, %s9799_s19  ;;  %v5117_v48 = vsel %vm382_vm1, %v5108_v29, %v5116_v37  ;;  %v5125_v59 = vsel %vm382_vm1, %v5116_v37, %v5124_v45  ;;  %v7002_v29 = vsel %vm651_vm0, %v6999_v6, %v7001_v2 }
 0x364   : > { %v13369_v55 = vpop.permute.xlu0 %5344 }
 0x365   : > { %16189 = vst [vmem:[#allocation49_spill] sm:$0xff] %v13369_v55  ;;  %v13372_v30 = vpop.permute.xlu1 %5346  ;;  %v16193_v55 = vld [vmem:[#allocation29_spill] sm:$0xff] }
 0x366   : > { %16190 = vst [vmem:[#allocation50_spill] sm:$0xff] %v13372_v30  ;;  %4873 = vrot.lane.b32.xlu0 %v4824_v49, %s9798_s18  ;;  %v5134_v61 = vshrl.u32 %v16193_v55, 16  ;;  %v5137_v30 = vshll.u32 %v16193_v55, 16  ;;  %v5131_v49 = vrot.slane %v5129_v7, 5  ;;  %v6541_v7 = vld [vmem:[#allocation2 + $0xa0] sm:$0xf] }
 0x367   : > { %7049 = vrot.lane.b32.xlu1 %v7000_v33, %s9798_s18 }
 0x368   : > { %v13381_v38 = vpop.permute.xlu0 %5348  ;;  %v5136_v22 = vrot.slane %v5134_v61, 4  ;;  %v5139_v60 = vrot.slane %v5137_v30, 5  ;;  %v5132_v62 = vor.u32 %v5131_v49, %v5128_v56 }
 0x369   : > { %16192 = vst [vmem:[#allocation52_spill] sm:$0xff] %v13381_v38  ;;  %v13386_v23 = vpop.permute.xlu1 %5350  ;;  %v16199_v38 = vld [vmem:[#allocation27_spill] sm:$0xff] }
 0x36a   : > { %16194 = vst [vmem:[#allocation53_spill] sm:$0xff] %v13386_v23  ;;  %5250 = vrot.lane.b32.xlu0 %v5117_v48, %s9799_s19  ;;  %v16197_v48 = vld [vmem:[#allocation38_spill] sm:$0xff]  ;;  %v13402_v23 = vcombine.low %v6540_v28, %v6541_v7  ;;  %v5153_v30 = vshll.u32 %v16199_v38, 16  ;;  %v5140_v56 = vor.u32 %v5139_v60, %v5136_v22  ;;  %v5133_v61 = vsel %vm382_vm1, %v5124_v45, %v5132_v62  ;;  %v6542_v45 = vld [vmem:[#allocation2 + $0xa4] sm:$0xf] }
 0x36b   : > { %5252 = vrot.lane.b32.xlu1 %v5125_v59, %s9799_s19  ;;  %v5142_v55 = vshrl.u32 %v16197_v48, 16  ;;  %v5145_v37 = vshll.u32 %v16197_v48, 16  ;;  %v4826_v59 = vsel %vm651_vm0, %v4823_v9, %v4825_v0  ;;  %v4827_v48 = vrot.slane %v13166_v12, 5  ;;  %v4329_v12 = vld [vmem:[#allocation2] sm:$0x8] }
 0x36c   : > { %v13393_v53 = vpop.permute.xlu0 %5352  ;;  %16198 = vst [vmem:[#allocation56_spill] sm:$0xff] %v13402_v23  ;;  %v5141_v9 = vsel %vm382_vm1, %v5132_v62, %v5140_v56  ;;  %v7003_v28 = vrot.slane %v13402_v23, 5  ;;  %v16210_v23 = vld [vmem:[#allocation41_spill] sm:$0xff] }
 0x36d   : > { %16195 = vst [vmem:[#allocation54_spill] sm:$0xff] %v13393_v53  ;;  %v13396_v33 = vpop.permute.xlu1 %5354  ;;  %v5150_v53 = vshrl.u32 %v16199_v38, 16  ;;  %v5155_v38 = vrot.slane %v5153_v30, 5  ;;  %v4828_v60 = vsel %vm651_vm0, %v4825_v0, %v4827_v48 }
 0x36e   : > { %16196 = vst [vmem:[#allocation55_spill] sm:$0xff] %v13396_v33  ;;  %7051 = vrot.lane.b32.xlu0 %v7002_v29, %s9798_s18  ;;  %v5144_v29 = vrot.slane %v5142_v55, 4  ;;  %v5147_v33 = vrot.slane %v5145_v37, 5  ;;  %v7004_v62 = vsel %vm651_vm0, %v7001_v2, %v7003_v28 }
 0x36f   : > { %4875 = vrot.lane.b32.xlu1 %v4826_v59, %s9798_s18  ;;  %v5152_v7 = vrot.slane %v5150_v53, 4  ;;  %v6543_v59 = vld [vmem:[#allocation2 + $0xa8] sm:$0xf]  ;;  %v16205_v53 = vld [vmem:[#allocation33_spill] sm:$0xff] }
 0x370   : > { %v13407_v6 = vpop.permute.xlu0 %5356  ;;  %v5148_v55 = vor.u32 %v5147_v33, %v5144_v29  ;;  %v13422_v37 = vcombine.low %v6542_v45, %v6543_v59  ;;  %v5166_v30 = vshrl.u32 %v16205_v53, 16  ;;  %v9736_v45 = vld [vmem:[#allocation2 + $0x4] sm:$0xf] }
 0x371   : > { %16200 = vst [vmem:[#allocation57_spill] sm:$0xff] %v13407_v6  ;;  %v13410_v49 = vpop.permute.xlu1 %5358  ;;  %v5169_v6 = vshll.u32 %v16205_v53, 16  ;;  %v6544_v53 = vld [vmem:[#allocation2 + $0xac] sm:$0xf] }
 0x372   : > { %16201 = vst [vmem:[#allocation58_spill] sm:$0xff] %v13410_v49  ;;  %5254 = vrot.lane.b32.xlu0 %v5133_v61, %s9799_s19  ;;  %16204 = vst [vmem:[#allocation61_spill] sm:$0xff] %v13422_v37  ;;  %v5156_v61 = vor.u32 %v5155_v38, %v5152_v7  ;;  %v5149_v33 = vsel %vm382_vm1, %v5140_v56, %v5148_v55  ;;  %v7005_v2 = vrot.slane %v13422_v37, 5  ;;  %v5168_v7 = vrot.slane %v5166_v30, 4 }
 0x373   : > { %5256 = vrot.lane.b32.xlu1 %v5141_v9, %s9799_s19  ;;  %v16206_v9 = vld [vmem:[#allocation32_spill] sm:$0xff]  ;;  %v5171_v59 = vrot.slane %v5169_v6, 5  ;;  %v4829_v56 = vrot.slane %v13183_v8, 5  ;;  %v5174_v37 = vshrl.u32 %v16210_v23, 16  ;;  %v9648_v6 = vld [vmem:[%s15707_s2] sm:$0xff]  }
 0x374   : > { %v13417_v22 = vpop.permute.xlu0 %5360  ;;  %v5161_v0 = vshll.u32 %v16206_v9, 16  ;;  %v5157_v38 = vsel %vm382_vm1, %v5148_v55, %v5156_v61  ;;  %9339 = vmatprep.subr.bf16.mxu0 %v9648_v6 }
 0x375   : > { %16202 = vst [vmem:[#allocation59_spill] sm:$0xff] %v13417_v22  ;;  %v13420_v49 = vpop.permute.xlu1 %5362  ;;  %v5158_v22 = vshrl.u32 %v16206_v9, 16  ;;  %v5172_v30 = vor.u32 %v5171_v59, %v5168_v7  ;;  %9340 = vmatpush3.bf16.msra.mxu0 %v9648_v6 }
 0x376   : > { %16203 = vst [vmem:[#allocation60_spill] sm:$0xff] %v13420_v49  ;;  %4877 = vrot.lane.b32.xlu0 %v4828_v60, %s9798_s18  ;;  %v8613_v60 = vcombine.low %v4329_v12, %v9736_v45  ;;  %v5163_v9 = vrot.slane %v5161_v0, 5  ;;  %v7006_v12 = vsel %vm651_vm0, %v7003_v28, %v7005_v2 }
 0x377   : > { %7053 = vrot.lane.b32.xlu1 %v7004_v62, %s9798_s18  ;;  %v5160_v62 = vrot.slane %v5158_v22, 4  ;;  %v4830_v22 = vsel %vm651_vm0, %v4827_v48, %v4829_v56 }
 0x378   : > { %v13431_v49 = vpop.permute.xlu0 %5364  ;;  %v4895_v0 = vsel %vm751_vm3, %v8613_v60, %v13303_v10  ;;  %v6546_v10 = vld [vmem:[#allocation2 + $0xb4] sm:$0xf]  ;;  %v6547_v60 = vld [vmem:[#allocation2 + $0xb8] sm:$0xf] }
 0x379   : > { %16207 = vst [vmem:[#allocation62_spill] sm:$0xff] %v13431_v49  ;;  %v13434_v29 = vpop.permute.xlu1 %5366 }
 0x37a   : > { %16208 = vst [vmem:[#allocation63_spill] sm:$0xff] %v13434_v29  ;;  %5258 = vrot.lane.b32.xlu0 %v5149_v33, %s9799_s19  ;;  %v6545_v29 = vld [vmem:[#allocation2 + $0xb0] sm:$0xf]  ;;  %v5177_v33 = vshll.u32 %v16210_v23, 16  ;;  %v16213_v23 = vld [vmem:[#allocation3_spill] sm:$0xff] }
 0x37b   : > { %5260 = vrot.lane.b32.xlu1 %v5157_v38, %s9799_s19  ;;  %v5164_v38 = vor.u32 %v5163_v9, %v5160_v62  ;;  %v13456_v45 = vcombine.low %v6544_v53, %v6545_v29  ;;  %v5185_v48 = vshll.u32 %v16213_v23, 16  ;;  %v4969_v9 = vsel %vm827_vm4, %v4895_v0, %v13288_v18 }
 0x37c   : > { %v13440_v49 = vpop.permute.xlu0 %5368  ;;  %v5179_v8 = vrot.slane %v5177_v33, 5 }
 0x37d   : > { %16209 = vst [vmem:[#allocation64_spill] sm:$0xff] %v13440_v49  ;;  %v13449_v55 = vpop.permute.xlu1 %5370  ;;  %16212 = vst [vmem:[#allocation66_spill] sm:$0xff] %v13456_v45  ;;  %v5182_v49 = vshrl.u32 %v16213_v23, 16  ;;  %v5165_v7 = vsel %vm382_vm1, %v5156_v61, %v5164_v38  ;;  %v5173_v53 = vsel %vm382_vm1, %v5164_v38, %v5172_v30  ;;  %v7007_v29 = vrot.slane %v13456_v45, 5  ;;  %v16232_v45 = vld [vmem:[#allocation6_spill] sm:$0xff] }
 0x37e   : > { %16211 = vst [vmem:[#allocation65_spill] sm:$0xff] %v13449_v55  ;;  %7055 = vrot.lane.b32.xlu0 %v7006_v12, %s9798_s18  ;;  %v15824_v55 = vrot.slane %v13202_v63, 5  ;;  %v5176_v12 = vrot.slane %v5174_v37, 4  ;;  %v5187_v6 = vrot.slane %v5185_v48, 5  ;;  %v6549_v48 = vld [vmem:[#allocation2 + $0xc0] sm:$0xf] }
 0x37f   : > { %4879 = vrot.lane.b32.xlu1 %v4830_v22, %s9798_s18  ;;  %v5184_v37 = vrot.slane %v5182_v49, 4  ;;  %v13477_v22 = vcombine.low %v6546_v10, %v6547_v60  ;;  %v5201_v49 = vshll.u32 %v13058_v54, 16  ;;  %v7008_v23 = vsel %vm651_vm0, %v7005_v2, %v7007_v29 }
 0x380   : > { %v13459_v28 = vpop.permute.xlu0 %5372  ;;  %v4832_v61 = vsel %vm651_vm0, %v4829_v56, %v15824_v55  ;;  %v5180_v33 = vor.u32 %v5179_v8, %v5176_v12  ;;  %v16221_v56 = vld [vmem:[#allocation42_spill] sm:$0xff]  ;;  %v5999_v12 = vshrl.u32 %v4969_v9, 16  ;;  %v6002_v10 = vshll.u32 %v4969_v9, 16 }
 0x381   : > { %16214 = vst [vmem:[#allocation67_spill] sm:$0xff] %v13459_v28  ;;  %v13464_v59 = vpop.permute.xlu1 %5374  ;;  %16217 = vst [vmem:[#allocation70_spill] sm:$0xff] %v13477_v22  ;;  %v6548_v28 = vld [vmem:[#allocation2 + $0xbc] sm:$0xf] }
 0x382   : > { %16215 = vst [vmem:[#allocation68_spill] sm:$0xff] %v13464_v59  ;;  %5262 = vrot.lane.b32.xlu0 %v5165_v7, %s9799_s19  ;;  %v16219_v7 = vld [vmem:[#allocation7_spill] sm:$0xff]  ;;  %v5181_v55 = vsel %vm382_vm1, %v5172_v30, %v5180_v33  ;;  %v16226_v30 = vld [vmem:[#allocation5_spill] sm:$0xff] }
 0x383   : > { %5264 = vrot.lane.b32.xlu1 %v5173_v53, %s9799_s19  ;;  %v5190_v18 = vshrl.u32 %v16219_v7, 16  ;;  %v5193_v0 = vshll.u32 %v16219_v7, 16  ;;  %v5198_v53 = vshrl.u32 %v13058_v54, 16  ;;  %v5188_v7 = vor.u32 %v5187_v6, %v5184_v37 }
 0x384   : > { %v13472_v62 = vpop.permute.xlu0 %5376  ;;  %v7009_v54 = vrot.slane %v13477_v22, 5  ;;  %v13507_v6 = vcombine.low %v6548_v28, %v6549_v48 }
 0x385   : > { %16216 = vst [vmem:[#allocation69_spill] sm:$0xff] %v13472_v62  ;;  %v13479_v38 = vpop.permute.xlu1 %5378  ;;  %v16220_v62 = vld [vmem:[#allocation35_spill] sm:$0xff]  ;;  %v5192_v2 = vrot.slane %v5190_v18, 4  ;;  %v5195_v59 = vrot.slane %v5193_v0, 5  ;;  %v5206_v18 = vshrl.u32 %v13079_v1, 16  ;;  %v5209_v0 = vshll.u32 %v13079_v1, 16 }
 0x386   : > { %16218 = vst [vmem:[#allocation71_spill] sm:$0xff] %v13479_v38  ;;  %4881 = vrot.lane.b32.xlu0 %v4832_v61, %s9798_s18  ;;  %v13489_v8 = vcombine.low %v16221_v56, %v16220_v62  ;;  %v13496_v38 = vld [vmem:[#allocation2 + $0xc] sm:$0x8]  ;;  %v5200_v62 = vrot.slane %v5198_v53, 4  ;;  %v5203_v56 = vrot.slane %v5201_v49, 5  ;;  %16228 = vst [vmem:[#allocation5_spill] sm:$0xff] %v13507_v6  ;;  %v7010_v28 = vsel %vm651_vm0, %v7007_v29, %v7009_v54 }
 0x387   : > { %7057 = vrot.lane.b32.xlu1 %v7008_v23, %s9798_s18  ;;  %v5189_v23 = vsel %vm382_vm1, %v5180_v33, %v5188_v7  ;;  %v13512_v53 = vrot.slane %v5999_v12, 3  ;;  %v6551_v33 = vld [vmem:[#allocation2 + $0xc8] sm:$0xf]  ;;  %v16231_v12 = vrot.slane %v13202_v63, 5  ;;  %v6553_v29 = vld [vmem:[#allocation2 + $0xd0] sm:$0xf] }
 0x388   : > { %16222 = vst [vmem:[#allocation35_spill] sm:$0xff] %v13489_v8  ;;  %v13492_v60 = vpop.permute.xlu0 %5380  ;;  %v4833_v9 = vrot.slane %v13489_v8, 5  ;;  %v5204_v22 = vor.u32 %v5203_v56, %v5200_v62  ;;  %v7011_v8 = vrot.slane %v13507_v6, 5  ;;  %v16236_v56 = vld [vmem:[#allocation8_spill] sm:$0xff]  ;;  %v4547_v6 = vshll.u32 %v13101_v3, 16 }
 0x389   : > { %16223 = vst [vmem:[#allocation42_spill] sm:$0xff] %v13492_v60  ;;  %v13498_v61 = vpop.permute.xlu1 %5382  ;;  %v16225_v60 = vld [vmem:[#allocation4_spill] sm:$0xff] }
 0x38a   : > { %16224 = vst [vmem:[#allocation72_spill] sm:$0xff] %v13498_v61  ;;  %5266 = vrot.lane.b32.xlu0 %v5181_v55, %s9799_s19  ;;  %v13505_v37 = vcombine.low %v16226_v30, %v16225_v60  ;;  %v6550_v55 = vld [vmem:[#allocation2 + $0xc4] sm:$0xf]  ;;  %v13516_v61 = vld [vmem:[#allocation2 + $0x10] sm:$0xf]  ;;  %v13520_v30 = vrot.slane %v6002_v10, 4  ;;  %v4834_v1 = vsel %vm651_vm0, %v16231_v12, %v4833_v9 }
 0x38b   : > { %5268 = vrot.lane.b32.xlu1 %v5189_v23, %s9799_s19  ;;  %v5196_v23 = vor.u32 %v5195_v59, %v5192_v2  ;;  %v16233_v60 = vld [vmem:[#allocation11_spill] sm:$0xff]  ;;  %v5208_v59 = vrot.slane %v5206_v18, 4  ;;  %v5211_v2 = vrot.slane %v5209_v0, 5  ;;  %v13536_v62 = vcombine.low %v6550_v55, %v6551_v33 }
 0x38c   : > { %16227 = vst [vmem:[#allocation4_spill] sm:$0xff] %v13505_v37  ;;  %v13514_v49 = vpop.permute.xlu0 %7023  ;;  %v13533_v10 = vcombine.low %v16233_v60, %v16232_v45  ;;  %v6713_v45 = vshrl.u32 %v13095_v57, 16  ;;  %v6716_v60 = vshll.u32 %v13095_v57, 16  ;;  %v13553_v33 = vcombine.low %v6552_v19, %v6553_v29 }
 0x38d   : > { %16229 = vst [vmem:[#allocation73_spill] sm:$0xff] %v13514_v49  ;;  %v13523_v48 = vpop.permute.xlu1 %4847  ;;  %v4835_v49 = vrot.slane %v13505_v37, 5  ;;  %16235 = vst [vmem:[#allocation11_spill] sm:$0xff] %v13536_v62  ;;  %v4544_v37 = vshrl.u32 %v13101_v3, 16  ;;  %v5205_v0 = vsel %vm382_vm1, %v5196_v23, %v5204_v22  ;;  %v6725_v57 = vshll.u32 %v13113_v26, 16 }
 0x38e   : > { %16230 = vst [vmem:[#allocation74_spill] sm:$0xff] %v13523_v48  ;;  %7059 = vrot.lane.b32.xlu0 %v7010_v28, %s9798_s18  ;;  %16234 = vst [vmem:[#allocation6_spill] sm:$0xff] %v13533_v10  ;;  %v16237_v28 = vld [vmem:[#allocation36_spill] sm:$0xff]  ;;  %v6715_v63 = vrot.slane %v6713_v45, 4  ;;  %v6718_v47 = vrot.slane %v6716_v60, 5  ;;  %v15849_v3 = vrot.slane %v13533_v10, 5 }
 0x38f   : > { %4883 = vrot.lane.b32.xlu1 %v4834_v1, %s9798_s18  ;;  %v13540_v48 = vcombine.low %v16237_v28, %v16236_v56  ;;  %v5197_v1 = vsel %vm382_vm1, %v5188_v7, %v5196_v23  ;;  %v4836_v55 = vsel %vm651_vm0, %v4833_v9, %v4835_v49  ;;  %16241 = vst [vmem:[#allocation76_spill] sm:$0xff] %v13553_v33  ;;  %v4733_v56 = vshrl.u32 %v13533_v10, 16 }
 0x390   : > { %v13542_v12 = vpop.permute.xlu0 %4849  ;;  %v4736_v28 = vshll.u32 %v13533_v10, 16  ;;  %v7012_v7 = vsel %vm651_vm0, %v7009_v54, %v7011_v8  ;;  %v7013_v23 = vrot.slane %v13536_v62, 5  ;;  %v4546_v29 = vrot.slane %v4544_v37, 4 }
 0x391   : > { %16238 = vst [vmem:[#allocation8_spill] sm:$0xff] %v13540_v48  ;;  %16239 = vst [vmem:[#allocation36_spill] sm:$0xff] %v13542_v12  ;;  %v13549_v18 = vpop.permute.xlu1 %7025  ;;  %v6722_v12 = vshrl.u32 %v13113_v26, 16  ;;  %v4837_v19 = vrot.slane %v13540_v48, 5  ;;  %v4556_v54 = vshll.u32 %v13118_v5, 16  ;;  %v4562_v45 = vshrl.u32 %v13130_v50, 16 }
 0x392   : > { %16240 = vst [vmem:[#allocation75_spill] sm:$0xff] %v13549_v18  ;;  %5270 = vrot.lane.b32.xlu0 %v5197_v1, %s9799_s19  ;;  %v5212_v18 = vor.u32 %v5211_v2, %v5208_v59  ;;  %v4549_v1 = vrot.slane %v4547_v6, 5  ;;  %v4735_v59 = vrot.slane %v4733_v56, 4  ;;  %v4738_v2 = vrot.slane %v4736_v28, 5 }
 0x393   : > { %5272 = vrot.lane.b32.xlu1 %v5205_v0, %s9799_s19  ;;  %v4553_v0 = vshrl.u32 %v13118_v5, 16  ;;  %v6724_v62 = vrot.slane %v6722_v12, 4  ;;  %v4565_v60 = vshll.u32 %v13130_v50, 16  ;;  %v7014_v56 = vsel %vm651_vm0, %v7011_v8, %v7013_v23 }
 0x394   : > { %v13564_v9 = vpop.permute.xlu0 %7027  ;;  %v5213_v6 = vsel %vm382_vm1, %v5204_v22, %v5212_v18  ;;  %v4550_v12 = vor.u32 %v4549_v1, %v4546_v29  ;;  %v6719_v28 = vor.u32 %v6718_v47, %v6715_v63  ;;  %v4838_v37 = vsel %vm651_vm0, %v4835_v49, %v4837_v19 }
 0x395   : > { %16242 = vst [vmem:[#allocation77_spill] sm:$0xff] %v13564_v9  ;;  %v13566_v24 = vpop.permute.xlu1 %4851  ;;  %v6727_v9 = vrot.slane %v6725_v57, 5  ;;  %v4840_v22 = vsel %vm651_vm0, %v4837_v19, %v15849_v3  ;;  %v6731_v47 = vshrl.u32 %v13134_v32, 16  ;;  %v4564_v63 = vrot.slane %v4562_v45, 4 }
 0x396   : > { %16243 = vst [vmem:[#allocation78_spill] sm:$0xff] %v13566_v24  ;;  %4885 = vrot.lane.b32.xlu0 %v4836_v55, %s9798_s18  ;;  %v5222_v55 = vsel %vm382_vm1, %v5212_v18, %v13243_v41  ;;  %v4558_v24 = vrot.slane %v4556_v54, 5  ;;  %v13594_v18 = vor.u32 %v4738_v2, %v4735_v59  ;;  %v4567_v49 = vrot.slane %v4565_v60, 5 }
 0x397   : > { %7061 = vrot.lane.b32.xlu1 %v7012_v7, %s9798_s18  ;;  %v4555_v7 = vrot.slane %v4553_v0, 4  ;;  %v13596_v8 = vor.u32 %v6727_v9, %v6724_v62  ;;  %v6734_v19 = vshll.u32 %v13134_v32, 16  ;;  %v6740_v29 = vshrl.u32 %v13153_v34, 16 }
 0x398   : > { %v13579_v26 = vpop.permute.xlu0 %4853  ;;  %v13606_v0 = vsel %vm382_vm1, %v13260_v58, %v4550_v12  ;;  %v13610_v62 = vsel %vm382_vm1, %v13274_v31, %v6719_v28  ;;  %v4571_v9 = vshrl.u32 %v13142_v44, 16  ;;  %v4574_v32 = vshll.u32 %v13142_v44, 16 }
 0x399   : > { %16244 = vst [vmem:[#allocation79_spill] sm:$0xff] %v13579_v26  ;;  %v13584_v57 = vpop.permute.xlu1 %7029  ;;  %v16246_v26 = vrot.slane %v13553_v33, 5  ;;  %v4559_v54 = vor.u32 %v4558_v24, %v4555_v7  ;;  %v4580_v59 = vshrl.u32 %v13171_v46, 16  ;;  %v4583_v2 = vshll.u32 %v13171_v46, 16 }
 0x39a   : > { %16245 = vst [vmem:[#allocation80_spill] sm:$0xff] %v13584_v57  ;;  %5274 = vrot.lane.b32.xlu0 %v5213_v6, %s9799_s19  ;;  %v13622_v58 = vsel %vm382_vm1, %v6719_v28, %v13596_v8  ;;  %v6733_v31 = vrot.slane %v6731_v47, 4  ;;  %v6752_v6 = vshll.u32 %v13159_v20, 16  ;;  %v4568_v24 = vor.u32 %v4567_v49, %v4564_v63 }
 0x39b   : > { %v7016_v41 = vsel %vm651_vm0, %v7013_v23, %v16246_v26  ;;  %5276 = vrot.lane.b32.xlu1 %v5222_v55, %s9799_s19  ;;  %v6743_v23 = vshll.u32 %v13153_v34, 16  ;;  %v6749_v34 = vshrl.u32 %v13159_v20, 16  ;;  %v13628_v45 = vsel %vm382_vm1, %v4550_v12, %v4559_v54 }
 0x39c   : > { %v13602_v1 = vpop.permute.xlu0 %7031  ;;  %v6736_v60 = vrot.slane %v6734_v19, 5  ;;  %v6742_v55 = vrot.slane %v6740_v29, 4  ;;  %v4573_v3 = vrot.slane %v4571_v9, 4  ;;  %v6758_v28 = vshrl.u32 %v13187_v40, 16  ;;  %v13641_v29 = vld [vmem:[#allocation2 + $0x8] sm:$0xf] }
 0x39d   : > { %16247 = vst [vmem:[#allocation81_spill] sm:$0xff] %v13602_v1  ;;  %v13614_v26 = vpop.permute.xlu1 %4855  ;;  %v6761_v47 = vshll.u32 %v13187_v40, 16  ;;  %v4582_v20 = vrot.slane %v4580_v59, 4  ;;  %v4585_v57 = vrot.slane %v4583_v2, 5  ;;  %v6751_v12 = vrot.slane %v6749_v34, 4 }
 0x39e   : > { %16248 = vst [vmem:[#allocation82_spill] sm:$0xff] %v13614_v26  ;;  %7063 = vrot.lane.b32.xlu0 %v7014_v56, %s9798_s18  ;;  %v6745_v56 = vrot.slane %v6743_v23, 5  ;;  %v4576_v26 = vrot.slane %v4574_v32, 5  ;;  %v6754_v63 = vrot.slane %v6752_v6, 5  ;;  %v4592_v49 = vshll.u32 %v13177_v42, 16 }
 0x39f   : > { %4887 = vrot.lane.b32.xlu1 %v4838_v37, %s9798_s18  ;;  %v4589_v37 = vshrl.u32 %v13177_v42, 16  ;;  %v4598_v19 = vshrl.u32 %v13197_v25, 16  ;;  %v13643_v40 = vld [vmem:[#allocation2 + $0xc] sm:$0xf]  ;;  %v4601_v9 = vshll.u32 %v13197_v25, 16  ;;  %v6767_v32 = vshrl.u32 %v13191_v21, 16 }
 0x3a0   : > { %v13630_v7 = vpop.permute.xlu0 %4857  ;;  %v4569_v2 = vsel %vm382_vm1, %v4559_v54, %v4568_v24  ;;  %v6737_v34 = vor.u32 %v6736_v60, %v6733_v31  ;;  %v6760_v6 = vrot.slane %v6758_v28, 4  ;;  %v4577_v10 = vor.u32 %v4576_v26, %v4573_v3 }
 0x3a1   : > { %16249 = vst [vmem:[#allocation83_spill] sm:$0xff] %v13630_v7  ;;  %v13634_v1 = vpop.permute.xlu1 %7033  ;;  %v4586_v33 = vor.u32 %v4585_v57, %v4582_v20  ;;  %v4591_v48 = vrot.slane %v4589_v37, 4  ;;  %v6755_v23 = vor.u32 %v6754_v63, %v6751_v12  ;;  %v4594_v25 = vrot.slane %v4592_v49, 5 }
 0x3a2   : > { %16250 = vst [vmem:[#allocation84_spill] sm:$0xff] %v13634_v1  ;;  %4889 = vrot.lane.b32.xlu0 %v4840_v22, %s9798_s18  ;;  %v6770_v22 = vshll.u32 %v13191_v21, 16  ;;  %v6746_v1 = vor.u32 %v6745_v56, %v6742_v55  ;;  %v4600_v42 = vrot.slane %v4598_v19, 4  ;;  %v6776_v21 = vshrl.u32 %v13210_v14, 16 }
 0x3a3   : > { %7065 = vrot.lane.b32.xlu1 %v7016_v41, %s9798_s18  ;;  %v6763_v41 = vrot.slane %v6761_v47, 5  ;;  %v4603_v54 = vrot.slane %v4601_v9, 5  ;;  %v6769_v31 = vrot.slane %v6767_v32, 4  ;;  %v6779_v28 = vshll.u32 %v13210_v14, 16 }
 0x3a4   : > { %v13650_v59 = vpop.permute.xlu0 %7035  ;;  %v6772_v60 = vrot.slane %v6770_v22, 5  ;;  %v13665_v3 = vsel %vm382_vm1, %v13596_v8, %v6737_v34  ;;  %v4607_v57 = vshrl.u32 %v13215_v4, 16  ;;  %v4610_v26 = vshll.u32 %v13215_v4, 16 }
 0x3a5   : > { %v13653_v7 = vpop.permute.xlu1 %4859  ;;  %v6747_v47 = vsel %vm382_vm1, %v6737_v34, %v6746_v1  ;;  %v13673_v20 = vsel %vm382_vm1, %v4577_v10, %v4586_v33  ;;  %v4616_v14 = vshrl.u32 %v13014_v27, 16  ;;  %v4619_v37 = vshll.u32 %v13014_v27, 16 }
 0x3a6   : > { %5278 = vrot.lane.b32.xlu0 %v13253_v11, %s9799_s19  ;;  %v6764_v11 = vor.u32 %v6763_v41, %v6760_v6  ;;  %v13680_v8 = vsel %vm382_vm1, %v4568_v24, %v4577_v10  ;;  %v13686_v63 = vsel %vm382_vm1, %v6746_v1, %v6755_v23  ;;  %v4595_v49 = vor.u32 %v4594_v25, %v4591_v48  ;;  %v16253_v10 = vld [vmem:[#allocation14_spill] sm:$0xff] }
 0x3a7   : > { %4789 = vrot.lane.b32.xlu1 %v13594_v18, %s9799_s19  ;;  %v4604_v19 = vor.u32 %v4603_v54, %v4600_v42  ;;  %v6773_v9 = vor.u32 %v6772_v60, %v6769_v31  ;;  %v6778_v32 = vrot.slane %v6776_v21, 4  ;;  %v6781_v22 = vrot.slane %v6779_v28, 5 }
 0x3a8   : > { %v13661_v55 = vpop.permute.xlu0 %4861  ;;  %v13683_v12 = vsel %vm382_vm1, %v6755_v23, %v6764_v11  ;;  %v4612_v6 = vrot.slane %v4610_v26, 5  ;;  %v6785_v24 = vshrl.u32 %v16253_v10, 16  ;;  %v6788_v41 = vshll.u32 %v16253_v10, 16 }
 0x3a9   : > { %16251 = vst [vmem:[#allocation85_spill] sm:$0xff] %v13661_v55  ;;  %v13669_v56 = vpop.permute.xlu1 %7037  ;;  %v4618_v1 = vrot.slane %v4616_v14, 4  ;;  %v4621_v23 = vrot.slane %v4619_v37, 5  ;;  %v6794_v25 = vshrl.u32 %v13228_v17, 16  ;;  %v6797_v48 = vshll.u32 %v13228_v17, 16 }
 0x3aa   : > { %4745 = vrot.lane.b32.xlu0 %v13606_v0, %s9799_s19  ;;  %v4609_v0 = vrot.slane %v4607_v57, 4  ;;  %v13701_v42 = vsel %vm382_vm1, %v4586_v33, %v4595_v49  ;;  %v4628_v21 = vshll.u32 %v13016_v15, 16  ;;  %v4634_v54 = vshrl.u32 %v12856_v35, 16 }
 0x3ab   : > { %6921 = vrot.lane.b32.xlu1 %v13610_v62, %s9799_s19  ;;  %v4625_v62 = vshrl.u32 %v13016_v15, 16  ;;  %v13708_v31 = vsel %vm382_vm1, %v4595_v49, %v4604_v19  ;;  %v4637_v60 = vshll.u32 %v12856_v35, 16  ;;  %v6803_v17 = vshrl.u32 %v13265_v52, 16 }
 0x3ac   : > { %v13690_v34 = vpop.permute.xlu0 %7039  ;;  %v6782_v33 = vor.u32 %v6781_v22, %v6778_v32  ;;  %v13716_v57 = vsel %vm382_vm1, %v6764_v11, %v6773_v9  ;;  %v6787_v26 = vrot.slane %v6785_v24, 4  ;;  %v6790_v14 = vrot.slane %v6788_v41, 5 }
 0x3ad   : > { %16252 = vst [vmem:[#allocation86_spill] sm:$0xff] %v13690_v34  ;;  %v13694_v55 = vpop.permute.xlu1 %4863  ;;  %v4622_v10 = vor.u32 %v4621_v23, %v4618_v1  ;;  %v6796_v49 = vrot.slane %v6794_v25, 4  ;;  %v6799_v34 = vrot.slane %v6797_v48, 5  ;;  %v4630_v32 = vrot.slane %v4628_v21, 5 }
 0x3ae   : > { %6923 = vrot.lane.b32.xlu0 %v13622_v58, %s9799_s19  ;;  %v6806_v58 = vshll.u32 %v13265_v52, 16  ;;  %v13724_v52 = vsel %vm1633_vm2, %v13319_v39, 0  ;;  %v4636_v22 = vrot.slane %v4634_v54, 4  ;;  %v4639_v11 = vrot.slane %v4637_v60, 5 }
 0x3af   : > { %4749 = vrot.lane.b32.xlu1 %v4569_v2, %s9799_s19  ;;  %v4613_v2 = vor.u32 %v4612_v6, %v4609_v0  ;;  %v6805_v24 = vrot.slane %v6803_v17, 4  ;;  %v6812_v0 = vshrl.u32 %v13305_v16, 16  ;;  %v13729_v1 = vsel %vm382_vm1, %v6773_v9, %v6782_v33  ;;  %v16257_v17 = vld [vmem:[#allocation17_spill] sm:$0xff] }
 0x3b0   : > { %v13713_v28 = vpop.permute.xlu0 %4865  ;;  %v6808_v41 = vrot.slane %v6806_v58, 5  ;;  %v6791_v23 = vor.u32 %v6790_v14, %v6787_v26  ;;  %v6815_v39 = vshll.u32 %v13305_v16, 16  ;;  %v4646_v21 = vshll.u32 %v13091_v36, 16 }
 0x3b1   : > { %16254 = vst [vmem:[#allocation14_spill] sm:$0xff] %v13713_v28  ;;  %v13718_v37 = vpop.permute.xlu1 %7041  ;;  %v4627_v28 = vrot.slane %v4625_v62, 4  ;;  %v13736_v48 = vsel %vm382_vm1, %v4613_v2, %v4622_v10  ;;  %v4643_v62 = vshrl.u32 %v13091_v36, 16  ;;  %v16255_v54 = vcombine.low %v13496_v38, %v13516_v61 }
 0x3b2   : > { %4747 = vrot.lane.b32.xlu0 %v13628_v45, %s9799_s19  ;;  %v13732_v45 = vsel %vm382_vm1, %v4604_v19, %v4613_v2  ;;  %v16256_v16 = vcombine.low %v13641_v29, %v13643_v40  ;;  %v13751_v60 = vsel %vm382_vm1, %v6782_v33, %v6791_v23  ;;  %v4640_v38 = vor.u32 %v4639_v11, %v4636_v22 }
 0x3b3   : > { %6927 = vrot.lane.b32.xlu1 %v6747_v47, %s9799_s19  ;;  %v6800_v47 = vor.u32 %v6799_v34, %v6796_v49  ;;  %v4631_v34 = vor.u32 %v4630_v32, %v4627_v28  ;;  %v6809_v61 = vor.u32 %v6808_v41, %v6805_v24  ;;  %v6814_v26 = vrot.slane %v6812_v0, 4  ;;  %v16258_v49 = vld [vmem:[#allocation19_spill] sm:$0xff] }
 0x3b4   : > { %v5233_v6 = vpop.permute.xlu0 %5232  ;;  %v6817_v29 = vrot.slane %v6815_v39, 5  ;;  %v4652_v40 = vshrl.u32 %v13106_v43, 16  ;;  %v4645_v32 = vrot.slane %v4643_v62, 4  ;;  %v6821_v39 = vshrl.u32 %v13322_v51, 16 }
 0x3b5   : > { %v4744_v25 = vpop.permute.xlu1 %4743  ;;  %v5386_v9 = vsel %vm751_vm3, %v16255_v54, %v5233_v6  ;;  %v4648_v6 = vrot.slane %v4646_v21, 5  ;;  %v13768_v11 = vsel %vm382_vm1, %v6791_v23, %v6800_v47  ;;  %v13771_v24 = vsel %vm382_vm1, %v4631_v34, %v4640_v38 }
 0x3b6   : > { %6925 = vrot.lane.b32.xlu0 %v13665_v3, %s9799_s19  ;;  %v4898_v19 = vsel %vm751_vm3, %v16256_v16, %v4744_v25  ;;  %v5438_v33 = vsel %vm827_vm4, %v5386_v9, %v16258_v49  ;;  %v4655_v25 = vshll.u32 %v13106_v43, 16  ;;  %v13776_v41 = vsel %vm382_vm1, %v4622_v10, %v4631_v34 }
 0x3b7   : > { %v4971_v58 = vsel %vm827_vm4, %v4898_v19, %v16257_v17  ;;  %4753 = vrot.lane.b32.xlu1 %v13673_v20, %s9799_s19  ;;  %v13779_v0 = vsel %vm382_vm1, %v6800_v47, %v6809_v61  ;;  %v6824_v62 = vshll.u32 %v13322_v51, 16  ;;  %v5494_v21 = vshll.u32 %v5438_v33, 16  ;;  %v16259_v47 = vld [vmem:[#allocation13_spill] sm:$0xff] }
 0x3b8   : > { %v6006_v14 = vshrl.u32 %v4971_v58, 16  ;;  %v6009_v3 = vshll.u32 %v4971_v58, 16  ;;  %v13757_v2 = vpop.permute.xlu0 %6919  ;;  %v4654_v9 = vrot.slane %v4652_v40, 4  ;;  %v13787_v19 = vor.u32 %v6817_v29, %v6814_v26  ;;  %v16261_v26 = vld [vmem:[#allocation26_spill] sm:$0xff]  ;;  %v16262_v29 = vld [vmem:[#allocation20_spill] sm:$0xff] }
 0x3b9   : > { %v13762_v28 = vpop.permute.xlu1 %5280  ;;  %v4657_v10 = vrot.slane %v4655_v25, 5  ;;  %v6830_v34 = vshrl.u32 %v13352_v13, 16  ;;  %v16260_v17 = vor.u32 %v13520_v30, %v13512_v53  ;;  %v6823_v49 = vrot.slane %v6821_v39, 4  ;;  %v16263_v39 = vld [vmem:[#allocation18_spill] sm:$0xff] }
 0x3ba   : > { %v6008_v20 = vrot.slane %v6006_v14, 3  ;;  %v6011_v22 = vrot.slane %v6009_v3, 4  ;;  %4751 = vrot.lane.b32.xlu0 %v13680_v8, %s9799_s19  ;;  %v5491_v8 = vshrl.u32 %v5438_v33, 16  ;;  %v6833_v14 = vshll.u32 %v13352_v13, 16 }
 0x3bb   : > { %6931 = vrot.lane.b32.xlu1 %v13683_v12, %s9799_s19  ;;  %v4649_v12 = vor.u32 %v4648_v6, %v4645_v32  ;;  %v4661_v3 = vshrl.u32 %v16261_v26, 16  ;;  %v6826_v53 = vrot.slane %v6824_v62, 5  ;;  %v5496_v33 = vrot.slane %v5494_v21, 4 }
 0x3bc   : > { %v13783_v23 = vor.u32 %v6011_v22, %v6008_v20  ;;  %v13785_v54 = vpop.permute.xlu0 %7043  ;;  %v5493_v30 = vrot.slane %v5491_v8, 3  ;;  %v13814_v22 = vor.u32 %v4657_v10, %v4654_v9  ;;  %v6835_v8 = vrot.slane %v6833_v14, 5 }
 0x3bd   : > { %v5235_v16 = vpop.permute.xlu1 %5234  ;;  %v4663_v9 = vrot.slane %v4661_v3, 4 }
 0x3be   : > { %6929 = vrot.lane.b32.xlu0 %v13686_v63, %s9799_s19  ;;  %v5388_v51 = vsel %vm751_vm3, %v16259_v47, %v5235_v16  ;;  %v6013_v58 = vsel %vm1351_vm5, %v16260_v17, %v13783_v23  ;;  %v13808_v63 = vsel %vm382_vm1, %v6809_v61, %v13787_v19  ;;  %v6832_v16 = vrot.slane %v6830_v34, 4 }
 0x3bf   : > { %v5440_v40 = vsel %vm827_vm4, %v5388_v51, %v16262_v29  ;;  %9341 = vmatprep.mubr.msk.bf16.mxu0 %vm1560_vm6, %v6013_v58  ;;  %4757 = vrot.lane.b32.xlu1 %v13708_v31, %s9799_s19  ;;  %v13817_v31 = vsel %vm382_vm1, %v4640_v38, %v4649_v12  ;;  %v5497_v38 = vor.u32 %v5496_v33, %v5493_v30  ;;  %v4664_v17 = vshll.u32 %v16261_v26, 16  ;;  %v16264_v58 = vld [vmem:[#allocation12_spill] sm:$0xff] }
 0x3c0   : > { %v5498_v32 = vshrl.u32 %v5440_v40, 16  ;;  %v5501_v13 = vshll.u32 %v5440_v40, 16  ;;  %v5237_v6 = vpop.permute.xlu0 %5236  ;;  %v4670_v29 = vshrl.u32 %v16264_v58, 16 }
 0x3c1   : > { %v5390_v25 = vsel %vm751_vm3, %v13118_v5, %v5237_v6  ;;  %v13812_v20 = vpop.permute.xlu1 %4867  ;;  %v13825_v5 = vor.u32 %v6826_v53, %v6823_v49  ;;  %v16265_v6 = vld [vmem:[#allocation45_spill] sm:$0xff]  ;;  %v13841_v53 = vsel %vm382_vm1, %v4649_v12, %v13814_v22 }
 0x3c2   : > { %v5500_v61 = vrot.slane %v5498_v32, 3  ;;  %v5503_v47 = vrot.slane %v5501_v13, 4  ;;  %v5442_v62 = vsel %vm827_vm4, %v5390_v25, %v16263_v39  ;;  %4755 = vrot.lane.b32.xlu0 %v13701_v42, %s9799_s19  ;;  %v4673_v13 = vshll.u32 %v16264_v58, 16  ;;  %v16266_v25 = vld [vmem:[#allocation47_spill] sm:$0xff] }
 0x3c3   : > { %v5506_v21 = vshrl.u32 %v5442_v62, 16  ;;  %v5509_v51 = vshll.u32 %v5442_v62, 16  ;;  %6935 = vrot.lane.b32.xlu1 %v13729_v1, %s9799_s19  ;;  %v16267_v39 = vld [vmem:[#allocation51_spill] sm:$0xff] }
 0x3c4   : > { %v5504_v10 = vor.u32 %v5503_v47, %v5500_v61  ;;  %v5239_v34 = vpop.permute.xlu0 %5238  ;;  %v6839_v62 = vshrl.u32 %v16267_v39, 16  ;;  %v6842_v12 = vshll.u32 %v16267_v39, 16 }
 0x3c5   : > { %v5508_v40 = vrot.slane %v5506_v21, 3  ;;  %v5511_v32 = vrot.slane %v5509_v51, 4  ;;  %v5392_v42 = vsel %vm751_vm3, %v13130_v50, %v5239_v34  ;;  %v5241_v14 = vpop.permute.xlu1 %5240  ;;  %v9649_v21 = vld [vmem:[%s15707_s2 + $0x18] sm:$0xff]  }
 0x3c6   : > { %v5444_v1 = vsel %vm827_vm4, %v5392_v42, %v16265_v6  ;;  %6933 = vrot.lane.b32.xlu0 %v13716_v57, %s9799_s19  ;;  %v5394_v3 = vsel %vm751_vm3, %v13142_v44, %v5241_v14  ;;  %v5505_v49 = vsel %vm1351_vm5, %v5497_v38, %v5504_v10  ;;  %v4672_v14 = vrot.slane %v4670_v29, 4 }
 0x3c7   : > { %v5512_v30 = vor.u32 %v5511_v32, %v5508_v40  ;;  %v5514_v50 = vshrl.u32 %v5444_v1, 16  ;;  %v5517_v33 = vshll.u32 %v5444_v1, 16  ;;  %v5446_v61 = vsel %vm827_vm4, %v5394_v3, %v16266_v25  ;;  %4761 = vrot.lane.b32.xlu1 %v13736_v48, %s9799_s19  ;;  %9289 = vmatprep.mubr.msk.bf16.mxu1 %vm1560_vm6, %v5505_v49  ;;  %v16269_v25 = vld [vmem:[#allocation49_spill] sm:$0xff] }
 0x3c8   : > { %v5522_v57 = vshrl.u32 %v5446_v61, 16  ;;  %v5525_v47 = vshll.u32 %v5446_v61, 16  ;;  %v13848_v44 = vpop.permute.xlu0 %4869  ;;  %v4666_v48 = vrot.slane %v4664_v17, 5  ;;  %v4675_v6 = vrot.slane %v4673_v13, 5  ;;  %v16270_v61 = vld [vmem:[#allocation43_spill] sm:$0xff] }
 0x3c9   : > { %v5516_v51 = vrot.slane %v5514_v50, 3  ;;  %v5519_v38 = vrot.slane %v5517_v33, 4  ;;  %v5513_v34 = vsel %vm1351_vm5, %v5504_v10, %v5512_v30  ;;  %v13856_v40 = vpop.permute.xlu1 %7045  ;;  %v13864_v3 = vor.u32 %v6835_v8, %v6832_v16  ;;  %v16268_v33 = vld [vmem:[#allocation56_spill] sm:$0xff] }
 0x3ca   : > { %v5524_v32 = vrot.slane %v5522_v57, 3  ;;  %v5527_v42 = vrot.slane %v5525_v47, 4  ;;  %4759 = vrot.lane.b32.xlu0 %v13732_v45, %s9799_s19  ;;  %9290 = vmatmul.mubr.msk.bf16.vlgmr.msra.gmra.mxu1 %vm1560_vm6, %v5513_v34  ;;  %v13869_v10 = vsel %vm382_vm1, %v13787_v19, %v13825_v5  ;;  %v6841_v45 = vrot.slane %v6839_v62, 4 }
 0x3cb   : > { %v5520_v1 = vor.u32 %v5519_v38, %v5516_v51  ;;  %6939 = vrot.lane.b32.xlu1 %v13768_v11, %s9799_s19  ;;  %9390 = vmatpush3.bf16.msra.mxu1 %v13724_v52  ;;  %v6844_v50 = vrot.slane %v6842_v12, 5  ;;  %v6848_v29 = vshrl.u32 %v16268_v33, 16  ;;  %v4667_v16 = vor.u32 %v4666_v48, %v4663_v9  ;;  %v16272_v9 = vld [vmem:[#allocation50_spill] sm:$0xff] }
 0x3cc   : > { %v5528_v17 = vor.u32 %v5527_v42, %v5524_v32  ;;  %v5243_v49 = vpop.permute.xlu0 %5242  ;;  %9391 = vmatprep.subr.bf16.mxu1 %v9649_v21  ;;  %v6851_v8 = vshll.u32 %v16268_v33, 16  ;;  %v13883_v47 = vor.u32 %v4675_v6, %v4672_v14  ;;  %v16274_v32 = vld [vmem:[#allocation46_spill] sm:$0xff] }
 0x3cd   : > { %v5396_v13 = vsel %vm751_vm3, %v13171_v46, %v5243_v49  ;;  %v5521_v11 = vsel %vm1351_vm5, %v5512_v30, %v5520_v1  ;;  %v5245_v52 = vpop.permute.xlu1 %5244  ;;  %v16271_v46 = vld [vmem:[#allocation34_spill] sm:$0xff]  ;;  %v4688_v42 = vshrl.u32 %v16274_v32, 16  ;;  %v6850_v33 = vrot.slane %v6848_v29, 4 }
 0x3ce   : > { %v5448_v19 = vsel %vm827_vm4, %v5396_v13, %v16269_v25  ;;  %6937 = vrot.lane.b32.xlu0 %v13751_v60, %s9799_s19  ;;  %9293 = vmatprep.mubr.msk.bf16.mxu1 %vm1560_vm6, %v5521_v11  ;;  %v5398_v57 = vsel %vm751_vm3, %v16270_v61, %v5245_v52  ;;  %v4679_v39 = vshrl.u32 %v16271_v46, 16  ;;  %v5529_v51 = vsel %vm1351_vm5, %v5520_v1, %v5528_v17 }
 0x3cf   : > { %v5530_v30 = vshrl.u32 %v5448_v19, 16  ;;  %v5533_v62 = vshll.u32 %v5448_v19, 16  ;;  %v5450_v12 = vsel %vm827_vm4, %v5398_v57, %v16272_v9  ;;  %4765 = vrot.lane.b32.xlu1 %v13771_v24, %s9799_s19  ;;  %9392 = vmatpush3.bf16.msra.mxu1 %v9649_v21  ;;  %v4682_v48 = vshll.u32 %v16271_v46, 16  ;;  %v16276_v9 = vld [vmem:[#allocation61_spill] sm:$0xff] }
 0x3d0   : > { %v5538_v60 = vshrl.u32 %v5450_v12, 16  ;;  %v5541_v38 = vshll.u32 %v5450_v12, 16  ;;  %v13891_v34 = vpop.permute.xlu0 %7047  ;;  %v6853_v13 = vrot.slane %v6851_v8, 5  ;;  %v6837_v24 = vsel %vm382_vm1, %v13825_v5, %v13864_v3 }
 0x3d1   : > { %16273 = vst [vmem:[#allocation17_spill] sm:$0xff] %v13891_v34  ;;  %v5532_v14 = vrot.slane %v5530_v30, 3  ;;  %v5535_v6 = vrot.slane %v5533_v62, 4  ;;  %v13895_v49 = vpop.permute.xlu1 %4871  ;;  %v6845_v21 = vor.u32 %v6844_v50, %v6841_v45  ;;  %v13907_v29 = vsel %vm382_vm1, %v4667_v16, %v13883_v47  ;;  %v16275_v45 = vld [vmem:[#allocation48_spill] sm:$0xff]  ;;  %v16333_v34 = vld [vmem:[#allocation25_spill] sm:$0xff] }
 0x3d2   : > { %v5540_v11 = vrot.slane %v5538_v60, 3  ;;  %v5543_v52 = vrot.slane %v5541_v38, 4  ;;  %4763 = vrot.lane.b32.xlu0 %v13776_v41, %s9799_s19  ;;  %9294 = vmatmul.mubr.msk.bf16.gmra.mxu1 %vm1560_vm6, %v5529_v51  ;;  %v13911_v8 = vsel %vm382_vm1, %v13814_v22, %v4667_v16  ;;  %v4681_v41 = vrot.slane %v4679_v39, 4  ;;  %v16277_v51 = vld [vmem:[#allocation52_spill] sm:$0xff]  ;;  %v16278_v60 = vld [vmem:[#allocation66_spill] sm:$0xff] }
 0x3d3   : > { %v5536_v1 = vor.u32 %v5535_v6, %v5532_v14  ;;  %6943 = vrot.lane.b32.xlu1 %v13808_v63, %s9799_s19  ;;  %v4684_v61 = vrot.slane %v4682_v48, 5  ;;  %v4690_v57 = vrot.slane %v4688_v42, 4  ;;  %v4691_v5 = vshll.u32 %v16274_v32, 16  ;;  %v16279_v42 = vld [vmem:[#allocation53_spill] sm:$0xff] }
 0x3d4   : > { %v5544_v25 = vor.u32 %v5543_v52, %v5540_v11  ;;  %v5247_v19 = vpop.permute.xlu0 %5246  ;;  %v13917_v62 = vor.u32 %v6853_v13, %v6850_v33  ;;  %v6857_v12 = vshrl.u32 %v16276_v9, 16  ;;  %v6860_v39 = vshll.u32 %v16276_v9, 16 }
 0x3d5   : > { %v5400_v50 = vsel %vm751_vm3, %v16275_v45, %v5247_v19  ;;  %v5537_v63 = vsel %vm1351_vm5, %v5528_v17, %v5536_v1  ;;  %v5249_v30 = vpop.permute.xlu1 %5248  ;;  %v6866_v17 = vshrl.u32 %v16278_v60, 16  ;;  %v4693_v11 = vrot.slane %v4691_v5, 5  ;;  %v16282_v5 = vld [vmem:[#allocation15_spill] sm:$0xff] }
 0x3d6   : > { %v5452_v22 = vsel %vm827_vm4, %v5400_v50, %v16277_v51  ;;  %6941 = vrot.lane.b32.xlu0 %v13779_v0, %s9799_s19  ;;  %9297 = vmatprep.mubr.msk.bf16.mxu1 %vm1560_vm6, %v5537_v63  ;;  %v5402_v16 = vsel %vm751_vm3, %v13215_v4, %v5249_v30  ;;  %v5545_v6 = vsel %vm1351_vm5, %v5536_v1, %v5544_v25  ;;  %v6869_v4 = vshll.u32 %v16278_v60, 16 }
 0x3d7   : > { %v5546_v38 = vshrl.u32 %v5452_v22, 16  ;;  %v5549_v48 = vshll.u32 %v5452_v22, 16  ;;  %v5454_v14 = vsel %vm827_vm4, %v5402_v16, %v16279_v42  ;;  %4769 = vrot.lane.b32.xlu1 %v13841_v53, %s9799_s19  ;;  %v13941_v50 = vsel %vm382_vm1, %v13864_v3, %v6845_v21 }
 0x3d8   : > { %v5554_v0 = vshrl.u32 %v5454_v14, 16  ;;  %v5557_v33 = vshll.u32 %v5454_v14, 16  ;;  %v13934_v13 = vpop.permute.xlu0 %4873  ;;  %v4685_v63 = vor.u32 %v4684_v61, %v4681_v41  ;;  %v6855_v1 = vsel %vm382_vm1, %v6845_v21, %v13917_v62  ;;  %v16283_v14 = vld [vmem:[#allocation35_spill] sm:$0xff] }
 0x3d9   : > { %16280 = vst [vmem:[#allocation19_spill] sm:$0xff] %v13934_v13  ;;  %v5548_v52 = vrot.slane %v5546_v38, 3  ;;  %v5551_v19 = vrot.slane %v5549_v48, 4  ;;  %v13937_v45 = vpop.permute.xlu1 %7049  ;;  %v4697_v9 = vshrl.u32 %v16282_v5, 16  ;;  %v6859_v22 = vrot.slane %v6857_v12, 4  ;;  %v16284_v12 = vld [vmem:[#allocation54_spill] sm:$0xff] }
 0x3da   : > { %16281 = vst [vmem:[#allocation13_spill] sm:$0xff] %v13937_v45  ;;  %v5556_v30 = vrot.slane %v5554_v0, 3  ;;  %v5559_v53 = vrot.slane %v5557_v33, 4  ;;  %4767 = vrot.lane.b32.xlu0 %v13817_v31, %s9799_s19  ;;  %9298 = vmatmul.mubr.msk.bf16.gmra.mxu1 %vm1560_vm6, %v5545_v6  ;;  %v6862_v16 = vrot.slane %v6860_v39, 5  ;;  %v6868_v3 = vrot.slane %v6866_v17, 4 }
 0x3db   : > { %v5552_v51 = vor.u32 %v5551_v19, %v5548_v52  ;;  %6947 = vrot.lane.b32.xlu1 %v6837_v24, %s9799_s19  ;;  %v13950_v61 = vor.u32 %v4693_v11, %v4690_v57  ;;  %v6871_v38 = vrot.slane %v6869_v4, 5  ;;  %v4700_v31 = vshll.u32 %v16282_v5, 16  ;;  %v16286_v11 = vld [vmem:[#allocation55_spill] sm:$0xff]  ;;  %v14297_v45 = vld [vmem:[#allocation2 + $0xa8] sm:$0xf] }
 0x3dc   : > { %v5560_v60 = vor.u32 %v5559_v53, %v5556_v30  ;;  %v5251_v41 = vpop.permute.xlu0 %5250  ;;  %v4706_v6 = vshrl.u32 %v16283_v14, 16  ;;  %v4709_v24 = vshll.u32 %v16283_v14, 16  ;;  %v4699_v17 = vrot.slane %v4697_v9, 4 }
 0x3dd   : > { %v5404_v48 = vsel %vm751_vm3, %v13014_v27, %v5251_v41  ;;  %v5553_v21 = vsel %vm1351_vm5, %v5544_v25, %v5552_v51  ;;  %v5253_v42 = vpop.permute.xlu1 %5252  ;;  %v16285_v27 = vld [vmem:[#allocation70_spill] sm:$0xff]  ;;  %v4702_v53 = vrot.slane %v4700_v31, 5 }
 0x3de   : > { %v5456_v39 = vsel %vm827_vm4, %v5404_v48, %v16284_v12  ;;  %6945 = vrot.lane.b32.xlu0 %v13869_v10, %s9799_s19  ;;  %9301 = vmatprep.mubr.msk.bf16.mxu1 %vm1560_vm6, %v5553_v21  ;;  %v5406_v57 = vsel %vm751_vm3, %v13016_v15, %v5253_v42  ;;  %v6875_v0 = vshrl.u32 %v16285_v27, 16  ;;  %v5561_v52 = vsel %vm1351_vm5, %v5552_v51, %v5560_v60  ;;  %v16289_v51 = vld [vmem:[#allocation5_spill] sm:$0xff] }
 0x3df   : > { %v5562_v25 = vshrl.u32 %v5456_v39, 16  ;;  %v5565_v33 = vshll.u32 %v5456_v39, 16  ;;  %v5458_v4 = vsel %vm827_vm4, %v5406_v57, %v16286_v11  ;;  %4773 = vrot.lane.b32.xlu1 %v13907_v29, %s9799_s19  ;;  %v6878_v15 = vshll.u32 %v16285_v27, 16  ;;  %16334 = vst [vmem:[#allocation5_spill] sm:$0xff] %v14297_v45 }
 0x3e0   : > { %v5570_v19 = vshrl.u32 %v5458_v4, 16  ;;  %v5573_v10 = vshll.u32 %v5458_v4, 16  ;;  %v13971_v30 = vpop.permute.xlu0 %7051  ;;  %v4708_v21 = vrot.slane %v4706_v6, 4  ;;  %v4711_v42 = vrot.slane %v4709_v24, 5 }
 0x3e1   : > { %16287 = vst [vmem:[#allocation26_spill] sm:$0xff] %v13971_v30  ;;  %v5564_v9 = vrot.slane %v5562_v25, 3  ;;  %v5567_v41 = vrot.slane %v5565_v33, 4  ;;  %v13974_v48 = vpop.permute.xlu1 %4875  ;;  %v4686_v29 = vsel %vm382_vm1, %v13883_v47, %v4685_v63  ;;  %v6884_v31 = vshrl.u32 %v16289_v51, 16 }
 0x3e2   : > { %16288 = vst [vmem:[#allocation20_spill] sm:$0xff] %v13974_v48  ;;  %v5572_v12 = vrot.slane %v5570_v19, 3  ;;  %v5575_v39 = vrot.slane %v5573_v10, 4  ;;  %4771 = vrot.lane.b32.xlu0 %v13911_v8, %s9799_s19  ;;  %9302 = vmatmul.mubr.msk.bf16.gmra.mxu1 %vm1560_vm6, %v5561_v52  ;;  %v4695_v27 = vsel %vm382_vm1, %v4685_v63, %v13950_v61  ;;  %v6863_v6 = vor.u32 %v6862_v16, %v6859_v22 }
 0x3e3   : > { %v5568_v57 = vor.u32 %v5567_v41, %v5564_v9  ;;  %6951 = vrot.lane.b32.xlu1 %v6855_v1, %s9799_s19  ;;  %v13985_v24 = vor.u32 %v6871_v38, %v6868_v3  ;;  %v4703_v11 = vor.u32 %v4702_v53, %v4699_v17  ;;  %v6877_v8 = vrot.slane %v6875_v0, 4  ;;  %v16290_v9 = vld [vmem:[#allocation57_spill] sm:$0xff]  ;;  %v16292_v17 = vld [vmem:[#allocation58_spill] sm:$0xff] }
 0x3e4   : > { %v5576_v25 = vor.u32 %v5575_v39, %v5572_v12  ;;  %v5255_v33 = vpop.permute.xlu0 %5254  ;;  %v6880_v4 = vrot.slane %v6878_v15, 5  ;;  %v13990_v10 = vor.u32 %v4711_v42, %v4708_v21  ;;  %v6887_v1 = vshll.u32 %v16289_v51, 16  ;;  %v16294_v42 = vld [vmem:[#allocation8_spill] sm:$0xff] }
 0x3e5   : > { %v5408_v52 = vsel %vm751_vm3, %v12856_v35, %v5255_v33  ;;  %v5569_v47 = vsel %vm1351_vm5, %v5560_v60, %v5568_v57  ;;  %v5257_v19 = vpop.permute.xlu1 %5256  ;;  %v6886_v16 = vrot.slane %v6884_v31, 4  ;;  %v16291_v35 = vld [vmem:[#allocation4_spill] sm:$0xff]  ;;  %v4727_v33 = vshll.u32 %v16294_v42, 16 }
 0x3e6   : > { %v5460_v63 = vsel %vm827_vm4, %v5408_v52, %v16290_v9  ;;  %6949 = vrot.lane.b32.xlu0 %v13941_v50, %s9799_s19  ;;  %9305 = vmatprep.mubr.msk.bf16.mxu1 %vm1560_vm6, %v5569_v47  ;;  %v5410_v22 = vsel %vm751_vm3, %v13091_v36, %v5257_v19  ;;  %v4715_v3 = vshrl.u32 %v16291_v35, 16  ;;  %v5577_v53 = vsel %vm1351_vm5, %v5568_v57, %v5576_v25 }
 0x3e7   : > { %v5578_v60 = vshrl.u32 %v5460_v63, 16  ;;  %v5581_v38 = vshll.u32 %v5460_v63, 16  ;;  %v5462_v0 = vsel %vm827_vm4, %v5410_v22, %v16292_v17  ;;  %4777 = vrot.lane.b32.xlu1 %v4695_v27, %s9799_s19  ;;  %v4718_v21 = vshll.u32 %v16291_v35, 16 }
 0x3e8   : > { %v5586_v15 = vshrl.u32 %v5462_v0, 16  ;;  %v5589_v41 = vshll.u32 %v5462_v0, 16  ;;  %v14005_v50 = vpop.permute.xlu0 %4877  ;;  %v4724_v36 = vshrl.u32 %v16294_v42, 16  ;;  %v6889_v31 = vrot.slane %v6887_v1, 5 }
 0x3e9   : > { %16293 = vst [vmem:[#allocation18_spill] sm:$0xff] %v14005_v50  ;;  %v5580_v12 = vrot.slane %v5578_v60, 3  ;;  %v5583_v39 = vrot.slane %v5581_v38, 4  ;;  %v14009_v51 = vpop.permute.xlu1 %7053  ;;  %v6873_v57 = vsel %vm382_vm1, %v6863_v6, %v13985_v24  ;;  %v6864_v27 = vsel %vm382_vm1, %v13917_v62, %v6863_v6 }
 0x3ea   : > { %16295 = vst [vmem:[#allocation12_spill] sm:$0xff] %v14009_v51  ;;  %v5588_v52 = vrot.slane %v5586_v15, 3  ;;  %v5591_v47 = vrot.slane %v5589_v41, 4  ;;  %4775 = vrot.lane.b32.xlu0 %v4686_v29, %s9799_s19  ;;  %9306 = vmatmul.mubr.msk.bf16.gmra.mxu1 %vm1560_vm6, %v5577_v53  ;;  %v4713_v1 = vsel %vm382_vm1, %v4703_v11, %v13990_v10  ;;  %v4704_v9 = vsel %vm382_vm1, %v13950_v61, %v4703_v11  ;;  %v16296_v41 = vld [vmem:[#allocation59_spill] sm:$0xff]  ;;  %v16297_v11 = vld [vmem:[#allocation76_spill] sm:$0xff] }
 0x3eb   : > { %v5584_v19 = vor.u32 %v5583_v39, %v5580_v12  ;;  %6955 = vrot.lane.b32.xlu1 %v6873_v57, %s9799_s19  ;;  %v6881_v63 = vor.u32 %v6880_v4, %v6877_v8  ;;  %v4717_v60 = vrot.slane %v4715_v3, 4  ;;  %v4720_v38 = vrot.slane %v4718_v21, 5  ;;  %v16298_v3 = vld [vmem:[#allocation60_spill] sm:$0xff]  ;;  %v14291_v51 = vld [vmem:[#allocation2 + $0x94] sm:$0xf] }
 0x3ec   : > { %v5592_v22 = vor.u32 %v5591_v47, %v5588_v52  ;;  %v5259_v29 = vpop.permute.xlu0 %5258  ;;  %v4726_v17 = vrot.slane %v4724_v36, 4  ;;  %v14026_v53 = vor.u32 %v6889_v31, %v6886_v16  ;;  %v4729_v15 = vrot.slane %v4727_v33, 5  ;;  %v16300_v33 = vld [vmem:[#allocation11_spill] sm:$0xff]  ;;  %16332 = vst [vmem:[#allocation55_spill] sm:$0xff] %v14291_v51 }
 0x3ed   : > { %v5412_v0 = vsel %vm751_vm3, %v13106_v43, %v5259_v29  ;;  %v5585_v62 = vsel %vm1351_vm5, %v5576_v25, %v5584_v19  ;;  %v5261_v6 = vpop.permute.xlu1 %5260  ;;  %v6902_v8 = vshrl.u32 %v16297_v11, 16  ;;  %v6905_v43 = vshll.u32 %v16297_v11, 16 }
 0x3ee   : > { %v5464_v12 = vsel %vm827_vm4, %v5412_v0, %v16296_v41  ;;  %6953 = vrot.lane.b32.xlu0 %v6864_v27, %s9799_s19  ;;  %9309 = vmatprep.mubr.msk.bf16.mxu1 %vm1560_vm6, %v5585_v62  ;;  %v5414_v61 = vsel %vm751_vm3, %v16261_v26, %v5261_v6  ;;  %v5593_v21 = vsel %vm1351_vm5, %v5584_v19, %v5592_v22  ;;  %v6893_v52 = vshrl.u32 %v16300_v33, 16 }
 0x3ef   : > { %v5594_v4 = vshrl.u32 %v5464_v12, 16  ;;  %v5597_v25 = vshll.u32 %v5464_v12, 16  ;;  %v5466_v16 = vsel %vm827_vm4, %v5414_v61, %v16298_v3  ;;  %4781 = vrot.lane.b32.xlu1 %v4713_v1, %s9799_s19  ;;  %v6896_v26 = vshll.u32 %v16300_v33, 16  ;;  %v14050_v1 = vld [vmem:[#allocation2 + $0xd4] sm:$0xf] }
 0x3f0   : > { %v5602_v36 = vshrl.u32 %v5466_v16, 16  ;;  %v5605_v39 = vshll.u32 %v5466_v16, 16  ;;  %v14040_v31 = vpop.permute.xlu0 %7055  ;;  %v6891_v29 = vsel %vm382_vm1, %v6881_v63, %v14026_v53  ;;  %v14048_v0 = vor.u32 %v4729_v15, %v4726_v17  ;;  %v14054_v12 = vld [vmem:[#allocation2 + $0xd8] sm:$0xf] }
 0x3f1   : > { %16299 = vst [vmem:[#allocation45_spill] sm:$0xff] %v14040_v31  ;;  %v5596_v47 = vrot.slane %v5594_v4, 3  ;;  %v5599_v57 = vrot.slane %v5597_v25, 4  ;;  %v14044_v27 = vpop.permute.xlu1 %4879  ;;  %v6904_v6 = vrot.slane %v6902_v8, 4  ;;  %v6907_v41 = vrot.slane %v6905_v43, 5 }
 0x3f2   : > { %16301 = vst [vmem:[#allocation47_spill] sm:$0xff] %v14044_v27  ;;  %v5604_v19 = vrot.slane %v5602_v36, 3  ;;  %v5607_v62 = vrot.slane %v5605_v39, 4  ;;  %4779 = vrot.lane.b32.xlu0 %v4704_v9, %s9799_s19  ;;  %9310 = vmatmul.mubr.msk.bf16.gmra.mxu1 %vm1560_vm6, %v5593_v21  ;;  %v4721_v4 = vor.u32 %v4720_v38, %v4717_v60  ;;  %v6882_v17 = vsel %vm382_vm1, %v13985_v24, %v6881_v63  ;;  %v16302_v60 = vld [vmem:[#allocation62_spill] sm:$0xff]  ;;  %v16303_v39 = vld [vmem:[#allocation63_spill] sm:$0xff] }
 0x3f3   : > { %v5600_v61 = vor.u32 %v5599_v57, %v5596_v47  ;;  %6959 = vrot.lane.b32.xlu1 %v6891_v29, %s9799_s19  ;;  %v6895_v15 = vrot.slane %v6893_v52, 4  ;;  %v6898_v16 = vrot.slane %v6896_v26, 5  ;;  %v14066_v36 = vcombine.low %v14050_v1, %v14054_v12  ;;  %v14276_v31 = vld [vmem:[#allocation2 + $0x80] sm:$0xf] }
 0x3f4   : > { %v5608_v25 = vor.u32 %v5607_v62, %v5604_v19  ;;  %v5263_v3 = vpop.permute.xlu0 %5262  ;;  %v4731_v43 = vsel %vm382_vm1, %v4721_v4, %v14048_v0  ;;  %v14074_v24 = vor.u32 %v6907_v41, %v6904_v6  ;;  %v4722_v29 = vsel %vm382_vm1, %v13990_v10, %v4721_v4  ;;  %16327 = vst [vmem:[#allocation53_spill] sm:$0xff] %v14276_v31 }
 0x3f5   : > { %v5416_v9 = vsel %vm751_vm3, %v16264_v58, %v5263_v3  ;;  %v5601_v21 = vsel %vm1351_vm5, %v5592_v22, %v5600_v61  ;;  %v5265_v8 = vpop.permute.xlu1 %5264  ;;  %v6899_v19 = vor.u32 %v6898_v16, %v6895_v15  ;;  %v6911_v3 = vshrl.u32 %v14066_v36, 16 }
 0x3f6   : > { %v5468_v38 = vsel %vm827_vm4, %v5416_v9, %v16302_v60  ;;  %6957 = vrot.lane.b32.xlu0 %v6882_v17, %s9799_s19  ;;  %9313 = vmatprep.mubr.msk.bf16.mxu1 %vm1560_vm6, %v5601_v21  ;;  %v5418_v58 = vsel %vm751_vm3, %v16271_v46, %v5265_v8  ;;  %v5609_v52 = vsel %vm1351_vm5, %v5600_v61, %v5608_v25  ;;  %v9650_v46 = vld [vmem:[#allocation2 + $0xc4] ss:$0 sps:$4 sm:$0x11]   ;;  %v6914_v17 = vshll.u32 %v14066_v36, 16 }
 0x3f7   : > { %v5610_v63 = vshrl.u32 %v5468_v38, 16  ;;  %v5613_v22 = vshll.u32 %v5468_v38, 16  ;;  %v5470_v33 = vsel %vm827_vm4, %v5418_v58, %v16303_v39  ;;  %4785 = vrot.lane.b32.xlu1 %v4731_v43, %s9799_s19  ;;  %v6909_v61 = vsel %vm382_vm1, %v6899_v19, %v14074_v24  ;;  %v9652_v43 = vld [vmem:[#allocation2 + $0xdc] ss:$0 sps:$4 sm:$0x11]   ;;  %v16306_v39 = vld [vmem:[#allocation64_spill] sm:$0xff] }
 0x3f8   : > { %v5618_v26 = vshrl.u32 %v5470_v33, 16  ;;  %v5621_v47 = vshll.u32 %v5470_v33, 16  ;;  %v14080_v57 = vpop.permute.xlu0 %4881  ;;  %v6900_v16 = vsel %vm382_vm1, %v14026_v53, %v6899_v19  ;;  %v4841_v8 = vrot.slane %v9650_v46, 5 }
 0x3f9   : > { %16304 = vst [vmem:[#allocation51_spill] sm:$0xff] %v14080_v57  ;;  %v5612_v62 = vrot.slane %v5610_v63, 3  ;;  %v5615_v6 = vrot.slane %v5613_v22, 4  ;;  %v14084_v41 = vpop.permute.xlu1 %7057  ;;  %v6913_v63 = vrot.slane %v6911_v3, 4  ;;  %v6916_v22 = vrot.slane %v6914_v17, 5 }
 0x3fa   : > { %16305 = vst [vmem:[#allocation56_spill] sm:$0xff] %v14084_v41  ;;  %v5620_v9 = vrot.slane %v5618_v26, 3  ;;  %v5623_v21 = vrot.slane %v5621_v47, 4  ;;  %4783 = vrot.lane.b32.xlu0 %v4722_v29, %s9799_s19  ;;  %9314 = vmatmul.mubr.msk.bf16.gmra.mxu1 %vm1560_vm6, %v5609_v52  ;;  %v16307_v52 = vld [vmem:[#allocation6_spill] sm:$0xff]  ;;  %v7019_v17 = vrot.slane %v9652_v43, 5 }
 0x3fb   : > { %v5616_v10 = vor.u32 %v5615_v6, %v5612_v62  ;;  %6963 = vrot.lane.b32.xlu1 %v6909_v61, %s9799_s19  ;;  %v16308_v26 = vrot.slane %v16307_v52, 5  ;;  %v14284_v41 = vld [vmem:[#allocation2 + $0x9c] sm:$0xf] }
 0x3fc   : > { %v5624_v4 = vor.u32 %v5623_v21, %v5620_v9  ;;  %v5267_v15 = vpop.permute.xlu0 %5266  ;;  %v4740_v21 = vsel %vm382_vm1, %v14048_v0, %v13594_v18  ;;  %16330 = vst [vmem:[#allocation54_spill] sm:$0xff] %v14284_v41 }
 0x3fd   : > { %v5420_v60 = vsel %vm751_vm3, %v16274_v32, %v5267_v15  ;;  %v5617_v38 = vsel %vm1351_vm5, %v5608_v25, %v5616_v10  ;;  %v5269_v58 = vpop.permute.xlu1 %5268  ;;  %v4842_v47 = vsel %vm651_vm0, %v16308_v26, %v4841_v8  ;;  %v16309_v25 = vld [vmem:[#allocation65_spill] sm:$0xff]  ;;  %v6917_v15 = vor.u32 %v6916_v22, %v6913_v63 }
 0x3fe   : > { %v5472_v33 = vsel %vm827_vm4, %v5420_v60, %v16306_v39  ;;  %6961 = vrot.lane.b32.xlu0 %v6900_v16, %s9799_s19  ;;  %9317 = vmatprep.mubr.msk.bf16.mxu1 %vm1560_vm6, %v5617_v38  ;;  %v5422_v53 = vsel %vm751_vm3, %v16282_v5, %v5269_v58  ;;  %v5625_v46 = vsel %vm1351_vm5, %v5616_v10, %v5624_v4  ;;  %v7017_v10 = vrot.slane %v14066_v36, 5  ;;  %v16312_v39 = vld [vmem:[#allocation67_spill] sm:$0xff] }
 0x3ff   : > { %v5626_v32 = vshrl.u32 %v5472_v33, 16  ;;  %v5629_v29 = vshll.u32 %v5472_v33, 16  ;;  %v5474_v19 = vsel %vm827_vm4, %v5422_v53, %v16309_v25  ;;  %4891 = vrot.lane.b32.xlu1 %v4842_v47, %s9798_s18  ;;  %v6918_v0 = vsel %vm382_vm1, %v14074_v24, %v6917_v15  ;;  %v16313_v47 = vld [vmem:[#allocation68_spill] sm:$0xff] }
 0x400   : > { %v5634_v62 = vshrl.u32 %v5474_v19, 16  ;;  %v5637_v6 = vshll.u32 %v5474_v19, 16  ;;  %v14111_v3 = vpop.permute.xlu0 %7059  ;;  %v7020_v58 = vsel %vm651_vm0, %v7017_v10, %v7019_v17 }
 0x401   : > { %16310 = vst [vmem:[#allocation49_spill] sm:$0xff] %v14111_v3  ;;  %v5628_v9 = vrot.slane %v5626_v32, 3  ;;  %v5631_v5 = vrot.slane %v5629_v29, 4  ;;  %v14116_v61 = vpop.permute.xlu1 %4883  ;;  %v14270_v3 = vld [vmem:[#allocation2 + $0x88] sm:$0xf] }
 0x402   : > { %16311 = vst [vmem:[#allocation43_spill] sm:$0xff] %v14116_v61  ;;  %v5636_v16 = vrot.slane %v5634_v62, 3  ;;  %v5639_v8 = vrot.slane %v5637_v6, 4  ;;  %4787 = vrot.lane.b32.xlu0 %v4740_v21, %s9799_s19  ;;  %9318 = vmatmul.mubr.msk.bf16.gmra.mxu1 %vm1560_vm6, %v5625_v46  ;;  %v16315_v46 = vrot.slane %v16297_v11, 5  ;;  %v16317_v11 = vld [vmem:[#allocation69_spill] sm:$0xff] }
 0x403   : > { %v5632_v60 = vor.u32 %v5631_v5, %v5628_v9  ;;  %6967 = vrot.lane.b32.xlu1 %v6917_v15, %s9799_s19 }
 0x404   : > { %v5640_v43 = vor.u32 %v5639_v8, %v5636_v16  ;;  %v5271_v38 = vpop.permute.xlu0 %5270  ;;  %v7018_v62 = vsel %vm651_vm0, %v16315_v46, %v7017_v10 }
 0x405   : > { %v5424_v18 = vsel %vm751_vm3, %v16283_v14, %v5271_v38  ;;  %v5633_v63 = vsel %vm1351_vm5, %v5624_v4, %v5632_v60  ;;  %v5273_v22 = vpop.permute.xlu1 %5272  ;;  %v6507_v38 = vld [vmem:[#allocation2 + $0x18] sm:$0x8] }
 0x406   : > { %v5476_v33 = vsel %vm827_vm4, %v5424_v18, %v16312_v39  ;;  %6965 = vrot.lane.b32.xlu0 %v6918_v0, %s9799_s19  ;;  %9321 = vmatprep.mubr.msk.bf16.mxu1 %vm1560_vm6, %v5633_v63  ;;  %v5426_v36 = vsel %vm751_vm3, %v16291_v35, %v5273_v22  ;;  %v5641_v24 = vsel %vm1351_vm5, %v5632_v60, %v5640_v43  ;;  %v16318_v0 = vld [vmem:[#allocation71_spill] sm:$0xff] }
 0x407   : > { %v5642_v53 = vshrl.u32 %v5476_v33, 16  ;;  %v5645_v26 = vshll.u32 %v5476_v33, 16  ;;  %v5478_v14 = vsel %vm827_vm4, %v5426_v36, %v16313_v47  ;;  %7069 = vrot.lane.b32.xlu1 %v7020_v58, %s9798_s18 }
 0x408   : > { %v5650_v4 = vshrl.u32 %v5478_v14, 16  ;;  %v5653_v32 = vshll.u32 %v5478_v14, 16  ;;  %v14138_v29 = vpop.permute.xlu0 %4885  ;;  %v9741_v14 = vld [vmem:[#allocation2 + $0x1c] sm:$0xf] }
 0x409   : > { %16314 = vst [vmem:[#allocation34_spill] sm:$0xff] %v14138_v29  ;;  %v5644_v25 = vrot.slane %v5642_v53, 3  ;;  %v5647_v19 = vrot.slane %v5645_v26, 4  ;;  %v14143_v35 = vpop.permute.xlu1 %7061 }
 0x40a   : > { %16316 = vst [vmem:[#allocation50_spill] sm:$0xff] %v14143_v35  ;;  %v5652_v6 = vrot.slane %v5650_v4, 3  ;;  %v5655_v17 = vrot.slane %v5653_v32, 4  ;;  %7067 = vrot.lane.b32.xlu0 %v7018_v62, %s9798_s18  ;;  %9322 = vmatmul.mubr.msk.bf16.gmra.mxu1 %vm1560_vm6, %v5641_v24  ;;  %v14272_v35 = vld [vmem:[#allocation2 + $0x8c] sm:$0xf] }
 0x40b   : > { %v5648_v9 = vor.u32 %v5647_v19, %v5644_v25  ;;  %16326 = vst [vmem:[#allocation66_spill] sm:$0xff] %v14272_v35 }
 0x40c   : > { %v5656_v5 = vor.u32 %v5655_v17, %v5652_v6  ;;  %v5275_v21 = vpop.permute.xlu0 %5274  ;;  %v16322_v6 = vld [vmem:[#allocation72_spill] sm:$0xff] }
 0x40d   : > { %v5428_v15 = vsel %vm751_vm3, %v16294_v42, %v5275_v21  ;;  %v5649_v16 = vsel %vm1351_vm5, %v5640_v43, %v5648_v9  ;;  %v5277_v8 = vpop.permute.xlu1 %5276  ;;  %v9740_v42 = vld [vmem:[#allocation2 + $0xcc] sm:$0xf] }
 0x40e   : > { %v5480_v10 = vsel %vm827_vm4, %v5428_v15, %v16317_v11  ;;  %9325 = vmatprep.mubr.msk.bf16.mxu1 %vm1560_vm6, %v5649_v16  ;;  %v5430_v60 = vsel %vm751_vm3, %v16307_v52, %v5277_v8  ;;  %v5657_v22 = vsel %vm1351_vm5, %v5648_v9, %v5656_v5  ;;  %v8665_v39 = vcombine.low %v9740_v42, %v9740_v42  ;;  %v9743_v15 = vld [vmem:[#allocation2 + $0xc8] sm:$0xf]  ;;  %v14178_v8 = vld [vmem:[#allocation2 + $0xc0] sm:$0xf]  ;;  %v14203_v42 = vld [vmem:[#allocation2 + $0x34] sm:$0xf] }
 0x40f   : > { %v5658_v58 = vshrl.u32 %v5480_v10, 16  ;;  %v5661_v18 = vshll.u32 %v5480_v10, 16  ;;  %v5482_v63 = vsel %vm827_vm4, %v5430_v60, %v16318_v0  ;;  %v8724_v52 = vcombine.low %v6507_v38, %v9741_v14  ;;  %v14183_v11 = vld [vmem:[#allocation2 + $0x20] sm:$0xf]  ;;  %v14185_v10 = vld [vmem:[#allocation2 + $0x24] sm:$0xf] }
 0x410   : > { %v5666_v43 = vshrl.u32 %v5482_v63, 16  ;;  %v5669_v33 = vshll.u32 %v5482_v63, 16  ;;  %v14158_v36 = vpop.permute.xlu0 %7063  ;;  %v5436_v24 = vsel %vm751_vm3, %v8665_v39, %v13762_v28  ;;  %v9742_v28 = vld [vmem:[#allocation2 + $0xc4] sm:$0xf]  ;;  %v14191_v38 = vld [vmem:[#allocation2 + $0x2c] sm:$0xf]  ;;  %v16337_v13 = vcombine.low %v14183_v11, %v14185_v10 }
 0x411   : > { %16319 = vst [vmem:[#allocation46_spill] sm:$0xff] %v14158_v36  ;;  %v5660_v53 = vrot.slane %v5658_v58, 3  ;;  %v5663_v26 = vrot.slane %v5661_v18, 4  ;;  %v14160_v47 = vpop.permute.xlu1 %4887  ;;  %v7073_v19 = vsel %vm751_vm3, %v8724_v52, %v13757_v2  ;;  %v14173_v17 = vsel %vm827_vm4, %v5436_v24, %v16322_v6  ;;  %v14195_v18 = vld [vmem:[#allocation2 + $0x38] sm:$0xf] }
 0x412   : > { %16320 = vst [vmem:[#allocation48_spill] sm:$0xff] %v14160_v47  ;;  %v5668_v4 = vrot.slane %v5666_v43, 3  ;;  %v5671_v32 = vrot.slane %v5669_v33, 4  ;;  %9326 = vmatmul.mubr.msk.bf16.gmra.mxu1 %vm1560_vm6, %v5657_v22  ;;  %v8664_v16 = vcombine.low %v9742_v28, %v9743_v15  ;;  %v14197_v0 = vld [vmem:[#allocation2 + $0x3c] sm:$0xf]  ;;  %v16324_v43 = vld [vmem:[#allocation23_spill] sm:$0xff] }
 0x413   : > { %v5664_v25 = vor.u32 %v5663_v26, %v5660_v53  ;;  %v14201_v22 = vld [vmem:[#allocation2 + $0x30] sm:$0xf]  ;;  %v14209_v33 = vsel %vm827_vm4, %v7073_v19, %v16324_v43  ;;  %v14213_v26 = vld [vmem:[#allocation2 + $0x48] sm:$0xf]  ;;  %v14215_v14 = vld [vmem:[#allocation2 + $0x4c] sm:$0xf] }
 0x414   : > { %v14167_v46 = vor.u32 %v5671_v32, %v5668_v4  ;;  %v14169_v62 = vpop.permute.xlu0 %4889  ;;  %v14219_v24 = vld [vmem:[#allocation2 + $0x40] sm:$0xf]  ;;  %v14221_v4 = vld [vmem:[#allocation2 + $0x44] sm:$0xf]  ;;  %v5682_v19 = vshrl.u32 %v14173_v17, 16  ;;  %v5685_v6 = vshll.u32 %v14173_v17, 16 }
 0x415   : > { %16321 = vst [vmem:[#allocation61_spill] sm:$0xff] %v14169_v62  ;;  %v5665_v9 = vsel %vm1351_vm5, %v5656_v5, %v5664_v25  ;;  %v14176_v21 = vpop.permute.xlu1 %7065  ;;  %v14189_v5 = vld [vmem:[#allocation2 + $0x28] sm:$0xf]  ;;  %v14229_v28 = vld [vmem:[#allocation2 + $0x5c] sm:$0xf]  ;;  %v7203_v50 = vshll.u32 %v14209_v33, 16 }
 0x416   : > { %16323 = vst [vmem:[#allocation52_spill] sm:$0xff] %v14176_v21  ;;  %9329 = vmatprep.mubr.msk.bf16.mxu1 %vm1560_vm6, %v5665_v9  ;;  %v5673_v53 = vsel %vm1351_vm5, %v5664_v25, %v14167_v46  ;;  %v14227_v25 = vld [vmem:[#allocation2 + $0x58] sm:$0xf]  ;;  %v14233_v43 = vld [vmem:[#allocation2 + $0x50] sm:$0xf]  ;;  %v5684_v27 = vrot.slane %v5682_v19, 3 }
 0x417   : > { %v14235_v2 = vld [vmem:[#allocation2 + $0x54] sm:$0xf]  ;;  %v14242_v17 = vld [vmem:[#allocation2 + $0x68] sm:$0xf]  ;;  %v14244_v63 = vld [vmem:[#allocation2 + $0x6c] sm:$0xf] }
 0x418   : > { %v5279_v9 = vpop.permute.xlu0 %5278  ;;  %v14248_v60 = vld [vmem:[#allocation2 + $0x60] sm:$0xf]  ;;  %v14250_v15 = vld [vmem:[#allocation2 + $0x64] sm:$0xf]  ;;  %v14254_v36 = vld [vmem:[#allocation2 + $0x78] sm:$0xf] }
 0x419   : > { %v5433_v32 = vsel %vm751_vm3, %v8664_v16, %v5279_v9  ;;  %v14240_v39 = vpop.permute.xlu1 %4789  ;;  %v14256_v52 = vld [vmem:[#allocation2 + $0x7c] sm:$0xf]  ;;  %v7200_v9 = vshrl.u32 %v14209_v33, 16  ;;  %v14264_v58 = vld [vmem:[#allocation2 + $0x70] sm:$0xf]  ;;  %v5687_v16 = vrot.slane %v5685_v6, 4 }
 0x41a   : > { %v16325_v21 = vld [vmem:[#allocation42_spill] sm:$0xff]  ;;  %9330 = vmatmul.mubr.msk.bf16.gmra.mxu1 %vm1560_vm6, %v5673_v53  ;;  %v14266_v47 = vld [vmem:[#allocation2 + $0x74] sm:$0xf]  ;;  %v14299_v62 = vld [vmem:[#allocation2 + $0xac] sm:$0xf] }
 0x41b   : > { %v5484_v29 = vsel %vm827_vm4, %v5433_v32, %v16325_v21  ;;  %v14278_v21 = vld [vmem:[#allocation2 + $0x84] sm:$0xf]  ;;  %v14282_v32 = vld [vmem:[#allocation2 + $0x98] sm:$0xf]  ;;  %16335 = vst [vmem:[#allocation57_spill] sm:$0xff] %v14299_v62  ;;  %v7202_v19 = vrot.slane %v7200_v9, 3 }
 0x41c   : > { %v5674_v57 = vshrl.u32 %v5484_v29, 16  ;;  %v5677_v61 = vshll.u32 %v5484_v29, 16  ;;  %16328 = vst [vmem:[#allocation15_spill] sm:$0xff] %v14278_v21  ;;  %16329 = vst [vmem:[#allocation35_spill] sm:$0xff] %v14282_v32  ;;  %v4746_v30 = vpop.permute.xlu0 %4745  ;;  %v14289_v29 = vld [vmem:[#allocation2 + $0x90] sm:$0xf] }
 0x41d   : > { %16331 = vst [vmem:[#allocation70_spill] sm:$0xff] %v14289_v29  ;;  %v4901_v21 = vsel %vm751_vm3, %v16333_v34, %v4746_v30  ;;  %v6922_v31 = vpop.permute.xlu1 %6921  ;;  %v16336_v6 = vld [vmem:[#allocation74_spill] sm:$0xff]  ;;  %v14311_v34 = vld [vmem:[#allocation2 + $0xa4] sm:$0xf]  ;;  %v16339_v33 = vld [vmem:[#allocation73_spill] sm:$0xff]  ;;  %v7205_v62 = vrot.slane %v7203_v50, 4 }
 0x41e   : > { %v5676_v53 = vrot.slane %v5674_v57, 3  ;;  %v5679_v48 = vrot.slane %v5677_v61, 4  ;;  %v4973_v41 = vsel %vm827_vm4, %v4901_v21, %v16336_v6  ;;  %v7076_v57 = vsel %vm751_vm3, %v16337_v13, %v6922_v31  ;;  %v14309_v61 = vld [vmem:[#allocation2 + $0xa0] sm:$0xf]  ;;  %16338 = vst [vmem:[#allocation4_spill] sm:$0xff] %v14311_v34 }
 0x41f   : > { %v6014_v29 = vshrl.u32 %v4973_v41, 16  ;;  %v6017_v32 = vshll.u32 %v4973_v41, 16  ;;  %v7149_v9 = vsel %vm827_vm4, %v7076_v57, %v16339_v33  ;;  %v5688_v21 = vor.u32 %v5687_v16, %v5684_v27  ;;  %v16341_v34 = vld [vmem:[#allocation75_spill] sm:$0xff]  ;;  %v16343_v57 = vld [vmem:[#allocation78_spill] sm:$0xff] }
 0x420   : > { %v5680_v51 = vor.u32 %v5679_v48, %v5676_v53  ;;  %v7207_v6 = vshrl.u32 %v7149_v9, 16  ;;  %v7210_v45 = vshll.u32 %v7149_v9, 16  ;;  %v6924_v11 = vpop.permute.xlu0 %6923  ;;  %v16340_v31 = vcombine.low %v14189_v5, %v14191_v38  ;;  %v16342_v5 = vld [vmem:[#allocation21_spill] sm:$0xff] }
 0x421   : > { %v6016_v10 = vrot.slane %v6014_v29, 3  ;;  %v6019_v13 = vrot.slane %v6017_v32, 4  ;;  %v4750_v53 = vpop.permute.xlu1 %4749 }
 0x422   : > { %v7079_v35 = vsel %vm751_vm3, %v16340_v31, %v6924_v11  ;;  %v5681_v48 = vsel %vm1351_vm5, %v14167_v46, %v5680_v51  ;;  %v7209_v41 = vrot.slane %v7207_v6, 3  ;;  %v7212_v30 = vrot.slane %v7210_v45, 4  ;;  %v16344_v31 = vld [vmem:[#allocation16_spill] sm:$0xff] }
 0x423   : > { %v7151_v50 = vsel %vm827_vm4, %v7079_v35, %v16341_v34  ;;  %9333 = vmatprep.mubr.msk.bf16.mxu1 %vm1560_vm6, %v5681_v48  ;;  %v5689_v27 = vsel %vm1351_vm5, %v5680_v51, %v5688_v21  ;;  %v14327_v16 = vor.u32 %v6019_v13, %v6016_v10  ;;  %v4907_v38 = vsel %vm751_vm3, %v16342_v5, %v4750_v53  ;;  %v14334_v35 = vld [vmem:[#allocation2 + $0xb8] sm:$0xf]  ;;  %v14336_v34 = vld [vmem:[#allocation2 + $0xbc] sm:$0xf]  ;;  %v16353_v51 = vld [vmem:[#allocation79_spill] sm:$0xff] }
 0x424   : > { %v7215_v32 = vshrl.u32 %v7151_v50, 16  ;;  %v7218_v29 = vshll.u32 %v7151_v50, 16  ;;  %9334 = vmatmul.mubr.msk.bf16.gmra.mxu1 %vm1560_vm6, %v5689_v27  ;;  %v7206_v46 = vor.u32 %v7205_v62, %v7202_v19  ;;  %v7213_v33 = vor.u32 %v7212_v30, %v7209_v41  ;;  %v4748_v9 = vpop.permute.xlu0 %4747 }
 0x425   : > { %v4977_v45 = vsel %vm827_vm4, %v4907_v38, %v16343_v57  ;;  %v6928_v13 = vpop.permute.xlu1 %6927  ;;  %v4904_v62 = vsel %vm751_vm3, %v16344_v31, %v4748_v9  ;;  %v6021_v19 = vsel %vm1351_vm5, %v13783_v23, %v14327_v16  ;;  %v16345_v30 = vcombine.low %v14195_v18, %v14197_v0  ;;  %v16347_v23 = vld [vmem:[#allocation80_spill] sm:$0xff]  ;;  %v14356_v0 = vld [vmem:[#allocation2 + $0xb0] sm:$0xf] }
 0x426   : > { %v7217_v21 = vrot.slane %v7215_v32, 3  ;;  %v7220_v6 = vrot.slane %v7218_v29, 4  ;;  %v6030_v11 = vshrl.u32 %v4977_v45, 16  ;;  %v6033_v10 = vshll.u32 %v4977_v45, 16  ;;  %v16346_v32 = vld [vmem:[#allocation36_spill] sm:$0xff]  ;;  %9342 = vmatmul.mubr.msk.bf16.vlgmr.msra.gmra.mxu0 %vm1560_vm6, %v6021_v19  ;;  %v16349_v19 = vld [vmem:[#allocation77_spill] sm:$0xff] }
 0x427   : > { %v7085_v48 = vsel %vm751_vm3, %v16345_v30, %v6928_v13  ;;  %v7214_v53 = vsel %vm1351_vm5, %v7206_v46, %v7213_v33  ;;  %v4975_v29 = vsel %vm827_vm4, %v4904_v62, %v16346_v32  ;;  %v14358_v45 = vld [vmem:[#allocation2 + $0xb4] sm:$0xf] }
 0x428   : > { %v7221_v41 = vor.u32 %v7220_v6, %v7217_v21  ;;  %v6032_v50 = vrot.slane %v6030_v11, 3  ;;  %v6035_v27 = vrot.slane %v6033_v10, 4  ;;  %9393 = vmatprep.mubr.msk.bf16.mxu1 %vm1560_vm6, %v7214_v53  ;;  %v6022_v5 = vshrl.u32 %v4975_v29, 16  ;;  %v6926_v18 = vpop.permute.xlu0 %6925 }
 0x429   : > { %v6025_v38 = vshll.u32 %v4975_v29, 16  ;;  %v7155_v57 = vsel %vm827_vm4, %v7085_v48, %v16347_v23  ;;  %v16348_v11 = vcombine.low %v14201_v22, %v14203_v42  ;;  %v4754_v13 = vpop.permute.xlu1 %4753  ;;  %v16350_v23 = vld [vmem:[#allocation24_spill] sm:$0xff] }
 0x42a   : > { %v14362_v9 = vor.u32 %v6035_v27, %v6032_v50  ;;  %v7231_v21 = vshrl.u32 %v7155_v57, 16  ;;  %v7234_v6 = vshll.u32 %v7155_v57, 16  ;;  %v6024_v31 = vrot.slane %v6022_v5, 3  ;;  %v14374_v57 = vld [vmem:[#allocation2 + $0xc8] sm:$0xf] }
 0x42b   : > { %v7082_v10 = vsel %vm751_vm3, %v16348_v11, %v6926_v18  ;;  %v6027_v62 = vrot.slane %v6025_v38, 4  ;;  %v7222_v48 = vsel %vm1351_vm5, %v7213_v33, %v7221_v41  ;;  %v4913_v22 = vsel %vm751_vm3, %v16350_v23, %v4754_v13  ;;  %v14376_v5 = vld [vmem:[#allocation2 + $0xcc] sm:$0xf]  ;;  %v14380_v18 = vld [vmem:[#allocation2 + $0xc0] sm:$0xf]  ;;  %v16351_v13 = vld [vmem:[#allocation82_spill] sm:$0xff] }
 0x42c   : > { %v7153_v30 = vsel %vm827_vm4, %v7082_v10, %v16349_v19  ;;  %v7233_v53 = vrot.slane %v7231_v21, 3  ;;  %v7236_v32 = vrot.slane %v7234_v6, 4  ;;  %9394 = vmatmul.mubr.msk.bf16.vlgmr.msra.gmra.mxu1 %vm1560_vm6, %v7222_v48  ;;  %v4752_v42 = vpop.permute.xlu0 %4751  ;;  %v14382_v33 = vld [vmem:[#allocation2 + $0xc4] sm:$0xf] }
 0x42d   : > { %v7223_v29 = vshrl.u32 %v7153_v30, 16  ;;  %v7226_v50 = vshll.u32 %v7153_v30, 16  ;;  %v6028_v27 = vor.u32 %v6027_v62, %v6024_v31  ;;  %v4981_v31 = vsel %vm827_vm4, %v4913_v22, %v16351_v13  ;;  %v6932_v62 = vpop.permute.xlu1 %6931  ;;  %v16352_v48 = vld [vmem:[#allocation31_spill] sm:$0xff] }
 0x42e   : > { %v14386_v6 = vor.u32 %v7236_v32, %v7233_v53  ;;  %v6046_v19 = vshrl.u32 %v4981_v31, 16  ;;  %v6049_v30 = vshll.u32 %v4981_v31, 16  ;;  %v4910_v23 = vsel %vm751_vm3, %v16352_v48, %v4752_v42 }
 0x42f   : > { %v7225_v11 = vrot.slane %v7223_v29, 3  ;;  %v7228_v10 = vrot.slane %v7226_v50, 4  ;;  %v6029_v38 = vsel %vm1351_vm5, %v14327_v16, %v6028_v27  ;;  %v4979_v21 = vsel %vm827_vm4, %v4910_v23, %v16353_v51 }
 0x430   : > { %9345 = vmatprep.mubr.msk.bf16.mxu0 %vm1560_vm6, %v6029_v38  ;;  %v6037_v53 = vsel %vm1351_vm5, %v6028_v27, %v14362_v9  ;;  %v16354_v32 = vcombine.low %v14213_v26, %v14215_v14  ;;  %v6048_v50 = vrot.slane %v6046_v19, 3  ;;  %v6051_v22 = vrot.slane %v6049_v30, 4  ;;  %v6930_v16 = vpop.permute.xlu0 %6929 }
 0x431   : > { %v7229_v46 = vor.u32 %v7228_v10, %v7225_v11  ;;  %v6038_v42 = vshrl.u32 %v4979_v21, 16  ;;  %v6041_v13 = vshll.u32 %v4979_v21, 16  ;;  %9346 = vmatmul.mubr.msk.bf16.gmra.mxu0 %vm1560_vm6, %v6037_v53  ;;  %v16355_v11 = vld [vmem:[#allocation84_spill] sm:$0xff]  ;;  %v16356_v38 = vcombine.low %v14219_v24, %v14221_v4  ;;  %v4758_v14 = vpop.permute.xlu1 %4757  ;;  %v16357_v24 = vld [vmem:[#allocation81_spill] sm:$0xff] }
 0x432   : > { %v7091_v29 = vsel %vm751_vm3, %v16354_v32, %v6932_v62  ;;  %v8748_v19 = vcombine.low %v14054_v12, %v14054_v12  ;;  %v14416_v30 = vor.u32 %v6051_v22, %v6048_v50  ;;  %v16359_v50 = vld [vmem:[#allocation39_spill] sm:$0xff] }
 0x433   : > { %v7159_v51 = vsel %vm827_vm4, %v7091_v29, %v16355_v11  ;;  %v7088_v27 = vsel %vm751_vm3, %v16356_v38, %v6930_v16  ;;  %v7230_v10 = vsel %vm1351_vm5, %v7221_v41, %v7229_v46  ;;  %v7238_v26 = vsel %vm1351_vm5, %v7229_v46, %v14386_v6  ;;  %v16358_v41 = vld [vmem:[#allocation40_spill] sm:$0xff] }
 0x434   : > { %v6040_v31 = vrot.slane %v6038_v42, 3  ;;  %v6043_v62 = vrot.slane %v6041_v13, 4  ;;  %v7247_v21 = vshrl.u32 %v7159_v51, 16  ;;  %9397 = vmatprep.mubr.msk.bf16.mxu1 %vm1560_vm6, %v7230_v10  ;;  %v7250_v48 = vshll.u32 %v7159_v51, 16  ;;  %v4756_v42 = vpop.permute.xlu0 %4755  ;;  %v14427_v51 = vld [vmem:[#allocation2 + $0xd0] sm:$0xf] }
 0x435   : > { %v7157_v4 = vsel %vm827_vm4, %v7088_v27, %v16357_v24  ;;  %9398 = vmatmul.mubr.msk.bf16.gmra.mxu1 %vm1560_vm6, %v7238_v26  ;;  %v4919_v46 = vsel %vm751_vm3, %v16358_v41, %v4758_v14  ;;  %v4916_v22 = vsel %vm751_vm3, %v16359_v50, %v4756_v42  ;;  %v6936_v11 = vpop.permute.xlu1 %6935  ;;  %v8747_v38 = vcombine.low %v14427_v51, %v14050_v1 }
 0x436   : > { %v6044_v23 = vor.u32 %v6043_v62, %v6040_v31  ;;  %v7249_v53 = vrot.slane %v7247_v21, 3  ;;  %v7239_v32 = vshrl.u32 %v7157_v4, 16  ;;  %v7242_v29 = vshll.u32 %v7157_v4, 16  ;;  %v16360_v62 = vld [vmem:[#allocation83_spill] sm:$0xff] }
 0x437   : > { %v7252_v13 = vrot.slane %v7250_v48, 4  ;;  %v4985_v16 = vsel %vm827_vm4, %v4919_v46, %v13653_v7  ;;  %v4983_v21 = vsel %vm827_vm4, %v4916_v22, %v16360_v62 }
 0x438   : > { %v7241_v27 = vrot.slane %v7239_v32, 3  ;;  %v7244_v10 = vrot.slane %v7242_v29, 4  ;;  %v6062_v26 = vshrl.u32 %v4985_v16, 16  ;;  %v6065_v14 = vshll.u32 %v4985_v16, 16  ;;  %v6934_v32 = vpop.permute.xlu0 %6933 }
 0x439   : > { %v14431_v31 = vor.u32 %v7252_v13, %v7249_v53  ;;  %v6045_v7 = vsel %vm1351_vm5, %v14362_v9, %v6044_v23  ;;  %v6053_v48 = vsel %vm1351_vm5, %v6044_v23, %v14416_v30  ;;  %v6054_v46 = vshrl.u32 %v4983_v21, 16  ;;  %v4762_v50 = vpop.permute.xlu1 %4761 }
 0x43a   : > { %v7245_v24 = vor.u32 %v7244_v10, %v7241_v27  ;;  %v6064_v4 = vrot.slane %v6062_v26, 3  ;;  %v6067_v41 = vrot.slane %v6065_v14, 4  ;;  %9349 = vmatprep.mubr.msk.bf16.mxu0 %vm1560_vm6, %v6045_v7  ;;  %v16361_v53 = vcombine.low %v14178_v8, %v14178_v8  ;;  %v16364_v14 = vld [vmem:[#allocation22_spill] sm:$0xff] }
 0x43b   : > { %v6057_v42 = vshll.u32 %v4983_v21, 16  ;;  %9350 = vmatmul.mubr.msk.bf16.gmra.mxu0 %vm1560_vm6, %v6053_v48  ;;  %v16362_v9 = vcombine.low %v14227_v25, %v14229_v28  ;;  %v16363_v13 = vcombine.low %v14233_v43, %v14235_v2  ;;  %v6056_v8 = vrot.slane %v6054_v46, 3  ;;  %v16365_v46 = vld [vmem:[#allocation37_spill] sm:$0xff] }
 0x43c   : > { %v14445_v29 = vsel %vm751_vm3, %v16361_v53, %v14240_v39  ;;  %v14456_v22 = vor.u32 %v6067_v41, %v6064_v4  ;;  %v7246_v2 = vsel %vm1351_vm5, %v14386_v6, %v7245_v24  ;;  %v7254_v43 = vsel %vm1351_vm5, %v7245_v24, %v14431_v31  ;;  %v4760_v21 = vpop.permute.xlu0 %4759 }
 0x43d   : > { %v7097_v23 = vsel %vm751_vm3, %v16362_v9, %v6936_v11  ;;  %v7094_v16 = vsel %vm751_vm3, %v16363_v13, %v6934_v32  ;;  %v6059_v10 = vrot.slane %v6057_v42, 4  ;;  %v4925_v62 = vsel %vm751_vm3, %v16364_v14, %v4762_v50  ;;  %9401 = vmatprep.mubr.msk.bf16.mxu1 %vm1560_vm6, %v7246_v2  ;;  %v16367_v13 = vld [vmem:[#allocation85_spill] sm:$0xff] }
 0x43e   : > { %v7163_v39 = vsel %vm827_vm4, %v7097_v23, %v13669_v56  ;;  %v7161_v27 = vsel %vm827_vm4, %v7094_v16, %v13650_v59  ;;  %v6940_v59 = vpop.permute.xlu1 %6939  ;;  %9402 = vmatmul.mubr.msk.bf16.gmra.mxu1 %vm1560_vm6, %v7254_v43  ;;  %v4989_v6 = vsel %vm827_vm4, %v4925_v62, %v13694_v55  ;;  %v4922_v24 = vsel %vm751_vm3, %v16365_v46, %v4760_v21 }
 0x43f   : > { %v7263_v26 = vshrl.u32 %v7163_v39, 16  ;;  %v7266_v25 = vshll.u32 %v7163_v39, 16  ;;  %v7255_v28 = vshrl.u32 %v7161_v27, 16  ;;  %v7258_v11 = vshll.u32 %v7161_v27, 16 }
 0x440   : > { %v6060_v7 = vor.u32 %v6059_v10, %v6056_v8  ;;  %v16366_v32 = vcombine.low %v14242_v17, %v14244_v63  ;;  %v6078_v9 = vshrl.u32 %v4989_v6, 16  ;;  %v6081_v23 = vshll.u32 %v4989_v6, 16  ;;  %v6938_v27 = vpop.permute.xlu0 %6937 }
 0x441   : > { %v7265_v56 = vrot.slane %v7263_v26, 3  ;;  %v7268_v48 = vrot.slane %v7266_v25, 4  ;;  %v7257_v4 = vrot.slane %v7255_v28, 3  ;;  %v7260_v41 = vrot.slane %v7258_v11, 4 }
 0x442   : > { %v7103_v53 = vsel %vm751_vm3, %v16366_v32, %v6940_v59  ;;  %v4987_v16 = vsel %vm827_vm4, %v4922_v24, %v16367_v13  ;;  %v6061_v55 = vsel %vm1351_vm5, %v14416_v30, %v6060_v7  ;;  %v6080_v10 = vrot.slane %v6078_v9, 3  ;;  %v4766_v25 = vpop.permute.xlu1 %4765  ;;  %v16371_v24 = vld [vmem:[#allocation28_spill] sm:$0xff] }
 0x443   : > { %v14478_v42 = vor.u32 %v7268_v48, %v7265_v56  ;;  %v7261_v50 = vor.u32 %v7260_v41, %v7257_v4  ;;  %v6070_v8 = vshrl.u32 %v4987_v16, 16  ;;  %v6073_v39 = vshll.u32 %v4987_v16, 16  ;;  %9353 = vmatprep.mubr.msk.bf16.mxu0 %vm1560_vm6, %v6061_v55  ;;  %v16369_v4 = vld [vmem:[#allocation86_spill] sm:$0xff] }
 0x444   : > { %v6083_v26 = vrot.slane %v6081_v23, 4  ;;  %v6069_v63 = vsel %vm1351_vm5, %v6060_v7, %v14456_v22  ;;  %v7167_v17 = vsel %vm827_vm4, %v7103_v53, %v13718_v37  ;;  %v16368_v30 = vcombine.low %v14248_v60, %v14250_v15  ;;  %v4764_v41 = vpop.permute.xlu0 %4763  ;;  %v16370_v60 = vld [vmem:[#allocation30_spill] sm:$0xff] }
 0x445   : > { %v6072_v28 = vrot.slane %v6070_v8, 3  ;;  %v6075_v11 = vrot.slane %v6073_v39, 4  ;;  %9354 = vmatmul.mubr.msk.bf16.gmra.mxu0 %vm1560_vm6, %v6069_v63  ;;  %v7279_v2 = vshrl.u32 %v7167_v17, 16  ;;  %v7282_v43 = vshll.u32 %v7167_v17, 16  ;;  %v16372_v23 = vld [vmem:[#allocation14_spill] sm:$0xff] }
 0x446   : > { %v6084_v14 = vor.u32 %v6083_v26, %v6080_v10  ;;  %v7100_v62 = vsel %vm751_vm3, %v16368_v30, %v6938_v27  ;;  %v7262_v21 = vsel %vm1351_vm5, %v14431_v31, %v7261_v50  ;;  %v7270_v7 = vsel %vm1351_vm5, %v7261_v50, %v14478_v42  ;;  %v6944_v32 = vpop.permute.xlu1 %6943 }
 0x447   : > { %v6076_v37 = vor.u32 %v6075_v11, %v6072_v28  ;;  %v7281_v56 = vrot.slane %v7279_v2, 3  ;;  %v7284_v48 = vrot.slane %v7282_v43, 4  ;;  %v7165_v59 = vsel %vm827_vm4, %v7100_v62, %v16369_v4  ;;  %9405 = vmatprep.mubr.msk.bf16.mxu1 %vm1560_vm6, %v7262_v21 }
 0x448   : > { %v7271_v6 = vshrl.u32 %v7165_v59, 16  ;;  %v7274_v46 = vshll.u32 %v7165_v59, 16  ;;  %v4931_v15 = vsel %vm751_vm3, %v16370_v60, %v4766_v25  ;;  %v4928_v31 = vsel %vm751_vm3, %v16371_v24, %v4764_v41  ;;  %9406 = vmatmul.mubr.msk.bf16.gmra.mxu1 %vm1560_vm6, %v7270_v7  ;;  %v6942_v17 = vpop.permute.xlu0 %6941  ;;  %v16376_v60 = vld [vmem:[#allocation44_spill] sm:$0xff] }
 0x449   : > { %v14505_v53 = vor.u32 %v7284_v48, %v7281_v56  ;;  %v4993_v9 = vsel %vm827_vm4, %v4931_v15, %v13812_v20  ;;  %v4991_v13 = vsel %vm827_vm4, %v4928_v31, %v16372_v23  ;;  %v6077_v16 = vsel %vm1351_vm5, %v14456_v22, %v6076_v37 }
 0x44a   : > { %v7273_v50 = vrot.slane %v7271_v6, 3  ;;  %v7276_v8 = vrot.slane %v7274_v46, 4  ;;  %v6094_v39 = vshrl.u32 %v4993_v9, 16  ;;  %v6097_v55 = vshll.u32 %v4993_v9, 16  ;;  %9357 = vmatprep.mubr.msk.bf16.mxu0 %vm1560_vm6, %v6077_v16  ;;  %v4770_v2 = vpop.permute.xlu1 %4769 }
 0x44b   : > { %v6086_v27 = vshrl.u32 %v4991_v13, 16  ;;  %v6089_v10 = vshll.u32 %v4991_v13, 16  ;;  %v6085_v26 = vsel %vm1351_vm5, %v6076_v37, %v6084_v14  ;;  %v16373_v63 = vcombine.low %v14254_v36, %v14256_v52 }
 0x44c   : > { %v7277_v25 = vor.u32 %v7276_v8, %v7273_v50  ;;  %v6096_v28 = vrot.slane %v6094_v39, 3  ;;  %v6099_v11 = vrot.slane %v6097_v55, 4  ;;  %v16374_v36 = vcombine.low %v14264_v58, %v14266_v47  ;;  %v4768_v41 = vpop.permute.xlu0 %4767  ;;  %v16375_v47 = vld [vmem:[#allocation29_spill] sm:$0xff]  ;;  %v16377_v55 = vld [vmem:[#allocation66_spill] sm:$0xff] }
 0x44d   : > { %v7109_v20 = vsel %vm751_vm3, %v16373_v63, %v6944_v32  ;;  %v6088_v43 = vrot.slane %v6086_v27, 3  ;;  %v6091_v30 = vrot.slane %v6089_v10, 4  ;;  %9358 = vmatmul.mubr.msk.bf16.gmra.mxu0 %vm1560_vm6, %v6085_v26  ;;  %v4937_v58 = vsel %vm751_vm3, %v16375_v47, %v4770_v2  ;;  %v16385_v47 = vld [vmem:[#allocation38_spill] sm:$0xff] }
 0x44e   : > { %v7171_v22 = vsel %vm827_vm4, %v7109_v20, %v13856_v40  ;;  %v6100_v7 = vor.u32 %v6099_v11, %v6096_v28  ;;  %v7106_v52 = vsel %vm751_vm3, %v16374_v36, %v6942_v17  ;;  %v7278_v37 = vsel %vm1351_vm5, %v14478_v42, %v7277_v25  ;;  %v6948_v15 = vpop.permute.xlu1 %6947 }
 0x44f   : > { %v7295_v62 = vshrl.u32 %v7171_v22, 16  ;;  %v7298_v21 = vshll.u32 %v7171_v22, 16  ;;  %v7286_v56 = vsel %vm1351_vm5, %v7277_v25, %v14505_v53  ;;  %v6092_v40 = vor.u32 %v6091_v30, %v6088_v43  ;;  %9409 = vmatprep.mubr.msk.bf16.mxu1 %vm1560_vm6, %v7278_v37  ;;  %v16380_v43 = vld [vmem:[#allocation53_spill] sm:$0xff]  ;;  %v16381_v30 = vld [vmem:[#allocation15_spill] sm:$0xff] }
 0x450   : > { %v7169_v59 = vsel %vm827_vm4, %v7106_v52, %v13785_v54  ;;  %v4934_v42 = vsel %vm751_vm3, %v16376_v60, %v4768_v41  ;;  %9410 = vmatmul.mubr.msk.bf16.gmra.mxu1 %vm1560_vm6, %v7286_v56  ;;  %v4997_v31 = vsel %vm827_vm4, %v4937_v58, %v13895_v49  ;;  %v16378_v27 = vcombine.low %v14270_v3, %v16377_v55  ;;  %v6946_v10 = vpop.permute.xlu0 %6945  ;;  %v16388_v55 = vld [vmem:[#allocation35_spill] sm:$0xff] }
 0x451   : > { %v7297_v48 = vrot.slane %v7295_v62, 3  ;;  %v7300_v4 = vrot.slane %v7298_v21, 4  ;;  %v7287_v6 = vshrl.u32 %v7169_v59, 16  ;;  %v7290_v46 = vshll.u32 %v7169_v59, 16 }
 0x452   : > { %v4995_v54 = vsel %vm827_vm4, %v4934_v42, %v13848_v44  ;;  %v6093_v32 = vsel %vm1351_vm5, %v6084_v14, %v6092_v40  ;;  %v6110_v13 = vshrl.u32 %v4997_v31, 16  ;;  %v6113_v16 = vshll.u32 %v4997_v31, 16  ;;  %v16379_v14 = vld [vmem:[#allocation13_spill] sm:$0xff]  ;;  %v4774_v17 = vpop.permute.xlu1 %4773  ;;  %v16386_v42 = vld [vmem:[#allocation20_spill] sm:$0xff]  ;;  %v16387_v31 = vld [vmem:[#allocation19_spill] sm:$0xff] }
 0x453   : > { %v14538_v24 = vor.u32 %v7300_v4, %v7297_v48  ;;  %v7289_v9 = vrot.slane %v7287_v6, 3  ;;  %v7292_v23 = vrot.slane %v7290_v46, 4  ;;  %9361 = vmatprep.mubr.msk.bf16.mxu0 %vm1560_vm6, %v6093_v32  ;;  %v6102_v50 = vshrl.u32 %v4995_v54, 16  ;;  %v16384_v6 = vld [vmem:[#allocation27_spill] sm:$0xff] }
 0x454   : > { %v6105_v8 = vshll.u32 %v4995_v54, 16  ;;  %v6101_v39 = vsel %vm1351_vm5, %v6092_v40, %v6100_v7  ;;  %v7115_v49 = vsel %vm751_vm3, %v16378_v27, %v6948_v15  ;;  %v6112_v44 = vrot.slane %v6110_v13, 3  ;;  %v16383_v40 = vld [vmem:[#allocation17_spill] sm:$0xff]  ;;  %v4772_v4 = vpop.permute.xlu0 %4771  ;;  %v16389_v27 = vld [vmem:[#allocation54_spill] sm:$0xff] }
 0x455   : > { %v7293_v26 = vor.u32 %v7292_v23, %v7289_v9  ;;  %v6115_v63 = vrot.slane %v6113_v16, 4  ;;  %v7175_v20 = vsel %vm827_vm4, %v7115_v49, %v16379_v14  ;;  %v6104_v25 = vrot.slane %v6102_v50, 3  ;;  %9362 = vmatmul.mubr.msk.bf16.gmra.mxu0 %vm1560_vm6, %v6101_v39 }
 0x456   : > { %v6107_v28 = vrot.slane %v6105_v8, 4  ;;  %v7311_v11 = vshrl.u32 %v7175_v20, 16  ;;  %v7314_v22 = vshll.u32 %v7175_v20, 16  ;;  %v16382_v3 = vcombine.low %v16380_v43, %v16381_v30  ;;  %v6952_v58 = vpop.permute.xlu1 %6951  ;;  %v16392_v30 = vld [vmem:[#allocation70_spill] sm:$0xff] }
 0x457   : > { %v6116_v2 = vor.u32 %v6115_v63, %v6112_v44  ;;  %v7294_v21 = vsel %vm1351_vm5, %v14505_v53, %v7293_v26  ;;  %v7302_v36 = vsel %vm1351_vm5, %v7293_v26, %v14538_v24  ;;  %v4943_v46 = vsel %vm751_vm3, %v16384_v6, %v4774_v17 }
 0x458   : > { %v7112_v62 = vsel %vm751_vm3, %v16382_v3, %v6946_v10  ;;  %v6108_v52 = vor.u32 %v6107_v28, %v6104_v25  ;;  %v7313_v37 = vrot.slane %v7311_v11, 3  ;;  %v7316_v56 = vrot.slane %v7314_v22, 4  ;;  %9413 = vmatprep.mubr.msk.bf16.mxu1 %vm1560_vm6, %v7294_v21  ;;  %v6950_v26 = vpop.permute.xlu0 %6949  ;;  %v16393_v3 = vld [vmem:[#allocation55_spill] sm:$0xff] }
 0x459   : > { %v7173_v48 = vsel %vm827_vm4, %v7112_v62, %v16383_v40  ;;  %v4940_v53 = vsel %vm751_vm3, %v16385_v47, %v4772_v4  ;;  %9414 = vmatmul.mubr.msk.bf16.gmra.mxu1 %vm1560_vm6, %v7302_v36  ;;  %v5001_v15 = vsel %vm827_vm4, %v4943_v46, %v16386_v42  ;;  %v16390_v49 = vcombine.low %v16388_v55, %v16389_v27  ;;  %v16396_v46 = vld [vmem:[#allocation33_spill] sm:$0xff] }
 0x45a   : > { %v7303_v59 = vshrl.u32 %v7173_v48, 16  ;;  %v7306_v41 = vshll.u32 %v7173_v48, 16  ;;  %v14570_v60 = vor.u32 %v7316_v56, %v7313_v37  ;;  %v4999_v54 = vsel %vm827_vm4, %v4940_v53, %v16387_v31  ;;  %v4778_v17 = vpop.permute.xlu1 %4777  ;;  %v16395_v48 = vld [vmem:[#allocation26_spill] sm:$0xff]  ;;  %v16397_v53 = vld [vmem:[#allocation32_spill] sm:$0xff]  ;;  %v16400_v27 = vld [vmem:[#allocation5_spill] sm:$0xff] }
 0x45b   : > { %v6109_v32 = vsel %vm1351_vm5, %v6100_v7, %v6108_v52  ;;  %v6126_v13 = vshrl.u32 %v5001_v15, 16  ;;  %v6129_v16 = vshll.u32 %v5001_v15, 16  ;;  %v6118_v50 = vshrl.u32 %v4999_v54, 16  ;;  %v16391_v7 = vld [vmem:[#allocation12_spill] sm:$0xff]  ;;  %v16398_v15 = vld [vmem:[#allocation47_spill] sm:$0xff] }
 0x45c   : > { %v7305_v9 = vrot.slane %v7303_v59, 3  ;;  %v7308_v23 = vrot.slane %v7306_v41, 4  ;;  %9365 = vmatprep.mubr.msk.bf16.mxu0 %vm1560_vm6, %v6109_v32  ;;  %v6121_v8 = vshll.u32 %v4999_v54, 16  ;;  %v6117_v39 = vsel %vm1351_vm5, %v6108_v52, %v6116_v2  ;;  %v4776_v59 = vpop.permute.xlu0 %4775  ;;  %v16399_v54 = vld [vmem:[#allocation18_spill] sm:$0xff] }
 0x45d   : > { %v7121_v10 = vsel %vm751_vm3, %v16390_v49, %v6952_v58  ;;  %v6128_v63 = vrot.slane %v6126_v13, 3  ;;  %v6131_v14 = vrot.slane %v6129_v16, 4  ;;  %v6120_v25 = vrot.slane %v6118_v50, 3  ;;  %9366 = vmatmul.mubr.msk.bf16.gmra.mxu0 %vm1560_vm6, %v6117_v39  ;;  %v16401_v49 = vld [vmem:[#allocation57_spill] sm:$0xff] }
 0x45e   : > { %v7309_v44 = vor.u32 %v7308_v23, %v7305_v9  ;;  %v7179_v20 = vsel %vm827_vm4, %v7121_v10, %v16391_v7  ;;  %v6123_v28 = vrot.slane %v6121_v8, 4  ;;  %v16394_v62 = vcombine.low %v16392_v30, %v16393_v3  ;;  %v6956_v58 = vpop.permute.xlu1 %6955  ;;  %v16404_v3 = vld [vmem:[#allocation4_spill] sm:$0xff] }
 0x45f   : > { %v7327_v11 = vshrl.u32 %v7179_v20, 16  ;;  %v7330_v22 = vshll.u32 %v7179_v20, 16  ;;  %v6132_v43 = vor.u32 %v6131_v14, %v6128_v63  ;;  %v4949_v47 = vsel %vm751_vm3, %v16396_v46, %v4778_v17 }
 0x460   : > { %v7118_v21 = vsel %vm751_vm3, %v16394_v62, %v6950_v26  ;;  %v7310_v36 = vsel %vm1351_vm5, %v14538_v24, %v7309_v44  ;;  %v7318_v52 = vsel %vm1351_vm5, %v7309_v44, %v14570_v60  ;;  %v6124_v37 = vor.u32 %v6123_v28, %v6120_v25  ;;  %v6954_v44 = vpop.permute.xlu0 %6953 }
 0x461   : > { %v7329_v56 = vrot.slane %v7327_v11, 3  ;;  %v7332_v40 = vrot.slane %v7330_v22, 4  ;;  %v7177_v4 = vsel %vm827_vm4, %v7118_v21, %v16395_v48  ;;  %9417 = vmatprep.mubr.msk.bf16.mxu1 %vm1560_vm6, %v7310_v36  ;;  %v4946_v24 = vsel %vm751_vm3, %v16397_v53, %v4776_v59  ;;  %v16406_v48 = vld [vmem:[#allocation45_spill] sm:$0xff] }
 0x462   : > { %v7319_v41 = vshrl.u32 %v7177_v4, 16  ;;  %v7322_v6 = vshll.u32 %v7177_v4, 16  ;;  %9418 = vmatmul.mubr.msk.bf16.gmra.mxu1 %vm1560_vm6, %v7318_v52  ;;  %v5005_v31 = vsel %vm827_vm4, %v4949_v47, %v16398_v15  ;;  %v5003_v32 = vsel %vm827_vm4, %v4946_v24, %v16399_v54  ;;  %v4782_v17 = vpop.permute.xlu1 %4781  ;;  %v16408_v47 = vld [vmem:[#allocation41_spill] sm:$0xff] }
 0x463   : > { %v14602_v42 = vor.u32 %v7332_v40, %v7329_v56  ;;  %v6125_v9 = vsel %vm1351_vm5, %v6116_v2, %v6124_v37  ;;  %v6142_v16 = vshrl.u32 %v5005_v31, 16  ;;  %v6145_v50 = vshll.u32 %v5005_v31, 16  ;;  %v16403_v2 = vld [vmem:[#allocation56_spill] sm:$0xff]  ;;  %v16410_v31 = vld [vmem:[#allocation51_spill] sm:$0xff] }
 0x464   : > { %v7321_v23 = vrot.slane %v7319_v41, 3  ;;  %v7324_v13 = vrot.slane %v7322_v6, 4  ;;  %9369 = vmatprep.mubr.msk.bf16.mxu0 %vm1560_vm6, %v6125_v9  ;;  %v6134_v8 = vshrl.u32 %v5003_v32, 16  ;;  %v6137_v39 = vshll.u32 %v5003_v32, 16  ;;  %v4780_v59 = vpop.permute.xlu0 %4779 }
 0x465   : > { %v6133_v55 = vsel %vm1351_vm5, %v6124_v37, %v6132_v43  ;;  %v16402_v10 = vcombine.low %v16400_v27, %v16401_v49  ;;  %v6144_v14 = vrot.slane %v6142_v16, 3  ;;  %v6147_v7 = vrot.slane %v6145_v50, 4 }
 0x466   : > { %v7325_v63 = vor.u32 %v7324_v13, %v7321_v23  ;;  %v6136_v25 = vrot.slane %v6134_v8, 3  ;;  %v6139_v28 = vrot.slane %v6137_v39, 4  ;;  %9370 = vmatmul.mubr.msk.bf16.gmra.mxu0 %vm1560_vm6, %v6133_v55  ;;  %v16405_v62 = vcombine.low %v14309_v61, %v16404_v3  ;;  %v16407_v61 = vld [vmem:[#allocation3_spill] sm:$0xff]  ;;  %v6960_v53 = vpop.permute.xlu1 %6959 }
 0x467   : > { %v7127_v26 = vsel %vm751_vm3, %v16402_v10, %v6956_v58  ;;  %v6148_v30 = vor.u32 %v6147_v7, %v6144_v14  ;;  %v4955_v46 = vsel %vm751_vm3, %v16407_v61, %v4782_v17  ;;  %v16409_v58 = vld [vmem:[#allocation43_spill] sm:$0xff]  ;;  %v16411_v55 = vcombine.low %v14334_v35, %v14336_v34 }
 0x468   : > { %v7183_v20 = vsel %vm827_vm4, %v7127_v26, %v16403_v2  ;;  %v7124_v21 = vsel %vm751_vm3, %v16405_v62, %v6954_v44  ;;  %v7326_v36 = vsel %vm1351_vm5, %v14570_v60, %v7325_v63  ;;  %v7334_v52 = vsel %vm1351_vm5, %v7325_v63, %v14602_v42  ;;  %v6958_v49 = vpop.permute.xlu0 %6957 }
 0x469   : > { %v7343_v11 = vshrl.u32 %v7183_v20, 16  ;;  %v7346_v22 = vshll.u32 %v7183_v20, 16  ;;  %v6140_v37 = vor.u32 %v6139_v28, %v6136_v25  ;;  %v7181_v4 = vsel %vm827_vm4, %v7124_v21, %v16406_v48  ;;  %9421 = vmatprep.mubr.msk.bf16.mxu1 %vm1560_vm6, %v7326_v36  ;;  %v16414_v21 = vld [vmem:[#allocation49_spill] sm:$0xff] }
 0x46a   : > { %v7335_v41 = vshrl.u32 %v7181_v4, 16  ;;  %v7338_v6 = vshll.u32 %v7181_v4, 16  ;;  %v4952_v60 = vsel %vm751_vm3, %v16408_v47, %v4780_v59  ;;  %9422 = vmatmul.mubr.msk.bf16.gmra.mxu1 %vm1560_vm6, %v7334_v52  ;;  %v5009_v15 = vsel %vm827_vm4, %v4955_v46, %v16409_v58  ;;  %v4786_v14 = vpop.permute.xlu1 %4785  ;;  %v16417_v59 = vld [vmem:[#allocation48_spill] sm:$0xff] }
 0x46b   : > { %v7345_v56 = vrot.slane %v7343_v11, 3  ;;  %v7348_v40 = vrot.slane %v7346_v22, 4  ;;  %v5007_v54 = vsel %vm827_vm4, %v4952_v60, %v16410_v31  ;;  %v6141_v32 = vsel %vm1351_vm5, %v6132_v43, %v6140_v37  ;;  %v16412_v43 = vld [vmem:[#allocation50_spill] sm:$0xff] }
 0x46c   : > { %v7337_v9 = vrot.slane %v7335_v41, 3  ;;  %v7340_v23 = vrot.slane %v7338_v6, 4  ;;  %v6158_v13 = vshrl.u32 %v5009_v15, 16  ;;  %v6161_v16 = vshll.u32 %v5009_v15, 16  ;;  %9373 = vmatprep.mubr.msk.bf16.mxu0 %vm1560_vm6, %v6141_v32  ;;  %v4784_v52 = vpop.permute.xlu0 %4783  ;;  %v16418_v6 = vld [vmem:[#allocation34_spill] sm:$0xff] }
 0x46d   : > { %v14634_v24 = vor.u32 %v7348_v40, %v7345_v56  ;;  %v6150_v50 = vshrl.u32 %v5007_v54, 16  ;;  %v6153_v8 = vshll.u32 %v5007_v54, 16  ;;  %v6149_v39 = vsel %vm1351_vm5, %v6140_v37, %v6148_v30  ;;  %v16416_v40 = vld [vmem:[#allocation7_spill] sm:$0xff] }
 0x46e   : > { %v7133_v27 = vsel %vm751_vm3, %v16411_v55, %v6960_v53  ;;  %v7341_v10 = vor.u32 %v7340_v23, %v7337_v9  ;;  %v6160_v26 = vrot.slane %v6158_v13, 3  ;;  %v6163_v44 = vrot.slane %v6161_v16, 4  ;;  %9374 = vmatmul.mubr.msk.bf16.gmra.mxu0 %vm1560_vm6, %v6149_v39  ;;  %v6964_v48 = vpop.permute.xlu1 %6963 }
 0x46f   : > { %v7187_v63 = vsel %vm827_vm4, %v7133_v27, %v16412_v43  ;;  %v6152_v7 = vrot.slane %v6150_v50, 3  ;;  %v6155_v2 = vrot.slane %v6153_v8, 4  ;;  %v16413_v35 = vcombine.low %v14356_v0, %v14358_v45  ;;  %v16415_v0 = vld [vmem:[#allocation9_spill] sm:$0xff]  ;;  %v16420_v50 = vld [vmem:[#allocation52_spill] sm:$0xff] }
 0x470   : > { %v7359_v20 = vshrl.u32 %v7187_v63, 16  ;;  %v7362_v17 = vshll.u32 %v7187_v63, 16  ;;  %v14651_v25 = vor.u32 %v6163_v44, %v6160_v26  ;;  %v7342_v28 = vsel %vm1351_vm5, %v14602_v42, %v7341_v10  ;;  %v6962_v23 = vpop.permute.xlu0 %6961 }
 0x471   : > { %v7130_v34 = vsel %vm751_vm3, %v16413_v35, %v6958_v49  ;;  %v7350_v11 = vsel %vm1351_vm5, %v7341_v10, %v14634_v24  ;;  %v6156_v22 = vor.u32 %v6155_v2, %v6152_v7  ;;  %9425 = vmatprep.mubr.msk.bf16.mxu1 %vm1560_vm6, %v7342_v28  ;;  %v4961_v45 = vsel %vm751_vm3, %v16415_v0, %v4786_v14  ;;  %v16422_v2 = vld [vmem:[#allocation46_spill] sm:$0xff] }
 0x472   : > { %v7361_v3 = vrot.slane %v7359_v20, 3  ;;  %v7364_v62 = vrot.slane %v7362_v17, 4  ;;  %v7185_v36 = vsel %vm827_vm4, %v7130_v34, %v16414_v21  ;;  %v4958_v42 = vsel %vm751_vm3, %v16416_v40, %v4784_v52  ;;  %9426 = vmatmul.mubr.msk.bf16.gmra.mxu1 %vm1560_vm6, %v7350_v11  ;;  %v4892_v39 = vpop.permute.xlu1 %4891 }
 0x473   : > { %v7351_v37 = vshrl.u32 %v7185_v36, 16  ;;  %v7354_v56 = vshll.u32 %v7185_v36, 16  ;;  %v5013_v41 = vsel %vm827_vm4, %v4961_v45, %v16417_v59  ;;  %v5011_v61 = vsel %vm827_vm4, %v4958_v42, %v16418_v6 }
 0x474   : > { %v14668_v4 = vor.u32 %v7364_v62, %v7361_v3  ;;  %v6157_v46 = vsel %vm1351_vm5, %v6148_v30, %v6156_v22  ;;  %v6174_v53 = vshrl.u32 %v5013_v41, 16  ;;  %v6177_v58 = vshll.u32 %v5013_v41, 16  ;;  %v4788_v17 = vpop.permute.xlu0 %4787  ;;  %v16424_v62 = vld [vmem:[#allocation61_spill] sm:$0xff] }
 0x475   : > { %v7353_v47 = vrot.slane %v7351_v37, 3  ;;  %v7356_v60 = vrot.slane %v7354_v56, 4  ;;  %9377 = vmatprep.mubr.msk.bf16.mxu0 %vm1560_vm6, %v6157_v46  ;;  %v6166_v15 = vshrl.u32 %v5011_v61, 16  ;;  %v6169_v31 = vshll.u32 %v5011_v61, 16 }
 0x476   : > { %v6165_v54 = vsel %vm1351_vm5, %v6156_v22, %v14651_v25  ;;  %v16419_v32 = vcombine.low %v14374_v57, %v14376_v5  ;;  %v6176_v16 = vrot.slane %v6174_v53, 3  ;;  %v6179_v30 = vrot.slane %v6177_v58, 4  ;;  %v6968_v28 = vpop.permute.xlu1 %6967 }
 0x477   : > { %v7357_v13 = vor.u32 %v7356_v60, %v7353_v47  ;;  %v6168_v55 = vrot.slane %v6166_v15, 3  ;;  %v6171_v27 = vrot.slane %v6169_v31, 4  ;;  %9378 = vmatmul.mubr.msk.bf16.gmra.mxu0 %vm1560_vm6, %v6165_v54  ;;  %v16421_v57 = vcombine.low %v14380_v18, %v14382_v33  ;;  %v16423_v33 = vld [vmem:[#allocation10_spill] sm:$0xff] }
 0x478   : > { %v7139_v9 = vsel %vm751_vm3, %v16419_v32, %v6964_v48  ;;  %v6180_v26 = vor.u32 %v6179_v30, %v6176_v16  ;;  %v5017_v18 = vsel %vm827_vm4, %v14445_v29, %v4892_v39  ;;  %v6966_v42 = vpop.permute.xlu0 %6965  ;;  %v7145_v6 = vsel %vm751_vm3, %v8748_v19, %v6968_v28 }
 0x479   : > { %v7191_v8 = vsel %vm827_vm4, %v7139_v9, %v16420_v50  ;;  %v7136_v5 = vsel %vm751_vm3, %v16421_v57, %v6962_v23  ;;  %v7358_v44 = vsel %vm1351_vm5, %v14634_v24, %v7357_v13  ;;  %v7366_v43 = vsel %vm1351_vm5, %v7357_v13, %v14668_v4 }
 0x47a   : > { %v7375_v49 = vshrl.u32 %v7191_v8, 16  ;;  %v7378_v10 = vshll.u32 %v7191_v8, 16  ;;  %v6172_v63 = vor.u32 %v6171_v27, %v6168_v55  ;;  %v7189_v20 = vsel %vm827_vm4, %v7136_v5, %v16422_v2  ;;  %9429 = vmatprep.mubr.msk.bf16.mxu1 %vm1560_vm6, %v7358_v44  ;;  %v7070_v61 = vpop.permute.xlu1 %7069 }
 0x47b   : > { %v7367_v35 = vshrl.u32 %v7189_v20, 16  ;;  %v7370_v34 = vshll.u32 %v7189_v20, 16  ;;  %v4964_v24 = vsel %vm751_vm3, %v16423_v33, %v4788_v17  ;;  %9430 = vmatmul.mubr.msk.bf16.gmra.mxu1 %vm1560_vm6, %v7366_v43  ;;  %v6190_v22 = vshrl.u32 %v5017_v18, 16 }
 0x47c   : > { %v7377_v14 = vrot.slane %v7375_v49, 3  ;;  %v7380_v7 = vrot.slane %v7378_v10, 4  ;;  %v6193_v3 = vshll.u32 %v5017_v18, 16  ;;  %v5015_v21 = vsel %vm827_vm4, %v4964_v24, %v16424_v62  ;;  %v7068_v19 = vpop.permute.xlu0 %7067 }
 0x47d   : > { %v7369_v36 = vrot.slane %v7367_v35, 3  ;;  %v7372_v52 = vrot.slane %v7370_v34, 4  ;;  %v6182_v37 = vshrl.u32 %v5015_v21, 16  ;;  %v6185_v56 = vshll.u32 %v5015_v21, 16 }
 0x47e   : > { %v7381_v11 = vor.u32 %v7380_v7, %v7377_v14  ;;  %v6192_v0 = vrot.slane %v6190_v22, 3  ;;  %v6195_v45 = vrot.slane %v6193_v3, 4  ;;  %v6173_v29 = vsel %vm1351_vm5, %v14651_v25, %v6172_v63 }
 0x47f   : > { %v6181_v40 = vsel %vm1351_vm5, %v6172_v63, %v6180_v26  ;;  %v7373_v48 = vor.u32 %v7372_v52, %v7369_v36  ;;  %v6184_v59 = vrot.slane %v6182_v37, 3  ;;  %v6187_v41 = vrot.slane %v6185_v56, 4  ;;  %9381 = vmatprep.mubr.msk.bf16.mxu0 %vm1560_vm6, %v6173_v29 }
 0x480   : > { %9382 = vmatmul.mubr.msk.bf16.gmra.mxu0 %vm1560_vm6, %v6181_v40  ;;  %v7195_v46 = vsel %vm827_vm4, %v7145_v6, %v7070_v61  ;;  %v7142_v58 = vsel %vm751_vm3, %v8747_v38, %v6966_v42  ;;  %v6196_v15 = vor.u32 %v6195_v45, %v6192_v0 }
 0x481   : > { %v6188_v47 = vor.u32 %v6187_v41, %v6184_v59  ;;  %v7374_v25 = vsel %vm1351_vm5, %v14668_v4, %v7373_v48  ;;  %v7382_v60 = vsel %vm1351_vm5, %v7373_v48, %v7381_v11  ;;  %v7391_v53 = vshrl.u32 %v7195_v46, 16 }
 0x482   : > { %9433 = vmatprep.mubr.msk.bf16.mxu1 %vm1560_vm6, %v7374_v25  ;;  %v7394_v12 = vshll.u32 %v7195_v46, 16  ;;  %v7193_v54 = vsel %vm827_vm4, %v7142_v58, %v7068_v19 }
 0x483   : > { %v7393_v31 = vrot.slane %v7391_v53, 3  ;;  %v6189_v32 = vsel %vm1351_vm5, %v6180_v26, %v6188_v47  ;;  %9434 = vmatmul.mubr.msk.bf16.gmra.mxu1 %vm1560_vm6, %v7382_v60  ;;  %v7383_v9 = vshrl.u32 %v7193_v54, 16  ;;  %v7386_v23 = vshll.u32 %v7193_v54, 16 }
 0x484   : > { %v7396_v4 = vrot.slane %v7394_v12, 4  ;;  %9385 = vmatprep.mubr.msk.bf16.mxu0 %vm1560_vm6, %v6189_v32  ;;  %v6197_v1 = vsel %vm1351_vm5, %v6188_v47, %v6196_v15 }
 0x485   : > { %v7385_v38 = vrot.slane %v7383_v9, 3  ;;  %v7388_v13 = vrot.slane %v7386_v23, 4 }
 0x486   : > { %v7397_v51 = vor.u32 %v7396_v4, %v7393_v31 }
 0x487   : > { %v7389_v16 = vor.u32 %v7388_v13, %v7385_v38 }
 0x488   : > { %9386 = vmatmul.mubr.msk.bf16.gmra.mxu0 %vm1560_vm6, %v6197_v1 }
 0x489   : > { %v7390_v30 = vsel %vm1351_vm5, %v7381_v11, %v7389_v16  ;;  %v7398_v50 = vsel %vm1351_vm5, %v7389_v16, %v7397_v51 }
 0x48a   : > { %9437 = vmatprep.mubr.msk.bf16.mxu1 %vm1560_vm6, %v7390_v30  ;;  %v9291_v8 = vpop.f32.mrf.mxu1 }
 0x48b   : > { %9438 = vmatmul.mubr.msk.bf16.gmra.mxu1 %vm1560_vm6, %v7398_v50 }
 0x48c   : > { %v5808_v39 = vpop.f32.mrf.mxu1 }
 0x48e   : > { %v14732_v55 = vpop.f32.mrf.mxu1 }
 0x490   : > { %v14734_v27 = vpop.f32.mrf.mxu1 }
 0x492   : > { %v14736_v49 = vpop.f32.mrf.mxu1 }
 0x494   : > { %v14738_v10 = vpop.f32.mrf.mxu1 }
 0x496   : > { %v14740_v26 = vpop.f32.mrf.mxu1 }
 0x498   : > { %v14742_v57 = vpop.f32.mrf.mxu1 }
 0x49a   : > { %v14744_v5 = vpop.f32.mrf.mxu1 }
 0x49c   : > { %v14746_v44 = vpop.f32.mrf.mxu1 }
 0x49e   : > { %v14748_v43 = vpop.f32.mrf.mxu1 }
 0x4a0   : > { %v14750_v63 = vpop.f32.mrf.mxu1 }
 0x4a2   : > { %v14752_v14 = vpop.f32.mrf.mxu1 }
 0x4a4   : > { %v14754_v7 = vpop.f32.mrf.mxu1 }
 0x4a6   : > { %v14756_v2 = vpop.f32.mrf.mxu1 }
 0x4a8   : > { %v14758_v20 = vpop.f32.mrf.mxu1 }
 0x4aa   : > { %v14760_v17 = vpop.f32.mrf.mxu1 }
 0x4ac   : > { %v14762_v35 = vpop.f32.mrf.mxu1 }
 0x4ae   : > { %v14764_v34 = vpop.f32.mrf.mxu1 }
 0x4b0   : > { %v14766_v18 = vpop.f32.mrf.mxu1 }
 0x4b2   : > { %v14768_v33 = vpop.f32.mrf.mxu1 }
 0x4b4   : > { %v14770_v24 = vpop.f32.mrf.mxu1 }
 0x4b6   : > { %v14772_v28 = vpop.f32.mrf.mxu1 }
 0x4b8   : > { %v14774_v11 = vpop.f32.mrf.mxu1 }
 0x4ba   : > { %v14776_v22 = vpop.f32.mrf.mxu1 }
 0x4bc   : > { %v14778_v3 = vpop.f32.mrf.mxu1 }
 0x4be   : > { %v14780_v62 = vpop.f32.mrf.mxu1 }
 0x4c0   : > { %v14782_v21 = vpop.f32.mrf.mxu1 }
 0x4c2   : > { %v14784_v36 = vpop.f32.mrf.mxu1 }
 0x4c4   : > { %v14786_v52 = vpop.f32.mrf.mxu1 }
 0x4c6   : > { %v14788_v37 = vpop.f32.mrf.mxu1 }
 0x4c8   : > { %v14790_v56 = vpop.f32.mrf.mxu1 }
 0x4ca   : > { %v14792_v0 = vpop.f32.mrf.mxu1 }
 0x4cc   : > { %v14794_v45 = vpop.f32.mrf.mxu1 }
 0x4ce   : > { %v14796_v29 = vpop.f32.mrf.mxu1 }
 0x4d0   : > { %v14798_v40 = vpop.f32.mrf.mxu1 }
 0x4d1   : > { %16425 = vst [vmem:[#allocation58_spill] sm:$0xff] %v14798_v40 }
 0x4d2   : > { %v14800_v42 = vpop.f32.mrf.mxu1 }
 0x4d3   : > { %16426 = vst [vmem:[#allocation8_spill] sm:$0xff] %v14800_v42 }
 0x4d4   : > { %v14802_v48 = vpop.f32.mrf.mxu1 }
 0x4d5   : > { %16427 = vst [vmem:[#allocation59_spill] sm:$0xff] %v14802_v48 }
 0x4d6   : > { %v14804_v59 = vpop.f32.mrf.mxu1 }
 0x4d7   : > { %16428 = vst [vmem:[#allocation76_spill] sm:$0xff] %v14804_v59 }
 0x4d8   : > { %v14806_v41 = vpop.f32.mrf.mxu1 }
 0x4d9   : > { %16429 = vst [vmem:[#allocation60_spill] sm:$0xff] %v14806_v41 }
 0x4da   : > { %v14808_v6 = vpop.f32.mrf.mxu1 }
 0x4db   : > { %16430 = vst [vmem:[#allocation11_spill] sm:$0xff] %v14808_v6 }
 0x4dc   : > { %v14810_v61 = vpop.f32.mrf.mxu1 }
 0x4dd   : > { %16431 = vst [vmem:[#allocation62_spill] sm:$0xff] %v14810_v61 }
 0x4de   : > { %v14812_v46 = vpop.f32.mrf.mxu1 }
 0x4df   : > { %16432 = vst [vmem:[#allocation63_spill] sm:$0xff] %v14812_v46 }
 0x4e0   : > { %v14814_v47 = vpop.f32.mrf.mxu1 }
 0x4e1   : > { %16433 = vst [vmem:[#allocation64_spill] sm:$0xff] %v14814_v47 }
 0x4e4   : > { %v14816_v25 = vpop.f32.mrf.mxu1 }
 0x4e5   : > { %16434 = vst [vmem:[#allocation6_spill] sm:$0xff] %v14816_v25 }
 0x4e6   : > { %v14818_v60 = vpop.f32.mrf.mxu1  ;;  %v9343_v53 = vpop.f32.mrf.mxu0 }
 0x4e7   : > { %16435 = vst [vmem:[#allocation65_spill] sm:$0xff] %v14818_v60  ;;  %v6325_v15 = vadd.f32 %v9343_v53, %v9291_v8 }
 0x4e8   : > { %v14820_v58 = vpop.f32.mrf.mxu1  ;;  %v6316_v12 = vpop.f32.mrf.mxu0 }
 0x4e9   : > { %16436 = vst [vmem:[#allocation67_spill] sm:$0xff] %v14820_v58  ;;  %v6317_v32 = vadd.f32 %v6316_v12, %v5808_v39 }
 0x4ea   : > { %v14822_v19 = vpop.f32.mrf.mxu1  ;;  %v9344_v31 = vpop.f32.mrf.mxu0 }
 0x4eb   : > { %16437 = vst [vmem:[#allocation68_spill] sm:$0xff] %v14822_v19  ;;  %v6328_v53 = vadd.f32 %v9344_v31, %v14732_v55 }
 0x4ec   : > { %v9395_v54 = vpop.f32.mrf.mxu1  ;;  %v6319_v9 = vpop.f32.mrf.mxu0 }
 0x4ed   : > { %v14824_v4 = vadd.f32 %v9395_v54, %v6325_v15 }
 0x4ee   : > { %v7517_v23 = vpop.f32.mrf.mxu1 }
 0x4ef   : > { %16438 = vst [vmem:[#allocation69_spill] sm:$0xff] %v14824_v4  ;;  %v14826_v1 = vadd.f32 %v7517_v23, %v6317_v32  ;;  %v6320_v23 = vadd.f32 %v6319_v9, %v14734_v27 }
 0x4f0   : > { %v9396_v51 = vpop.f32.mrf.mxu1 }
 0x4f1   : > { %16439 = vst [vmem:[#allocation71_spill] sm:$0xff] %v14826_v1  ;;  %v9347_v38 = vpop.f32.mrf.mxu0  ;;  %v14829_v12 = vadd.f32 %v9396_v51, %v6328_v53 }
 0x4f2   : > { %v7520_v13 = vpop.f32.mrf.mxu1  ;;  %v6341_v47 = vadd.f32 %v9347_v38, %v14736_v49  ;;  %v7849_v49 = vmul.f32 %v14826_v1, %v14826_v1  ;;  %v7818_v38 = vsel %vm751_vm3, %v14824_v4, 0.0 }
 0x4f3   : > { %v6332_v16 = vpop.f32.mrf.mxu0  ;;  %16440 = vst [vmem:[#allocation72_spill] sm:$0xff] %v14829_v12  ;;  %v7852_v55 = vmul.f32 %v14829_v12, %v14829_v12  ;;  %v14839_v31 = vadd.f32 %v7520_v13, %v6320_v23 }
 0x4f4   : > { %v6333_v15 = vadd.f32 %v6332_v16, %v14738_v10 }
 0x4f5   : > { %v9399_v30 = vpop.f32.mrf.mxu1  ;;  %v9348_v50 = vpop.f32.mrf.mxu0  ;;  %16442 = vst [vmem:[#allocation42_spill] sm:$0xff] %v14839_v31  ;;  %v7898_v13 = vsel %vm751_vm3, %v7852_v55, 0.0  ;;  %v7897_v55 = vsel %vm751_vm3, %v7849_v49, 0.0 }
 0x4f6   : > { %v6344_v6 = vadd.f32 %v9348_v50, %v14740_v26  ;;  %v14841_v51 = vadd.f32 %v9399_v30, %v6341_v47  ;;  %v7851_v47 = vmul.f32 %v14824_v4, %v14824_v4  ;;  %v7850_v30 = vmul.f32 %v14839_v31, %v14839_v31 }
 0x4f7   : > { %v7533_v58 = vpop.f32.mrf.mxu1  ;;  %v6335_v60 = vpop.f32.mrf.mxu0  ;;  %v7899_v48 = vadd.f32 %v7898_v13, %v7897_v55 }
 0x4f8   : > { %v14834_v46 = vadd.f32 %v7533_v58, %v6333_v15  ;;  %16443 = vst [vmem:[#allocation25_spill] sm:$0xff] %v14841_v51  ;;  %v6336_v10 = vadd.f32 %v6335_v60, %v14742_v57  ;;  %v7757_v57 = vsel %vm751_vm3, %v14829_v12, 0.0  ;;  %v7756_v60 = vsel %vm751_vm3, %v14826_v1, 0.0 }
 0x4f9   : > { %v9400_v25 = vpop.f32.mrf.mxu1  ;;  %v7855_v50 = vmul.f32 %v14841_v51, %v14841_v51  ;;  %v7758_v4 = vadd.f32 %v7757_v57, %v7756_v60  ;;  %v7759_v49 = vsel %vm751_vm3, %v14841_v51, 0.0 }
 0x4fa   : > { %16441 = vst [vmem:[#allocation23_spill] sm:$0xff] %v14834_v46  ;;  %v14844_v16 = vadd.f32 %v9400_v25, %v6344_v6  ;;  %v7853_v26 = vmul.f32 %v14834_v46, %v14834_v46 }
 0x4fb   : > { %v9351_v19 = vpop.f32.mrf.mxu0  ;;  %v7536_v8 = vpop.f32.mrf.mxu1 }
 0x4fc   : > { %16444 = vst [vmem:[#allocation74_spill] sm:$0xff] %v14844_v16  ;;  %v14850_v58 = vadd.f32 %v7536_v8, %v6336_v10  ;;  %v7788_v8 = vsel %vm751_vm3, %v14834_v46, 0.0  ;;  %v6357_v53 = vadd.f32 %v9351_v19, %v14744_v5  ;;  %v7856_v15 = vmul.f32 %v14844_v16, %v14844_v16 }
 0x4fd   : > { %v6348_v39 = vpop.f32.mrf.mxu0  ;;  %v7929_v1 = vsel %vm751_vm3, %v7853_v26, 0.0  ;;  %v7787_v46 = vsel %vm751_vm3, %v14839_v31, 0.0  ;;  %v7900_v26 = vsel %vm751_vm3, %v7855_v50, 0.0  ;;  %v7790_v13 = vsel %vm751_vm3, %v14844_v16, 0.0 }
 0x4fe   : > { %v9403_v32 = vpop.f32.mrf.mxu1  ;;  %16445 = vst [vmem:[#allocation73_spill] sm:$0xff] %v14850_v58  ;;  %v6349_v23 = vadd.f32 %v6348_v39, %v14746_v44  ;;  %v7854_v59 = vmul.f32 %v14850_v58, %v14850_v58  ;;  %v7928_v39 = vsel %vm751_vm3, %v7850_v30, 0.0  ;;  %v7789_v57 = vadd.f32 %v7788_v8, %v7787_v46 }
 0x4ff   : > { %v9352_v54 = vpop.f32.mrf.mxu0  ;;  %v14877_v5 = vadd.f32 %v9403_v32, %v6357_v53  ;;  %v7930_v60 = vadd.f32 %v7929_v1, %v7928_v39  ;;  %v7931_v55 = vsel %vm751_vm3, %v7856_v15, 0.0  ;;  %v7959_v39 = vsel %vm751_vm3, %v7851_v47, 0.0 }
 0x500   : > { %v7549_v41 = vpop.f32.mrf.mxu1  ;;  %v6360_v32 = vadd.f32 %v9352_v54, %v14748_v43  ;;  %v7960_v30 = vsel %vm751_vm3, %v7854_v59, 0.0  ;;  %v7791_v16 = vadd.f32 %v7790_v13, %v7789_v57 }
 0x501   : > { %v6351_v61 = vpop.f32.mrf.mxu0  ;;  %v14879_v19 = vadd.f32 %v7549_v41, %v6349_v23  ;;  %v7819_v23 = vsel %vm751_vm3, %v14850_v58, 0.0  ;;  %v7792_v46 = vsel %vm751_vm3, %v14877_v5, 0.0  ;;  %v7932_v31 = vadd.f32 %v7931_v55, %v7930_v60 }
 0x502   : > { %v9404_v9 = vpop.f32.mrf.mxu1  ;;  %v6352_v51 = vadd.f32 %v6351_v61, %v14750_v63  ;;  %v7901_v61 = vadd.f32 %v7900_v26, %v7899_v48  ;;  %v7793_v40 = vadd.f32 %v7792_v46, %v7791_v16 }
 0x503   : > { %v7857_v1 = vmul.f32 %v14879_v19, %v14879_v19  ;;  %v14898_v8 = vadd.f32 %v9404_v9, %v6360_v32  ;;  %v7821_v47 = vsel %vm751_vm3, %v14879_v19, 0.0 }
 0x504   : > { %v7552_v25 = vpop.f32.mrf.mxu1 }
 0x505   : > { %v9355_v27 = vpop.f32.mrf.mxu0  ;;  %v14902_v59 = vadd.f32 %v7552_v25, %v6352_v51  ;;  %v7962_v51 = vsel %vm751_vm3, %v7857_v1, 0.0 }
 0x506   : > { %v6373_v50 = vadd.f32 %v9355_v27, %v14752_v14  ;;  %v7760_v14 = vadd.f32 %v7759_v49, %v7758_v4  ;;  %v7859_v27 = vmul.f32 %v14877_v5, %v14877_v5  ;;  %v7860_v4 = vmul.f32 %v14898_v8, %v14898_v8 }
 0x507   : > { %v6364_v6 = vpop.f32.mrf.mxu0 }
 0x508   : > { %v9407_v12 = vpop.f32.mrf.mxu1  ;;  %v6365_v43 = vadd.f32 %v6364_v6, %v14754_v7  ;;  %v7820_v7 = vadd.f32 %v7819_v23, %v7818_v38  ;;  %v7961_v6 = vadd.f32 %v7960_v30, %v7959_v39  ;;  %v7858_v38 = vmul.f32 %v14902_v59, %v14902_v59 }
 0x509   : > { %v9356_v10 = vpop.f32.mrf.mxu0  ;;  %v14904_v63 = vadd.f32 %v9407_v12, %v6373_v50  ;;  %v7933_v26 = vsel %vm751_vm3, %v7859_v27, 0.0 }
 0x50a   : > { %v7565_v44 = vpop.f32.mrf.mxu1  ;;  %v6376_v48 = vadd.f32 %v9356_v10, %v14756_v2  ;;  %v7822_v55 = vadd.f32 %v7821_v47, %v7820_v7  ;;  %v7963_v23 = vadd.f32 %v7962_v51, %v7961_v6 }
 0x50b   : > { %v6367_v42 = vpop.f32.mrf.mxu0  ;;  %v14908_v58 = vadd.f32 %v7565_v44, %v6365_v43  ;;  %v7761_v44 = vsel %vm751_vm3, %v14902_v59, 0.0  ;;  %v7863_v16 = vmul.f32 %v14904_v63, %v14904_v63 }
 0x50c   : > { %v9408_v53 = vpop.f32.mrf.mxu1  ;;  %v6368_v49 = vadd.f32 %v6367_v42, %v14758_v20  ;;  %v7823_v20 = vsel %vm751_vm3, %v14898_v8, 0.0  ;;  %v7964_v42 = vsel %vm751_vm3, %v7860_v4, 0.0  ;;  %v7762_v46 = vadd.f32 %v7761_v44, %v7760_v14 }
 0x50d   : > { %v9359_v41 = vpop.f32.mrf.mxu0  ;;  %v7861_v57 = vmul.f32 %v14908_v58, %v14908_v58  ;;  %v14926_v60 = vadd.f32 %v9408_v53, %v6376_v48  ;;  %v7763_v30 = vsel %vm751_vm3, %v14908_v58, 0.0  ;;  %v7966_v39 = vsel %vm751_vm3, %v7863_v16, 0.0 }
 0x50e   : > { %v7568_v15 = vpop.f32.mrf.mxu1  ;;  %v7764_v27 = vadd.f32 %v7763_v30, %v7762_v46  ;;  %v7965_v44 = vadd.f32 %v7964_v42, %v7963_v23 }
 0x50f   : > { %v6380_v54 = vpop.f32.mrf.mxu0  ;;  %16446 = vst [vmem:[#allocation75_spill] sm:$0xff] %v14926_v60  ;;  %v14931_v50 = vadd.f32 %v7568_v15, %v6368_v49  ;;  %v6389_v15 = vadd.f32 %v9359_v41, %v14760_v17  ;;  %v7904_v7 = vsel %vm751_vm3, %v7861_v57, 0.0  ;;  %v7765_v6 = vsel %vm751_vm3, %v14926_v60, 0.0 }
 0x510   : > { %v9411_v32 = vpop.f32.mrf.mxu1  ;;  %v6381_v2 = vadd.f32 %v6380_v54, %v14762_v35  ;;  %v7902_v35 = vsel %vm751_vm3, %v7858_v38, 0.0  ;;  %v7825_v54 = vsel %vm751_vm3, %v14904_v63, 0.0  ;;  %v7864_v14 = vmul.f32 %v14926_v60, %v14926_v60 }
 0x511   : > { %v9360_v9 = vpop.f32.mrf.mxu0  ;;  %v7862_v4 = vmul.f32 %v14931_v50, %v14931_v50  ;;  %v7824_v41 = vadd.f32 %v7823_v20, %v7822_v55  ;;  %v7903_v38 = vadd.f32 %v7902_v35, %v7901_v61  ;;  %v7794_v30 = vsel %vm751_vm3, %v14931_v50, 0.0 }
 0x512   : > { %v7581_v25 = vpop.f32.mrf.mxu1  ;;  %v6392_v48 = vadd.f32 %v9360_v9, %v14764_v34  ;;  %v7967_v9 = vadd.f32 %v7966_v39, %v7965_v44  ;;  %v7906_v61 = vsel %vm751_vm3, %v7864_v14, 0.0  ;;  %v7795_v20 = vadd.f32 %v7794_v30, %v7793_v40 }
 0x513   : > { %v6383_v12 = vpop.f32.mrf.mxu0  ;;  %v14936_v1 = vadd.f32 %v7581_v25, %v6381_v2  ;;  %v14951_v25 = vadd.f32 %v9411_v32, %v6389_v15  ;;  %v7934_v2 = vadd.f32 %v7933_v26, %v7932_v31  ;;  %v7826_v34 = vadd.f32 %v7825_v54, %v7824_v41 }
 0x514   : > { %v9412_v13 = vpop.f32.mrf.mxu1  ;;  %v6384_v17 = vadd.f32 %v6383_v12, %v14766_v18  ;;  %v7905_v32 = vadd.f32 %v7904_v7, %v7903_v38  ;;  %v7766_v18 = vadd.f32 %v7765_v6, %v7764_v27  ;;  %v7935_v23 = vsel %vm751_vm3, %v7862_v4, 0.0 }
 0x515   : > { %v9363_v10 = vpop.f32.mrf.mxu0  ;;  %v7865_v16 = vmul.f32 %v14936_v1, %v14936_v1  ;;  %v14958_v46 = vadd.f32 %v9412_v13, %v6392_v48  ;;  %v7867_v31 = vmul.f32 %v14951_v25, %v14951_v25  ;;  %v7796_v13 = vsel %vm751_vm3, %v14936_v1, 0.0 }
 0x516   : > { %v7584_v43 = vpop.f32.mrf.mxu1  ;;  %v7936_v40 = vadd.f32 %v7935_v23, %v7934_v2  ;;  %v7797_v4 = vadd.f32 %v7796_v13, %v7795_v20 }
 0x517   : > { %v6396_v53 = vpop.f32.mrf.mxu0  ;;  %v14960_v60 = vadd.f32 %v7584_v43, %v6384_v17  ;;  %v7937_v42 = vsel %vm751_vm3, %v7865_v16, 0.0  ;;  %v6405_v43 = vadd.f32 %v9363_v10, %v14768_v33  ;;  %v7868_v39 = vmul.f32 %v14958_v46, %v14958_v46 }
 0x518   : > { %v6397_v26 = vadd.f32 %v6396_v53, %v14770_v24  ;;  %v7907_v24 = vadd.f32 %v7906_v61, %v7905_v32  ;;  %v7767_v53 = vsel %vm751_vm3, %v14951_v25, 0.0  ;;  %v7908_v14 = vsel %vm751_vm3, %v7867_v31, 0.0 }
 0x519   : > { %v9364_v47 = vpop.f32.mrf.mxu0  ;;  %v9415_v51 = vpop.f32.mrf.mxu1  ;;  %v7866_v15 = vmul.f32 %v14960_v60, %v14960_v60  ;;  %v7938_v41 = vadd.f32 %v7937_v42, %v7936_v40  ;;  %v7827_v44 = vsel %vm751_vm3, %v14960_v60, 0.0  ;;  %v7768_v30 = vadd.f32 %v7767_v53, %v7766_v18 }
 0x51a   : > { %v14980_v6 = vadd.f32 %v9415_v51, %v6405_v43  ;;  %v6408_v38 = vadd.f32 %v9364_v47, %v14772_v28  ;;  %v7909_v32 = vadd.f32 %v7908_v14, %v7907_v24  ;;  %v7828_v18 = vadd.f32 %v7827_v44, %v7826_v34 }
 0x51b   : > { %v6399_v49 = vpop.f32.mrf.mxu0  ;;  %v7597_v57 = vpop.f32.mrf.mxu1 }
 0x51c   : > { %v6400_v27 = vadd.f32 %v6399_v49, %v14774_v11  ;;  %v14976_v7 = vadd.f32 %v7597_v57, %v6397_v26  ;;  %v7798_v11 = vsel %vm751_vm3, %v14958_v46, 0.0  ;;  %v7939_v49 = vsel %vm751_vm3, %v7868_v39, 0.0 }
 0x51d   : > { %v9367_v12 = vpop.f32.mrf.mxu0  ;;  %v9416_v55 = vpop.f32.mrf.mxu1  ;;  %v7968_v57 = vsel %vm751_vm3, %v7866_v15, 0.0  ;;  %v7800_v61 = vsel %vm751_vm3, %v14980_v6, 0.0  ;;  %v7871_v23 = vmul.f32 %v14980_v6, %v14980_v6  ;;  %v7799_v31 = vadd.f32 %v7798_v11, %v7797_v4 }
 0x51e   : > { %v7829_v26 = vsel %vm751_vm3, %v14976_v7, 0.0  ;;  %v15003_v20 = vadd.f32 %v9416_v55, %v6408_v38  ;;  %v7940_v42 = vadd.f32 %v7939_v49, %v7938_v41  ;;  %v7969_v43 = vadd.f32 %v7968_v57, %v7967_v9 }
 0x51f   : > { %v6412_v35 = vpop.f32.mrf.mxu0  ;;  %v7600_v54 = vpop.f32.mrf.mxu1  ;;  %v7801_v15 = vadd.f32 %v7800_v61, %v7799_v31  ;;  %v6421_v24 = vadd.f32 %v9367_v12, %v14776_v22  ;;  %v7941_v55 = vsel %vm751_vm3, %v7871_v23, 0.0  ;;  %v7830_v53 = vadd.f32 %v7829_v26, %v7828_v18 }
 0x520   : > { %v6413_v48 = vadd.f32 %v6412_v35, %v14778_v3  ;;  %v14984_v17 = vadd.f32 %v7600_v54, %v6400_v27  ;;  %v7869_v3 = vmul.f32 %v14976_v7, %v14976_v7  ;;  %v7831_v41 = vsel %vm751_vm3, %v15003_v20, 0.0 }
 0x521   : > { %v9368_v33 = vpop.f32.mrf.mxu0 }
 0x522   : > { %v9419_v10 = vpop.f32.mrf.mxu1  ;;  %v7870_v13 = vmul.f32 %v14984_v17, %v14984_v17  ;;  %v6424_v35 = vadd.f32 %v9368_v33, %v14780_v62  ;;  %v7970_v27 = vsel %vm751_vm3, %v7869_v3, 0.0  ;;  %v7769_v14 = vsel %vm751_vm3, %v14984_v17, 0.0 }
 0x523   : > { %v6415_v51 = vpop.f32.mrf.mxu0  ;;  %v7872_v33 = vmul.f32 %v15003_v20, %v15003_v20  ;;  %v7971_v12 = vadd.f32 %v7970_v27, %v7969_v43  ;;  %v7770_v49 = vadd.f32 %v7769_v14, %v7768_v30 }
 0x524   : > { %v7613_v16 = vpop.f32.mrf.mxu1  ;;  %v7910_v4 = vsel %vm751_vm3, %v7870_v13, 0.0  ;;  %v6416_v22 = vadd.f32 %v6415_v51, %v14782_v21 }
 0x525   : > { %v14995_v2 = vadd.f32 %v7613_v16, %v6413_v48  ;;  %v15020_v48 = vadd.f32 %v9419_v10, %v6421_v24  ;;  %v7911_v61 = vadd.f32 %v7910_v4, %v7909_v32  ;;  %v7972_v30 = vsel %vm751_vm3, %v7872_v33, 0.0 }
 0x526   : > { %v9371_v28 = vpop.f32.mrf.mxu0  ;;  %v9420_v47 = vpop.f32.mrf.mxu1  ;;  %v7973_v24 = vadd.f32 %v7972_v30, %v7971_v12 }
 0x527   : > { %v7873_v40 = vmul.f32 %v14995_v2, %v14995_v2  ;;  %v15015_v34 = vadd.f32 %v9420_v47, %v6424_v35  ;;  %v6437_v11 = vadd.f32 %v9371_v28, %v14784_v36  ;;  %v7771_v57 = vsel %vm751_vm3, %v14995_v2, 0.0 }
 0x528   : > { %v6428_v54 = vpop.f32.mrf.mxu0  ;;  %v7616_v39 = vpop.f32.mrf.mxu1  ;;  %v7942_v28 = vadd.f32 %v7941_v55, %v7940_v42  ;;  %v7832_v47 = vadd.f32 %v7831_v41, %v7830_v53  ;;  %v7833_v31 = vsel %vm751_vm3, %v15020_v48, 0.0  ;;  %v7875_v26 = vmul.f32 %v15020_v48, %v15020_v48 }
 0x529   : > { %v6429_v44 = vadd.f32 %v6428_v54, %v14786_v52  ;;  %v7912_v3 = vsel %vm751_vm3, %v7873_v40, 0.0  ;;  %v15030_v10 = vadd.f32 %v7616_v39, %v6416_v22  ;;  %v7876_v21 = vmul.f32 %v15015_v34, %v15015_v34 }
 0x52a   : > { %v9372_v9 = vpop.f32.mrf.mxu0  ;;  %v9423_v62 = vpop.f32.mrf.mxu1  ;;  %v7772_v32 = vadd.f32 %v7771_v57, %v7770_v49  ;;  %v7913_v13 = vadd.f32 %v7912_v3, %v7911_v61  ;;  %v7773_v18 = vsel %vm751_vm3, %v15015_v34, 0.0  ;;  %v7974_v22 = vsel %vm751_vm3, %v7875_v26, 0.0  ;;  %v16447_v26 = vld [vmem:[#allocation58_spill] sm:$0xff] }
 0x52b   : > { %v15034_v51 = vadd.f32 %v9423_v62, %v6437_v11  ;;  %v7802_v54 = vsel %vm751_vm3, %v15030_v10, 0.0  ;;  %v7874_v42 = vmul.f32 %v15030_v10, %v15030_v10  ;;  %v6440_v39 = vadd.f32 %v9372_v9, %v14788_v37 }
 0x52c   : > { %v6431_v38 = vpop.f32.mrf.mxu0  ;;  %v7629_v16 = vpop.f32.mrf.mxu1  ;;  %v7914_v40 = vsel %vm751_vm3, %v7876_v21, 0.0  ;;  %v7774_v12 = vadd.f32 %v7773_v18, %v7772_v32  ;;  %v7803_v41 = vadd.f32 %v7802_v54, %v7801_v15  ;;  %v7975_v54 = vadd.f32 %v7974_v22, %v7973_v24  ;;  %v16449_v22 = vld [vmem:[#allocation59_spill] sm:$0xff] }
 0x52d   : > { %v15036_v23 = vadd.f32 %v7629_v16, %v6429_v44  ;;  %v6432_v27 = vadd.f32 %v6431_v38, %v14790_v56  ;;  %v7879_v55 = vmul.f32 %v15034_v51, %v15034_v51  ;;  %v7834_v56 = vadd.f32 %v7833_v31, %v7832_v47 }
 0x52e   : > { %v9375_v36 = vpop.f32.mrf.mxu0  ;;  %v9424_v52 = vpop.f32.mrf.mxu1  ;;  %v7915_v38 = vadd.f32 %v7914_v40, %v7913_v13  ;;  %v7943_v16 = vsel %vm751_vm3, %v7874_v42, 0.0  ;;  %v7775_v49 = vsel %vm751_vm3, %v15034_v51, 0.0 }
 0x52f   : > { %v7877_v53 = vmul.f32 %v15036_v23, %v15036_v23  ;;  %v7804_v33 = vsel %vm751_vm3, %v15036_v23, 0.0  ;;  %v15058_v4 = vadd.f32 %v9424_v52, %v6440_v39  ;;  %v7916_v3 = vsel %vm751_vm3, %v7879_v55, 0.0 }
 0x530   : > { %v6444_v43 = vpop.f32.mrf.mxu0  ;;  %v7632_v35 = vpop.f32.mrf.mxu1  ;;  %v6453_v21 = vadd.f32 %v9375_v36, %v14792_v0  ;;  %v7944_v13 = vadd.f32 %v7943_v16, %v7942_v28  ;;  %v7917_v28 = vadd.f32 %v7916_v3, %v7915_v38 }
 0x531   : > { %v6445_v37 = vadd.f32 %v6444_v43, %v14794_v45  ;;  %v15061_v9 = vadd.f32 %v7632_v35, %v6432_v27  ;;  %v7805_v45 = vadd.f32 %v7804_v33, %v7803_v41  ;;  %v7945_v61 = vsel %vm751_vm3, %v7877_v53, 0.0 }
 0x532   : > { %v9376_v14 = vpop.f32.mrf.mxu0  ;;  %v9427_v62 = vpop.f32.mrf.mxu1  ;;  %v7806_v15 = vsel %vm751_vm3, %v15058_v4, 0.0  ;;  %v7880_v18 = vmul.f32 %v15058_v4, %v15058_v4  ;;  %v7776_v27 = vadd.f32 %v7775_v49, %v7774_v12  ;;  %v7946_v40 = vadd.f32 %v7945_v61, %v7944_v13 }
 0x533   : > { %v7878_v30 = vmul.f32 %v15061_v9, %v15061_v9  ;;  %v6456_v31 = vadd.f32 %v9376_v14, %v14796_v29  ;;  %v15080_v43 = vadd.f32 %v9427_v62, %v6453_v21  ;;  %v7835_v42 = vsel %vm751_vm3, %v15061_v9, 0.0 }
 0x534   : > { %v6447_v11 = vpop.f32.mrf.mxu0  ;;  %v7645_v44 = vpop.f32.mrf.mxu1  ;;  %v7807_v55 = vadd.f32 %v7806_v15, %v7805_v45  ;;  %v16450_v15 = vld [vmem:[#allocation76_spill] sm:$0xff] }
 0x535   : > { %v15067_v57 = vadd.f32 %v7645_v44, %v6445_v37  ;;  %v6448_v32 = vadd.f32 %v6447_v11, %v16447_v26  ;;  %v7976_v62 = vsel %vm751_vm3, %v7878_v30, 0.0  ;;  %v16448_v37 = vld [vmem:[#allocation8_spill] sm:$0xff]  ;;  %v7947_v11 = vsel %vm751_vm3, %v7880_v18, 0.0 }
 0x536   : > { %v9428_v47 = vpop.f32.mrf.mxu1  ;;  %v7836_v44 = vadd.f32 %v7835_v42, %v7834_v56  ;;  %v7808_v12 = vsel %vm751_vm3, %v15080_v43, 0.0  ;;  %v7883_v56 = vmul.f32 %v15080_v43, %v15080_v43  ;;  %v16451_v18 = vld [vmem:[#allocation60_spill] sm:$0xff] }
 0x537   : > { %v9379_v52 = vpop.f32.mrf.mxu0  ;;  %v7881_v0 = vmul.f32 %v15067_v57, %v15067_v57  ;;  %v15086_v39 = vadd.f32 %v9428_v47, %v6456_v31  ;;  %v7837_v33 = vsel %vm751_vm3, %v15067_v57, 0.0 }
 0x538   : > { %v7648_v35 = vpop.f32.mrf.mxu1  ;;  %v6469_v24 = vadd.f32 %v9379_v52, %v16448_v37  ;;  %v7977_v52 = vadd.f32 %v7976_v62, %v7975_v54  ;;  %v7838_v47 = vadd.f32 %v7837_v33, %v7836_v44 }
 0x539   : > { %v6460_v36 = vpop.f32.mrf.mxu0  ;;  %v15088_v29 = vadd.f32 %v7648_v35, %v6448_v32  ;;  %v7978_v38 = vsel %vm751_vm3, %v7881_v0, 0.0  ;;  %v7884_v3 = vmul.f32 %v15086_v39, %v15086_v39  ;;  %v7948_v32 = vadd.f32 %v7947_v11, %v7946_v40  ;;  %v16452_v11 = vld [vmem:[#allocation11_spill] sm:$0xff] }
 0x53a   : > { %v6461_v41 = vadd.f32 %v6460_v36, %v16449_v22  ;;  %v7839_v13 = vsel %vm751_vm3, %v15086_v39, 0.0  ;;  %v7809_v35 = vadd.f32 %v7808_v12, %v7807_v55  ;;  %v7979_v42 = vadd.f32 %v7978_v38, %v7977_v52 }
 0x53b   : > { %v9380_v53 = vpop.f32.mrf.mxu0  ;;  %v9431_v14 = vpop.f32.mrf.mxu1  ;;  %v7882_v45 = vmul.f32 %v15088_v29, %v15088_v29  ;;  %v7777_v54 = vsel %vm751_vm3, %v15088_v29, 0.0  ;;  %v7980_v33 = vsel %vm751_vm3, %v7884_v3, 0.0  ;;  %v7949_v22 = vsel %vm751_vm3, %v7883_v56, 0.0 }
 0x53c   : > { %v15103_v61 = vadd.f32 %v9431_v14, %v6469_v24  ;;  %v6472_v30 = vadd.f32 %v9380_v53, %v16450_v15  ;;  %v7840_v55 = vadd.f32 %v7839_v13, %v7838_v47  ;;  %v7981_v15 = vadd.f32 %v7980_v33, %v7979_v42 }
 0x53d   : > { %v6463_v16 = vpop.f32.mrf.mxu0  ;;  %v7661_v49 = vpop.f32.mrf.mxu1  ;;  %v7918_v40 = vsel %vm751_vm3, %v7882_v45, 0.0  ;;  %v16453_v45 = vld [vmem:[#allocation62_spill] sm:$0xff] }
 0x53e   : > { %v15105_v21 = vadd.f32 %v7661_v49, %v6461_v41  ;;  %v6464_v0 = vadd.f32 %v6463_v16, %v16451_v18  ;;  %v7887_v37 = vmul.f32 %v15103_v61, %v15103_v61  ;;  %v7778_v16 = vadd.f32 %v7777_v54, %v7776_v27  ;;  %v16455_v54 = vld [vmem:[#allocation63_spill] sm:$0xff] }
 0x53f   : > { %v9432_v26 = vpop.f32.mrf.mxu1  ;;  %v7841_v56 = vsel %vm751_vm3, %v15103_v61, 0.0 }
 0x540   : > { %v9383_v31 = vpop.f32.mrf.mxu0  ;;  %v7885_v36 = vmul.f32 %v15105_v21, %v15105_v21  ;;  %v15117_v14 = vadd.f32 %v9432_v26, %v6472_v30  ;;  %v7779_v41 = vsel %vm751_vm3, %v15105_v21, 0.0  ;;  %v7919_v30 = vadd.f32 %v7918_v40, %v7917_v28 }
 0x541   : > { %v7664_v53 = vpop.f32.mrf.mxu1  ;;  %v6485_v44 = vadd.f32 %v9383_v31, %v16452_v11  ;;  %v7982_v31 = vsel %vm751_vm3, %v7887_v37, 0.0  ;;  %v7780_v18 = vadd.f32 %v7779_v41, %v7778_v16  ;;  %v7950_v40 = vadd.f32 %v7949_v22, %v7948_v32  ;;  %v16456_v41 = vld [vmem:[#allocation64_spill] sm:$0xff] }
 0x542   : > { %v6476_v62 = vpop.f32.mrf.mxu0  ;;  %v15123_v24 = vadd.f32 %v7664_v53, %v6464_v0  ;;  %v7920_v49 = vsel %vm751_vm3, %v7885_v36, 0.0  ;;  %v7888_v3 = vmul.f32 %v15117_v14, %v15117_v14  ;;  %v7781_v42 = vsel %vm751_vm3, %v15117_v14, 0.0 }
 0x543   : > { %v9435_v38 = vpop.f32.mrf.mxu1  ;;  %v6477_v52 = vadd.f32 %v6476_v62, %v16453_v45  ;;  %v7921_v36 = vadd.f32 %v7920_v49, %v7919_v30  ;;  %v7983_v16 = vadd.f32 %v7982_v31, %v7981_v15  ;;  %v16458_v15 = vld [vmem:[#allocation6_spill] sm:$0xff] }
 0x544   : > { %v9384_v12 = vpop.f32.mrf.mxu0  ;;  %v15135_v47 = vadd.f32 %v9435_v38, %v6485_v44  ;;  %v7886_v27 = vmul.f32 %v15123_v24, %v15123_v24  ;;  %v7810_v28 = vsel %vm751_vm3, %v15123_v24, 0.0  ;;  %v7922_v37 = vsel %vm751_vm3, %v7888_v3, 0.0 }
 0x545   : > { %v7677_v13 = vpop.f32.mrf.mxu1  ;;  %v6488_v62 = vadd.f32 %v9384_v12, %v16455_v54  ;;  %v7842_v38 = vadd.f32 %v7841_v56, %v7840_v55  ;;  %v7782_v12 = vadd.f32 %v7781_v42, %v7780_v18  ;;  %v7923_v3 = vadd.f32 %v7922_v37, %v7921_v36 }
 0x546   : > { %16454 = vst [vmem:[#allocation21_spill] sm:$0xff] %v15135_v47  ;;  %v6479_v26 = vpop.f32.mrf.mxu0  ;;  %v15140_v0 = vadd.f32 %v7677_v13, %v6477_v52  ;;  %v7891_v49 = vmul.f32 %v15135_v47, %v15135_v47  ;;  %v7811_v13 = vadd.f32 %v7810_v28, %v7809_v35  ;;  %v7951_v32 = vsel %vm751_vm3, %v7886_v27, 0.0 }
 0x547   : > { %v9436_v33 = vpop.f32.mrf.mxu1  ;;  %v6480_v11 = vadd.f32 %v6479_v26, %v16456_v41  ;;  %v7952_v36 = vadd.f32 %v7951_v32, %v7950_v40  ;;  %v7783_v42 = vsel %vm751_vm3, %v15135_v47, 0.0 }
 0x548   : > { %v9387_v53 = vpop.f32.mrf.mxu0  ;;  %v7889_v44 = vmul.f32 %v15140_v0, %v15140_v0  ;;  %v15153_v45 = vadd.f32 %v9436_v33, %v6488_v62  ;;  %v7812_v26 = vsel %vm751_vm3, %v15140_v0, 0.0  ;;  %v16459_v33 = vld [vmem:[#allocation65_spill] sm:$0xff]  ;;  %v7924_v28 = vsel %vm751_vm3, %v7891_v49, 0.0 }
 0x549   : > { %v7680_v30 = vpop.f32.mrf.mxu1  ;;  %v6501_v56 = vadd.f32 %v9387_v53, %v16458_v15  ;;  %v7813_v41 = vadd.f32 %v7812_v26, %v7811_v13 }
 0x54a   : > { %16457 = vst [vmem:[#allocation78_spill] sm:$0xff] %v15153_v45  ;;  %v6492_v52 = vpop.f32.mrf.mxu0  ;;  %v15156_v22 = vadd.f32 %v7680_v30, %v6480_v11  ;;  %v7953_v55 = vsel %vm751_vm3, %v7889_v44, 0.0  ;;  %v7892_v62 = vmul.f32 %v15153_v45, %v15153_v45  ;;  %v16460_v44 = vld [vmem:[#allocation67_spill] sm:$0xff]  ;;  %v7814_v40 = vsel %vm751_vm3, %v15153_v45, 0.0 }
 0x54b   : > { %v9439_v54 = vpop.f32.mrf.mxu1  ;;  %v6493_v18 = vadd.f32 %v6492_v52, %v16459_v33  ;;  %v7954_v33 = vadd.f32 %v7953_v55, %v7952_v36  ;;  %v16462_v55 = vld [vmem:[#allocation68_spill] sm:$0xff]  ;;  %v7815_v36 = vadd.f32 %v7814_v40, %v7813_v41 }
 0x54c   : > { %v9388_v31 = vpop.f32.mrf.mxu0  ;;  %v7843_v35 = vsel %vm751_vm3, %v15156_v22, 0.0  ;;  %v7890_v27 = vmul.f32 %v15156_v22, %v15156_v22  ;;  %v15172_v53 = vadd.f32 %v9439_v54, %v6501_v56  ;;  %v7955_v56 = vsel %vm751_vm3, %v7892_v62, 0.0 }
 0x54d   : > { %v7693_v37 = vpop.f32.mrf.mxu1  ;;  %v6504_v52 = vadd.f32 %v9388_v31, %v16460_v44  ;;  %v7844_v32 = vadd.f32 %v7843_v35, %v7842_v38 }
 0x54e   : > { %v7984_v11 = vsel %vm751_vm3, %v7890_v27, 0.0  ;;  %v6495_v30 = vpop.f32.mrf.mxu0  ;;  %v15176_v15 = vadd.f32 %v7693_v37, %v6493_v18  ;;  %v7895_v47 = vmul.f32 %v15172_v53, %v15172_v53  ;;  %v7816_v38 = vsel %vm751_vm3, %v15172_v53, 0.0 }
 0x54f   : > { %v9440_v49 = vpop.f32.mrf.mxu1  ;;  %v7985_v54 = vadd.f32 %v7984_v11, %v7983_v16  ;;  %v6496_v18 = vadd.f32 %v6495_v30, %v16462_v55  ;;  %v7956_v30 = vadd.f32 %v7955_v56, %v7954_v33 }
 0x550   : > { %16461 = vst [vmem:[#allocation16_spill] sm:$0xff] %v15176_v15  ;;  %v7845_v13 = vsel %vm751_vm3, %v15176_v15, 0.0  ;;  %v7893_v26 = vmul.f32 %v15176_v15, %v15176_v15  ;;  %v15187_v31 = vadd.f32 %v9440_v49, %v6504_v52  ;;  %v7957_v37 = vsel %vm751_vm3, %v7895_v47, 0.0 }
 0x551   : > { %v7846_v35 = vadd.f32 %v7845_v13, %v7844_v32  ;;  %v7696_v27 = vpop.f32.mrf.mxu1  ;;  %v7784_v52 = vadd.f32 %v7783_v42, %v7782_v12  ;;  %v7817_v49 = vadd.f32 %v7816_v38, %v7815_v36  ;;  %v7925_v32 = vadd.f32 %v7924_v28, %v7923_v3 }
 0x552   : > { %v7986_v62 = vsel %vm751_vm3, %v7893_v26, 0.0  ;;  %v7847_v44 = vsel %vm751_vm3, %v15187_v31, 0.0  ;;  %v7896_v16 = vmul.f32 %v15187_v31, %v15187_v31  ;;  %v15198_v11 = vadd.f32 %v7696_v27, %v6496_v18 }
 0x553   : > { %v7987_v45 = vadd.f32 %v7986_v62, %v7985_v54  ;;  %v7848_v15 = vadd.f32 %v7847_v44, %v7846_v35  ;;  %v7958_v13 = vadd.f32 %v7957_v37, %v7956_v30  ;;  %v7994_v18 = vsel %vm751_vm3, %v7817_v49, 0.0 }
 0x554   : > { %v7988_v41 = vsel %vm751_vm3, %v7896_v16, 0.0  ;;  %v7785_v47 = vsel %vm751_vm3, %v15198_v11, 0.0  ;;  %v7894_v40 = vmul.f32 %v15198_v11, %v15198_v11 }
 0x555   : > { %v7989_v26 = vadd.f32 %v7988_v41, %v7987_v45  ;;  %v7992_v54 = vmul.f32 0.0, %v7848_v15  ;;  %v7786_v55 = vadd.f32 %v7785_v47, %v7784_v52  ;;  %v8008_v33 = vsel %vm751_vm3, %v7958_v13, 0.0 }
 0x556   : > { %v7926_v35 = vsel %vm751_vm3, %v7894_v40, 0.0 }
 0x557   : > { %v8006_v12 = vmul.f32 0.0, %v7989_v26  ;;  %v7927_v42 = vadd.f32 %v7926_v35, %v7925_v32  ;;  %v7993_v3 = vsel %vm751_vm3, %v7786_v55, 0.0  ;;  %v7996_v56 = vsel %vm751_vm3, %v7992_v54, 0.0  ;;  %v15217_v35 = vld [vmem:[%s9835_s17 + $0x10] sm:$0xff]  }
 0x558   : > { %v7995_v28 = vadd.f32 %v7994_v18, %v7993_v3  ;;  %16463 = vst [vmem:[#allocation36_spill] sm:$0xff] %v15217_v35  ;;  %v15220_v18 = vld [vmem:[%s9835_s17 + $0x18] sm:$0xff]   ;;  %v15229_v3 = vld [vmem:[%s9835_s17 + $0x30] sm:$0xff]  }
 0x559   : > { %v8007_v38 = vsel %vm751_vm3, %v7927_v42, 0.0  ;;  %v8010_v45 = vsel %vm751_vm3, %v8006_v12, 0.0  ;;  %16464 = vst [vmem:[#allocation80_spill] sm:$0xff] %v15220_v18  ;;  %v15223_v12 = vld [vmem:[%s9835_s17 + $0x20] sm:$0xff]   ;;  %v15226_v42 = vld [vmem:[%s9835_s17 + $0x28] sm:$0xff]   ;;  %16467 = vst [vmem:[#allocation82_spill] sm:$0xff] %v15229_v3 }
 0x55a   : > { %v7997_v27 = vadd.f32 %v7996_v56, %v7995_v28  ;;  %v8009_v36 = vadd.f32 %v8008_v33, %v8007_v38  ;;  %16465 = vst [vmem:[#allocation77_spill] sm:$0xff] %v15223_v12  ;;  %16466 = vst [vmem:[#allocation24_spill] sm:$0xff] %v15226_v42  ;;  %v15232_v28 = vld [vmem:[%s9835_s17 + $0x38] sm:$0xff]   ;;  %v16487_v38 = vld [vmem:[#allocation71_spill] sm:$0xff] }
 0x55b   : > { %16468 = vst [vmem:[#allocation31_spill] sm:$0xff] %v15232_v28  ;;  %v15294_v56 = vld [vmem:[%s9835_s17 + $0x98] sm:$0xff]  }
 0x55c   : > { %v7998_v15 = vrot.slane %v7997_v27, 4  ;;  %v8011_v37 = vadd.f32 %v8010_v45, %v8009_v36  ;;  %v15239_v36 = vld [vmem:[%s9835_s17 + $0x40] sm:$0xff]   ;;  %v15242_v45 = vld [vmem:[%s9835_s17 + $0x48] sm:$0xff]   ;;  %16480 = vst [vmem:[#allocation28_spill] sm:$0xff] %v15294_v56  ;;  %v16492_v56 = vld [vmem:[#allocation73_spill] sm:$0xff] }
 0x55d   : > { %16469 = vst [vmem:[#allocation79_spill] sm:$0xff] %v15239_v36  ;;  %16470 = vst [vmem:[#allocation84_spill] sm:$0xff] %v15242_v45 }
 0x55e   : > { %v7999_v62 = vadd.f32 %v7998_v15, %v7997_v27  ;;  %v8012_v44 = vrot.slane %v8011_v37, 4  ;;  %v15284_v27 = vld [vmem:[%s9835_s17 + $0x88] sm:$0xff]  }
 0x55f   : > { %16478 = vst [vmem:[#allocation86_spill] sm:$0xff] %v15284_v27 }
 0x560   : > { %v8000_v16 = vrot.slane %v7999_v62, 2  ;;  %v8013_v52 = vadd.f32 %v8012_v44, %v8011_v37  ;;  %v15268_v44 = vld [vmem:[%s9835_s17 + $0x70] sm:$0xff]   ;;  %v16490_v37 = vld [vmem:[#allocation72_spill] sm:$0xff] }
 0x561   : > { %16475 = vst [vmem:[#allocation22_spill] sm:$0xff] %v15268_v44 }
 0x562   : > { %v8001_v30 = vadd.f32 %v8000_v16, %v7999_v62  ;;  %v8014_v49 = vrot.slane %v8013_v52, 2  ;;  %v15248_v16 = vld [vmem:[%s9835_s17 + $0x50] sm:$0xff]   ;;  %v15278_v62 = vld [vmem:[%s9835_s17 + $0x80] sm:$0xff]  }
 0x563   : > { %16471 = vst [vmem:[#allocation81_spill] sm:$0xff] %v15248_v16  ;;  %16477 = vst [vmem:[#allocation85_spill] sm:$0xff] %v15278_v62  ;;  %v15320_v62 = vld [vmem:[%s9835_s17 + $0xc0] sm:$0xff]  }
 0x564   : > { %v8002_v32 = vrot.slane %v8001_v30, 1  ;;  %v8015_v41 = vadd.f32 %v8014_v49, %v8013_v52  ;;  %v15251_v52 = vld [vmem:[%s9835_s17 + $0x58] sm:$0xff]   ;;  %v15307_v49 = vld [vmem:[%s9835_s17 + $0xb0] sm:$0xff]   ;;  %16485 = vst [vmem:[#allocation13_spill] sm:$0xff] %v15320_v62 }
 0x565   : > { %16472 = vst [vmem:[#allocation40_spill] sm:$0xff] %v15251_v52  ;;  %16483 = vst [vmem:[#allocation44_spill] sm:$0xff] %v15307_v49 }
 0x566   : > { %v8003_v47 = vadd.f32 %v8002_v32, %v8001_v30  ;;  %v8016_v40 = vrot.slane %v8015_v41, 1  ;;  %v15265_v30 = vld [vmem:[%s9835_s17 + $0x68] sm:$0xff]   ;;  %v15314_v32 = vld [vmem:[%s9835_s17 + $0xb8] sm:$0xff]  }
 0x567   : > { %16474 = vst [vmem:[#allocation83_spill] sm:$0xff] %v15265_v30  ;;  %16484 = vst [vmem:[#allocation66_spill] sm:$0xff] %v15314_v32  ;;  %v16488_v30 = vld [vmem:[#allocation42_spill] sm:$0xff] }
 0x568   : > { %v8017_v13 = vadd.f32 %v8016_v40, %v8015_v41  ;;  %v15212_v26 = vmul.f32 0.00390625, %v8003_v47  ;;  %v15258_v47 = vld [vmem:[%s9835_s17 + $0x60] sm:$0xff]   ;;  %v15287_v41 = vld [vmem:[%s9835_s17 + $0x90] sm:$0xff]  }
 0x569   : > { %16473 = vst [vmem:[#allocation39_spill] sm:$0xff] %v15258_v47  ;;  %16479 = vst [vmem:[#allocation30_spill] sm:$0xff] %v15287_v41  ;;  %v15304_v47 = vld [vmem:[%s9835_s17 + $0xa8] sm:$0xff]   ;;  %v16491_v40 = vld [vmem:[#allocation23_spill] sm:$0xff] }
 0x56a   : > { %v8019_v54 = vmul.f32 0.00390625, %v8017_v13  ;;  %v8020_v55 = vmul.f32 %v15212_v26, %v15212_v26  ;;  %v15275_v13 = vld [vmem:[%s9835_s17 + $0x78] sm:$0xff]   ;;  %16482 = vst [vmem:[#allocation29_spill] sm:$0xff] %v15304_v47  ;;  %v8023_v44 = vsub.f32 %v16487_v38, %v15212_v26  ;;  %v8026_v33 = vsub.f32 %v16490_v37, %v15212_v26 }
 0x56b   : > { %16476 = vst [vmem:[#allocation37_spill] sm:$0xff] %v15275_v13  ;;  %v15323_v13 = vld [vmem:[%s9835_s17 + $0xc8] sm:$0xff]   ;;  %v8027_v32 = vsub.f32 %v16491_v40, %v15212_v26  ;;  %v8028_v41 = vsub.f32 %v16492_v56, %v15212_v26  ;;  %v16494_v38 = vld [vmem:[#allocation74_spill] sm:$0xff]  ;;  %v8033_v37 = vsub.f32 %v14877_v5, %v15212_v26  ;;  %v8034_v40 = vsub.f32 %v14898_v8, %v15212_v26 }
 0x56c   : > { %v8021_v15 = vsub.f32 %v8019_v54, %v8020_v55  ;;  %v15297_v55 = vld [vmem:[%s9835_s17 + $0xa0] sm:$0xff]   ;;  %16486 = vst [vmem:[#allocation53_spill] sm:$0xff] %v15323_v13  ;;  %v8030_v62 = vsub.f32 %v16494_v38, %v15212_v26  ;;  %v8035_v56 = vsub.f32 %v14908_v58, %v15212_v26  ;;  %v8037_v38 = vsub.f32 %v14904_v63, %v15212_v26  ;;  %s9448_s17 = smul.u32 384, %s16574_s13 }
 0x56d   : > { %16481 = vst [vmem:[#allocation14_spill] sm:$0xff] %v15297_v55  ;;  %v8040_v5 = vsub.f32 %v14960_v60, %v15212_v26  ;;  %v8041_v8 = vsub.f32 %v14951_v25, %v15212_v26  ;;  %v8042_v58 = vsub.f32 %v14958_v46, %v15212_v26  ;;  %v8044_v63 = vsub.f32 %v14984_v17, %v15212_v26 }
 0x56e   : > { %v8022_v54 = vmax.f32 %v8021_v15, 0.0  ;;  %v16493_v15 = vld [vmem:[#allocation25_spill] sm:$0xff]  ;;  %v8047_v60 = vsub.f32 %v14995_v2, %v15212_v26  ;;  %v8048_v25 = vsub.f32 %v15030_v10, %v15212_v26  ;;  %v8049_v46 = vsub.f32 %v15020_v48, %v15212_v26  ;;  %s15476_s19 = scalar_lea.vmem %s15708_s3, %s9448_s17 }
 0x56f   : > { %v8029_v13 = vsub.f32 %v16493_v15, %v15212_v26  ;;  %v8036_v15 = vsub.f32 %v14931_v50, %v15212_v26  ;;  %v8043_v50 = vsub.f32 %v14976_v7, %v15212_v26  ;;  %v8050_v7 = vsub.f32 %v15015_v34, %v15212_v26 }
 0x570   : > { %v8071_v52 = vadd.f32 1e-05, %v8022_v54  ;;  %v16489_v54 = vld [vmem:[#allocation69_spill] sm:$0xff]  ;;  %v8051_v17 = vsub.f32 %v15036_v23, %v15212_v26  ;;  %v8054_v2 = vsub.f32 %v15058_v4, %v15212_v26  ;;  %v8055_v10 = vsub.f32 %v15067_v57, %v15212_v26 }
 0x571   : > { %v8025_v49 = vsub.f32 %v16489_v54, %v15212_v26  ;;  %v8032_v54 = vsub.f32 %v14902_v59, %v15212_v26  ;;  %v8039_v59 = vsub.f32 %v14936_v1, %v15212_v26  ;;  %v8046_v1 = vsub.f32 %v15003_v20, %v15212_v26 }
 0x572   : > { %9680 = vrsqrt.f32 %v8071_v52  ;;  %v8024_v52 = vsub.f32 %v16488_v30, %v15212_v26  ;;  %v8031_v30 = vsub.f32 %v14879_v19, %v15212_v26  ;;  %v16495_v19 = vld [vmem:[#allocation75_spill] sm:$0xff]  ;;  %v8053_v20 = vsub.f32 %v15034_v51, %v15212_v26 }
 0x573   : > { %v8038_v47 = vsub.f32 %v16495_v19, %v15212_v26  ;;  %v8045_v19 = vsub.f32 %v14980_v6, %v15212_v26  ;;  %v8052_v6 = vsub.f32 %v15061_v9, %v15212_v26  ;;  %v8056_v48 = vsub.f32 %v15088_v29, %v15212_v26 }
 0x574   : > { %v8057_v34 = vsub.f32 %v15080_v43, %v15212_v26  ;;  %v8058_v23 = vsub.f32 %v15086_v39, %v15212_v26  ;;  %v8059_v9 = vsub.f32 %v15105_v21, %v15212_v26  ;;  %v8060_v51 = vsub.f32 %v15123_v24, %v15212_v26  ;;  %v16496_v39 = vld [vmem:[#allocation21_spill] sm:$0xff]  ;;  %v16497_v21 = vld [vmem:[#allocation78_spill] sm:$0xff]  ;;  %v16498_v24 = vld [vmem:[#allocation16_spill] sm:$0xff] }
 0x575   : > { %v8061_v4 = vsub.f32 %v15103_v61, %v15212_v26  ;;  %v8062_v57 = vsub.f32 %v15117_v14, %v15212_v26  ;;  %v8063_v29 = vsub.f32 %v15140_v0, %v15212_v26  ;;  %v8064_v43 = vsub.f32 %v15156_v22, %v15212_v26 }
 0x576   : > { %v8065_v55 = vsub.f32 %v16496_v39, %v15212_v26  ;;  %v8066_v27 = vsub.f32 %v16497_v21, %v15212_v26  ;;  %v8067_v45 = vsub.f32 %v16498_v24, %v15212_v26  ;;  %v8068_v61 = vsub.f32 %v15198_v11, %v15212_v26 }
 0x577   : > { %v8069_v14 = vsub.f32 %v15172_v53, %v15212_v26  ;;  %v8070_v0 = vsub.f32 %v15187_v31, %v15212_v26 }
 0x57f   : > { %v9681_v16 = vpop.eup %9680 }
 0x580   : > { %v8073_v22 = vmul.f32 %v9681_v16, %v8023_v44  ;;  %v8074_v36 = vmul.f32 %v9681_v16, %v8024_v52  ;;  %v8075_v28 = vmul.f32 %v9681_v16, %v8025_v49  ;;  %v8076_v39 = vmul.f32 %v9681_v16, %v8026_v33 }
 0x581   : > { %v8077_v3 = vmul.f32 %v9681_v16, %v8027_v32  ;;  %v8078_v42 = vmul.f32 %v9681_v16, %v8028_v41  ;;  %v8079_v21 = vmul.f32 %v9681_v16, %v8029_v13  ;;  %v8080_v12 = vmul.f32 %v9681_v16, %v8030_v62 }
 0x582   : > { %v8081_v18 = vmul.f32 %v9681_v16, %v8031_v30  ;;  %v8082_v35 = vmul.f32 %v9681_v16, %v8032_v54  ;;  %v8083_v24 = vmul.f32 %v9681_v16, %v8033_v37  ;;  %v8084_v11 = vmul.f32 %v9681_v16, %v8034_v40 }
 0x583   : > { %v8085_v53 = vmul.f32 %v9681_v16, %v8035_v56  ;;  %v8086_v26 = vmul.f32 %v9681_v16, %v8036_v15  ;;  %v8087_v31 = vmul.f32 %v9681_v16, %v8037_v38  ;;  %v8088_v44 = vmul.f32 %v9681_v16, %v8038_v47 }
 0x584   : > { %v8089_v52 = vmul.f32 %v9681_v16, %v8039_v59  ;;  %v8090_v49 = vmul.f32 %v9681_v16, %v8040_v5  ;;  %v8091_v33 = vmul.f32 %v9681_v16, %v8041_v8  ;;  %v8092_v32 = vmul.f32 %v9681_v16, %v8042_v58 }
 0x585   : > { %v8093_v41 = vmul.f32 %v9681_v16, %v8043_v50  ;;  %v8094_v13 = vmul.f32 %v9681_v16, %v8044_v63  ;;  %v8095_v62 = vmul.f32 %v9681_v16, %v8045_v19  ;;  %v8096_v30 = vmul.f32 %v9681_v16, %v8046_v1 }
 0x586   : > { %v15432_v54 = vmul.f32 %v9681_v16, %v8047_v60  ;;  %v15434_v37 = vmul.f32 %v9681_v16, %v8048_v25  ;;  %v15436_v40 = vmul.f32 %v9681_v16, %v8049_v46  ;;  %v15438_v56 = vmul.f32 %v9681_v16, %v8050_v7 }
 0x587   : > { %v15441_v15 = vmul.f32 %v9681_v16, %v8051_v17  ;;  %v15443_v47 = vmul.f32 %v9681_v16, %v8052_v6  ;;  %v15445_v38 = vmul.f32 %v9681_v16, %v8053_v20  ;;  %v15447_v59 = vmul.f32 %v9681_v16, %v8054_v2 }
 0x588   : > { %v15449_v5 = vmul.f32 %v9681_v16, %v8055_v10  ;;  %v15451_v8 = vmul.f32 %v9681_v16, %v8056_v48  ;;  %v15453_v58 = vmul.f32 %v9681_v16, %v8057_v34  ;;  %v15455_v50 = vmul.f32 %v9681_v16, %v8058_v23 }
 0x589   : > { %v15457_v63 = vmul.f32 %v9681_v16, %v8059_v9  ;;  %v15459_v19 = vmul.f32 %v9681_v16, %v8060_v51  ;;  %v15461_v1 = vmul.f32 %v9681_v16, %v8061_v4  ;;  %v15463_v60 = vmul.f32 %v9681_v16, %v8062_v57  ;;  %v16503_v9 = vld [vmem:[#allocation80_spill] sm:$0xff] }
 0x58a   : > { %v15465_v25 = vmul.f32 %v9681_v16, %v8063_v29  ;;  %v15467_v46 = vmul.f32 %v9681_v16, %v8064_v43  ;;  %v15469_v7 = vmul.f32 %v9681_v16, %v8065_v55  ;;  %v15471_v17 = vmul.f32 %v9681_v16, %v8066_v27  ;;  %v16500_v55 = vld [vmem:[#allocation36_spill] sm:$0xff]  ;;  %v16506_v29 = vld [vmem:[#allocation77_spill] sm:$0xff] }
 0x58b   : > { %v15478_v6 = vmul.f32 %v9681_v16, %v8067_v45  ;;  %v15480_v20 = vmul.f32 %v9681_v16, %v8068_v61  ;;  %v15482_v2 = vmul.f32 %v9681_v16, %v8069_v14  ;;  %v15484_v10 = vmul.f32 %v9681_v16, %v8070_v0  ;;  %v16509_v0 = vld [vmem:[#allocation24_spill] sm:$0xff] }
 0x58c   : > { %v16501_v48 = vunpack.c.l.bf16 %v16500_v55  ;;  %v16502_v34 = vunpack.c.h.bf16 %v16500_v55  ;;  %v16504_v51 = vunpack.c.l.bf16 %v16503_v9  ;;  %v16505_v4 = vunpack.c.h.bf16 %v16503_v9 }
 0x58d   : > { %16499 = vst [vmem:[#allocation15_spill] sm:$0xff] %v15484_v10  ;;  %v16507_v43 = vunpack.c.l.bf16 %v16506_v29  ;;  %v16508_v14 = vunpack.c.h.bf16 %v16506_v29  ;;  %v16510_v10 = vunpack.c.l.bf16 %v16509_v0  ;;  %v16511_v55 = vunpack.c.h.bf16 %v16509_v0 }
 0x58e   : > { %v8217_v27 = vadd.f32 %v16501_v48, %v8073_v22  ;;  %v8218_v23 = vadd.f32 %v16502_v34, %v8074_v36  ;;  %v8219_v45 = vadd.f32 %v16504_v51, %v8075_v28  ;;  %v8220_v57 = vadd.f32 %v16505_v4, %v8076_v39  ;;  %v16512_v48 = vld [vmem:[#allocation82_spill] sm:$0xff] }
 0x58f   : > { %v8221_v61 = vadd.f32 %v16507_v43, %v8077_v3  ;;  %v8222_v16 = vadd.f32 %v16508_v14, %v8078_v42  ;;  %v8223_v22 = vadd.f32 %v16510_v10, %v8079_v21  ;;  %v8224_v36 = vadd.f32 %v16511_v55, %v8080_v12  ;;  %v16515_v3 = vld [vmem:[#allocation31_spill] sm:$0xff]  ;;  %v16521_v10 = vld [vmem:[#allocation84_spill] sm:$0xff] }
 0x590   : > { %v16513_v28 = vunpack.c.l.bf16 %v16512_v48  ;;  %v16514_v39 = vunpack.c.h.bf16 %v16512_v48  ;;  %v16516_v51 = vunpack.c.l.bf16 %v16515_v3  ;;  %v16517_v42 = vunpack.c.h.bf16 %v16515_v3  ;;  %8265 = vst.msk [vmem:[%s15476_s19] sm:$0xff] %vm751_vm3, %v8217_v27  ;;  %8266 = vst.msk [vmem:[%s15476_s19 + $0x8] sm:$0xff] %vm751_vm3, %v8218_v23 }
 0x591   : > { %8267 = vst.msk [vmem:[%s15476_s19 + $0x10] sm:$0xff] %vm751_vm3, %v8219_v45  ;;  %8268 = vst.msk [vmem:[%s15476_s19 + $0x18] sm:$0xff] %vm751_vm3, %v8220_v57  ;;  %v16523_v27 = vunpack.c.h.bf16 %v16521_v10  ;;  %v16527_v57 = vld [vmem:[#allocation40_spill] sm:$0xff] }
 0x592   : > { %v8225_v34 = vadd.f32 %v16513_v28, %v8081_v18  ;;  %v8226_v9 = vadd.f32 %v16514_v39, %v8082_v35  ;;  %v8227_v4 = vadd.f32 %v16516_v51, %v8083_v24  ;;  %v8228_v29 = vadd.f32 %v16517_v42, %v8084_v11  ;;  %v16518_v18 = vld [vmem:[#allocation79_spill] sm:$0xff]  ;;  %8269 = vst.msk [vmem:[%s15476_s19 + $0x20] sm:$0xff] %vm751_vm3, %v8221_v61 }
 0x593   : > { %v16519_v12 = vunpack.c.l.bf16 %v16518_v18  ;;  %v16520_v21 = vunpack.c.h.bf16 %v16518_v18  ;;  %v16522_v11 = vunpack.c.l.bf16 %v16521_v10  ;;  %v8232_v14 = vadd.f32 %v16523_v27, %v8088_v44  ;;  %8270 = vst.msk [vmem:[%s15476_s19 + $0x28] sm:$0xff] %vm751_vm3, %v8222_v16  ;;  %8271 = vst.msk [vmem:[%s15476_s19 + $0x30] sm:$0xff] %vm751_vm3, %v8223_v22  ;;  %v16545_v18 = vld [vmem:[#allocation86_spill] sm:$0xff] }
 0x594   : > { %8272 = vst.msk [vmem:[%s15476_s19 + $0x38] sm:$0xff] %vm751_vm3, %v8224_v36  ;;  %v16528_v44 = vunpack.c.l.bf16 %v16527_v57  ;;  %v16529_v61 = vunpack.c.h.bf16 %v16527_v57  ;;  %8273 = vst.msk [vmem:[%s15476_s19 + $0x40] sm:$0xff] %vm751_vm3, %v8225_v34  ;;  %v16533_v36 = vld [vmem:[#allocation83_spill] sm:$0xff] }
 0x595   : > { %v8229_v35 = vadd.f32 %v16519_v12, %v8085_v53  ;;  %v8230_v24 = vadd.f32 %v16520_v21, %v8086_v26  ;;  %v8231_v43 = vadd.f32 %v16522_v11, %v8087_v31  ;;  %v16524_v53 = vld [vmem:[#allocation81_spill] sm:$0xff]  ;;  %8274 = vst.msk [vmem:[%s15476_s19 + $0x48] sm:$0xff] %vm751_vm3, %v8226_v9  ;;  %8275 = vst.msk [vmem:[%s15476_s19 + $0x50] sm:$0xff] %vm751_vm3, %v8227_v4  ;;  %v16535_v28 = vunpack.c.h.bf16 %v16533_v36  ;;  %v16551_v11 = vld [vmem:[#allocation28_spill] sm:$0xff] }
 0x596   : > { %v16525_v23 = vunpack.c.l.bf16 %v16524_v53  ;;  %v16526_v31 = vunpack.c.h.bf16 %v16524_v53  ;;  %v8235_v0 = vadd.f32 %v16528_v44, %v8091_v33  ;;  %v8236_v55 = vadd.f32 %v16529_v61, %v8092_v32  ;;  %8276 = vst.msk [vmem:[%s15476_s19 + $0x58] sm:$0xff] %vm751_vm3, %v8228_v29  ;;  %8280 = vst.msk [vmem:[%s15476_s19 + $0x78] sm:$0xff] %vm751_vm3, %v8232_v14  ;;  %v16539_v9 = vld [vmem:[#allocation37_spill] sm:$0xff]  ;;  %v16563_v61 = vld [vmem:[#allocation66_spill] sm:$0xff] }
 0x597   : > { %v16534_v32 = vunpack.c.l.bf16 %v16533_v36  ;;  %v8240_v34 = vadd.f32 %v16535_v28, %v8096_v30  ;;  %8277 = vst.msk [vmem:[%s15476_s19 + $0x60] sm:$0xff] %vm751_vm3, %v8229_v35  ;;  %8278 = vst.msk [vmem:[%s15476_s19 + $0x68] sm:$0xff] %vm751_vm3, %v8230_v24  ;;  %v16540_v3 = vunpack.c.l.bf16 %v16539_v9  ;;  %v16541_v4 = vunpack.c.h.bf16 %v16539_v9 }
 0x598   : > { %v8233_v26 = vadd.f32 %v16525_v23, %v8089_v52  ;;  %v8234_v45 = vadd.f32 %v16526_v31, %v8090_v49  ;;  %v16530_v52 = vld [vmem:[#allocation39_spill] sm:$0xff]  ;;  %8279 = vst.msk [vmem:[%s15476_s19 + $0x70] sm:$0xff] %vm751_vm3, %v8231_v43  ;;  %8283 = vst.msk [vmem:[%s15476_s19 + $0x90] sm:$0xff] %vm751_vm3, %v8235_v0  ;;  %v16546_v12 = vunpack.c.l.bf16 %v16545_v18  ;;  %v16547_v21 = vunpack.c.h.bf16 %v16545_v18 }
 0x599   : > { %v16531_v16 = vunpack.c.l.bf16 %v16530_v52  ;;  %v16532_v33 = vunpack.c.h.bf16 %v16530_v52  ;;  %v8239_v48 = vadd.f32 %v16534_v32, %v8095_v62  ;;  %v8243_v51 = vadd.f32 %v16540_v3, %v15436_v40  ;;  %8284 = vst.msk [vmem:[%s15476_s19 + $0x98] sm:$0xff] %vm751_vm3, %v8236_v55  ;;  %8288 = vst.msk [vmem:[%s15476_s19 + $0xb8] sm:$0xff] %vm751_vm3, %v8240_v34 }
 0x59a   : > { %v8244_v42 = vadd.f32 %v16541_v4, %v15438_v56  ;;  %8281 = vst.msk [vmem:[%s15476_s19 + $0x80] sm:$0xff] %vm751_vm3, %v8233_v26  ;;  %8282 = vst.msk [vmem:[%s15476_s19 + $0x88] sm:$0xff] %vm751_vm3, %v8234_v45  ;;  %v8247_v35 = vadd.f32 %v16546_v12, %v15445_v38  ;;  %v8248_v24 = vadd.f32 %v16547_v21, %v15447_v59  ;;  %v16552_v43 = vunpack.c.l.bf16 %v16551_v11  ;;  %v16557_v26 = vld [vmem:[#allocation29_spill] sm:$0xff] }
 0x59b   : > { %v8237_v49 = vadd.f32 %v16531_v16, %v8093_v41  ;;  %v8238_v22 = vadd.f32 %v16532_v33, %v8094_v13  ;;  %v16536_v41 = vld [vmem:[#allocation22_spill] sm:$0xff]  ;;  %8287 = vst.msk [vmem:[%s15476_s19 + $0xb0] sm:$0xff] %vm751_vm3, %v8239_v48  ;;  %v16553_v14 = vunpack.c.h.bf16 %v16551_v11  ;;  %8291 = vst.msk [vmem:[%s15476_s19 + $0xd0] sm:$0xff] %vm751_vm3, %v8243_v51  ;;  %v16558_v31 = vunpack.c.l.bf16 %v16557_v26  ;;  %v16571_v48 = vld [vmem:[#allocation15_spill] sm:$0xff] }
 0x59c   : > { %v16537_v13 = vunpack.c.l.bf16 %v16536_v41  ;;  %v16538_v62 = vunpack.c.h.bf16 %v16536_v41  ;;  %v8251_v27 = vadd.f32 %v16552_v43, %v15453_v58  ;;  %8292 = vst.msk [vmem:[%s15476_s19 + $0xd8] sm:$0xff] %vm751_vm3, %v8244_v42  ;;  %v16559_v57 = vunpack.c.h.bf16 %v16557_v26  ;;  %8295 = vst.msk [vmem:[%s15476_s19 + $0xf0] sm:$0xff] %vm751_vm3, %v8247_v35 }
 0x59d   : > { %8285 = vst.msk [vmem:[%s15476_s19 + $0xa0] sm:$0xff] %vm751_vm3, %v8237_v49  ;;  %8286 = vst.msk [vmem:[%s15476_s19 + $0xa8] sm:$0xff] %vm751_vm3, %v8238_v22  ;;  %v8252_v53 = vadd.f32 %v16553_v14, %v15455_v50  ;;  %v8255_v45 = vadd.f32 %v16558_v31, %v15461_v1  ;;  %v16564_v55 = vunpack.c.l.bf16 %v16563_v61  ;;  %v16565_v16 = vunpack.c.h.bf16 %v16563_v61  ;;  %v16569_v22 = vld [vmem:[#allocation53_spill] sm:$0xff] }
 0x59e   : > { %v8241_v39 = vadd.f32 %v16537_v13, %v15432_v54  ;;  %v8242_v30 = vadd.f32 %v16538_v62, %v15434_v37  ;;  %v16542_v54 = vld [vmem:[#allocation85_spill] sm:$0xff]  ;;  %v8256_v44 = vadd.f32 %v16559_v57, %v15463_v60  ;;  %8296 = vst.msk [vmem:[%s15476_s19 + $0xf8] sm:$0xff] %vm751_vm3, %v8248_v24  ;;  %8299 = vst.msk [vmem:[%s15476_s19 + $0x110] sm:$0xff] %vm751_vm3, %v8251_v27  ;;  %v16570_v36 = vunpack.c.l.bf16 %v16569_v22 }
 0x59f   : > { %v16543_v37 = vunpack.c.l.bf16 %v16542_v54  ;;  %v16544_v29 = vunpack.c.h.bf16 %v16542_v54  ;;  %v8259_v52 = vadd.f32 %v16564_v55, %v15469_v7  ;;  %v8260_v49 = vadd.f32 %v16565_v16, %v15471_v17  ;;  %8300 = vst.msk [vmem:[%s15476_s19 + $0x118] sm:$0xff] %vm751_vm3, %v8252_v53  ;;  %8303 = vst.msk [vmem:[%s15476_s19 + $0x130] sm:$0xff] %vm751_vm3, %v8255_v45 }
 0x5a0   : > { %8289 = vst.msk [vmem:[%s15476_s19 + $0xc0] sm:$0xff] %vm751_vm3, %v8241_v39  ;;  %8290 = vst.msk [vmem:[%s15476_s19 + $0xc8] sm:$0xff] %vm751_vm3, %v8242_v30  ;;  %v8263_v32 = vadd.f32 %v16570_v36, %v15482_v2  ;;  %v16572_v28 = vunpack.c.h.bf16 %v16569_v22 }
 0x5a1   : > { %v8245_v40 = vadd.f32 %v16543_v37, %v15441_v15  ;;  %v8246_v56 = vadd.f32 %v16544_v29, %v15443_v47  ;;  %v16548_v15 = vld [vmem:[#allocation30_spill] sm:$0xff]  ;;  %8304 = vst.msk [vmem:[%s15476_s19 + $0x138] sm:$0xff] %vm751_vm3, %v8256_v44  ;;  %8307 = vst.msk [vmem:[%s15476_s19 + $0x150] sm:$0xff] %vm751_vm3, %v8259_v52 }
 0x5a2   : > { %v16549_v47 = vunpack.c.l.bf16 %v16548_v15  ;;  %v16550_v10 = vunpack.c.h.bf16 %v16548_v15  ;;  %v8264_v34 = vadd.f32 %v16572_v28, %v16571_v48  ;;  %8308 = vst.msk [vmem:[%s15476_s19 + $0x158] sm:$0xff] %vm751_vm3, %v8260_v49  ;;  %8311 = vst.msk [vmem:[%s15476_s19 + $0x170] sm:$0xff] %vm751_vm3, %v8263_v32 }
 0x5a3   : > { %8293 = vst.msk [vmem:[%s15476_s19 + $0xe0] sm:$0xff] %vm751_vm3, %v8245_v40  ;;  %8294 = vst.msk [vmem:[%s15476_s19 + $0xe8] sm:$0xff] %vm751_vm3, %v8246_v56 }
 0x5a4   : > { %v8249_v38 = vadd.f32 %v16549_v47, %v15449_v5  ;;  %v8250_v59 = vadd.f32 %v16550_v10, %v15451_v8  ;;  %v16554_v5 = vld [vmem:[#allocation14_spill] sm:$0xff]  ;;  %8312 = vst.msk [vmem:[%s15476_s19 + $0x178] sm:$0xff] %vm751_vm3, %v8264_v34 }
 0x5a5   : > { %v16555_v8 = vunpack.c.l.bf16 %v16554_v5  ;;  %v16556_v23 = vunpack.c.h.bf16 %v16554_v5 }
 0x5a6   : > { %8297 = vst.msk [vmem:[%s15476_s19 + $0x100] sm:$0xff] %vm751_vm3, %v8249_v38  ;;  %8298 = vst.msk [vmem:[%s15476_s19 + $0x108] sm:$0xff] %vm751_vm3, %v8250_v59 }
 0x5a7   : > { %v8253_v58 = vadd.f32 %v16555_v8, %v15457_v63  ;;  %v8254_v50 = vadd.f32 %v16556_v23, %v15459_v19  ;;  %v16560_v63 = vld [vmem:[#allocation44_spill] sm:$0xff] }
 0x5a8   : > { %v16561_v19 = vunpack.c.l.bf16 %v16560_v63  ;;  %v16562_v0 = vunpack.c.h.bf16 %v16560_v63 }
 0x5a9   : > { %8301 = vst.msk [vmem:[%s15476_s19 + $0x120] sm:$0xff] %vm751_vm3, %v8253_v58  ;;  %8302 = vst.msk [vmem:[%s15476_s19 + $0x128] sm:$0xff] %vm751_vm3, %v8254_v50 }
 0x5aa   : > { %v8257_v1 = vadd.f32 %v16561_v19, %v15465_v25  ;;  %v8258_v60 = vadd.f32 %v16562_v0, %v15467_v46  ;;  %v16566_v25 = vld [vmem:[#allocation13_spill] sm:$0xff] }
 0x5ab   : > { %v16567_v46 = vunpack.c.l.bf16 %v16566_v25  ;;  %v16568_v17 = vunpack.c.h.bf16 %v16566_v25 }
 0x5ac   : > { %8305 = vst.msk [vmem:[%s15476_s19 + $0x140] sm:$0xff] %vm751_vm3, %v8257_v1  ;;  %8306 = vst.msk [vmem:[%s15476_s19 + $0x148] sm:$0xff] %vm751_vm3, %v8258_v60 }
 0x5ad   : > { %v8261_v7 = vadd.f32 %v16567_v46, %v15478_v6  ;;  %v8262_v33 = vadd.f32 %v16568_v17, %v15480_v20 }
 0x5af   : > { %8309 = vst.msk [vmem:[%s15476_s19 + $0x160] sm:$0xff] %vm751_vm3, %v8261_v7  ;;  %8310 = vst.msk [vmem:[%s15476_s19 + $0x168] sm:$0xff] %vm751_vm3, %v8262_v33 }
 0x5b0 PF: > { %s13_s12 = sadd.s32 1, %s9796_s12  }
 0x5b1   : > { %p10_p4 = scmp.ge.s32.totalorder %s13_s12, 4  }
 0x5b3   :  { %12 = sbr.rel (!%p10_p4) target bundleno = 1 (0x1), region = 66 }

</bundles_post_ra>
